<compile_context>
chip_gen: v5e
topology: v5e:2x2
jax: 0.10.0
libtpu: 0.0.40
codegen_flags: <defaults>
</compile_context>

<pallas_src>
import numpy as np

import jax
import jax.numpy as jnp
from jax.experimental import pallas as pl
from jax.experimental.pallas import tpu as pltpu

# ---------------------------------------------------------------------------
# Constants
# ---------------------------------------------------------------------------
MXU_DTYPE = jnp.bfloat16
VMEM_LIMIT_BYTES = 32 * 1024 * 1024   # explicit scoped-VMEM limit (v5e default
                                      # is 16 MiB; v7x physical is 64 MiB)
CAP_ROWS_CONV1 = 1024                 # conv1 rows/step: 2 x ~1 MiB input blocks
CAP_ROWS_FC = 512                     # images/step for conv2+fc: ~1.3 MiB block


def _round_up(v, m):
    return (v + m - 1) // m * m


def _pick_row_tile(rows, cap):
    """8-aligned row tile, capped by a VMEM budget, and small enough to give
    >= 2 grid steps whenever the row count allows (so "parallel" can feed both
    TensorCores on v7x); finally rebalanced so padding stays minimal."""
    rows8 = _round_up(max(rows, 8), 8)
    tile = min(cap, rows8)
    if rows8 >= 16 and tile > rows8 // 2:
        tile = _round_up(-(-rows8 // 2), 8)
    steps = -(-rows8 // tile)
    tile = _round_up(-(-rows8 // steps), 8)
    return tile, tile * steps


def _pad_rows(a, padded_rows):
    pad = padded_rows - a.shape[0]
    return a if pad == 0 else jnp.pad(a, ((0, pad), (0, 0)))


# ---------------------------------------------------------------------------
# Pallas kernels
# ---------------------------------------------------------------------------
def _conv1_pool_kernel(l0_ref, l1_ref, w_ref, b_ref, o_ref):
    """conv1 + bias + ReLU + 2x2/2 max-pool for one tile of (n, ph1) rows.

    l0_ref/l1_ref : (T, 512) bf16 -- row-band LHS for pool row offset dy=0/1,
                    lanes = (c, ki, iw) (480 real).
    w_ref         : (512, 256) bf16 -- banded conv1 weight; columns [0:128]
                    are pool column offset dx=0, [128:256] dx=1; within each
                    half the 84 real lanes are (pw1, oc).
    b_ref         : (1, 128) f32 -- bias tiled over pw1.
    o_ref         : (T, 128) bf16 -- pooled activation, lanes (pw1*6 + oc).
    """
    w = w_ref[...]
    y0 = jnp.dot(l0_ref[...], w, preferred_element_type=jnp.float32)  # dy = 0
    y1 = jnp.dot(l1_ref[...], w, preferred_element_type=jnp.float32)  # dy = 1
    m = jnp.maximum(jnp.maximum(y0[:, :128], y0[:, 128:]),
                    jnp.maximum(y1[:, :128], y1[:, 128:]))
    # relu(max_i(conv_i) + b) == maxpool2x2(relu(conv + b))  (bias per-channel,
    # ReLU monotone), so bias/ReLU are applied once after the pool-max.
    o_ref[...] = jnp.maximum(m + b_ref[...], 0.0).astype(o_ref.dtype)


def _conv2_fc_kernel(x_ref, w2_ref, b2_ref, f1_ref, g1_ref, f2_ref, g2_ref,
                     f3_ref, g3_ref, o_ref):
    """conv2 + bias + ReLU + 2x2/2 max-pool + fc1 + ReLU + fc2 + ReLU + fc3,
    fully fused for one tile of images.

    x_ref  : (T, 1280) bf16 -- flattened conv1 activation, lanes
             (ph1*84 + pw1*6 + c), 1176 real.
    w2_ref : (4, 1280, 512) bf16 -- one absorbed conv2(+pool-offset) weight
             per pool member (dy2, dx2); output lanes (ph2*80 + pw2*16 + oc2).
    b2_ref : (1, 512) f32 -- conv2 bias tiled over the 25 spatial positions.
    f*/g*  : repacked fc weights (bf16) / biases (f32).
    o_ref  : (T, 128) f32 -- logits (10 real lanes).
    """
    x = x_ref[...]
    m = jnp.dot(x, w2_ref[0], preferred_element_type=jnp.float32)
    for k in range(1, 4):                                  # static unroll
        m = jnp.maximum(m, jnp.dot(x, w2_ref[k],
                                   preferred_element_type=jnp.float32))
    h2 = jnp.maximum(m + b2_ref[...], 0.0).astype(MXU_DTYPE)      # (T, 512)
    a = jnp.dot(h2, f1_ref[...], preferred_element_type=jnp.float32)
    a = jnp.maximum(a + g1_ref[...], 0.0).astype(MXU_DTYPE)       # (T, 128)
    a = jnp.dot(a, f2_ref[...], preferred_element_type=jnp.float32)
    a = jnp.maximum(a + g2_ref[...], 0.0).astype(MXU_DTYPE)       # (T, 128)
    a = jnp.dot(a, f3_ref[...], preferred_element_type=jnp.float32)
    o_ref[...] = (a + g3_ref[...]).astype(o_ref.dtype)


# ---------------------------------------------------------------------------
# pallas_call wrappers (row-gridded, "parallel" for megacore / v7x)
# ---------------------------------------------------------------------------
def conv1_pool(l0, l1, w, b, tile_r):
    M = l0.shape[0]
    assert M % tile_r == 0 and tile_r % 8 == 0
    return pl.pallas_call(
        _conv1_pool_kernel,
        out_shape=jax.ShapeDtypeStruct((M, 128), MXU_DTYPE),
        grid=(M // tile_r,),
        in_specs=[
            pl.BlockSpec((tile_r, 512), lambda i: (i, 0)),
            pl.BlockSpec((tile_r, 512), lambda i: (i, 0)),
            pl.BlockSpec((512, 256), lambda i: (0, 0)),
            pl.BlockSpec((1, 128), lambda i: (0, 0)),
        ],
        out_specs=pl.BlockSpec((tile_r, 128), lambda i: (i, 0)),
        compiler_params=pltpu.CompilerParams(
            dimension_semantics=("parallel",),
            vmem_limit_bytes=VMEM_LIMIT_BYTES),
    )(l0, l1, w, b)


def conv2_pool_fc(x, w2, b2, f1, g1, f2, g2, f3, g3, tile_b):
    B = x.shape[0]
    assert B % tile_b == 0 and tile_b % 8 == 0
    full = lambda a: pl.BlockSpec(a.shape, lambda i: (0,) * a.ndim)
    return pl.pallas_call(
        _conv2_fc_kernel,
        out_shape=jax.ShapeDtypeStruct((B, 128), jnp.float32),
        grid=(B // tile_b,),
        in_specs=[
            pl.BlockSpec((tile_b, 1280), lambda i: (i, 0)),
            full(w2), full(b2), full(f1), full(g1),
            full(f2), full(g2), full(f3), full(g3),
        ],
        out_specs=pl.BlockSpec((tile_b, 128), lambda i: (i, 0)),
        compiler_params=pltpu.CompilerParams(
            dimension_semantics=("parallel",),
            vmem_limit_bytes=VMEM_LIMIT_BYTES),
    )(x, w2, b2, f1, g1, f2, g2, f3, g3)


# ---------------------------------------------------------------------------
# Parameters: torch layout -> one-time repack into banded / permuted operands
# ---------------------------------------------------------------------------
def init_torch_like_params(seed=0):
    """Synthetic params in the PyTorch layout: weights ~ N(0, 0.1), biases 0
    (mirrors Simplenet._init_weights; the exact torch RNG stream is not
    reproduced).  self.linear = nn.Linear(3, 3) is never used in forward()
    and is intentionally omitted."""
    ks = jax.random.split(jax.random.PRNGKey(seed), 5)
    std = 0.1
    return {
        "conv1_w": jax.random.normal(ks[0], (6, 3, 5, 5), jnp.float32) * std,
        "conv1_b": jnp.zeros((6,), jnp.float32),
        "conv2_w": jax.random.normal(ks[1], (16, 6, 5, 5), jnp.float32) * std,
        "conv2_b": jnp.zeros((16,), jnp.float32),
        "fc1_w": jax.random.normal(ks[2], (120, 400), jnp.float32) * std,
        "fc1_b": jnp.zeros((120,), jnp.float32),
        "fc2_w": jax.random.normal(ks[3], (84, 120), jnp.float32) * std,
        "fc2_b": jnp.zeros((84,), jnp.float32),
        "fc3_w": jax.random.normal(ks[4], (10, 84), jnp.float32) * std,
        "fc3_b": jnp.zeros((10,), jnp.float32),
    }


def prepare_params(tp):
    """One-time host-side repack (numpy) of the torch-layout weights into the
    banded / absorbed-pooling operands consumed by the kernels."""
    w1 = np.asarray(tp["conv1_w"], np.float32)   # (6, 3, 5, 5)  (oc, c, ki, kj)
    b1 = np.asarray(tp["conv1_b"], np.float32)
    w2 = np.asarray(tp["conv2_w"], np.float32)   # (16, 6, 5, 5)
    b2 = np.asarray(tp["conv2_b"], np.float32)
    f1 = np.asarray(tp["fc1_w"], np.float32)     # (120, 400)
    f2 = np.asarray(tp["fc2_w"], np.float32)     # (84, 120)
    f3 = np.asarray(tp["fc3_w"], np.float32)     # (10, 84)

    # conv1 banded weight: rows t = (c*5 + ki)*32 + iw (480 real of 512),
    # cols = dx*128 + pw1*6 + oc (two pool column offsets side by side, so a
    # single matmul uses 256 MXU columns on v6e/v7x).
    W1 = np.zeros((512, 256), np.float32)
    for dx in range(2):
        for pw in range(14):
            for kj in range(5):
                iw = 2 * pw + dx + kj
                rows = np.array([(c * 5 + ki) * 32 + iw
                                 for c in range(3) for ki in range(5)])
                blk = w1[:, :, :, kj].transpose(1, 2, 0).reshape(15, 6)
                W1[rows, dx * 128 + pw * 6: dx * 128 + pw * 6 + 6] = blk
    b1row = np.zeros((1, 128), np.float32)
    b1row[0, :84] = np.tile(b1, 14)

    # conv2 absorbed weights: one (1280, 512) matrix per pool member (dy2,dx2).
    # Input lanes u = ph1*84 + pw1*6 + c (1176 real), output lanes
    # v = ph2*80 + pw2*16 + oc2 (400 real).
    W2 = np.zeros((4, 1280, 512), np.float32)
    for m, (dy, dx) in enumerate(((0, 0), (0, 1), (1, 0), (1, 1))):
        for ph2 in range(5):
            for pw2 in range(5):
                v0 = ph2 * 80 + pw2 * 16
                for ki in range(5):
                    for kj in range(5):
                        u0 = (2 * ph2 + dy + ki) * 84 + (2 * pw2 + dx + kj) * 6
                        W2[m, u0:u0 + 6, v0:v0 + 16] = w2[:, :, ki, kj].T
    b2row = np.zeros((1, 512), np.float32)
    b2row[0, :400] = np.tile(b2, 25)

    # fc1: torch consumes the NCHW flatten a = oc2*25 + ph2*5 + pw2; repack to
    # our v = ph2*80 + pw2*16 + oc2 lane order.  (512, 128) = 131 KB.
    F1 = np.zeros((512, 128), np.float32)
    v_idx, a_idx = [], []
    for ph2 in range(5):
        for pw2 in range(5):
            for oc2 in range(16):
                v_idx.append(ph2 * 80 + pw2 * 16 + oc2)
                a_idx.append(oc2 * 25 + ph2 * 5 + pw2)
    F1[np.array(v_idx), :120] = f1[:, np.array(a_idx)].T
    F2 = np.zeros((128, 128), np.float32); F2[:120, :84] = f2.T
    F3 = np.zeros((128, 128), np.float32); F3[:84, :10] = f3.T

    def bias_row(b, n):
        out = np.zeros((1, n), np.float32)
        out[0, :b.shape[0]] = np.asarray(b, np.float32)
        return jnp.asarray(out)

    return {
        "w1": jnp.asarray(W1, MXU_DTYPE), "b1": jnp.asarray(b1row),
        "w2": jnp.asarray(W2, MXU_DTYPE), "b2": jnp.asarray(b2row),
        "f1": jnp.asarray(F1, MXU_DTYPE), "g1": bias_row(tp["fc1_b"], 128),
        "f2": jnp.asarray(F2, MXU_DTYPE), "g2": bias_row(tp["fc2_b"], 128),
        "f3": jnp.asarray(F3, MXU_DTYPE), "g3": bias_row(tp["fc3_b"], 128),
    }


# ---------------------------------------------------------------------------
# Forward pass (2 Pallas launches: conv1+pool, conv2+pool+fc1+fc2+fc3)
# ---------------------------------------------------------------------------
def simplenet_forward(params, x):
    """x: (N, 3, 32, 32) float32 NCHW. Returns (N, 10) float32 logits."""
    N = x.shape[0]
    xb = x.astype(MXU_DTYPE)

    # conv1 "row band" LHS, one per pooled-row phase dy: rows (n, ph1), lanes
    # (c, ki, iw) = 480 real of 512 (~29 KB/img instead of the old ~200 KB
    # pool-grouped im2col; kj taps + pool column offsets live in the weight).
    phases = []
    for dy in range(2):
        slabs = [xb[:, :, dy + ki: dy + ki + 27: 2, :] for ki in range(5)]
        band = jnp.stack(slabs, axis=2)                    # (N, 3, 5, 14, 32)
        band = band.transpose(0, 3, 1, 2, 4).reshape(N * 14, 480)
        phases.append(jnp.pad(band, ((0, 0), (0, 512 - 480))))

    rows1 = N * 14
    tile1, padded1 = _pick_row_tile(rows1, CAP_ROWS_CONV1)
    h1 = conv1_pool(_pad_rows(phases[0], padded1),
                    _pad_rows(phases[1], padded1),
                    params["w1"], params["b1"], tile1)      # (padded1, 128)

    # Flatten the pooled conv1 activation to 1176 real lanes (ph1, pw1, c):
    # ~2.5 KB/img, the only inter-kernel HBM traffic besides the logits.
    hflat = h1[:rows1].reshape(N, 14, 128)[:, :, :84].reshape(N, 14 * 84)
    hflat = jnp.pad(hflat, ((0, 0), (0, 1280 - 1176)))

    tile2, padded2 = _pick_row_tile(N, CAP_ROWS_FC)
    logits = conv2_pool_fc(_pad_rows(hflat, padded2),
                           params["w2"], params["b2"],
                           params["f1"], params["g1"],
                           params["f2"], params["g2"],
                           params["f3"], params["g3"], tile2)
    return logits[:N, :10]        # padded batch rows carry garbage: slice off


# ---------------------------------------------------------------------------
# Pure-JAX reference of the torch module (numerical sanity check)
# ---------------------------------------------------------------------------
def reference_forward(tp, x):
    def conv(h, w, b):
        y = jax.lax.conv_general_dilated(
            h, w, window_strides=(1, 1), padding="VALID",
            dimension_numbers=("NCHW", "OIHW", "NCHW"))
        return jax.nn.relu(y + b.reshape(1, -1, 1, 1))

    def pool(h):
        return jax.lax.reduce_window(h, -jnp.inf, jax.lax.max,
                                     (1, 1, 2, 2), (1, 1, 2, 2), "VALID")

    h = pool(conv(x, tp["conv1_w"], tp["conv1_b"]))
    h = pool(conv(h, tp["conv2_w"], tp["conv2_b"]))
    h = h.reshape(h.shape[0], -1)                    # NCHW flatten
    h = jax.nn.relu(h @ tp["fc1_w"].T + tp["fc1_b"])
    h = jax.nn.relu(h @ tp["fc2_w"].T + tp["fc2_b"])
    return h @ tp["fc3_w"].T + tp["fc3_b"]


if __name__ == "__main__":
    torch_params = init_torch_like_params(seed=0)
    params = prepare_params(torch_params)
    # fc1 (16*5*5 inputs) implies 3x32x32 CIFAR-sized images.
    x = jax.random.normal(jax.random.PRNGKey(0), (2, 3, 32, 32), jnp.float32)

    fwd = jax.jit(simplenet_forward)
    out = jax.block_until_ready(fwd(params, x))

    assert out.shape == (2, 10), out.shape
    assert out.dtype == jnp.float32
    assert bool(jnp.all(jnp.isfinite(out)))

    # Numerical sanity vs the f32 XLA reference (bf16 MXU operands -> loose tol)
    ref = reference_forward(torch_params, x)
    rel = float(jnp.linalg.norm(out - ref) / (jnp.linalg.norm(ref) + 1e-6))
    assert rel < 5e-2, f"relative error too large: {rel}"

    print("KERNEL_OK")
</pallas_src>

<mosaic_0001>
module attributes {stable_mosaic.version = 11 : i64} {
  func.func @_conv1_pool_kernel(%arg0: i32, %arg1: memref<16x512xbf16, #tpu.memory_space<vmem>>, %arg2: memref<16x512xbf16, #tpu.memory_space<vmem>>, %arg3: memref<512x256xbf16, #tpu.memory_space<vmem>>, %arg4: memref<1x128xf32, #tpu.memory_space<vmem>>, %arg5: memref<16x128xbf16, #tpu.memory_space<vmem>>) attributes {dimension_semantics = [#tpu.dimension_semantics<parallel>], iteration_bounds = array<i64: 2>, scalar_prefetch = 0 : i64, scratch_operands = 0 : i64, tpu.core_type = #tpu.core_type<tc>, window_params = [{transform_indices = @transform_0, window_bounds = array<i64: 16, 512>}, {transform_indices = @transform_1, window_bounds = array<i64: 16, 512>}, {pipeline_mode = #tpu.pipeline_mode<synchronous>, transform_indices = @transform_2, window_bounds = array<i64: 512, 256>}, {pipeline_mode = #tpu.pipeline_mode<synchronous>, transform_indices = @transform_3, window_bounds = array<i64: 1, 128>}, {transform_indices = @transform_4, window_bounds = array<i64: 16, 128>}]} {
    %c0 = arith.constant 0 : index
    %c0_0 = arith.constant 0 : index
    %0 = vector.load %arg3[%c0, %c0_0] : memref<512x256xbf16, #tpu.memory_space<vmem>>, vector<512x256xbf16>
    %c0_1 = arith.constant 0 : index
    %c0_2 = arith.constant 0 : index
    %1 = vector.load %arg1[%c0_1, %c0_2] : memref<16x512xbf16, #tpu.memory_space<vmem>>, vector<16x512xbf16>
    %cst = arith.constant dense<0.000000e+00> : vector<16x256xf32>
    %2 = tpu.matmul %1, %0, %cst {dimension_numbers = #tpu.dot_dimension_numbers<[1], [0], [0], [1], [0, 0, 1, 1], [], []>} : vector<16x512xbf16>, vector<512x256xbf16>, vector<16x256xf32> -> vector<16x256xf32>
    %c0_3 = arith.constant 0 : index
    %c0_4 = arith.constant 0 : index
    %3 = vector.load %arg2[%c0_3, %c0_4] : memref<16x512xbf16, #tpu.memory_space<vmem>>, vector<16x512xbf16>
    %cst_5 = arith.constant dense<0.000000e+00> : vector<16x256xf32>
    %4 = tpu.matmul %3, %0, %cst_5 {dimension_numbers = #tpu.dot_dimension_numbers<[1], [0], [0], [1], [0, 0, 1, 1], [], []>} : vector<16x512xbf16>, vector<512x256xbf16>, vector<16x256xf32> -> vector<16x256xf32>
    %5 = vector.extract_strided_slice %2 {offsets = [0, 0], sizes = [16, 128], strides = [1, 1]} : vector<16x256xf32> to vector<16x128xf32>
    %6 = vector.extract_strided_slice %2 {offsets = [0, 128], sizes = [16, 128], strides = [1, 1]} : vector<16x256xf32> to vector<16x128xf32>
    %7 = arith.maximumf %5, %6 : vector<16x128xf32>
    %8 = vector.extract_strided_slice %4 {offsets = [0, 0], sizes = [16, 128], strides = [1, 1]} : vector<16x256xf32> to vector<16x128xf32>
    %9 = vector.extract_strided_slice %4 {offsets = [0, 128], sizes = [16, 128], strides = [1, 1]} : vector<16x256xf32> to vector<16x128xf32>
    %10 = arith.maximumf %8, %9 : vector<16x128xf32>
    %11 = arith.maximumf %7, %10 : vector<16x128xf32>
    %c0_6 = arith.constant 0 : index
    %c0_7 = arith.constant 0 : index
    %12 = vector.load %arg4[%c0_6, %c0_7] : memref<1x128xf32, #tpu.memory_space<vmem>>, vector<1x128xf32>
    %13 = vector.broadcast %12 : vector<1x128xf32> to vector<16x128xf32>
    %14 = arith.addf %11, %13 : vector<16x128xf32>
    %cst_8 = arith.constant 0.000000e+00 : f32
    %15 = vector.broadcast %cst_8 : f32 to vector<16x128xf32>
    %16 = arith.maximumf %14, %15 : vector<16x128xf32>
    %17 = arith.truncf %16 : vector<16x128xf32> to vector<16x128xbf16>
    %c0_9 = arith.constant 0 : index
    %c0_10 = arith.constant 0 : index
    %18 = vector.load %arg5[%c0_9, %c0_10] : memref<16x128xbf16, #tpu.memory_space<vmem>>, vector<16x128xbf16>
    tpu.vector_store %arg5[%c0_9, %c0_10], %17 {strides = array<i32>} : memref<16x128xbf16, #tpu.memory_space<vmem>>, vector<16x128xbf16>,
    return
  }
  func.func @transform_0(%arg0: i32) -> (i32, i32) {
    %c0_i32 = arith.constant 0 : i32
    %c0_i32_0 = arith.constant 0 : i32
    return %arg0, %c0_i32 : i32, i32
  }
  func.func @transform_1(%arg0: i32) -> (i32, i32) {
    %c0_i32 = arith.constant 0 : i32
    %c0_i32_0 = arith.constant 0 : i32
    return %arg0, %c0_i32 : i32, i32
  }
  func.func @transform_2(%arg0: i32) -> (i32, i32) {
    %c0_i32 = arith.constant 0 : i32
    %c0_i32_0 = arith.constant 0 : i32
    %c0_i32_1 = arith.constant 0 : i32
    return %c0_i32, %c0_i32_0 : i32, i32
  }
  func.func @transform_3(%arg0: i32) -> (i32, i32) {
    %c0_i32 = arith.constant 0 : i32
    %c0_i32_0 = arith.constant 0 : i32
    %c0_i32_1 = arith.constant 0 : i32
    return %c0_i32, %c0_i32_0 : i32, i32
  }
  func.func @transform_4(%arg0: i32) -> (i32, i32) {
    %c0_i32 = arith.constant 0 : i32
    %c0_i32_0 = arith.constant 0 : i32
    return %arg0, %c0_i32 : i32, i32
  }
}

module attributes {stable_mosaic.version = 11 : i64} {
  func.func @_conv2_fc_kernel(%arg0: i32, %arg1: memref<8x1280xbf16, #tpu.memory_space<vmem>>, %arg2: memref<4x1280x512xbf16, #tpu.memory_space<vmem>>, %arg3: memref<1x512xf32, #tpu.memory_space<vmem>>, %arg4: memref<512x128xbf16, #tpu.memory_space<vmem>>, %arg5: memref<1x128xf32, #tpu.memory_space<vmem>>, %arg6: memref<128x128xbf16, #tpu.memory_space<vmem>>, %arg7: memref<1x128xf32, #tpu.memory_space<vmem>>, %arg8: memref<128x128xbf16, #tpu.memory_space<vmem>>, %arg9: memref<1x128xf32, #tpu.memory_space<vmem>>, %arg10: memref<8x128xf32, #tpu.memory_space<vmem>>) attributes {dimension_semantics = [#tpu.dimension_semantics<parallel>], iteration_bounds = array<i64: 1>, scalar_prefetch = 0 : i64, scratch_operands = 0 : i64, tpu.core_type = #tpu.core_type<tc>, window_params = [{transform_indices = @transform_0, window_bounds = array<i64: 8, 1280>}, {pipeline_mode = #tpu.pipeline_mode<synchronous>, transform_indices = @transform_1, window_bounds = array<i64: 4, 1280, 512>}, {pipeline_mode = #tpu.pipeline_mode<synchronous>, transform_indices = @transform_2, window_bounds = array<i64: 1, 512>}, {pipeline_mode = #tpu.pipeline_mode<synchronous>, transform_indices = @transform_3, window_bounds = array<i64: 512, 128>}, {pipeline_mode = #tpu.pipeline_mode<synchronous>, transform_indices = @transform_4, window_bounds = array<i64: 1, 128>}, {pipeline_mode = #tpu.pipeline_mode<synchronous>, transform_indices = @transform_5, window_bounds = array<i64: 128, 128>}, {pipeline_mode = #tpu.pipeline_mode<synchronous>, transform_indices = @transform_6, window_bounds = array<i64: 1, 128>}, {pipeline_mode = #tpu.pipeline_mode<synchronous>, transform_indices = @transform_7, window_bounds = array<i64: 128, 128>}, {pipeline_mode = #tpu.pipeline_mode<synchronous>, transform_indices = @transform_8, window_bounds = array<i64: 1, 128>}, {transform_indices = @transform_9, window_bounds = array<i64: 8, 128>}]} {
    %c0 = arith.constant 0 : index
    %c0_0 = arith.constant 0 : index
    %0 = vector.load %arg1[%c0, %c0_0] : memref<8x1280xbf16, #tpu.memory_space<vmem>>, vector<8x1280xbf16>
    %c0_1 = arith.constant 0 : index
    %c0_2 = arith.constant 0 : index
    %c0_3 = arith.constant 0 : index
    %1 = vector.load %arg2[%c0_1, %c0_2, %c0_3] : memref<4x1280x512xbf16, #tpu.memory_space<vmem>>, vector<1x1280x512xbf16>
    %2 = vector.shape_cast %1 : vector<1x1280x512xbf16> to vector<1280x512xbf16>
    %cst = arith.constant dense<0.000000e+00> : vector<8x512xf32>
    %3 = tpu.matmul %0, %2, %cst {dimension_numbers = #tpu.dot_dimension_numbers<[1], [0], [0], [1], [0, 0, 1, 1], [], []>} : vector<8x1280xbf16>, vector<1280x512xbf16>, vector<8x512xf32> -> vector<8x512xf32>
    %c1 = arith.constant 1 : index
    %c0_4 = arith.constant 0 : index
    %c0_5 = arith.constant 0 : index
    %4 = vector.load %arg2[%c1, %c0_4, %c0_5] : memref<4x1280x512xbf16, #tpu.memory_space<vmem>>, vector<1x1280x512xbf16>
    %5 = vector.shape_cast %4 : vector<1x1280x512xbf16> to vector<1280x512xbf16>
    %cst_6 = arith.constant dense<0.000000e+00> : vector<8x512xf32>
    %6 = tpu.matmul %0, %5, %cst_6 {dimension_numbers = #tpu.dot_dimension_numbers<[1], [0], [0], [1], [0, 0, 1, 1], [], []>} : vector<8x1280xbf16>, vector<1280x512xbf16>, vector<8x512xf32> -> vector<8x512xf32>
    %7 = arith.maximumf %3, %6 : vector<8x512xf32>
    %c2 = arith.constant 2 : index
    %c0_7 = arith.constant 0 : index
    %c0_8 = arith.constant 0 : index
    %8 = vector.load %arg2[%c2, %c0_7, %c0_8] : memref<4x1280x512xbf16, #tpu.memory_space<vmem>>, vector<1x1280x512xbf16>
    %9 = vector.shape_cast %8 : vector<1x1280x512xbf16> to vector<1280x512xbf16>
    %cst_9 = arith.constant dense<0.000000e+00> : vector<8x512xf32>
    %10 = tpu.matmul %0, %9, %cst_9 {dimension_numbers = #tpu.dot_dimension_numbers<[1], [0], [0], [1], [0, 0, 1, 1], [], []>} : vector<8x1280xbf16>, vector<1280x512xbf16>, vector<8x512xf32> -> vector<8x512xf32>
    %11 = arith.maximumf %7, %10 : vector<8x512xf32>
    %c3 = arith.constant 3 : index
    %c0_10 = arith.constant 0 : index
    %c0_11 = arith.constant 0 : index
    %12 = vector.load %arg2[%c3, %c0_10, %c0_11] : memref<4x1280x512xbf16, #tpu.memory_space<vmem>>, vector<1x1280x512xbf16>
    %13 = vector.shape_cast %12 : vector<1x1280x512xbf16> to vector<1280x512xbf16>
    %cst_12 = arith.constant dense<0.000000e+00> : vector<8x512xf32>
    %14 = tpu.matmul %0, %13, %cst_12 {dimension_numbers = #tpu.dot_dimension_numbers<[1], [0], [0], [1], [0, 0, 1, 1], [], []>} : vector<8x1280xbf16>, vector<1280x512xbf16>, vector<8x512xf32> -> vector<8x512xf32>
    %15 = arith.maximumf %11, %14 : vector<8x512xf32>
    %c0_13 = arith.constant 0 : index
    %c0_14 = arith.constant 0 : index
    %16 = vector.load %arg3[%c0_13, %c0_14] : memref<1x512xf32, #tpu.memory_space<vmem>>, vector<1x512xf32>
    %17 = vector.broadcast %16 : vector<1x512xf32> to vector<8x512xf32>
    %18 = arith.addf %15, %17 : vector<8x512xf32>
    %cst_15 = arith.constant 0.000000e+00 : f32
    %19 = vector.broadcast %cst_15 : f32 to vector<8x512xf32>
    %20 = arith.maximumf %18, %19 : vector<8x512xf32>
    %21 = arith.truncf %20 : vector<8x512xf32> to vector<8x512xbf16>
    %c0_16 = arith.constant 0 : index
    %c0_17 = arith.constant 0 : index
    %22 = vector.load %arg4[%c0_16, %c0_17] : memref<512x128xbf16, #tpu.memory_space<vmem>>, vector<512x128xbf16>
    %cst_18 = arith.constant dense<0.000000e+00> : vector<8x128xf32>
    %23 = tpu.matmul %21, %22, %cst_18 {dimension_numbers = #tpu.dot_dimension_numbers<[1], [0], [0], [1], [0, 0, 1, 1], [], []>} : vector<8x512xbf16>, vector<512x128xbf16>, vector<8x128xf32> -> vector<8x128xf32>
    %c0_19 = arith.constant 0 : index
    %c0_20 = arith.constant 0 : index
    %24 = vector.load %arg5[%c0_19, %c0_20] : memref<1x128xf32, #tpu.memory_space<vmem>>, vector<1x128xf32>
    %25 = vector.broadcast %24 : vector<1x128xf32> to vector<8x128xf32>
    %26 = arith.addf %23, %25 : vector<8x128xf32>
    %cst_21 = arith.constant 0.000000e+00 : f32
    %27 = vector.broadcast %cst_21 : f32 to vector<8x128xf32>
    %28 = arith.maximumf %26, %27 : vector<8x128xf32>
    %29 = arith.truncf %28 : vector<8x128xf32> to vector<8x128xbf16>
    %c0_22 = arith.constant 0 : index
    %c0_23 = arith.constant 0 : index
    %30 = vector.load %arg6[%c0_22, %c0_23] : memref<128x128xbf16, #tpu.memory_space<vmem>>, vector<128x128xbf16>
    %cst_24 = arith.constant dense<0.000000e+00> : vector<8x128xf32>
    %31 = tpu.matmul %29, %30, %cst_24 {dimension_numbers = #tpu.dot_dimension_numbers<[1], [0], [0], [1], [0, 0, 1, 1], [], []>} : vector<8x128xbf16>, vector<128x128xbf16>, vector<8x128xf32> -> vector<8x128xf32>
    %c0_25 = arith.constant 0 : index
    %c0_26 = arith.constant 0 : index
    %32 = vector.load %arg7[%c0_25, %c0_26] : memref<1x128xf32, #tpu.memory_space<vmem>>, vector<1x128xf32>
    %33 = vector.broadcast %32 : vector<1x128xf32> to vector<8x128xf32>
    %34 = arith.addf %31, %33 : vector<8x128xf32>
    %cst_27 = arith.constant 0.000000e+00 : f32
    %35 = vector.broadcast %cst_27 : f32 to vector<8x128xf32>
    %36 = arith.maximumf %34, %35 : vector<8x128xf32>
    %37 = arith.truncf %36 : vector<8x128xf32> to vector<8x128xbf16>
    %c0_28 = arith.constant 0 : index
    %c0_29 = arith.constant 0 : index
    %38 = vector.load %arg8[%c0_28, %c0_29] : memref<128x128xbf16, #tpu.memory_space<vmem>>, vector<128x128xbf16>
    %cst_30 = arith.constant dense<0.000000e+00> : vector<8x128xf32>
    %39 = tpu.matmul %37, %38, %cst_30 {dimension_numbers = #tpu.dot_dimension_numbers<[1], [0], [0], [1], [0, 0, 1, 1], [], []>} : vector<8x128xbf16>, vector<128x128xbf16>, vector<8x128xf32> -> vector<8x128xf32>
    %c0_31 = arith.constant 0 : index
    %c0_32 = arith.constant 0 : index
    %40 = vector.load %arg9[%c0_31, %c0_32] : memref<1x128xf32, #tpu.memory_space<vmem>>, vector<1x128xf32>
    %41 = vector.broadcast %40 : vector<1x128xf32> to vector<8x128xf32>
    %42 = arith.addf %39, %41 : vector<8x128xf32>
    %c0_33 = arith.constant 0 : index
    %c0_34 = arith.constant 0 : index
    %43 = vector.load %arg10[%c0_33, %c0_34] : memref<8x128xf32, #tpu.memory_space<vmem>>, vector<8x128xf32>
    tpu.vector_store %arg10[%c0_33, %c0_34], %42 {strides = array<i32>} : memref<8x128xf32, #tpu.memory_space<vmem>>, vector<8x128xf32>,
    return
  }
  func.func @transform_0(%arg0: i32) -> (i32, i32) {
    %c0_i32 = arith.constant 0 : i32
    %c0_i32_0 = arith.constant 0 : i32
    return %arg0, %c0_i32 : i32, i32
  }
  func.func @transform_1(%arg0: i32) -> (i32, i32, i32) {
    %c0_i32 = arith.constant 0 : i32
    %c0_i32_0 = arith.constant 0 : i32
    %c0_i32_1 = arith.constant 0 : i32
    %c0_i32_2 = arith.constant 0 : i32
    return %c0_i32, %c0_i32_0, %c0_i32_1 : i32, i32, i32
  }
  func.func @transform_2(%arg0: i32) -> (i32, i32) {
    %c0_i32 = arith.constant 0 : i32
    %c0_i32_0 = arith.constant 0 : i32
    %c0_i32_1 = arith.constant 0 : i32
    return %c0_i32, %c0_i32_0 : i32, i32
  }
  func.func @transform_3(%arg0: i32) -> (i32, i32) {
    %c0_i32 = arith.constant 0 : i32
    %c0_i32_0 = arith.constant 0 : i32
    %c0_i32_1 = arith.constant 0 : i32
    return %c0_i32, %c0_i32_0 : i32, i32
  }
  func.func @transform_4(%arg0: i32) -> (i32, i32) {
    %c0_i32 = arith.constant 0 : i32
    %c0_i32_0 = arith.constant 0 : i32
    %c0_i32_1 = arith.constant 0 : i32
    return %c0_i32, %c0_i32_0 : i32, i32
  }
  func.func @transform_5(%arg0: i32) -> (i32, i32) {
    %c0_i32 = arith.constant 0 : i32
    %c0_i32_0 = arith.constant 0 : i32
    %c0_i32_1 = arith.constant 0 : i32
    return %c0_i32, %c0_i32_0 : i32, i32
  }
  func.func @transform_6(%arg0: i32) -> (i32, i32) {
    %c0_i32 = arith.constant 0 : i32
    %c0_i32_0 = arith.constant 0 : i32
    %c0_i32_1 = arith.constant 0 : i32
    return %c0_i32, %c0_i32_0 : i32, i32
  }
  func.func @transform_7(%arg0: i32) -> (i32, i32) {
    %c0_i32 = arith.constant 0 : i32
    %c0_i32_0 = arith.constant 0 : i32
    %c0_i32_1 = arith.constant 0 : i32
    return %c0_i32, %c0_i32_0 : i32, i32
  }
  func.func @transform_8(%arg0: i32) -> (i32, i32) {
    %c0_i32 = arith.constant 0 : i32
    %c0_i32_0 = arith.constant 0 : i32
    %c0_i32_1 = arith.constant 0 : i32
    return %c0_i32, %c0_i32_0 : i32, i32
  }
  func.func @transform_9(%arg0: i32) -> (i32, i32) {
    %c0_i32 = arith.constant 0 : i32
    %c0_i32_0 = arith.constant 0 : i32
    return %arg0, %c0_i32 : i32, i32
  }
}

</mosaic_0001>

<bundles_post_ra>
// kernel: simplenet_forward.2
= control target key start
LH: loop header
LB: loop body
LE: loop exit
PB: predicated region body
PF: predicated region fallthrough
CT: control target
= control target key end

     0   :  { %9 = vsyncpa [#allocation3], 0  ;;  %s1896_s0 = inlined_call_operand.vmem [shape: bf16[32,512], index: 0, kind: input, shape index: {}]   ;;  %s1897_s1 = inlined_call_operand.vmem [shape: bf16[32,512], index: 1, kind: input, shape index: {}]   ;;  %s1898_s2 = inlined_call_operand.hbm [shape: bf16[512,256], index: 2, kind: input, shape index: {}]   ;;  %s1899_s3 = inlined_call_operand.hbm [shape: f32[1,128], index: 3, kind: input, shape index: {}]   ;;  %s1900_s4 = inlined_call_operand.vmem [shape: bf16[32,128], index: 4, kind: output, shape index: {}]  }
   0x1   :  { %10 = vsyncpa [#allocation5], 0  ;;  %s1548_s15 = smov 0  }
   0x2 LB: > { %s152_s18 = sshll.u32 %s1898_s2, 4  ;;  %s1025_s19 = sadd.s32 4294967295, %s1517_s15   ;;  %s1517_s15 = sphi %s1548_s15, %s16_s15   ;;  %s153_s18 = int_to_ptr.hbm [resolvable:$true] %s152_s18 }
   0x3   : > { %p1027_p0 = scmp.ge.s32.totalorder %s1517_s15, 1  ;;  %p141_p1 = scmp.lt.s32.totalorder %s1517_s15, 3 }
   0x4   : > { %p1561_p2 = scmp.eq.s32.totalorder %s1025_s19, 0  ;;  %s1519_s22 = smov [#allocation2]  }
   0x5   : > { %p1565_p3 = pnand %p1027_p0, %p141_p1  ;;  %s154_s23 = sshll.u32 %s1519_s22, 4  ;;  %s155_s23 = int_to_ptr.vmem [resolvable:$true] %s154_s23 }
   0x6   : > { %s167_s26 = sshll.u32 %s1899_s3, 4  ;;  %s1520_s27 = smov [#allocation4]   ;;  %s168_s26 = int_to_ptr.hbm [resolvable:$true] %s167_s26 }
   0x7   : > { %p1419_p4 = pneg %p1565_p3  ;;  %s169_s28 = sshll.u32 %s1520_s27, 4  ;;  %s170_s28 = int_to_ptr.vmem [resolvable:$true] %s169_s28 }
   0x8   : > { %s1521_s29 = smov 128   ;;  %s1522_s30 = smov 8  }
   0x9   : > { %p1420_p5 = pnand %p1561_p2, %p1419_p4  ;;  %202 = sbr.rel (%p1565_p3) target bundleno = 304 (0x130), region = 36 }
   0xb   : > { %1422 = dma.hbm_to_vmem [thread:$0]  (!%p1420_p5), %s153_s18, 8192, %s155_s23, [#allocation3], %s1521_s29, %s1521_s29, %s1522_s30  }
   0xc   : > { %1425 = dma.hbm_to_vmem [thread:$0]  (!%p1420_p5), %s168_s26, 16, %s170_s28, [#allocation5]  }
   0xe   : > { %1508 = dma.done.wait (%p1561_p2), [#allocation3], 8192  }
   0xf   : > { %1510 = vsyncadd (%p1561_p2), [#allocation3], 4294959104 }
  0x10   : > { %1512 = dma.done.wait (%p1561_p2), [#allocation5], 16  }
  0x11   : > { %1514 = vsyncadd (%p1561_p2), [#allocation5], 4294967280  ;;  %v1116_v0 = vld [vmem:[#allocation2 + $0x70] sm:$0xf]  ;;  %v1349_v1 = vld [vmem:[#allocation2 + $0x74] sm:$0xf0] }
  0x12   : > { %v1180_v2 = vld [vmem:[#allocation2 + $0xf0] sm:$0xf]  ;;  %v1586_v3 = vor.u32 %v1349_v1, %v1116_v0  ;;  %v1365_v4 = vld [vmem:[#allocation2 + $0xf4] sm:$0xf0]  ;;  %v1108_v11 = vld [vmem:[#allocation2 + $0x60] sm:$0xf] }
  0x13   : > { %v1244_v5 = vld [vmem:[#allocation2 + $0x170] sm:$0xf]  ;;  %v1381_v6 = vld [vmem:[#allocation2 + $0x174] sm:$0xf0]  ;;  %v1588_v7 = vor.u32 %v1365_v4, %v1180_v2  ;;  %v1347_v13 = vld [vmem:[#allocation2 + $0x64] sm:$0xf0] }
  0x14   : > { %v1590_v8 = vor.u32 %v1381_v6, %v1244_v5  ;;  %v1308_v9 = vld [vmem:[#allocation2 + $0x1f0] sm:$0xf]  ;;  %v1397_v10 = vld [vmem:[#allocation2 + $0x1f4] sm:$0xf0]  ;;  %669 = vmatpush.bf16.msra.mxu0 %v1586_v3  ;;  %v1172_v14 = vld [vmem:[#allocation2 + $0xe0] sm:$0xf]  ;;  %v1597_v16 = vor.u32 %v1347_v13, %v1108_v11 }
  0x15   : > { %v1593_v12 = vor.u32 %v1397_v10, %v1308_v9  ;;  %v1363_v15 = vld [vmem:[#allocation2 + $0xe4] sm:$0xf0]  ;;  %683 = vmatpush.bf16.msra.mxu1 %v1588_v7  ;;  %v1236_v18 = vld [vmem:[#allocation2 + $0x160] sm:$0xf]  ;;  %v1100_v23 = vld [vmem:[#allocation2 + $0x50] sm:$0xf] }
  0x16   : > { %697 = vmatpush.bf16.msra.mxu2 %v1590_v8  ;;  %v1599_v17 = vor.u32 %v1363_v15, %v1172_v14  ;;  %v1379_v19 = vld [vmem:[#allocation2 + $0x164] sm:$0xf0]  ;;  %v1300_v20 = vld [vmem:[#allocation2 + $0x1e0] sm:$0xf]  ;;  %v1345_v24 = vld [vmem:[#allocation2 + $0x54] sm:$0xf0] }
  0x17   : > { %711 = vmatpush.bf16.msra.mxu3 %v1593_v12  ;;  %v1602_v21 = vor.u32 %v1379_v19, %v1236_v18  ;;  %v1395_v22 = vld [vmem:[#allocation2 + $0x1e4] sm:$0xf0]  ;;  %v1164_v26 = vld [vmem:[#allocation2 + $0xd0] sm:$0xf]  ;;  %v1361_v27 = vld [vmem:[#allocation2 + $0xd4] sm:$0xf0]  ;;  %v1607_v29 = vor.u32 %v1345_v24, %v1100_v23 }
  0x18   : > { %v1604_v25 = vor.u32 %v1395_v22, %v1300_v20  ;;  %v1228_v28 = vld [vmem:[#allocation2 + $0x150] sm:$0xf]  ;;  %670 = vmatpush.bf16.msra.mxu0 %v1597_v16  ;;  %v1377_v30 = vld [vmem:[#allocation2 + $0x154] sm:$0xf0]  ;;  %v1611_v33 = vor.u32 %v1361_v27, %v1164_v26  ;;  %v1092_v35 = vld [vmem:[#allocation2 + $0x40] sm:$0xf] }
  0x19   : > { %v1292_v31 = vld [vmem:[#allocation2 + $0x1d0] sm:$0xf]  ;;  %v1393_v32 = vld [vmem:[#allocation2 + $0x1d4] sm:$0xf0]  ;;  %684 = vmatpush.bf16.msra.mxu1 %v1599_v17  ;;  %v1613_v34 = vor.u32 %v1377_v30, %v1228_v28  ;;  %v1343_v36 = vld [vmem:[#allocation2 + $0x44] sm:$0xf0] }
  0x1a   : > { %698 = vmatpush.bf16.msra.mxu2 %v1602_v21  ;;  %v1156_v37 = vld [vmem:[#allocation2 + $0xc0] sm:$0xf]  ;;  %v1616_v38 = vor.u32 %v1393_v32, %v1292_v31  ;;  %v1359_v39 = vld [vmem:[#allocation2 + $0xc4] sm:$0xf0]  ;;  %v1619_v44 = vor.u32 %v1343_v36, %v1092_v35  ;;  %s1623_s5 = sshll.u32 %s1025_s19, 1 }
  0x1b   : > { %712 = vmatpush.bf16.msra.mxu3 %v1604_v25  ;;  %v1220_v40 = vld [vmem:[#allocation2 + $0x140] sm:$0xf]  ;;  %v1375_v41 = vld [vmem:[#allocation2 + $0x144] sm:$0xf0]  ;;  %v1627_v45 = vor.u32 %v1359_v39, %v1156_v37  ;;  %v1084_v47 = vld [vmem:[#allocation2 + $0x30] sm:$0xf] }
  0x1c   : > { %v1284_v42 = vld [vmem:[#allocation2 + $0x1c0] sm:$0xf]  ;;  %v1391_v43 = vld [vmem:[#allocation2 + $0x1c4] sm:$0xf0]  ;;  %671 = vmatpush.bf16.msra.mxu0 %v1607_v29  ;;  %v1629_v46 = vor.u32 %v1375_v41, %v1220_v40  ;;  %v1341_v48 = vld [vmem:[#allocation2 + $0x34] sm:$0xf0] }
  0x1d   : > { %685 = vmatpush.bf16.msra.mxu1 %v1611_v33  ;;  %v1148_v49 = vld [vmem:[#allocation2 + $0xb0] sm:$0xf]  ;;  %v1632_v50 = vor.u32 %v1391_v43, %v1284_v42  ;;  %v1357_v51 = vld [vmem:[#allocation2 + $0xb4] sm:$0xf0]  ;;  %v1635_v56 = vor.u32 %v1341_v48, %v1084_v47  ;;  %p242_p6 = scmp.lt.s32.totalorder %s1623_s5, 3 }
  0x1e   : > { %699 = vmatpush.bf16.msra.mxu2 %v1613_v34  ;;  %v1212_v52 = vld [vmem:[#allocation2 + $0x130] sm:$0xf]  ;;  %v1373_v53 = vld [vmem:[#allocation2 + $0x134] sm:$0xf0]  ;;  %v1640_v57 = vor.u32 %v1357_v51, %v1148_v49  ;;  %v1076_v59 = vld [vmem:[#allocation2 + $0x20] sm:$0xf] }
  0x1f   : > { %713 = vmatpush.bf16.msra.mxu3 %v1616_v38  ;;  %v1276_v54 = vld [vmem:[#allocation2 + $0x1b0] sm:$0xf]  ;;  %v1389_v55 = vld [vmem:[#allocation2 + $0x1b4] sm:$0xf0]  ;;  %v1642_v58 = vor.u32 %v1373_v53, %v1212_v52  ;;  %v1339_v60 = vld [vmem:[#allocation2 + $0x24] sm:$0xf0] }
  0x20   : > { %672 = vmatpush.bf16.msra.mxu0 %v1619_v44  ;;  %v1140_v61 = vld [vmem:[#allocation2 + $0xa0] sm:$0xf]  ;;  %v1645_v62 = vor.u32 %v1389_v55, %v1276_v54  ;;  %v1355_v63 = vld [vmem:[#allocation2 + $0xa4] sm:$0xf0]  ;;  %v1648_v5 = vor.u32 %v1339_v60, %v1076_v59  ;;  %s1949_s5 = smov (!%p242_p6, %s1623_s5), 3 }
  0x21   : > { %686 = vmatpush.bf16.msra.mxu1 %v1627_v45  ;;  %v1204_v0 = vld [vmem:[#allocation2 + $0x120] sm:$0xf]  ;;  %v1371_v1 = vld [vmem:[#allocation2 + $0x124] sm:$0xf0]  ;;  %v1657_v6 = vor.u32 %v1355_v63, %v1140_v61  ;;  %v1068_v10 = vld [vmem:[#allocation2 + $0x10] sm:$0xf] }
  0x22   : > { %700 = vmatpush.bf16.msra.mxu2 %v1629_v46  ;;  %v1268_v2 = vld [vmem:[#allocation2 + $0x1a0] sm:$0xf]  ;;  %v1387_v4 = vld [vmem:[#allocation2 + $0x1a4] sm:$0xf0]  ;;  %v1659_v9 = vor.u32 %v1371_v1, %v1204_v0  ;;  %v1337_v11 = vld [vmem:[#allocation2 + $0x14] sm:$0xf0] }
  0x23   : > { %714 = vmatpush.bf16.msra.mxu3 %v1632_v50  ;;  %v1132_v13 = vld [vmem:[#allocation2 + $0x90] sm:$0xf]  ;;  %v1662_v14 = vor.u32 %v1387_v4, %v1268_v2  ;;  %v1353_v15 = vld [vmem:[#allocation2 + $0x94] sm:$0xf0]  ;;  %v1665_v23 = vor.u32 %v1337_v11, %v1068_v10  ;;  %v1060_v24 = vld [vmem:[#allocation2] sm:$0xf] }
  0x24   : > { %673 = vmatpush.bf16.msra.mxu0 %v1635_v56  ;;  %v1196_v18 = vld [vmem:[#allocation2 + $0x110] sm:$0xf]  ;;  %v1369_v19 = vld [vmem:[#allocation2 + $0x114] sm:$0xf0]  ;;  %v1335_v26 = vld [vmem:[#allocation2 + $0x4] sm:$0xf0]  ;;  %v1670_v27 = vor.u32 %v1353_v15, %v1132_v13 }
  0x25   : > { %687 = vmatpush.bf16.msra.mxu1 %v1640_v57  ;;  %v1260_v20 = vld [vmem:[#allocation2 + $0x190] sm:$0xf]  ;;  %v1385_v22 = vld [vmem:[#allocation2 + $0x194] sm:$0xf0]  ;;  %s1332_s6 = sshll.u32 %s1949_s5, 4  ;;  %v1672_v28 = vor.u32 %v1369_v19, %v1196_v18  ;;  %v1678_v43 = vor.u32 %v1335_v26, %v1060_v24  ;;  %s1041_s13 = sshll.u32 %s1949_s5, 2 }
  0x26   : > { %701 = vmatpush.bf16.msra.mxu2 %v1642_v58  ;;  %v1124_v30 = vld [vmem:[#allocation2 + $0x80] sm:$0xf]  ;;  %v1351_v31 = vld [vmem:[#allocation2 + $0x84] sm:$0xf0]  ;;  %v1675_v35 = vor.u32 %v1385_v22, %v1260_v20  ;;  %v1348_v40 = vld [vmem:[#allocation2 + $0x74] sm:$0xf]  ;;  %s1696_s9 = scalar_lea.vmem %s1896_s0, %s1332_s6  ;;  %s253_s12 = scalar_lea.vmem %s1897_s1, %s1332_s6 }
  0x27   : > { %715 = vmatpush.bf16.msra.mxu3 %v1645_v62  ;;  %v1188_v32 = vld [vmem:[#allocation2 + $0x100] sm:$0xf]  ;;  %v1367_v36 = vld [vmem:[#allocation2 + $0x104] sm:$0xf0]  ;;  %v1118_v41 = vld [vmem:[#allocation2 + $0x78] sm:$0xf0]  ;;  %v1682_v51 = vor.u32 %v1351_v31, %v1124_v30  ;;  %s259_s17 = scalar_lea.vmem %s1900_s4, %s1041_s13 }
  0x28   : > { %674 = vmatpush.bf16.msra.mxu0 %v1648_v5  ;;  %v1252_v37 = vld [vmem:[#allocation2 + $0x180] sm:$0xf]  ;;  %v1383_v39 = vld [vmem:[#allocation2 + $0x184] sm:$0xf0]  ;;  %v1364_v42 = vld [vmem:[#allocation2 + $0xf4] sm:$0xf]  ;;  %v1684_v52 = vor.u32 %v1367_v36, %v1188_v32  ;;  %v1689_v59 = vor.u32 %v1348_v40, %v1118_v41 }
  0x29   : > { %688 = vmatpush.bf16.msra.mxu1 %v1657_v6  ;;  %v1182_v47 = vld [vmem:[#allocation2 + $0xf8] sm:$0xf0]  ;;  %v1380_v48 = vld [vmem:[#allocation2 + $0x174] sm:$0xf]  ;;  %v1687_v55 = vor.u32 %v1383_v39, %v1252_v37  ;;  %v1346_v60 = vld [vmem:[#allocation2 + $0x64] sm:$0xf] }
  0x2a   : > { %702 = vmatpush.bf16.msra.mxu2 %v1659_v9  ;;  %v1246_v49 = vld [vmem:[#allocation2 + $0x178] sm:$0xf0]  ;;  %v1396_v53 = vld [vmem:[#allocation2 + $0x1f4] sm:$0xf]  ;;  %v1110_v61 = vld [vmem:[#allocation2 + $0x68] sm:$0xf0]  ;;  %v1698_v63 = vor.u32 %v1364_v42, %v1182_v47 }
  0x2b   : > { %716 = vmatpush.bf16.msra.mxu3 %v1662_v14  ;;  %v1310_v54 = vld [vmem:[#allocation2 + $0x1f8] sm:$0xf0]  ;;  %v1700_v0 = vor.u32 %v1380_v48, %v1246_v49  ;;  %v1362_v1 = vld [vmem:[#allocation2 + $0xe4] sm:$0xf]  ;;  %v1174_v2 = vld [vmem:[#allocation2 + $0xe8] sm:$0xf0]  ;;  %v1711_v22 = vor.u32 %v1346_v60, %v1110_v61 }
  0x2c   : > { %675 = vmatpush.bf16.msra.mxu0 %v1665_v23  ;;  %v1378_v4 = vld [vmem:[#allocation2 + $0x164] sm:$0xf]  ;;  %v1703_v10 = vor.u32 %v1396_v53, %v1310_v54  ;;  %v1238_v11 = vld [vmem:[#allocation2 + $0x168] sm:$0xf0]  ;;  %v1344_v18 = vld [vmem:[#allocation2 + $0x54] sm:$0xf]  ;;  %v1717_v32 = vor.u32 %v1362_v1, %v1174_v2 }
  0x2d   : > { %689 = vmatpush.bf16.msra.mxu1 %v1670_v27  ;;  %v1394_v13 = vld [vmem:[#allocation2 + $0x1e4] sm:$0xf]  ;;  %v1302_v15 = vld [vmem:[#allocation2 + $0x1e8] sm:$0xf0]  ;;  %v1052_v19 = vld [vmem:[%s1696_s9 + $0x8] sm:$0xf]  ;;  %v1719_v36 = vor.u32 %v1378_v4, %v1238_v11 }
  0x2e   : > { %703 = vmatpush.bf16.msra.mxu2 %v1672_v28  ;;  %v1401_v20 = vld [vmem:[%s1696_s9 + $0x14] sm:$0xf0]  ;;  %v1102_v24 = vld [vmem:[#allocation2 + $0x58] sm:$0xf0]  ;;  %v1360_v26 = vld [vmem:[#allocation2 + $0xd4] sm:$0xf]  ;;  %v1722_v41 = vor.u32 %v1394_v13, %v1302_v15 }
  0x2f   : > { %717 = vmatpush.bf16.msra.mxu3 %v1675_v35  ;;  %v1166_v30 = vld [vmem:[#allocation2 + $0xd8] sm:$0xf0]  ;;  %v1713_v31 = vor.u32 %v1401_v20, %v1052_v19  ;;  %v1376_v37 = vld [vmem:[#allocation2 + $0x154] sm:$0xf]  ;;  %v1399_v47 = vld [vmem:[%s1696_s9 + $0xc] sm:$0xf]  ;;  %v1733_v61 = vor.u32 %v1344_v18, %v1102_v24 }
  0x30   : > { %676 = vmatpush.bf16.msra.mxu0 %v1678_v43  ;;  %v1230_v39 = vld [vmem:[#allocation2 + $0x158] sm:$0xf0]  ;;  %v1392_v40 = vld [vmem:[#allocation2 + $0x1d4] sm:$0xf]  ;;  %1918 = vst [vmem:[#allocation8_spill] sm:$0xff] %v1722_v41  ;;  %v1740_v4 = vor.u32 %v1360_v26, %v1166_v30 }
  0x31   : > { %690 = vmatpush.bf16.msra.mxu1 %v1682_v51  ;;  %v1294_v42 = vld [vmem:[#allocation2 + $0x1d8] sm:$0xf0]  ;;  %v1044_v53 = vld [vmem:[%s1696_s9] sm:$0xf]  ;;  %v1400_v54 = vld [vmem:[%s1696_s9 + $0xc] sm:$0xf0]  ;;  %v1742_v11 = vor.u32 %v1376_v37, %v1230_v39 }
  0x32   : > { %704 = vmatpush.bf16.msra.mxu2 %v1684_v52  ;;  %v1054_v48 = vld [vmem:[%s1696_s9 + $0x18] sm:$0xf0]  ;;  %v1398_v60 = vld [vmem:[%s1696_s9 + $0x4] sm:$0xf]  ;;  %1919 = vst [vmem:[#allocation9_spill] sm:$0xff] %v1733_v61  ;;  %v1735_v1 = vor.u32 %v1400_v54, %v1044_v53  ;;  %v1747_v18 = vor.u32 %v1392_v40, %v1294_v42 }
  0x33   : > { %718 = vmatpush.bf16.msra.mxu3 %v1687_v55  ;;  %v1727_v49 = vor.u32 %v1399_v47, %v1054_v48  ;;  %v1046_v2 = vld [vmem:[%s1696_s9 + $0x10] sm:$0xf0]  ;;  %1920 = vst [vmem:[#allocation10_spill] sm:$0xff] %v1740_v4  ;;  %v1342_v13 = vld [vmem:[#allocation2 + $0x44] sm:$0xf] }
  0x34   : > { %725 = vmatpush.bf16.msrb.mxu0 %v1689_v59  ;;  %1921 = vst [vmem:[#allocation11_spill] sm:$0xff] %v1742_v11  ;;  %v1094_v15 = vld [vmem:[#allocation2 + $0x48] sm:$0xf0]  ;;  %v1358_v19 = vld [vmem:[#allocation2 + $0xc4] sm:$0xf]  ;;  %v1744_v20 = vor.u32 %v1398_v60, %v1046_v2 }
  0x35   : > { %739 = vmatpush.bf16.msrb.mxu1 %v1698_v63  ;;  %705 = vmatmul.bf16.vlgmr.msra.gmra.mxu2 %v1713_v31  ;;  %1922 = vst [vmem:[#allocation12_spill] sm:$0xff] %v1747_v18  ;;  %v1158_v24 = vld [vmem:[#allocation2 + $0xc8] sm:$0xf0]  ;;  %v1374_v47 = vld [vmem:[#allocation2 + $0x144] sm:$0xf]  ;;  %v1753_v26 = vor.u32 %v1342_v13, %v1094_v15 }
  0x36   : > { %753 = vmatpush.bf16.msrb.mxu2 %v1700_v0  ;;  %v1222_v48 = vld [vmem:[#allocation2 + $0x148] sm:$0xf0]  ;;  %677 = vmatmul.bf16.vlgmr.msra.gmra.mxu0 %v1735_v1  ;;  %v1390_v53 = vld [vmem:[#allocation2 + $0x1c4] sm:$0xf]  ;;  %v1757_v30 = vor.u32 %v1358_v19, %v1158_v24  ;;  %v1340_v39 = vld [vmem:[#allocation2 + $0x34] sm:$0xf] }
  0x37   : > { %767 = vmatpush.bf16.msrb.mxu3 %v1703_v10  ;;  %v1286_v54 = vld [vmem:[#allocation2 + $0x1c8] sm:$0xf0]  ;;  %691 = vmatmul.bf16.vlgmr.msra.gmra.mxu1 %v1744_v20  ;;  %1923 = vst [vmem:[#allocation13_spill] sm:$0xff] %v1753_v26  ;;  %v1759_v37 = vor.u32 %v1374_v47, %v1222_v48  ;;  %v1086_v40 = vld [vmem:[#allocation2 + $0x38] sm:$0xf0] }
  0x38   : > { %726 = vmatpush.bf16.msrb.mxu0 %v1711_v22  ;;  %719 = vmatmul.bf16.vlgmr.msra.gmra.mxu3 %v1727_v49  ;;  %1924 = vst [vmem:[#allocation14_spill] sm:$0xff] %v1757_v30  ;;  %v1356_v42 = vld [vmem:[#allocation2 + $0xb4] sm:$0xf]  ;;  %v1762_v60 = vor.u32 %v1390_v53, %v1286_v54  ;;  %v1150_v2 = vld [vmem:[#allocation2 + $0xb8] sm:$0xf0] }
  0x39   : > { %740 = vmatpush.bf16.msrb.mxu1 %v1717_v32  ;;  %1925 = vst [vmem:[#allocation15_spill] sm:$0xff] %v1759_v37  ;;  %v1388_v13 = vld [vmem:[#allocation2 + $0x1b4] sm:$0xf]  ;;  %v1278_v15 = vld [vmem:[#allocation2 + $0x1b8] sm:$0xf0]  ;;  %v1769_v19 = vor.u32 %v1356_v42, %v1150_v2 }
  0x3a   : > { %754 = vmatpush.bf16.msrb.mxu2 %v1719_v36  ;;  %1926 = vst [vmem:[#allocation16_spill] sm:$0xff] %v1762_v60  ;;  %v1338_v47 = vld [vmem:[#allocation2 + $0x24] sm:$0xf]  ;;  %v1078_v48 = vld [vmem:[#allocation2 + $0x28] sm:$0xf0]  ;;  %v1774_v54 = vor.u32 %v1388_v13, %v1278_v15 }
  0x3b   : > { %768 = vmatpush.bf16.msrb.mxu3 %v1722_v41  ;;  %v1372_v41 = vld [vmem:[#allocation2 + $0x134] sm:$0xf]  ;;  %1928 = vst [vmem:[#allocation18_spill] sm:$0xff] %v1769_v19  ;;  %v1354_v53 = vld [vmem:[#allocation2 + $0xa4] sm:$0xf] }
  0x3c   : > { %727 = vmatpush.bf16.msrb.mxu0 %v1733_v61  ;;  %v1214_v61 = vld [vmem:[#allocation2 + $0x138] sm:$0xf0]  ;;  %1930 = vst [vmem:[#allocation20_spill] sm:$0xff] %v1774_v54  ;;  %v1336_v42 = vld [vmem:[#allocation2 + $0x14] sm:$0xf] }
  0x3d   : > { %741 = vmatpush.bf16.msrb.mxu1 %v1740_v4  ;;  %v1765_v4 = vor.u32 %v1340_v39, %v1086_v40  ;;  %v1771_v24 = vor.u32 %v1372_v41, %v1214_v61  ;;  %v1386_v39 = vld [vmem:[#allocation2 + $0x1a4] sm:$0xf]  ;;  %v1270_v40 = vld [vmem:[#allocation2 + $0x1a8] sm:$0xf0]  ;;  %v1070_v2 = vld [vmem:[#allocation2 + $0x18] sm:$0xf0] }
  0x3e   : > { %755 = vmatpush.bf16.msrb.mxu2 %v1742_v11  ;;  %v1370_v11 = vld [vmem:[#allocation2 + $0x124] sm:$0xf]  ;;  %v1352_v13 = vld [vmem:[#allocation2 + $0x94] sm:$0xf]  ;;  %v1786_v15 = vor.u32 %v1386_v39, %v1270_v40 }
  0x3f   : > { %769 = vmatpush.bf16.msrb.mxu3 %v1747_v18  ;;  %1927 = vst [vmem:[#allocation17_spill] sm:$0xff] %v1765_v4  ;;  %v1142_v18 = vld [vmem:[#allocation2 + $0xa8] sm:$0xf0]  ;;  %v1350_v39 = vld [vmem:[#allocation2 + $0x84] sm:$0xf] }
  0x40   : > { %728 = vmatpush.bf16.msrb.mxu0 %v1753_v26  ;;  %1929 = vst [vmem:[#allocation19_spill] sm:$0xff] %v1771_v24  ;;  %v1206_v26 = vld [vmem:[#allocation2 + $0x128] sm:$0xf0]  ;;  %v1781_v41 = vor.u32 %v1354_v53, %v1142_v18 }
  0x41   : > { %742 = vmatpush.bf16.msrb.mxu1 %v1757_v30  ;;  %v1777_v30 = vor.u32 %v1338_v47, %v1078_v48  ;;  %v1783_v61 = vor.u32 %v1370_v11, %v1206_v26  ;;  %v1384_v47 = vld [vmem:[#allocation2 + $0x194] sm:$0xf]  ;;  %v1262_v48 = vld [vmem:[#allocation2 + $0x198] sm:$0xf0]  ;;  %v1334_v26 = vld [vmem:[#allocation2 + $0x4] sm:$0xf] }
  0x42   : > { %756 = vmatpush.bf16.msrb.mxu2 %v1759_v37  ;;  %1932 = vst [vmem:[#allocation22_spill] sm:$0xff] %v1781_v41  ;;  %v1368_v37 = vld [vmem:[#allocation2 + $0x114] sm:$0xf]  ;;  %v1062_v53 = vld [vmem:[#allocation2 + $0x8] sm:$0xf0]  ;;  %v1798_v40 = vor.u32 %v1384_v47, %v1262_v48 }
  0x43   : > { %770 = vmatpush.bf16.msrb.mxu3 %v1762_v60  ;;  %1931 = vst [vmem:[#allocation21_spill] sm:$0xff] %v1777_v30  ;;  %v1134_v60 = vld [vmem:[#allocation2 + $0x98] sm:$0xf0] }
  0x44   : > { %729 = vmatpush.bf16.msrb.mxu0 %v1765_v4  ;;  %v1198_v4 = vld [vmem:[#allocation2 + $0x118] sm:$0xf0]  ;;  %v1793_v11 = vor.u32 %v1352_v13, %v1134_v60 }
  0x45   : > { %743 = vmatpush.bf16.msrb.mxu1 %v1769_v19  ;;  %v1789_v19 = vor.u32 %v1336_v42, %v1070_v2  ;;  %v1795_v18 = vor.u32 %v1368_v37, %v1198_v4  ;;  %v1382_v42 = vld [vmem:[#allocation2 + $0x184] sm:$0xf]  ;;  %v1254_v2 = vld [vmem:[#allocation2 + $0x188] sm:$0xf0] }
  0x46   : > { %757 = vmatpush.bf16.msrb.mxu2 %v1771_v24  ;;  %v1366_v24 = vld [vmem:[#allocation2 + $0x104] sm:$0xf]  ;;  %v1810_v60 = vor.u32 %v1382_v42, %v1254_v2 }
  0x47   : > { %771 = vmatpush.bf16.msrb.mxu3 %v1774_v54  ;;  %v1126_v54 = vld [vmem:[#allocation2 + $0x88] sm:$0xf0] }
  0x48   : > { %730 = vmatpush.bf16.msrb.mxu0 %v1777_v30  ;;  %v1190_v30 = vld [vmem:[#allocation2 + $0x108] sm:$0xf0]  ;;  %v1805_v4 = vor.u32 %v1350_v39, %v1126_v54 }
  0x49   : > { %744 = vmatpush.bf16.msrb.mxu1 %v1781_v41  ;;  %v1801_v41 = vor.u32 %v1334_v26, %v1062_v53  ;;  %v1807_v37 = vor.u32 %v1366_v24, %v1190_v30 }
  0x4a   : > { %758 = vmatpush.bf16.msrb.mxu2 %v1783_v61 }
  0x4b   : > { %772 = vmatpush.bf16.msrb.mxu3 %v1786_v15 }
  0x4c   : > { %731 = vmatpush.bf16.msrb.mxu0 %v1789_v19 }
  0x4d   : > { %745 = vmatpush.bf16.msrb.mxu1 %v1793_v11 }
  0x4e   : > { %759 = vmatpush.bf16.msrb.mxu2 %v1795_v18 }
  0x4f   : > { %773 = vmatpush.bf16.msrb.mxu3 %v1798_v40 }
  0x50   : > { %732 = vmatpush.bf16.msrb.mxu0 %v1801_v41 }
  0x51   : > { %746 = vmatpush.bf16.msrb.mxu1 %v1805_v4 }
  0x52   : > { %760 = vmatpush.bf16.msrb.mxu2 %v1807_v37 }
  0x53   : > { %774 = vmatpush.bf16.msrb.mxu3 %v1810_v60  ;;  %733 = vmatmul.bf16.vlgmr.msrb.gmra.mxu0 %v1735_v1 }
  0x54   : > { %805 = vmatpush.bf16.msra.mxu0 %v1586_v3  ;;  %747 = vmatmul.bf16.vlgmr.msrb.gmra.mxu1 %v1744_v20  ;;  %v1324_v3 = vld [vmem:[%s253_s12 + $0x8] sm:$0xf] }
  0x55   : > { %819 = vmatpush.bf16.msra.mxu1 %v1588_v7  ;;  %761 = vmatmul.bf16.vlgmr.msrb.gmra.mxu2 %v1713_v31  ;;  %v1405_v7 = vld [vmem:[%s253_s12 + $0x14] sm:$0xf0] }
  0x56   : > { %833 = vmatpush.bf16.msra.mxu2 %v1590_v8  ;;  %775 = vmatmul.bf16.vlgmr.msrb.gmra.mxu3 %v1727_v49  ;;  %v1403_v8 = vld [vmem:[%s253_s12 + $0xc] sm:$0xf] }
  0x57   : > { %847 = vmatpush.bf16.msra.mxu3 %v1593_v12  ;;  %v1326_v12 = vld [vmem:[%s253_s12 + $0x18] sm:$0xf0] }
  0x58   : > { %806 = vmatpush.bf16.msra.mxu0 %v1597_v16  ;;  %v1316_v16 = vld [vmem:[%s253_s12] sm:$0xf] }
  0x59   : > { %820 = vmatpush.bf16.msra.mxu1 %v1599_v17  ;;  %v1404_v17 = vld [vmem:[%s253_s12 + $0xc] sm:$0xf0] }
  0x5a   : > { %834 = vmatpush.bf16.msra.mxu2 %v1602_v21  ;;  %v1402_v21 = vld [vmem:[%s253_s12 + $0x4] sm:$0xf] }
  0x5b   : > { %848 = vmatpush.bf16.msra.mxu3 %v1604_v25  ;;  %v1318_v25 = vld [vmem:[%s253_s12 + $0x10] sm:$0xf0] }
  0x5c   : > { %807 = vmatpush.bf16.msra.mxu0 %v1607_v29  ;;  %v1325_v29 = vor.u32 %v1405_v7, %v1324_v3 }
  0x5d   : > { %821 = vmatpush.bf16.msra.mxu1 %v1611_v33  ;;  %v1329_v33 = vor.u32 %v1403_v8, %v1326_v12 }
  0x5e   : > { %835 = vmatpush.bf16.msra.mxu2 %v1613_v34  ;;  %v1317_v34 = vor.u32 %v1404_v17, %v1316_v16 }
  0x5f   : > { %849 = vmatpush.bf16.msra.mxu3 %v1616_v38  ;;  %v1321_v38 = vor.u32 %v1402_v21, %v1318_v25 }
  0x60   : > { %808 = vmatpush.bf16.msra.mxu0 %v1619_v44  ;;  %v1933_v44 = vld [vmem:[#allocation8_spill] sm:$0xff] }
  0x61   : > { %822 = vmatpush.bf16.msra.mxu1 %v1627_v45  ;;  %v1934_v45 = vld [vmem:[#allocation9_spill] sm:$0xff] }
  0x62   : > { %836 = vmatpush.bf16.msra.mxu2 %v1629_v46  ;;  %v1935_v46 = vld [vmem:[#allocation10_spill] sm:$0xff] }
  0x63   : > { %850 = vmatpush.bf16.msra.mxu3 %v1632_v50  ;;  %v1936_v50 = vld [vmem:[#allocation11_spill] sm:$0xff] }
  0x64   : > { %809 = vmatpush.bf16.msra.mxu0 %v1635_v56  ;;  %v1937_v56 = vld [vmem:[#allocation12_spill] sm:$0xff] }
  0x65   : > { %823 = vmatpush.bf16.msra.mxu1 %v1640_v57  ;;  %v1938_v57 = vld [vmem:[#allocation13_spill] sm:$0xff] }
  0x66   : > { %837 = vmatpush.bf16.msra.mxu2 %v1642_v58  ;;  %v1939_v58 = vld [vmem:[#allocation14_spill] sm:$0xff] }
  0x67   : > { %851 = vmatpush.bf16.msra.mxu3 %v1645_v62  ;;  %v1940_v62 = vld [vmem:[#allocation15_spill] sm:$0xff] }
  0x68   : > { %810 = vmatpush.bf16.msra.mxu0 %v1648_v5  ;;  %v1941_v5 = vld [vmem:[#allocation16_spill] sm:$0xff] }
  0x69   : > { %824 = vmatpush.bf16.msra.mxu1 %v1657_v6  ;;  %v1942_v6 = vld [vmem:[#allocation17_spill] sm:$0xff] }
  0x6a   : > { %838 = vmatpush.bf16.msra.mxu2 %v1659_v9  ;;  %v1943_v9 = vld [vmem:[#allocation18_spill] sm:$0xff] }
  0x6b   : > { %852 = vmatpush.bf16.msra.mxu3 %v1662_v14  ;;  %v1944_v14 = vld [vmem:[#allocation19_spill] sm:$0xff] }
  0x6c   : > { %811 = vmatpush.bf16.msra.mxu0 %v1665_v23  ;;  %v1945_v23 = vld [vmem:[#allocation20_spill] sm:$0xff] }
  0x6d   : > { %825 = vmatpush.bf16.msra.mxu1 %v1670_v27  ;;  %v1946_v27 = vld [vmem:[#allocation21_spill] sm:$0xff] }
  0x6e   : > { %839 = vmatpush.bf16.msra.mxu2 %v1672_v28  ;;  %v1947_v28 = vld [vmem:[#allocation22_spill] sm:$0xff] }
  0x6f   : > { %853 = vmatpush.bf16.msra.mxu3 %v1675_v35 }
  0x70   : > { %812 = vmatpush.bf16.msra.mxu0 %v1678_v43 }
  0x71   : > { %826 = vmatpush.bf16.msra.mxu1 %v1682_v51 }
  0x72   : > { %840 = vmatpush.bf16.msra.mxu2 %v1684_v52 }
  0x73   : > { %854 = vmatpush.bf16.msra.mxu3 %v1687_v55  ;;  %813 = vmatmul.bf16.vlgmr.msra.gmra.mxu0 %v1317_v34 }
  0x74   : > { %861 = vmatpush.bf16.msrb.mxu0 %v1689_v59  ;;  %827 = vmatmul.bf16.vlgmr.msra.gmra.mxu1 %v1321_v38 }
  0x75   : > { %875 = vmatpush.bf16.msrb.mxu1 %v1698_v63  ;;  %841 = vmatmul.bf16.vlgmr.msra.gmra.mxu2 %v1325_v29 }
  0x76   : > { %889 = vmatpush.bf16.msrb.mxu2 %v1700_v0  ;;  %855 = vmatmul.bf16.vlgmr.msra.gmra.mxu3 %v1329_v33 }
  0x77   : > { %903 = vmatpush.bf16.msrb.mxu3 %v1703_v10 }
  0x78   : > { %862 = vmatpush.bf16.msrb.mxu0 %v1711_v22 }
  0x79   : > { %876 = vmatpush.bf16.msrb.mxu1 %v1717_v32 }
  0x7a   : > { %890 = vmatpush.bf16.msrb.mxu2 %v1719_v36 }
  0x7b   : > { %904 = vmatpush.bf16.msrb.mxu3 %v1933_v44 }
  0x7c   : > { %863 = vmatpush.bf16.msrb.mxu0 %v1934_v45 }
  0x7d   : > { %877 = vmatpush.bf16.msrb.mxu1 %v1935_v46 }
  0x7e   : > { %891 = vmatpush.bf16.msrb.mxu2 %v1936_v50 }
  0x7f   : > { %905 = vmatpush.bf16.msrb.mxu3 %v1937_v56 }
  0x80   : > { %864 = vmatpush.bf16.msrb.mxu0 %v1938_v57 }
  0x81   : > { %878 = vmatpush.bf16.msrb.mxu1 %v1939_v58 }
  0x82   : > { %892 = vmatpush.bf16.msrb.mxu2 %v1940_v62 }
  0x83   : > { %906 = vmatpush.bf16.msrb.mxu3 %v1941_v5 }
  0x84   : > { %865 = vmatpush.bf16.msrb.mxu0 %v1942_v6  ;;  %v1442_v6 = vld [vmem:[#allocation4] ss:$0 sm:$0xff] }
  0x85   : > { %879 = vmatpush.bf16.msrb.mxu1 %v1943_v9 }
  0x86   : > { %893 = vmatpush.bf16.msrb.mxu2 %v1944_v14 }
  0x87   : > { %907 = vmatpush.bf16.msrb.mxu3 %v1945_v23 }
  0x88   : > { %866 = vmatpush.bf16.msrb.mxu0 %v1946_v27 }
  0x89   : > { %880 = vmatpush.bf16.msrb.mxu1 %v1947_v28 }
  0x8a   : > { %894 = vmatpush.bf16.msrb.mxu2 %v1783_v61 }
  0x8b   : > { %908 = vmatpush.bf16.msrb.mxu3 %v1786_v15 }
  0x8c   : > { %867 = vmatpush.bf16.msrb.mxu0 %v1789_v19 }
  0x8d   : > { %881 = vmatpush.bf16.msrb.mxu1 %v1793_v11 }
  0x8e   : > { %895 = vmatpush.bf16.msrb.mxu2 %v1795_v18 }
  0x8f   : > { %909 = vmatpush.bf16.msrb.mxu3 %v1798_v40 }
  0x90   : > { %868 = vmatpush.bf16.msrb.mxu0 %v1801_v41 }
  0x91   : > { %882 = vmatpush.bf16.msrb.mxu1 %v1805_v4 }
  0x92   : > { %896 = vmatpush.bf16.msrb.mxu2 %v1807_v37 }
  0x93   : > { %910 = vmatpush.bf16.msrb.mxu3 %v1810_v60  ;;  %869 = vmatmul.bf16.vlgmr.msrb.gmra.mxu0 %v1317_v34 }
  0x94   : > { %883 = vmatmul.bf16.vlgmr.msrb.gmra.mxu1 %v1321_v38 }
  0x95   : > { %897 = vmatmul.bf16.vlgmr.msrb.gmra.mxu2 %v1325_v29 }
  0x96   : > { %911 = vmatmul.bf16.vlgmr.msrb.gmra.mxu3 %v1329_v33 }
  0xb3   : > { %v678_v35 = vpop.f32.mrf.mxu0 }
  0xb4   : > { %v692_v43 = vpop.f32.mrf.mxu1 }
  0xb5   : > { %v693_v53 = vadd.f32 %v692_v43, %v678_v35 }
  0xb8   : > { %v706_v51 = vpop.f32.mrf.mxu2 }
  0xb9   : > { %v707_v60 = vadd.f32 %v706_v51, %v693_v53 }
  0xbb   : > { %v720_v52 = vpop.f32.mrf.mxu3  ;;  %v680_v55 = vpop.f32.mrf.mxu0 }
  0xbc   : > { %v694_v59 = vpop.f32.mrf.mxu1  ;;  %v721_v29 = vadd.f32 %v720_v52, %v707_v60 }
  0xbd   : > { %v695_v3 = vadd.f32 %v694_v59, %v680_v55 }
  0xc0   : > { %v708_v63 = vpop.f32.mrf.mxu2 }
  0xc1   : > { %v709_v33 = vadd.f32 %v708_v63, %v695_v3 }
  0xc3   : > { %v722_v0 = vpop.f32.mrf.mxu3 }
  0xc4   : > { %v723_v58 = vadd.f32 %v722_v0, %v709_v33 }
  0xd0   : > { %v734_v10 = vpop.f32.mrf.mxu0 }
  0xd1   : > { %v748_v22 = vpop.f32.mrf.mxu1 }
  0xd2   : > { %v749_v11 = vadd.f32 %v748_v22, %v734_v10 }
  0xd8   : > { %v762_v31 = vpop.f32.mrf.mxu2  ;;  %v736_v36 = vpop.f32.mrf.mxu0 }
  0xd9   : > { %v776_v32 = vpop.f32.mrf.mxu3  ;;  %v750_v49 = vpop.f32.mrf.mxu1  ;;  %v763_v40 = vadd.f32 %v762_v31, %v749_v11 }
  0xda   : > { %v751_v42 = vadd.f32 %v750_v49, %v736_v36 }
  0xdb   : > { %v777_v17 = vadd.f32 %v776_v32, %v763_v40 }
  0xdd   : > { %v917_v46 = vmax.f32 %v721_v29, %v777_v17 }
  0xe0   : > { %v764_v1 = vpop.f32.mrf.mxu2 }
  0xe1   : > { %v778_v20 = vpop.f32.mrf.mxu3  ;;  %v765_v21 = vadd.f32 %v764_v1, %v751_v42 }
  0xe3   : > { %v779_v50 = vadd.f32 %v778_v20, %v765_v21 }
  0xe5   : > { %v918_v14 = vmax.f32 %v723_v58, %v779_v50 }
  0xf0   : > { %v814_v30 = vpop.f32.mrf.mxu0 }
  0xf1   : > { %v828_v19 = vpop.f32.mrf.mxu1 }
  0xf2   : > { %v829_v18 = vadd.f32 %v828_v19, %v814_v30 }
  0xf8   : > { %v842_v24 = vpop.f32.mrf.mxu2  ;;  %v816_v41 = vpop.f32.mrf.mxu0 }
  0xf9   : > { %v856_v54 = vpop.f32.mrf.mxu3  ;;  %v830_v61 = vpop.f32.mrf.mxu1  ;;  %v843_v2 = vadd.f32 %v842_v24, %v829_v18 }
  0xfa   : > { %v831_v7 = vadd.f32 %v830_v61, %v816_v41 }
  0xfb   : > { %v857_v25 = vadd.f32 %v856_v54, %v843_v2 }
 0x100   : > { %v844_v13 = vpop.f32.mrf.mxu2 }
 0x101   : > { %v858_v15 = vpop.f32.mrf.mxu3  ;;  %v845_v34 = vadd.f32 %v844_v13, %v831_v7 }
 0x103   : > { %v859_v62 = vadd.f32 %v858_v15, %v845_v34 }
 0x110   : > { %v870_v47 = vpop.f32.mrf.mxu0 }
 0x111   : > { %v884_v48 = vpop.f32.mrf.mxu1 }
 0x112   : > { %v885_v26 = vadd.f32 %v884_v48, %v870_v47 }
 0x118   : > { %v898_v39 = vpop.f32.mrf.mxu2  ;;  %v872_v12 = vpop.f32.mrf.mxu0 }
 0x119   : > { %v899_v4 = vadd.f32 %v898_v39, %v885_v26  ;;  %v912_v37 = vpop.f32.mrf.mxu3  ;;  %v886_v16 = vpop.f32.mrf.mxu1 }
 0x11a   : > { %v887_v44 = vadd.f32 %v886_v16, %v872_v12 }
 0x11b   : > { %v913_v8 = vadd.f32 %v912_v37, %v899_v4 }
 0x11d   : > { %v919_v38 = vmax.f32 %v857_v25, %v913_v8 }
 0x11f   : > { %v921_v5 = vmax.f32 %v917_v46, %v919_v38 }
 0x120   : > { %v900_v45 = vpop.f32.mrf.mxu2 }
 0x121   : > { %v901_v56 = vadd.f32 %v900_v45, %v887_v44  ;;  %v914_v57 = vpop.f32.mrf.mxu3  ;;  %v927_v27 = vadd.f32 %v1442_v6, %v921_v5 }
 0x123   : > { %v915_v9 = vadd.f32 %v914_v57, %v901_v56  ;;  %v929_v43 = vmax.f32 %v927_v27, 0.0 }
 0x125   : > { %v920_v23 = vmax.f32 %v859_v62, %v915_v9 }
 0x127   : > { %v922_v28 = vmax.f32 %v918_v14, %v920_v23 }
 0x129   : > { %v928_v35 = vadd.f32 %v1442_v6, %v922_v28 }
 0x12b   : > { %v930_v51 = vmax.f32 %v928_v35, 0.0 }
 0x12d   : > { %v1409_v52 = vpack.c.bf16 %v930_v51, %v929_v43 }
 0x12f   : > { %1410 = vst [vmem:[%s259_s17] sm:$0xff] %v1409_v52  }
 0x130 PF: > { %s16_s15 = sadd.s32 1, %s1517_s15  }
 0x131   : > { %p13_p7 = scmp.ge.s32.totalorder %s16_s15, 4  }
 0x133   :  { %15 = sbr.rel (!%p13_p7) target bundleno = 2 (0x2), region = 78 }
 0x138   :  { %957 = vsyncpa [#allocation3], 1 }
 0x139   :  { %959 = vsyncpa [#allocation3 + $0x1], 1 }
 0x13a   :  { %960 = vsyncpa [#allocation5], 1 }

// kernel: simplenet_forward.3
= control target key start
LH: loop header
LB: loop body
LE: loop exit
PB: predicated region body
PF: predicated region fallthrough
CT: control target
= control target key end

     0   :  { %14 = vsyncpa [#allocation3], 0  ;;  %s17774_s0 = inlined_call_operand.vmem [shape: bf16[8,1280], index: 0, kind: input, shape index: {}]   ;;  %s17775_s1 = inlined_call_operand.hbm [shape: bf16[4,1280,512], index: 1, kind: input, shape index: {}]   ;;  %s17776_s2 = inlined_call_operand.hbm [shape: f32[1,512], index: 2, kind: input, shape index: {}]   ;;  %s17777_s3 = inlined_call_operand.hbm [shape: bf16[512,128], index: 3, kind: input, shape index: {}]   ;;  %s17778_s4 = inlined_call_operand.hbm [shape: f32[1,128], index: 4, kind: input, shape index: {}]   ;;  %s17779_s5 = inlined_call_operand.hbm [shape: bf16[128,128], index: 5, kind: input, shape index: {}]   ;;  %s17780_s6 = inlined_call_operand.hbm [shape: f32[1,128], index: 6, kind: input, shape index: {}]   ;;  %s17781_s7 = inlined_call_operand.hbm [shape: bf16[128,128], index: 7, kind: input, shape index: {}]   ;;  %s17782_s8 = inlined_call_operand.hbm [shape: f32[1,128], index: 8, kind: input, shape index: {}]   ;;  %s17783_s9 = inlined_call_operand.vmem [shape: f32[8,128], index: 9, kind: output, shape index: {}]  }
   0x1   :  { %15 = vsyncpa [#allocation5], 0 }
   0x2   :  { %16 = vsyncpa [#allocation8], 0 }
   0x3   :  { %17 = vsyncpa [#allocation11], 0  ;;  %s39_s11 = sshll.u32 %s17776_s2, 4  ;;  %s40_s11 = int_to_ptr.hbm [resolvable:$true] %s39_s11 }
   0x4   :  { %18 = vsyncpa [#allocation14], 0  ;;  %s17331_s12 = smov [#allocation4]   ;;  %s63_s16 = sshll.u32 %s17778_s4, 4  ;;  %s64_s16 = int_to_ptr.hbm [resolvable:$true] %s63_s16 }
   0x5   :  { %s41_s13 = sshll.u32 %s17331_s12, 4  ;;  %s17332_s17 = smov [#allocation7]   ;;  %s42_s13 = int_to_ptr.vmem [resolvable:$true] %s41_s13 }
   0x6   :  { %44 = dma.hbm_to_vmem [thread:$0]  %s40_s11, 64, %s42_s13, [#allocation5]  }
   0x7   :  { %s65_s18 = sshll.u32 %s17332_s17, 4  ;;  %s87_s21 = sshll.u32 %s17780_s6, 4  ;;  %s66_s18 = int_to_ptr.vmem [resolvable:$true] %s65_s18  ;;  %s88_s21 = int_to_ptr.hbm [resolvable:$true] %s87_s21 }
   0x8   :  { %68 = dma.hbm_to_vmem [thread:$0]  %s64_s16, 16, %s66_s18, [#allocation8]  }
   0x9   :  { %s25_s23 = sshll.u32 %s17775_s1, 4  ;;  %s17333_s24 = smov [#allocation10]   ;;  %s26_s23 = int_to_ptr.hbm [resolvable:$true] %s25_s23 }
   0xa   :  { %s89_s25 = sshll.u32 %s17333_s24, 4  ;;  %s17334_s4 = smov [#allocation2]   ;;  %s90_s25 = int_to_ptr.vmem [resolvable:$true] %s89_s25 }
   0xb   :  { %92 = dma.hbm_to_vmem [thread:$0]  %s88_s21, 16, %s90_s25, [#allocation11]  }
   0xc   :  { %s27_s26 = sshll.u32 %s17334_s4, 4  ;;  %s17335_s27 = smov 256   ;;  %s28_s26 = int_to_ptr.vmem [resolvable:$true] %s27_s26 }
   0xd   :  { %s17336_s28 = smov 16   ;;  %s49_s30 = sshll.u32 %s17777_s3, 4  ;;  %s50_s30 = int_to_ptr.hbm [resolvable:$true] %s49_s30 }
   0xe   :  { %33 = dma.hbm_to_vmem [thread:$0]  %s26_s23, 163840, %s28_s26, [#allocation3], %s17335_s27, %s17335_s27, %s17336_s28  }
   0xf   :  { %s17337_s10 = smov [#allocation6]   ;;  %s73_s13 = sshll.u32 %s17779_s5, 4  ;;  %s74_s13 = int_to_ptr.hbm [resolvable:$true] %s73_s13 }
  0x10   :  { %s51_s11 = sshll.u32 %s17337_s10, 4  ;;  %s17338_s14 = smov 64   ;;  %s52_s11 = int_to_ptr.vmem [resolvable:$true] %s51_s11 }
  0x11   :  { %s17339_s15 = smov 4   ;;  %s17340_s16 = smov [#allocation9]  }
  0x12   :  { %57 = dma.hbm_to_vmem [thread:$0]  %s50_s30, 4096, %s52_s11, [#allocation5], %s17338_s14, %s17338_s14, %s17339_s15  }
  0x13   :  { %s75_s17 = sshll.u32 %s17340_s16, 4  ;;  %s97_s20 = sshll.u32 %s17781_s7, 4  ;;  %s76_s17 = int_to_ptr.vmem [resolvable:$true] %s75_s17  ;;  %s98_s20 = int_to_ptr.hbm [resolvable:$true] %s97_s20 }
  0x14   :  { %81 = dma.hbm_to_vmem [thread:$0]  %s74_s13, 1024, %s76_s17, [#allocation8], %s17338_s14, %s17338_s14, %s17339_s15  }
  0x15   :  { %s111_s2 = sshll.u32 %s17782_s8, 4  ;;  %s17341_s22 = smov [#allocation12]   ;;  %s112_s2 = int_to_ptr.hbm [resolvable:$true] %s111_s2 }
  0x16   :  { %s99_s23 = sshll.u32 %s17341_s22, 4  ;;  %s17342_s5 = smov [#allocation13]   ;;  %s100_s23 = int_to_ptr.vmem [resolvable:$true] %s99_s23 }
  0x17   :  { %105 = dma.hbm_to_vmem [thread:$0]  %s98_s20, 1024, %s100_s23, [#allocation11], %s17338_s14, %s17338_s14, %s17339_s15  }
  0x18   :  { %s113_s24 = sshll.u32 %s17342_s5, 4  ;;  %s114_s24 = int_to_ptr.vmem [resolvable:$true] %s113_s24 }
  0x19   :  { %116 = dma.hbm_to_vmem [thread:$0]  %s112_s2, 16, %s114_s24, [#allocation14]  }
  0x1a   :  { %17321 = dma.done.wait [#allocation3], 163840  }
  0x1b   :  { %17322 = vsyncadd [#allocation3], 4294803456 }
  0x1c   :  { %17323 = dma.done.wait [#allocation5], 4160  }
  0x1d   :  { %17324 = vsyncadd [#allocation5], 4294963136 }
  0x1e   :  { %17325 = dma.done.wait [#allocation8], 1040  }
  0x1f   :  { %17326 = vsyncadd [#allocation8], 4294966256 }
  0x20   :  { %17327 = dma.done.wait [#allocation11], 1040  }
  0x21   :  { %17328 = vsyncadd [#allocation11], 4294966256 }
  0x22   :  { %17329 = dma.done.wait [#allocation14], 16  }
  0x23   :  { %17330 = vsyncadd [#allocation14], 4294967280  ;;  %v10588_v0 = vld [vmem:[#allocation2 + $0xe0] sm:$0xf]  ;;  %v15816_v1 = vld [vmem:[#allocation2 + $0xec] sm:$0xf0] }
  0x24   :  { %v10716_v2 = vld [vmem:[#allocation2 + $0x1e0] sm:$0xf]  ;;  %v10589_v3 = vor.u32 %v15816_v1, %v10588_v0  ;;  %v15848_v4 = vld [vmem:[#allocation2 + $0x1ec] sm:$0xf0] }
  0x25   :  { %v10844_v5 = vld [vmem:[#allocation2 + $0x2e0] sm:$0xf]  ;;  %v15880_v6 = vld [vmem:[#allocation2 + $0x2ec] sm:$0xf0]  ;;  %v10717_v7 = vor.u32 %v15848_v4, %v10716_v2 }
  0x26   :  { %v10845_v8 = vor.u32 %v15880_v6, %v10844_v5  ;;  %v10972_v9 = vld [vmem:[#allocation2 + $0x3e0] sm:$0xf]  ;;  %v15912_v10 = vld [vmem:[#allocation2 + $0x3ec] sm:$0xf0]  ;;  %2109 = vmatpush.bf16.msra.mxu0 %v10589_v3 }
  0x27   :  { %v10572_v11 = vld [vmem:[#allocation2 + $0xc0] sm:$0xf]  ;;  %v10973_v12 = vor.u32 %v15912_v10, %v10972_v9  ;;  %v15812_v13 = vld [vmem:[#allocation2 + $0xcc] sm:$0xf0]  ;;  %2122 = vmatpush.bf16.msra.mxu1 %v10717_v7 }
  0x28   :  { %v10700_v14 = vld [vmem:[#allocation2 + $0x1c0] sm:$0xf]  ;;  %v15844_v15 = vld [vmem:[#allocation2 + $0x1cc] sm:$0xf0]  ;;  %2135 = vmatpush.bf16.msra.mxu2 %v10845_v8  ;;  %v10573_v16 = vor.u32 %v15812_v13, %v10572_v11 }
  0x29   :  { %v10701_v17 = vor.u32 %v15844_v15, %v10700_v14  ;;  %v10828_v18 = vld [vmem:[#allocation2 + $0x2c0] sm:$0xf]  ;;  %v15876_v19 = vld [vmem:[#allocation2 + $0x2cc] sm:$0xf0]  ;;  %2148 = vmatpush.bf16.msra.mxu3 %v10973_v12 }
  0x2a   :  { %v10956_v20 = vld [vmem:[#allocation2 + $0x3c0] sm:$0xf]  ;;  %v10829_v21 = vor.u32 %v15876_v19, %v10828_v18  ;;  %v15908_v22 = vld [vmem:[#allocation2 + $0x3cc] sm:$0xf0]  ;;  %2110 = vmatpush.bf16.msra.mxu0 %v10573_v16 }
  0x2b   :  { %v10556_v23 = vld [vmem:[#allocation2 + $0xa0] sm:$0xf]  ;;  %v15808_v24 = vld [vmem:[#allocation2 + $0xac] sm:$0xf0]  ;;  %v10957_v25 = vor.u32 %v15908_v22, %v10956_v20  ;;  %2123 = vmatpush.bf16.msra.mxu1 %v10701_v17 }
  0x2c   :  { %v10684_v26 = vld [vmem:[#allocation2 + $0x1a0] sm:$0xf]  ;;  %v15840_v27 = vld [vmem:[#allocation2 + $0x1ac] sm:$0xf0]  ;;  %v10557_v29 = vor.u32 %v15808_v24, %v10556_v23  ;;  %2136 = vmatpush.bf16.msra.mxu2 %v10829_v21 }
  0x2d   :  { %v10812_v28 = vld [vmem:[#allocation2 + $0x2a0] sm:$0xf]  ;;  %v15872_v30 = vld [vmem:[#allocation2 + $0x2ac] sm:$0xf0]  ;;  %v10685_v33 = vor.u32 %v15840_v27, %v10684_v26  ;;  %2149 = vmatpush.bf16.msra.mxu3 %v10957_v25 }
  0x2e   :  { %v10940_v31 = vld [vmem:[#allocation2 + $0x3a0] sm:$0xf]  ;;  %v15904_v32 = vld [vmem:[#allocation2 + $0x3ac] sm:$0xf0]  ;;  %v10813_v34 = vor.u32 %v15872_v30, %v10812_v28  ;;  %2111 = vmatpush.bf16.msra.mxu0 %v10557_v29 }
  0x2f   :  { %v10540_v35 = vld [vmem:[#allocation2 + $0x80] sm:$0xf]  ;;  %v15804_v36 = vld [vmem:[#allocation2 + $0x8c] sm:$0xf0]  ;;  %v10941_v38 = vor.u32 %v15904_v32, %v10940_v31  ;;  %2124 = vmatpush.bf16.msra.mxu1 %v10685_v33 }
  0x30   :  { %v10668_v37 = vld [vmem:[#allocation2 + $0x180] sm:$0xf]  ;;  %v15836_v39 = vld [vmem:[#allocation2 + $0x18c] sm:$0xf0]  ;;  %v10541_v44 = vor.u32 %v15804_v36, %v10540_v35  ;;  %2137 = vmatpush.bf16.msra.mxu2 %v10813_v34 }
  0x31   :  { %v10796_v40 = vld [vmem:[#allocation2 + $0x280] sm:$0xf]  ;;  %v15868_v41 = vld [vmem:[#allocation2 + $0x28c] sm:$0xf0]  ;;  %v10669_v45 = vor.u32 %v15836_v39, %v10668_v37  ;;  %2150 = vmatpush.bf16.msra.mxu3 %v10941_v38 }
  0x32   :  { %v10924_v42 = vld [vmem:[#allocation2 + $0x380] sm:$0xf]  ;;  %v15900_v43 = vld [vmem:[#allocation2 + $0x38c] sm:$0xf0]  ;;  %v10797_v46 = vor.u32 %v15868_v41, %v10796_v40  ;;  %2112 = vmatpush.bf16.msra.mxu0 %v10541_v44 }
  0x33   :  { %v10524_v47 = vld [vmem:[#allocation2 + $0x60] sm:$0xf]  ;;  %v15800_v48 = vld [vmem:[#allocation2 + $0x6c] sm:$0xf0]  ;;  %v10925_v50 = vor.u32 %v15900_v43, %v10924_v42  ;;  %2125 = vmatpush.bf16.msra.mxu1 %v10669_v45 }
  0x34   :  { %v10652_v49 = vld [vmem:[#allocation2 + $0x160] sm:$0xf]  ;;  %v15832_v51 = vld [vmem:[#allocation2 + $0x16c] sm:$0xf0]  ;;  %v10525_v56 = vor.u32 %v15800_v48, %v10524_v47  ;;  %2138 = vmatpush.bf16.msra.mxu2 %v10797_v46 }
  0x35   :  { %v10780_v52 = vld [vmem:[#allocation2 + $0x260] sm:$0xf]  ;;  %v15864_v53 = vld [vmem:[#allocation2 + $0x26c] sm:$0xf0]  ;;  %v10653_v57 = vor.u32 %v15832_v51, %v10652_v49  ;;  %2151 = vmatpush.bf16.msra.mxu3 %v10925_v50 }
  0x36   :  { %v10908_v54 = vld [vmem:[#allocation2 + $0x360] sm:$0xf]  ;;  %v15896_v55 = vld [vmem:[#allocation2 + $0x36c] sm:$0xf0]  ;;  %v10781_v58 = vor.u32 %v15864_v53, %v10780_v52  ;;  %2113 = vmatpush.bf16.msra.mxu0 %v10525_v56 }
  0x37   :  { %v10508_v59 = vld [vmem:[#allocation2 + $0x40] sm:$0xf]  ;;  %v15796_v60 = vld [vmem:[#allocation2 + $0x4c] sm:$0xf0]  ;;  %v10909_v62 = vor.u32 %v15896_v55, %v10908_v54  ;;  %2126 = vmatpush.bf16.msra.mxu1 %v10653_v57 }
  0x38   :  { %v10636_v61 = vld [vmem:[#allocation2 + $0x140] sm:$0xf]  ;;  %v15828_v63 = vld [vmem:[#allocation2 + $0x14c] sm:$0xf0]  ;;  %v10509_v4 = vor.u32 %v15796_v60, %v10508_v59  ;;  %2139 = vmatpush.bf16.msra.mxu2 %v10781_v58  ;;  %v150_v58 = vld [vmem:[%s17774_s0 + $0x8] sm:$0xff] }
  0x39   :  { %v10764_v0 = vld [vmem:[#allocation2 + $0x240] sm:$0xf]  ;;  %v15860_v1 = vld [vmem:[#allocation2 + $0x24c] sm:$0xf0]  ;;  %v10637_v5 = vor.u32 %v15828_v63, %v10636_v61  ;;  %2152 = vmatpush.bf16.msra.mxu3 %v10909_v62  ;;  %v481_v63 = vunpack.c.l.b16 %v150_v58 }
  0x3a   :  { %v10892_v2 = vld [vmem:[#allocation2 + $0x340] sm:$0xf]  ;;  %v15892_v3 = vld [vmem:[#allocation2 + $0x34c] sm:$0xf0]  ;;  %v10765_v6 = vor.u32 %v15860_v1, %v10764_v0  ;;  %2114 = vmatpush.bf16.msra.mxu0 %v10509_v4  ;;  %v482_v0 = vunpack.c.h.b16 %v150_v58 }
  0x3b   :  { %v10492_v7 = vld [vmem:[#allocation2 + $0x20] sm:$0xf]  ;;  %v15792_v8 = vld [vmem:[#allocation2 + $0x2c] sm:$0xf0]  ;;  %v10893_v10 = vor.u32 %v15892_v3, %v10892_v2  ;;  %2127 = vmatpush.bf16.msra.mxu1 %v10637_v5  ;;  %v17420_v4 = vpack.c.b16 %v481_v63, %v481_v63 }
  0x3c   :  { %v10620_v9 = vld [vmem:[#allocation2 + $0x120] sm:$0xf]  ;;  %v15824_v11 = vld [vmem:[#allocation2 + $0x12c] sm:$0xf0]  ;;  %v10493_v16 = vor.u32 %v15792_v8, %v10492_v7  ;;  %2140 = vmatpush.bf16.msra.mxu2 %v10765_v6  ;;  %v17425_v6 = vpack.c.b16 %v482_v0, %v482_v0 }
  0x3d   :  { %v10748_v12 = vld [vmem:[#allocation2 + $0x220] sm:$0xf]  ;;  %v15856_v13 = vld [vmem:[#allocation2 + $0x22c] sm:$0xf0]  ;;  %v10621_v19 = vor.u32 %v15824_v11, %v10620_v9  ;;  %2153 = vmatpush.bf16.msra.mxu3 %v10893_v10 }
  0x3e   :  { %v10876_v14 = vld [vmem:[#allocation2 + $0x320] sm:$0xf]  ;;  %v15888_v15 = vld [vmem:[#allocation2 + $0x32c] sm:$0xf0]  ;;  %v10749_v20 = vor.u32 %v15856_v13, %v10748_v12  ;;  %2115 = vmatpush.bf16.msra.mxu0 %v10493_v16 }
  0x3f   :  { %v10476_v17 = vld [vmem:[#allocation2] sm:$0xf]  ;;  %v15788_v18 = vld [vmem:[#allocation2 + $0xc] sm:$0xf0]  ;;  %v10877_v24 = vor.u32 %v15888_v15, %v10876_v14  ;;  %2128 = vmatpush.bf16.msra.mxu1 %v10621_v19 }
  0x40   :  { %v10604_v21 = vld [vmem:[#allocation2 + $0x100] sm:$0xf]  ;;  %v15820_v22 = vld [vmem:[#allocation2 + $0x10c] sm:$0xf0]  ;;  %v10477_v31 = vor.u32 %v15788_v18, %v10476_v17  ;;  %2141 = vmatpush.bf16.msra.mxu2 %v10749_v20 }
  0x41   :  { %v10732_v23 = vld [vmem:[#allocation2 + $0x200] sm:$0xf]  ;;  %v15852_v25 = vld [vmem:[#allocation2 + $0x20c] sm:$0xf0]  ;;  %v10605_v35 = vor.u32 %v15820_v22, %v10604_v21  ;;  %2154 = vmatpush.bf16.msra.mxu3 %v10877_v24 }
  0x42   :  { %v10860_v26 = vld [vmem:[#allocation2 + $0x300] sm:$0xf]  ;;  %v15884_v27 = vld [vmem:[#allocation2 + $0x30c] sm:$0xf0]  ;;  %v10733_v36 = vor.u32 %v15852_v25, %v10732_v23  ;;  %2116 = vmatpush.bf16.msra.mxu0 %v10477_v31 }
  0x43   :  { %v11100_v28 = vld [vmem:[#allocation2 + $0x4e0] sm:$0xf]  ;;  %v15944_v29 = vld [vmem:[#allocation2 + $0x4ec] sm:$0xf0]  ;;  %v10861_v39 = vor.u32 %v15884_v27, %v10860_v26  ;;  %2129 = vmatpush.bf16.msra.mxu1 %v10605_v35 }
  0x44   :  { %v11228_v30 = vld [vmem:[#allocation2 + $0x5e0] sm:$0xf]  ;;  %v15976_v32 = vld [vmem:[#allocation2 + $0x5ec] sm:$0xf0]  ;;  %v11101_v40 = vor.u32 %v15944_v29, %v11100_v28  ;;  %2142 = vmatpush.bf16.msra.mxu2 %v10733_v36 }
  0x45   :  { %v11356_v33 = vld [vmem:[#allocation2 + $0x6e0] sm:$0xf]  ;;  %v16008_v34 = vld [vmem:[#allocation2 + $0x6ec] sm:$0xf0]  ;;  %v11229_v41 = vor.u32 %v15976_v32, %v11228_v30  ;;  %2155 = vmatpush.bf16.msra.mxu3 %v10861_v39 }
  0x46   :  { %v11484_v37 = vld [vmem:[#allocation2 + $0x7e0] sm:$0xf]  ;;  %v16040_v38 = vld [vmem:[#allocation2 + $0x7ec] sm:$0xf0]  ;;  %v11357_v42 = vor.u32 %v16008_v34, %v11356_v33  ;;  %2161 = vmatpush.bf16.msrb.mxu0 %v11101_v40 }
  0x47   :  { %v11084_v43 = vld [vmem:[#allocation2 + $0x4c0] sm:$0xf]  ;;  %v15940_v44 = vld [vmem:[#allocation2 + $0x4cc] sm:$0xf0]  ;;  %v11485_v46 = vor.u32 %v16040_v38, %v11484_v37  ;;  %2174 = vmatpush.bf16.msrb.mxu1 %v11229_v41  ;;  %2143 = vmatmul.bf16.vlgmr.msra.gmra.mxu2 %v17420_v4 }
  0x48   :  { %v11212_v45 = vld [vmem:[#allocation2 + $0x5c0] sm:$0xf]  ;;  %v15972_v47 = vld [vmem:[#allocation2 + $0x5cc] sm:$0xf0]  ;;  %v11085_v52 = vor.u32 %v15940_v44, %v11084_v43  ;;  %2187 = vmatpush.bf16.msrb.mxu2 %v11357_v42  ;;  %2156 = vmatmul.bf16.vlgmr.msra.gmra.mxu3 %v17425_v6 }
  0x49   :  { %v11340_v48 = vld [vmem:[#allocation2 + $0x6c0] sm:$0xf]  ;;  %v16004_v49 = vld [vmem:[#allocation2 + $0x6cc] sm:$0xf0]  ;;  %v11213_v54 = vor.u32 %v15972_v47, %v11212_v45  ;;  %2200 = vmatpush.bf16.msrb.mxu3 %v11485_v46 }
  0x4a   :  { %v11468_v50 = vld [vmem:[#allocation2 + $0x7c0] sm:$0xf]  ;;  %v16036_v51 = vld [vmem:[#allocation2 + $0x7cc] sm:$0xf0]  ;;  %v11341_v55 = vor.u32 %v16004_v49, %v11340_v48  ;;  %2162 = vmatpush.bf16.msrb.mxu0 %v11085_v52 }
  0x4b   :  { %v11068_v53 = vld [vmem:[#allocation2 + $0x4a0] sm:$0xf]  ;;  %v15936_v56 = vld [vmem:[#allocation2 + $0x4ac] sm:$0xf0]  ;;  %v11469_v59 = vor.u32 %v16036_v51, %v11468_v50  ;;  %2175 = vmatpush.bf16.msrb.mxu1 %v11213_v54 }
  0x4c   :  { %v11196_v57 = vld [vmem:[#allocation2 + $0x5a0] sm:$0xf]  ;;  %v15968_v60 = vld [vmem:[#allocation2 + $0x5ac] sm:$0xf0]  ;;  %v11069_v3 = vor.u32 %v15936_v56, %v11068_v53  ;;  %2188 = vmatpush.bf16.msrb.mxu2 %v11341_v55 }
  0x4d   :  { %v11324_v61 = vld [vmem:[#allocation2 + $0x6a0] sm:$0xf]  ;;  %v16000_v62 = vld [vmem:[#allocation2 + $0x6ac] sm:$0xf0]  ;;  %v11197_v7 = vor.u32 %v15968_v60, %v11196_v57  ;;  %2201 = vmatpush.bf16.msrb.mxu3 %v11469_v59 }
  0x4e   :  { %v11452_v1 = vld [vmem:[#allocation2 + $0x7a0] sm:$0xf]  ;;  %v16032_v2 = vld [vmem:[#allocation2 + $0x7ac] sm:$0xf0]  ;;  %v11325_v8 = vor.u32 %v16000_v62, %v11324_v61  ;;  %2163 = vmatpush.bf16.msrb.mxu0 %v11069_v3  ;;  %v152_v3 = vld [vmem:[%s17774_s0 + $0x18] sm:$0xff] }
  0x4f   :  { %v149_v5 = vld [vmem:[%s17774_s0] sm:$0xff]  ;;  %v15932_v10 = vld [vmem:[#allocation2 + $0x48c] sm:$0xf0]  ;;  %v11453_v14 = vor.u32 %v16032_v2, %v11452_v1  ;;  %2176 = vmatpush.bf16.msrb.mxu1 %v11197_v7 }
  0x50   :  { %v11052_v9 = vld [vmem:[#allocation2 + $0x480] sm:$0xf]  ;;  %v479_v12 = vunpack.c.l.b16 %v149_v5  ;;  %v480_v13 = vunpack.c.h.b16 %v149_v5  ;;  %v15964_v15 = vld [vmem:[#allocation2 + $0x58c] sm:$0xf0]  ;;  %2189 = vmatpush.bf16.msrb.mxu2 %v11325_v8 }
  0x51   :  { %v11180_v11 = vld [vmem:[#allocation2 + $0x580] sm:$0xf]  ;;  %v15996_v17 = vld [vmem:[#allocation2 + $0x68c] sm:$0xf0]  ;;  %v11053_v22 = vor.u32 %v15932_v10, %v11052_v9  ;;  %2202 = vmatpush.bf16.msrb.mxu3 %v11453_v14 }
  0x52   :  { %v11308_v16 = vld [vmem:[#allocation2 + $0x680] sm:$0xf]  ;;  %v16028_v19 = vld [vmem:[#allocation2 + $0x78c] sm:$0xf0]  ;;  %v17428_v20 = vpack.c.b16 %v479_v12, %v479_v12  ;;  %v17431_v21 = vpack.c.b16 %v480_v13, %v480_v13  ;;  %v11181_v23 = vor.u32 %v15964_v15, %v11180_v11  ;;  %v15814_v15 = vld [vmem:[#allocation2 + $0xe4] sm:$0xf] }
  0x53   :  { %v11436_v18 = vld [vmem:[#allocation2 + $0x780] sm:$0xf]  ;;  %v11309_v24 = vor.u32 %v15996_v17, %v11308_v16  ;;  %v15928_v26 = vld [vmem:[#allocation2 + $0x46c] sm:$0xf0]  ;;  %2164 = vmatpush.bf16.msrb.mxu0 %v11053_v22  ;;  %v10590_v16 = vld [vmem:[#allocation2 + $0xf0] sm:$0xf0]  ;;  %v485_v17 = vunpack.c.l.b16 %v152_v3 }
  0x54   :  { %v11036_v25 = vld [vmem:[#allocation2 + $0x460] sm:$0xf]  ;;  %v11437_v28 = vor.u32 %v16028_v19, %v11436_v18  ;;  %v15960_v29 = vld [vmem:[#allocation2 + $0x56c] sm:$0xf0]  ;;  %2117 = vmatmul.bf16.vlgmr.msra.gmra.mxu0 %v17428_v20  ;;  %2130 = vmatmul.bf16.vlgmr.msra.gmra.mxu1 %v17431_v21  ;;  %v15846_v22 = vld [vmem:[#allocation2 + $0x1e4] sm:$0xf] }
  0x55   :  { %v11164_v27 = vld [vmem:[#allocation2 + $0x560] sm:$0xf]  ;;  %v15992_v31 = vld [vmem:[#allocation2 + $0x66c] sm:$0xf0]  ;;  %v11037_v34 = vor.u32 %v15928_v26, %v11036_v25  ;;  %2177 = vmatpush.bf16.msrb.mxu1 %v11181_v23  ;;  %2190 = vmatpush.bf16.msrb.mxu2 %v11309_v24  ;;  %v10718_v23 = vld [vmem:[#allocation2 + $0x1f0] sm:$0xf0]  ;;  %v486_v25 = vunpack.c.h.b16 %v152_v3 }
  0x56   :  { %v11292_v30 = vld [vmem:[#allocation2 + $0x660] sm:$0xf]  ;;  %v16024_v33 = vld [vmem:[#allocation2 + $0x76c] sm:$0xf0]  ;;  %v11165_v35 = vor.u32 %v15960_v29, %v11164_v27  ;;  %2203 = vmatpush.bf16.msrb.mxu3 %v11437_v28  ;;  %v10670_v3 = vld [vmem:[#allocation2 + $0x190] sm:$0xf0] }
  0x57   :  { %v11420_v32 = vld [vmem:[#allocation2 + $0x760] sm:$0xf]  ;;  %v11293_v36 = vor.u32 %v15992_v31, %v11292_v30  ;;  %v15924_v38 = vld [vmem:[#allocation2 + $0x44c] sm:$0xf0]  ;;  %2165 = vmatpush.bf16.msrb.mxu0 %v11037_v34  ;;  %v10593_v30 = vor.u32 %v15814_v15, %v10590_v16  ;;  %v10721_v34 = vor.u32 %v15846_v22, %v10718_v23  ;;  %v10526_v15 = vld [vmem:[#allocation2 + $0x70] sm:$0xf0] }
  0x58   :  { %v11020_v37 = vld [vmem:[#allocation2 + $0x440] sm:$0xf]  ;;  %v11421_v40 = vor.u32 %v16024_v33, %v11420_v32  ;;  %v15956_v41 = vld [vmem:[#allocation2 + $0x54c] sm:$0xf0]  ;;  %v15830_v16 = vld [vmem:[#allocation2 + $0x164] sm:$0xf] }
  0x59   :  { %v11148_v39 = vld [vmem:[#allocation2 + $0x540] sm:$0xf]  ;;  %v15988_v43 = vld [vmem:[#allocation2 + $0x64c] sm:$0xf0]  ;;  %v11021_v46 = vor.u32 %v15924_v38, %v11020_v37  ;;  %2178 = vmatpush.bf16.msrb.mxu1 %v11165_v35  ;;  %2191 = vmatpush.bf16.msrb.mxu2 %v11293_v36  ;;  %v15810_v36 = vld [vmem:[#allocation2 + $0xc4] sm:$0xf]  ;;  %v17441_v38 = vpack.c.b16 %v485_v17, %v485_v17 }
  0x5a   :  { %v11276_v42 = vld [vmem:[#allocation2 + $0x640] sm:$0xf]  ;;  %v16020_v45 = vld [vmem:[#allocation2 + $0x74c] sm:$0xf0]  ;;  %v11149_v47 = vor.u32 %v15956_v41, %v11148_v39  ;;  %2204 = vmatpush.bf16.msrb.mxu3 %v11421_v40  ;;  %v10574_v37 = vld [vmem:[#allocation2 + $0xd0] sm:$0xf0] }
  0x5b   :  { %v11404_v44 = vld [vmem:[#allocation2 + $0x740] sm:$0xf]  ;;  %v11277_v48 = vor.u32 %v15988_v43, %v11276_v42  ;;  %v15920_v50 = vld [vmem:[#allocation2 + $0x42c] sm:$0xf0]  ;;  %2166 = vmatpush.bf16.msrb.mxu0 %v11021_v46  ;;  %v15842_v39 = vld [vmem:[#allocation2 + $0x1c4] sm:$0xf]  ;;  %v17445_v42 = vpack.c.b16 %v486_v25, %v486_v25  ;;  %v10577_v46 = vor.u32 %v15810_v36, %v10574_v37 }
  0x5c   :  { %v11004_v49 = vld [vmem:[#allocation2 + $0x420] sm:$0xf]  ;;  %v11405_v52 = vor.u32 %v16020_v45, %v11404_v44  ;;  %v15952_v53 = vld [vmem:[#allocation2 + $0x52c] sm:$0xf0]  ;;  %v10702_v40 = vld [vmem:[#allocation2 + $0x1d0] sm:$0xf0] }
  0x5d   :  { %v11132_v51 = vld [vmem:[#allocation2 + $0x520] sm:$0xf]  ;;  %v15984_v55 = vld [vmem:[#allocation2 + $0x62c] sm:$0xf0]  ;;  %v11005_v59 = vor.u32 %v15920_v50, %v11004_v49  ;;  %2179 = vmatpush.bf16.msrb.mxu1 %v11149_v47  ;;  %2192 = vmatpush.bf16.msrb.mxu2 %v11277_v48  ;;  %v10705_v50 = vor.u32 %v15842_v39, %v10702_v40  ;;  %v10654_v17 = vld [vmem:[#allocation2 + $0x170] sm:$0xf0] }
  0x5e   :  { %v11260_v54 = vld [vmem:[#allocation2 + $0x620] sm:$0xf]  ;;  %v16016_v57 = vld [vmem:[#allocation2 + $0x72c] sm:$0xf0]  ;;  %v11133_v63 = vor.u32 %v15952_v53, %v11132_v51  ;;  %2205 = vmatpush.bf16.msrb.mxu3 %v11405_v52  ;;  %v15806_v52 = vld [vmem:[#allocation2 + $0xa4] sm:$0xf] }
  0x5f   :  { %v11388_v56 = vld [vmem:[#allocation2 + $0x720] sm:$0xf]  ;;  %v15916_v60 = vld [vmem:[#allocation2 + $0x40c] sm:$0xf0]  ;;  %v11261_v0 = vor.u32 %v15984_v55, %v11260_v54  ;;  %2167 = vmatpush.bf16.msrb.mxu0 %v11005_v59  ;;  %v10558_v53 = vld [vmem:[#allocation2 + $0xb0] sm:$0xf0] }
  0x60   :  { %v10988_v58 = vld [vmem:[#allocation2 + $0x400] sm:$0xf]  ;;  %v15948_v62 = vld [vmem:[#allocation2 + $0x50c] sm:$0xf0]  ;;  %v11389_v5 = vor.u32 %v16016_v57, %v11388_v56  ;;  %v15838_v54 = vld [vmem:[#allocation2 + $0x1a4] sm:$0xf] }
  0x61   :  { %v11116_v61 = vld [vmem:[#allocation2 + $0x500] sm:$0xf]  ;;  %v15980_v2 = vld [vmem:[#allocation2 + $0x60c] sm:$0xf0]  ;;  %v10989_v13 = vor.u32 %v15916_v60, %v10988_v58  ;;  %2180 = vmatpush.bf16.msrb.mxu1 %v11133_v63  ;;  %2193 = vmatpush.bf16.msrb.mxu2 %v11261_v0  ;;  %v10686_v55 = vld [vmem:[#allocation2 + $0x1b0] sm:$0xf0]  ;;  %v10561_v58 = vor.u32 %v15806_v52, %v10558_v53 }
  0x62   :  { %v11244_v1 = vld [vmem:[#allocation2 + $0x600] sm:$0xf]  ;;  %v16012_v8 = vld [vmem:[#allocation2 + $0x70c] sm:$0xf0]  ;;  %v11117_v18 = vor.u32 %v15948_v62, %v11116_v61  ;;  %2206 = vmatpush.bf16.msrb.mxu3 %v11389_v5  ;;  %v10689_v62 = vor.u32 %v15838_v54, %v10686_v55  ;;  %v15802_v0 = vld [vmem:[#allocation2 + $0x84] sm:$0xf] }
  0x63   :  { %v11372_v7 = vld [vmem:[#allocation2 + $0x700] sm:$0xf]  ;;  %v151_v9 = vld [vmem:[%s17774_s0 + $0x10] sm:$0xff]  ;;  %v11245_v19 = vor.u32 %v15980_v2, %v11244_v1  ;;  %2168 = vmatpush.bf16.msrb.mxu0 %v10989_v13  ;;  %v15834_v2 = vld [vmem:[#allocation2 + $0x184] sm:$0xf] }
  0x64   :  { %v11612_v10 = vld [vmem:[#allocation2 + $0x8e0] sm:$0xf]  ;;  %v16072_v11 = vld [vmem:[#allocation2 + $0x8ec] sm:$0xf0]  ;;  %v483_v24 = vunpack.c.l.b16 %v151_v9  ;;  %v11373_v26 = vor.u32 %v16012_v8, %v11372_v7  ;;  %v484_v28 = vunpack.c.h.b16 %v151_v9  ;;  %v10542_v1 = vld [vmem:[#allocation2 + $0x90] sm:$0xf0] }
  0x65   :  { %v11740_v12 = vld [vmem:[#allocation2 + $0x9e0] sm:$0xf]  ;;  %v16104_v14 = vld [vmem:[#allocation2 + $0x9ec] sm:$0xf0]  ;;  %v11613_v27 = vor.u32 %v16072_v11, %v11612_v10  ;;  %2181 = vmatpush.bf16.msrb.mxu1 %v11117_v18  ;;  %2194 = vmatpush.bf16.msrb.mxu2 %v11245_v19  ;;  %v10545_v8 = vor.u32 %v15802_v0, %v10542_v1  ;;  %v15786_v55 = vld [vmem:[#allocation2 + $0x4] sm:$0xf] }
  0x66   :  { %v11741_v29 = vor.u32 %v16104_v14, %v11740_v12  ;;  %v11596_v31 = vld [vmem:[#allocation2 + $0x8c0] sm:$0xf]  ;;  %v16068_v32 = vld [vmem:[#allocation2 + $0x8cc] sm:$0xf0]  ;;  %v17443_v41 = vpack.c.b16 %v483_v24, %v483_v24  ;;  %2207 = vmatpush.bf16.msrb.mxu3 %v11373_v26  ;;  %v17447_v44 = vpack.c.b16 %v484_v28, %v484_v28  ;;  %v10673_v12 = vor.u32 %v15834_v2, %v10670_v3  ;;  %v15798_v14 = vld [vmem:[#allocation2 + $0x64] sm:$0xf] }
  0x67   :  { %v11724_v33 = vld [vmem:[#allocation2 + $0x9c0] sm:$0xf]  ;;  %v16100_v35 = vld [vmem:[#allocation2 + $0x9cc] sm:$0xf0]  ;;  %2213 = vmatpush.bf16.msra.mxu0 %v11613_v27  ;;  %v11597_v43 = vor.u32 %v16068_v32, %v11596_v31  ;;  %v10529_v22 = vor.u32 %v15798_v14, %v10526_v15  ;;  %v10657_v26 = vor.u32 %v15830_v16, %v10654_v17  ;;  %v15794_v28 = vld [vmem:[#allocation2 + $0x44] sm:$0xf] }
  0x68   :  { %v11725_v45 = vor.u32 %v16100_v35, %v11724_v33  ;;  %v11580_v47 = vld [vmem:[#allocation2 + $0x8a0] sm:$0xf]  ;;  %v16064_v48 = vld [vmem:[#allocation2 + $0x8ac] sm:$0xf0]  ;;  %2195 = vmatmul.bf16.vlgmr.msrb.gmra.mxu2 %v17441_v38  ;;  %2169 = vmatmul.bf16.vlgmr.msrb.gmra.mxu0 %v17443_v41  ;;  %v10638_v31 = vld [vmem:[#allocation2 + $0x150] sm:$0xf0] }
  0x69   :  { %2226 = vmatpush.bf16.msra.mxu1 %v11741_v29  ;;  %2239 = vmatpush.bf16.msra.mxu2 %v10593_v30  ;;  %v11708_v49 = vld [vmem:[#allocation2 + $0x9a0] sm:$0xf]  ;;  %v16096_v51 = vld [vmem:[#allocation2 + $0x9ac] sm:$0xf0]  ;;  %v11581_v56 = vor.u32 %v16064_v48, %v11580_v47  ;;  %v10510_v29 = vld [vmem:[#allocation2 + $0x50] sm:$0xf0] }
  0x6a   :  { %2252 = vmatpush.bf16.msra.mxu3 %v10721_v34  ;;  %2182 = vmatmul.bf16.vlgmr.msrb.gmra.mxu1 %v17447_v44  ;;  %v11709_v57 = vor.u32 %v16096_v51, %v11708_v49  ;;  %v11564_v59 = vld [vmem:[#allocation2 + $0x880] sm:$0xf]  ;;  %v16060_v60 = vld [vmem:[#allocation2 + $0x88c] sm:$0xf0]  ;;  %v15826_v30 = vld [vmem:[#allocation2 + $0x144] sm:$0xf]  ;;  %v10513_v35 = vor.u32 %v15794_v28, %v10510_v29 }
  0x6b   :  { %2208 = vmatmul.bf16.vlgmr.msrb.gmra.mxu3 %v17445_v42  ;;  %2214 = vmatpush.bf16.msra.mxu0 %v11597_v43  ;;  %v11692_v61 = vld [vmem:[#allocation2 + $0x980] sm:$0xf]  ;;  %v16092_v63 = vld [vmem:[#allocation2 + $0x98c] sm:$0xf0]  ;;  %v11565_v5 = vor.u32 %v16060_v60, %v11564_v59  ;;  %v10641_v40 = vor.u32 %v15826_v30, %v10638_v31  ;;  %v15790_v43 = vld [vmem:[#allocation2 + $0x24] sm:$0xf] }
  0x6c   :  { %v11693_v7 = vor.u32 %v16092_v63, %v11692_v61  ;;  %v11548_v9 = vld [vmem:[#allocation2 + $0x860] sm:$0xf]  ;;  %v16056_v10 = vld [vmem:[#allocation2 + $0x86c] sm:$0xf0]  ;;  %v10622_v47 = vld [vmem:[#allocation2 + $0x130] sm:$0xf0] }
  0x6d   :  { %2227 = vmatpush.bf16.msra.mxu1 %v11725_v45  ;;  %2240 = vmatpush.bf16.msra.mxu2 %v10577_v46  ;;  %v11676_v11 = vld [vmem:[#allocation2 + $0x960] sm:$0xf]  ;;  %v16088_v13 = vld [vmem:[#allocation2 + $0x96c] sm:$0xf0]  ;;  %v11549_v18 = vor.u32 %v16056_v10, %v11548_v9  ;;  %v10494_v45 = vld [vmem:[#allocation2 + $0x30] sm:$0xf0] }
  0x6e   :  { %2253 = vmatpush.bf16.msra.mxu3 %v10705_v50  ;;  %v11677_v19 = vor.u32 %v16088_v13, %v11676_v11  ;;  %v11532_v23 = vld [vmem:[#allocation2 + $0x840] sm:$0xf]  ;;  %v16052_v24 = vld [vmem:[#allocation2 + $0x84c] sm:$0xf0]  ;;  %v15822_v46 = vld [vmem:[#allocation2 + $0x124] sm:$0xf]  ;;  %v10497_v53 = vor.u32 %v15790_v43, %v10494_v45 }
  0x6f   :  { %2215 = vmatpush.bf16.msra.mxu0 %v11581_v56  ;;  %v11660_v25 = vld [vmem:[#allocation2 + $0x940] sm:$0xf]  ;;  %v16084_v27 = vld [vmem:[#allocation2 + $0x94c] sm:$0xf0]  ;;  %v11533_v32 = vor.u32 %v16052_v24, %v11532_v23  ;;  %v15818_v59 = vld [vmem:[#allocation2 + $0x104] sm:$0xf] }
  0x70   :  { %v11516_v33 = vld [vmem:[#allocation2 + $0x820] sm:$0xf]  ;;  %v11661_v34 = vor.u32 %v16084_v27, %v11660_v25  ;;  %v16048_v36 = vld [vmem:[#allocation2 + $0x82c] sm:$0xf0]  ;;  %v10606_v60 = vld [vmem:[#allocation2 + $0x110] sm:$0xf0] }
  0x71   :  { %2228 = vmatpush.bf16.msra.mxu1 %v11709_v57  ;;  %2241 = vmatpush.bf16.msra.mxu2 %v10561_v58  ;;  %v11644_v37 = vld [vmem:[#allocation2 + $0x920] sm:$0xf]  ;;  %v16080_v39 = vld [vmem:[#allocation2 + $0x92c] sm:$0xf0]  ;;  %v11517_v48 = vor.u32 %v16048_v36, %v11516_v33  ;;  %v10625_v57 = vor.u32 %v15822_v46, %v10622_v47  ;;  %v10478_v58 = vld [vmem:[#allocation2 + $0x10] sm:$0xf0] }
  0x72   :  { %2254 = vmatpush.bf16.msra.mxu3 %v10689_v62  ;;  %v11500_v49 = vld [vmem:[#allocation2 + $0x800] sm:$0xf]  ;;  %v16044_v50 = vld [vmem:[#allocation2 + $0x80c] sm:$0xf0]  ;;  %v11645_v52 = vor.u32 %v16080_v39, %v11644_v37  ;;  %v15878_v61 = vld [vmem:[#allocation2 + $0x2e4] sm:$0xf] }
  0x73   :  { %2216 = vmatpush.bf16.msra.mxu0 %v11565_v5  ;;  %v11628_v51 = vld [vmem:[#allocation2 + $0x900] sm:$0xf]  ;;  %v16076_v54 = vld [vmem:[#allocation2 + $0x90c] sm:$0xf0]  ;;  %v10846_v62 = vld [vmem:[#allocation2 + $0x2f0] sm:$0xf0]  ;;  %v11501_v0 = vor.u32 %v16044_v50, %v11500_v49 }
  0x74   :  { %v153_v56 = vld [vmem:[%s17774_s0 + $0x20] sm:$0xff]  ;;  %v10974_v1 = vld [vmem:[#allocation2 + $0x3f0] sm:$0xf0]  ;;  %v10849_v13 = vor.u32 %v15878_v61, %v10846_v62 }
  0x75   :  { %2229 = vmatpush.bf16.msra.mxu1 %v11693_v7  ;;  %2242 = vmatpush.bf16.msra.mxu2 %v10545_v8  ;;  %v15910_v63 = vld [vmem:[#allocation2 + $0x3e4] sm:$0xf]  ;;  %v11102_v3 = vld [vmem:[#allocation2 + $0x4f0] sm:$0xf0]  ;;  %v487_v5 = vunpack.c.l.b16 %v153_v56  ;;  %v11629_v7 = vor.u32 %v16076_v54, %v11628_v51  ;;  %v10481_v8 = vor.u32 %v15786_v55, %v10478_v58  ;;  %v488_v11 = vunpack.c.h.b16 %v153_v56 }
  0x76   :  { %2255 = vmatpush.bf16.msra.mxu3 %v10673_v12  ;;  %v15942_v2 = vld [vmem:[#allocation2 + $0x4e4] sm:$0xf]  ;;  %v11230_v10 = vld [vmem:[#allocation2 + $0x5f0] sm:$0xf0]  ;;  %v10609_v12 = vor.u32 %v15818_v59, %v10606_v60  ;;  %v10977_v14 = vor.u32 %v15910_v63, %v10974_v1 }
  0x77   :  { %2217 = vmatpush.bf16.msra.mxu0 %v11549_v18  ;;  %v15974_v9 = vld [vmem:[#allocation2 + $0x5e4] sm:$0xf]  ;;  %v11105_v15 = vor.u32 %v15942_v2, %v11102_v3  ;;  %v10830_v17 = vld [vmem:[#allocation2 + $0x2d0] sm:$0xf0] }
  0x78   :  { %v15874_v16 = vld [vmem:[#allocation2 + $0x2c4] sm:$0xf]  ;;  %v10958_v23 = vld [vmem:[#allocation2 + $0x3d0] sm:$0xf0] }
  0x79   :  { %2230 = vmatpush.bf16.msra.mxu1 %v11677_v19  ;;  %2243 = vmatpush.bf16.msra.mxu2 %v10529_v22  ;;  %v15906_v18 = vld [vmem:[#allocation2 + $0x3c4] sm:$0xf]  ;;  %v11233_v19 = vor.u32 %v15974_v9, %v11230_v10  ;;  %v17456_v22 = vpack.c.b16 %v487_v5, %v487_v5  ;;  %v11086_v25 = vld [vmem:[#allocation2 + $0x4d0] sm:$0xf0]  ;;  %v10833_v29 = vor.u32 %v15874_v16, %v10830_v17 }
  0x7a   :  { %2256 = vmatpush.bf16.msra.mxu3 %v10657_v26  ;;  %v15938_v24 = vld [vmem:[#allocation2 + $0x4c4] sm:$0xf]  ;;  %v17458_v26 = vpack.c.b16 %v488_v11, %v488_v11  ;;  %v11214_v28 = vld [vmem:[#allocation2 + $0x5d0] sm:$0xf0]  ;;  %v10961_v30 = vor.u32 %v15906_v18, %v10958_v23 }
  0x7b   :  { %2218 = vmatpush.bf16.msra.mxu0 %v11533_v32  ;;  %v15970_v27 = vld [vmem:[#allocation2 + $0x5c4] sm:$0xf]  ;;  %v11089_v31 = vor.u32 %v15938_v24, %v11086_v25  ;;  %v10814_v33 = vld [vmem:[#allocation2 + $0x2b0] sm:$0xf0] }
  0x7c   :  { %v15870_v32 = vld [vmem:[#allocation2 + $0x2a4] sm:$0xf]  ;;  %v10942_v36 = vld [vmem:[#allocation2 + $0x3b0] sm:$0xf0] }
  0x7d   :  { %2231 = vmatpush.bf16.msra.mxu1 %v11661_v34  ;;  %2244 = vmatpush.bf16.msra.mxu2 %v10513_v35  ;;  %v15902_v34 = vld [vmem:[#allocation2 + $0x3a4] sm:$0xf]  ;;  %v11217_v35 = vor.u32 %v15970_v27, %v11214_v28  ;;  %v11070_v39 = vld [vmem:[#allocation2 + $0x4b0] sm:$0xf0]  ;;  %v10817_v45 = vor.u32 %v15870_v32, %v10814_v33 }
  0x7e   :  { %2257 = vmatpush.bf16.msra.mxu3 %v10641_v40  ;;  %v15934_v37 = vld [vmem:[#allocation2 + $0x4a4] sm:$0xf]  ;;  %v11198_v43 = vld [vmem:[#allocation2 + $0x5b0] sm:$0xf0]  ;;  %v10945_v46 = vor.u32 %v15902_v34, %v10942_v36 }
  0x7f   :  { %2219 = vmatpush.bf16.msra.mxu0 %v11517_v48  ;;  %v15966_v40 = vld [vmem:[#allocation2 + $0x5a4] sm:$0xf]  ;;  %v11073_v47 = vor.u32 %v15934_v37, %v11070_v39  ;;  %v10798_v49 = vld [vmem:[#allocation2 + $0x290] sm:$0xf0] }
  0x80   :  { %v15866_v48 = vld [vmem:[#allocation2 + $0x284] sm:$0xf]  ;;  %v11201_v51 = vor.u32 %v15966_v40, %v11198_v43  ;;  %v11054_v54 = vld [vmem:[#allocation2 + $0x490] sm:$0xf0] }
  0x81   :  { %2232 = vmatpush.bf16.msra.mxu1 %v11645_v52  ;;  %2245 = vmatpush.bf16.msra.mxu2 %v10497_v53  ;;  %v15898_v50 = vld [vmem:[#allocation2 + $0x384] sm:$0xf]  ;;  %v10926_v52 = vld [vmem:[#allocation2 + $0x390] sm:$0xf0] }
  0x82   :  { %2258 = vmatpush.bf16.msra.mxu3 %v10625_v57  ;;  %v15930_v53 = vld [vmem:[#allocation2 + $0x484] sm:$0xf]  ;;  %v11182_v56 = vld [vmem:[#allocation2 + $0x590] sm:$0xf0]  ;;  %v10801_v57 = vor.u32 %v15866_v48, %v10798_v49  ;;  %v10929_v58 = vor.u32 %v15898_v50, %v10926_v52 }
  0x83   :  { %2220 = vmatpush.bf16.msra.mxu0 %v11501_v0  ;;  %v15962_v55 = vld [vmem:[#allocation2 + $0x584] sm:$0xf]  ;;  %v11057_v59 = vor.u32 %v15930_v53, %v11054_v54  ;;  %v10782_v61 = vld [vmem:[#allocation2 + $0x270] sm:$0xf0] }
  0x84   :  { %v15862_v60 = vld [vmem:[#allocation2 + $0x264] sm:$0xf]  ;;  %v11185_v63 = vor.u32 %v15962_v55, %v11182_v56  ;;  %v10910_v0 = vld [vmem:[#allocation2 + $0x370] sm:$0xf0] }
  0x85   :  { %2233 = vmatpush.bf16.msra.mxu1 %v11629_v7  ;;  %2246 = vmatpush.bf16.msra.mxu2 %v10481_v8  ;;  %v15894_v62 = vld [vmem:[#allocation2 + $0x364] sm:$0xf]  ;;  %v11038_v2 = vld [vmem:[#allocation2 + $0x470] sm:$0xf0]  ;;  %v10785_v7 = vor.u32 %v15862_v60, %v10782_v61 }
  0x86   :  { %2259 = vmatpush.bf16.msra.mxu3 %v10609_v12  ;;  %2221 = vmatmul.bf16.vlgmr.msra.gmra.mxu0 %v17456_v22  ;;  %v15926_v1 = vld [vmem:[#allocation2 + $0x464] sm:$0xf]  ;;  %v11166_v5 = vld [vmem:[#allocation2 + $0x570] sm:$0xf0]  ;;  %v10913_v8 = vor.u32 %v15894_v62, %v10910_v0 }
  0x87   :  { %2265 = vmatpush.bf16.msrb.mxu0 %v10849_v13  ;;  %v15958_v3 = vld [vmem:[#allocation2 + $0x564] sm:$0xf]  ;;  %v11041_v9 = vor.u32 %v15926_v1, %v11038_v2  ;;  %v10766_v11 = vld [vmem:[#allocation2 + $0x250] sm:$0xf0] }
  0x88   :  { %2234 = vmatmul.bf16.vlgmr.msra.gmra.mxu1 %v17458_v26  ;;  %2247 = vmatmul.bf16.vlgmr.msra.gmra.mxu2 %v17428_v20  ;;  %v15858_v10 = vld [vmem:[#allocation2 + $0x244] sm:$0xf]  ;;  %v11169_v13 = vor.u32 %v15958_v3, %v11166_v5  ;;  %v11022_v16 = vld [vmem:[#allocation2 + $0x450] sm:$0xf0] }
  0x89   :  { %2278 = vmatpush.bf16.msrb.mxu1 %v10977_v14  ;;  %2291 = vmatpush.bf16.msrb.mxu2 %v11105_v15  ;;  %v15890_v12 = vld [vmem:[#allocation2 + $0x344] sm:$0xf]  ;;  %v10894_v14 = vld [vmem:[#allocation2 + $0x350] sm:$0xf0] }
  0x8a   :  { %2304 = vmatpush.bf16.msrb.mxu3 %v11233_v19  ;;  %v15922_v15 = vld [vmem:[#allocation2 + $0x444] sm:$0xf]  ;;  %v11150_v18 = vld [vmem:[#allocation2 + $0x550] sm:$0xf0]  ;;  %v10769_v19 = vor.u32 %v15858_v10, %v10766_v11  ;;  %v10897_v23 = vor.u32 %v15890_v12, %v10894_v14 }
  0x8b   :  { %2266 = vmatpush.bf16.msrb.mxu0 %v10833_v29  ;;  %2260 = vmatmul.bf16.vlgmr.msra.gmra.mxu3 %v17431_v21  ;;  %v15954_v17 = vld [vmem:[#allocation2 + $0x544] sm:$0xf]  ;;  %v11025_v24 = vor.u32 %v15922_v15, %v11022_v16  ;;  %v10750_v27 = vld [vmem:[#allocation2 + $0x230] sm:$0xf0] }
  0x8c   :  { %v15854_v25 = vld [vmem:[#allocation2 + $0x224] sm:$0xf]  ;;  %v11153_v29 = vor.u32 %v15954_v17, %v11150_v18  ;;  %v11006_v32 = vld [vmem:[#allocation2 + $0x430] sm:$0xf0] }
  0x8d   :  { %2279 = vmatpush.bf16.msrb.mxu1 %v10961_v30  ;;  %2292 = vmatpush.bf16.msrb.mxu2 %v11089_v31  ;;  %v15886_v28 = vld [vmem:[#allocation2 + $0x324] sm:$0xf]  ;;  %v10878_v30 = vld [vmem:[#allocation2 + $0x330] sm:$0xf0] }
  0x8e   :  { %2305 = vmatpush.bf16.msrb.mxu3 %v11217_v35  ;;  %v15918_v31 = vld [vmem:[#allocation2 + $0x424] sm:$0xf]  ;;  %v11134_v34 = vld [vmem:[#allocation2 + $0x530] sm:$0xf0]  ;;  %v10753_v35 = vor.u32 %v15854_v25, %v10750_v27  ;;  %v10881_v39 = vor.u32 %v15886_v28, %v10878_v30 }
  0x8f   :  { %2267 = vmatpush.bf16.msrb.mxu0 %v10817_v45  ;;  %v15950_v33 = vld [vmem:[#allocation2 + $0x524] sm:$0xf]  ;;  %v10734_v37 = vld [vmem:[#allocation2 + $0x210] sm:$0xf0]  ;;  %v11009_v40 = vor.u32 %v15918_v31, %v11006_v32 }
  0x90   :  { %v15850_v36 = vld [vmem:[#allocation2 + $0x204] sm:$0xf]  ;;  %v10862_v45 = vld [vmem:[#allocation2 + $0x310] sm:$0xf0] }
  0x91   :  { %2280 = vmatpush.bf16.msrb.mxu1 %v10945_v46  ;;  %2293 = vmatpush.bf16.msrb.mxu2 %v11073_v47  ;;  %v15882_v43 = vld [vmem:[#allocation2 + $0x304] sm:$0xf]  ;;  %v11137_v47 = vor.u32 %v15950_v33, %v11134_v34  ;;  %v10990_v48 = vld [vmem:[#allocation2 + $0x410] sm:$0xf0]  ;;  %v10737_v54 = vor.u32 %v15850_v36, %v10734_v37 }
  0x92   :  { %2306 = vmatpush.bf16.msrb.mxu3 %v11201_v51  ;;  %v15914_v46 = vld [vmem:[#allocation2 + $0x404] sm:$0xf]  ;;  %v11118_v50 = vld [vmem:[#allocation2 + $0x510] sm:$0xf0] }
  0x93   :  { %2268 = vmatpush.bf16.msrb.mxu0 %v10801_v57  ;;  %v15946_v49 = vld [vmem:[#allocation2 + $0x504] sm:$0xf]  ;;  %v11358_v52 = vld [vmem:[#allocation2 + $0x6f0] sm:$0xf0] }
  0x94   :  { %v16006_v51 = vld [vmem:[#allocation2 + $0x6e4] sm:$0xf]  ;;  %v11486_v55 = vld [vmem:[#allocation2 + $0x7f0] sm:$0xf0]  ;;  %v11121_v62 = vor.u32 %v15946_v49, %v11118_v50 }
  0x95   :  { %2281 = vmatpush.bf16.msrb.mxu1 %v10929_v58  ;;  %2294 = vmatpush.bf16.msrb.mxu2 %v11057_v59  ;;  %v16038_v53 = vld [vmem:[#allocation2 + $0x7e4] sm:$0xf]  ;;  %v11614_v57 = vld [vmem:[#allocation2 + $0x8f0] sm:$0xf0]  ;;  %v10865_v58 = vor.u32 %v15882_v43, %v10862_v45  ;;  %v10993_v59 = vor.u32 %v15914_v46, %v10990_v48 }
  0x96   :  { %2307 = vmatpush.bf16.msrb.mxu3 %v11185_v63  ;;  %v16070_v56 = vld [vmem:[#allocation2 + $0x8e4] sm:$0xf]  ;;  %v11742_v61 = vld [vmem:[#allocation2 + $0x9f0] sm:$0xf0]  ;;  %v11361_v63 = vor.u32 %v16006_v51, %v11358_v52  ;;  %v11489_v0 = vor.u32 %v16038_v53, %v11486_v55 }
  0x97   :  { %2269 = vmatpush.bf16.msrb.mxu0 %v10785_v7  ;;  %v16102_v60 = vld [vmem:[#allocation2 + $0x9e4] sm:$0xf]  ;;  %v11617_v1 = vor.u32 %v16070_v56, %v11614_v57  ;;  %v11342_v3 = vld [vmem:[#allocation2 + $0x6d0] sm:$0xf0] }
  0x98   :  { %v16002_v2 = vld [vmem:[#allocation2 + $0x6c4] sm:$0xf]  ;;  %v11745_v7 = vor.u32 %v16102_v60, %v11742_v61  ;;  %v11598_v10 = vld [vmem:[#allocation2 + $0x8d0] sm:$0xf0] }
  0x99   :  { %2282 = vmatpush.bf16.msrb.mxu1 %v10913_v8  ;;  %2295 = vmatpush.bf16.msrb.mxu2 %v11041_v9  ;;  %v16034_v5 = vld [vmem:[#allocation2 + $0x7c4] sm:$0xf]  ;;  %v11470_v8 = vld [vmem:[#allocation2 + $0x7d0] sm:$0xf0] }
  0x9a   :  { %2308 = vmatpush.bf16.msrb.mxu3 %v11169_v13  ;;  %v16066_v9 = vld [vmem:[#allocation2 + $0x8c4] sm:$0xf]  ;;  %v11726_v12 = vld [vmem:[#allocation2 + $0x9d0] sm:$0xf0]  ;;  %v11345_v13 = vor.u32 %v16002_v2, %v11342_v3  ;;  %v11473_v14 = vor.u32 %v16034_v5, %v11470_v8 }
  0x9b   :  { %2270 = vmatpush.bf16.msrb.mxu0 %v10769_v19  ;;  %v16098_v11 = vld [vmem:[#allocation2 + $0x9c4] sm:$0xf]  ;;  %v11601_v15 = vor.u32 %v16066_v9, %v11598_v10  ;;  %v11326_v17 = vld [vmem:[#allocation2 + $0x6b0] sm:$0xf0] }
  0x9c   :  { %v15998_v16 = vld [vmem:[#allocation2 + $0x6a4] sm:$0xf]  ;;  %v11729_v19 = vor.u32 %v16098_v11, %v11726_v12  ;;  %v11582_v25 = vld [vmem:[#allocation2 + $0x8b0] sm:$0xf0] }
  0x9d   :  { %2283 = vmatpush.bf16.msrb.mxu1 %v10897_v23  ;;  %2296 = vmatpush.bf16.msrb.mxu2 %v11025_v24  ;;  %v16030_v18 = vld [vmem:[#allocation2 + $0x7a4] sm:$0xf]  ;;  %v11454_v23 = vld [vmem:[#allocation2 + $0x7b0] sm:$0xf0] }
  0x9e   :  { %2309 = vmatpush.bf16.msrb.mxu3 %v11153_v29  ;;  %v16062_v24 = vld [vmem:[#allocation2 + $0x8a4] sm:$0xf]  ;;  %v11710_v28 = vld [vmem:[#allocation2 + $0x9b0] sm:$0xf0]  ;;  %v11329_v29 = vor.u32 %v15998_v16, %v11326_v17  ;;  %v11457_v30 = vor.u32 %v16030_v18, %v11454_v23 }
  0x9f   :  { %2271 = vmatpush.bf16.msrb.mxu0 %v10753_v35  ;;  %v16094_v27 = vld [vmem:[#allocation2 + $0x9a4] sm:$0xf]  ;;  %v11585_v31 = vor.u32 %v16062_v24, %v11582_v25  ;;  %v11310_v33 = vld [vmem:[#allocation2 + $0x690] sm:$0xf0] }
  0xa0   :  { %v15994_v32 = vld [vmem:[#allocation2 + $0x684] sm:$0xf]  ;;  %v11713_v35 = vor.u32 %v16094_v27, %v11710_v28  ;;  %v11438_v36 = vld [vmem:[#allocation2 + $0x790] sm:$0xf0] }
  0xa1   :  { %2284 = vmatpush.bf16.msrb.mxu1 %v10881_v39  ;;  %2297 = vmatpush.bf16.msrb.mxu2 %v11009_v40  ;;  %v16026_v34 = vld [vmem:[#allocation2 + $0x784] sm:$0xf]  ;;  %v11566_v39 = vld [vmem:[#allocation2 + $0x890] sm:$0xf0]  ;;  %v11313_v45 = vor.u32 %v15994_v32, %v11310_v33 }
  0xa2   :  { %2310 = vmatpush.bf16.msrb.mxu3 %v11137_v47  ;;  %v16058_v37 = vld [vmem:[#allocation2 + $0x884] sm:$0xf]  ;;  %v11694_v43 = vld [vmem:[#allocation2 + $0x990] sm:$0xf0]  ;;  %v11441_v46 = vor.u32 %v16026_v34, %v11438_v36  ;;  %v15817_v36 = vld [vmem:[#allocation2 + $0xf4] sm:$0xf0] }
  0xa3   :  { %2272 = vmatpush.bf16.msrb.mxu0 %v10737_v54  ;;  %v16090_v40 = vld [vmem:[#allocation2 + $0x984] sm:$0xf]  ;;  %v11569_v47 = vor.u32 %v16058_v37, %v11566_v39  ;;  %v11294_v49 = vld [vmem:[#allocation2 + $0x670] sm:$0xf0]  ;;  %v10724_v37 = vld [vmem:[#allocation2 + $0x1e8] sm:$0xf] }
  0xa4   :  { %v15990_v48 = vld [vmem:[#allocation2 + $0x664] sm:$0xf]  ;;  %v11697_v51 = vor.u32 %v16090_v40, %v11694_v43  ;;  %v11422_v52 = vld [vmem:[#allocation2 + $0x770] sm:$0xf0]  ;;  %v15849_v40 = vld [vmem:[#allocation2 + $0x1f4] sm:$0xf0] }
  0xa5   :  { %2285 = vmatpush.bf16.msrb.mxu1 %v10865_v58  ;;  %2298 = vmatpush.bf16.msrb.mxu2 %v10993_v59  ;;  %v16022_v50 = vld [vmem:[#allocation2 + $0x764] sm:$0xf]  ;;  %v11550_v54 = vld [vmem:[#allocation2 + $0x870] sm:$0xf0]  ;;  %v11297_v57 = vor.u32 %v15990_v48, %v11294_v49  ;;  %v10852_v43 = vld [vmem:[#allocation2 + $0x2e8] sm:$0xf] }
  0xa6   :  { %2311 = vmatpush.bf16.msrb.mxu3 %v11121_v62  ;;  %2273 = vmatmul.bf16.vlgmr.msrb.gmra.mxu0 %v17420_v4  ;;  %v16054_v53 = vld [vmem:[#allocation2 + $0x864] sm:$0xf]  ;;  %v11678_v56 = vld [vmem:[#allocation2 + $0x970] sm:$0xf0]  ;;  %v11425_v58 = vor.u32 %v16022_v50, %v11422_v52  ;;  %v10980_v48 = vld [vmem:[#allocation2 + $0x3e8] sm:$0xf]  ;;  %v10725_v52 = vor.u32 %v15849_v40, %v10724_v37 }
  0xa7   :  { %2317 = vmatpush.bf16.msra.mxu0 %v11361_v63  ;;  %v16086_v55 = vld [vmem:[#allocation2 + $0x964] sm:$0xf]  ;;  %v11553_v59 = vor.u32 %v16054_v53, %v11550_v54  ;;  %v11278_v61 = vld [vmem:[#allocation2 + $0x650] sm:$0xf0]  ;;  %v15913_v49 = vld [vmem:[#allocation2 + $0x3f4] sm:$0xf0] }
  0xa8   :  { %2299 = vmatmul.bf16.vlgmr.msrb.gmra.mxu2 %v17443_v41  ;;  %2286 = vmatmul.bf16.vlgmr.msrb.gmra.mxu1 %v17425_v6  ;;  %v15986_v60 = vld [vmem:[#allocation2 + $0x644] sm:$0xf]  ;;  %v11681_v63 = vor.u32 %v16086_v55, %v11678_v56  ;;  %v11534_v2 = vld [vmem:[#allocation2 + $0x850] sm:$0xf0]  ;;  %v10580_v54 = vld [vmem:[#allocation2 + $0xc8] sm:$0xf] }
  0xa9   :  { %2330 = vmatpush.bf16.msra.mxu1 %v11489_v0  ;;  %2343 = vmatpush.bf16.msra.mxu2 %v11617_v1  ;;  %v16018_v62 = vld [vmem:[#allocation2 + $0x744] sm:$0xf]  ;;  %v11406_v0 = vld [vmem:[#allocation2 + $0x750] sm:$0xf0]  ;;  %v15813_v55 = vld [vmem:[#allocation2 + $0xd4] sm:$0xf0] }
  0xaa   :  { %2356 = vmatpush.bf16.msra.mxu3 %v11745_v7  ;;  %v16050_v1 = vld [vmem:[#allocation2 + $0x844] sm:$0xf]  ;;  %v11662_v5 = vld [vmem:[#allocation2 + $0x950] sm:$0xf0]  ;;  %v11281_v7 = vor.u32 %v15986_v60, %v11278_v61  ;;  %v11409_v8 = vor.u32 %v16018_v62, %v11406_v0  ;;  %v10708_v56 = vld [vmem:[#allocation2 + $0x1c8] sm:$0xf] }
  0xab   :  { %2312 = vmatmul.bf16.vlgmr.msrb.gmra.mxu3 %v17447_v44  ;;  %2318 = vmatpush.bf16.msra.mxu0 %v11345_v13  ;;  %v16082_v3 = vld [vmem:[#allocation2 + $0x944] sm:$0xf]  ;;  %v11537_v9 = vor.u32 %v16050_v1, %v11534_v2  ;;  %v11262_v11 = vld [vmem:[#allocation2 + $0x630] sm:$0xf0]  ;;  %v15877_v60 = vld [vmem:[#allocation2 + $0x2d4] sm:$0xf0] }
  0xac   :  { %v15982_v10 = vld [vmem:[#allocation2 + $0x624] sm:$0xf]  ;;  %v11665_v13 = vor.u32 %v16082_v3, %v11662_v5  ;;  %v11518_v16 = vld [vmem:[#allocation2 + $0x830] sm:$0xf0]  ;;  %v10964_v61 = vld [vmem:[#allocation2 + $0x3c8] sm:$0xf] }
  0xad   :  { %2331 = vmatpush.bf16.msra.mxu1 %v11473_v14  ;;  %2344 = vmatpush.bf16.msra.mxu2 %v11601_v15  ;;  %v16014_v12 = vld [vmem:[#allocation2 + $0x724] sm:$0xf]  ;;  %v11390_v14 = vld [vmem:[#allocation2 + $0x730] sm:$0xf0]  ;;  %v15909_v62 = vld [vmem:[#allocation2 + $0x3d4] sm:$0xf0] }
  0xae   :  { %2357 = vmatpush.bf16.msra.mxu3 %v11729_v19  ;;  %v16046_v15 = vld [vmem:[#allocation2 + $0x824] sm:$0xf]  ;;  %v11646_v18 = vld [vmem:[#allocation2 + $0x930] sm:$0xf0]  ;;  %v11265_v19 = vor.u32 %v15982_v10, %v11262_v11  ;;  %v11393_v25 = vor.u32 %v16014_v12, %v11390_v14  ;;  %v10564_v2 = vld [vmem:[#allocation2 + $0xa8] sm:$0xf] }
  0xaf   :  { %2319 = vmatpush.bf16.msra.mxu0 %v11329_v29  ;;  %v16078_v17 = vld [vmem:[#allocation2 + $0x924] sm:$0xf]  ;;  %v11246_v24 = vld [vmem:[#allocation2 + $0x610] sm:$0xf0]  ;;  %v11521_v27 = vor.u32 %v16046_v15, %v11518_v16  ;;  %v15809_v3 = vld [vmem:[#allocation2 + $0xb4] sm:$0xf0] }
  0xb0   :  { %v15978_v23 = vld [vmem:[#allocation2 + $0x604] sm:$0xf]  ;;  %v11374_v29 = vld [vmem:[#allocation2 + $0x710] sm:$0xf0]  ;;  %v10692_v5 = vld [vmem:[#allocation2 + $0x1a8] sm:$0xf] }
  0xb1   :  { %2332 = vmatpush.bf16.msra.mxu1 %v11457_v30  ;;  %2345 = vmatpush.bf16.msra.mxu2 %v11585_v31  ;;  %v16010_v28 = vld [vmem:[#allocation2 + $0x704] sm:$0xf]  ;;  %v11649_v31 = vor.u32 %v16078_v17, %v11646_v18  ;;  %v11502_v32 = vld [vmem:[#allocation2 + $0x810] sm:$0xf0]  ;;  %v11249_v39 = vor.u32 %v15978_v23, %v11246_v24  ;;  %v15873_v10 = vld [vmem:[#allocation2 + $0x2b4] sm:$0xf0] }
  0xb2   :  { %2358 = vmatpush.bf16.msra.mxu3 %v11713_v35  ;;  %v16042_v30 = vld [vmem:[#allocation2 + $0x804] sm:$0xf]  ;;  %v11630_v34 = vld [vmem:[#allocation2 + $0x910] sm:$0xf0]  ;;  %v10596_v35 = vld [vmem:[#allocation2 + $0xe8] sm:$0xf] }
  0xb3   :  { %2320 = vmatpush.bf16.msra.mxu0 %v11313_v45  ;;  %v16074_v33 = vld [vmem:[#allocation2 + $0x904] sm:$0xf]  ;;  %v15881_v45 = vld [vmem:[#allocation2 + $0x2f4] sm:$0xf0]  ;;  %v10948_v11 = vld [vmem:[#allocation2 + $0x3a8] sm:$0xf] }
  0xb4   :  { %v11633_v50 = vor.u32 %v16074_v33, %v11630_v34  ;;  %v10853_v53 = vor.u32 %v15881_v45, %v10852_v43  ;;  %v15905_v12 = vld [vmem:[#allocation2 + $0x3b4] sm:$0xf0]  ;;  %v10548_v16 = vld [vmem:[#allocation2 + $0x88] sm:$0xf] }
  0xb5   :  { %2333 = vmatpush.bf16.msra.mxu1 %v11441_v46  ;;  %2346 = vmatpush.bf16.msra.mxu2 %v11569_v47  ;;  %v11377_v46 = vor.u32 %v16010_v28, %v11374_v29  ;;  %v11505_v47 = vor.u32 %v16042_v30, %v11502_v32  ;;  %v15805_v17 = vld [vmem:[#allocation2 + $0x94] sm:$0xf0]  ;;  %v10676_v18 = vld [vmem:[#allocation2 + $0x188] sm:$0xf] }
  0xb6   :  { %2359 = vmatpush.bf16.msra.mxu3 %v11697_v51  ;;  %v10597_v51 = vor.u32 %v15817_v36, %v10596_v35  ;;  %v15837_v23 = vld [vmem:[#allocation2 + $0x194] sm:$0xf0]  ;;  %v10804_v24 = vld [vmem:[#allocation2 + $0x288] sm:$0xf]  ;;  %v10549_v29 = vor.u32 %v15805_v17, %v10548_v16 }
  0xb7   :  { %2321 = vmatpush.bf16.msra.mxu0 %v11297_v57  ;;  %v10981_v57 = vor.u32 %v15913_v49, %v10980_v48  ;;  %v15901_v28 = vld [vmem:[#allocation2 + $0x394] sm:$0xf0]  ;;  %v10677_v30 = vor.u32 %v15837_v23, %v10676_v18  ;;  %v10532_v32 = vld [vmem:[#allocation2 + $0x68] sm:$0xf] }
  0xb8   :  { %v15801_v33 = vld [vmem:[#allocation2 + $0x74] sm:$0xf0]  ;;  %v10660_v34 = vld [vmem:[#allocation2 + $0x168] sm:$0xf] }
  0xb9   :  { %2334 = vmatpush.bf16.msra.mxu1 %v11425_v58  ;;  %2347 = vmatpush.bf16.msra.mxu2 %v11553_v59  ;;  %v15845_v58 = vld [vmem:[#allocation2 + $0x1d4] sm:$0xf0]  ;;  %v10836_v59 = vld [vmem:[#allocation2 + $0x2c8] sm:$0xf]  ;;  %v10533_v45 = vor.u32 %v15801_v33, %v10532_v32 }
  0xba   :  { %2360 = vmatpush.bf16.msra.mxu3 %v11681_v63  ;;  %v10581_v63 = vor.u32 %v15813_v55, %v10580_v54  ;;  %v10709_v0 = vor.u32 %v15845_v58, %v10708_v56  ;;  %v10837_v1 = vor.u32 %v15877_v60, %v10836_v59  ;;  %v15833_v36 = vld [vmem:[#allocation2 + $0x174] sm:$0xf0]  ;;  %v10788_v37 = vld [vmem:[#allocation2 + $0x268] sm:$0xf] }
  0xbb   :  { %2322 = vmatpush.bf16.msra.mxu0 %v11281_v7  ;;  %v10965_v7 = vor.u32 %v15909_v62, %v10964_v61  ;;  %v10916_v40 = vld [vmem:[#allocation2 + $0x368] sm:$0xf]  ;;  %v15897_v43 = vld [vmem:[#allocation2 + $0x374] sm:$0xf0] }
  0xbc   :  { %v10516_v48 = vld [vmem:[#allocation2 + $0x48] sm:$0xf]  ;;  %v15797_v49 = vld [vmem:[#allocation2 + $0x54] sm:$0xf0] }
  0xbd   :  { %2335 = vmatpush.bf16.msra.mxu1 %v11409_v8  ;;  %2348 = vmatpush.bf16.msra.mxu2 %v11537_v9  ;;  %v15841_v8 = vld [vmem:[#allocation2 + $0x1b4] sm:$0xf0]  ;;  %v10820_v9 = vld [vmem:[#allocation2 + $0x2a8] sm:$0xf]  ;;  %v10517_v58 = vor.u32 %v15797_v49, %v10516_v48 }
  0xbe   :  { %2361 = vmatpush.bf16.msra.mxu3 %v11665_v13  ;;  %v10565_v13 = vor.u32 %v15809_v3, %v10564_v2  ;;  %v10693_v14 = vor.u32 %v15841_v8, %v10692_v5  ;;  %v10821_v15 = vor.u32 %v15873_v10, %v10820_v9  ;;  %v15861_v54 = vld [vmem:[#allocation2 + $0x254] sm:$0xf0]  ;;  %v10900_v55 = vld [vmem:[#allocation2 + $0x348] sm:$0xf] }
  0xbf   :  { %2323 = vmatpush.bf16.msra.mxu0 %v11265_v19  ;;  %v10949_v19 = vor.u32 %v15905_v12, %v10948_v11  ;;  %v15893_v56 = vld [vmem:[#allocation2 + $0x354] sm:$0xf0]  ;;  %v10500_v62 = vld [vmem:[#allocation2 + $0x28] sm:$0xf] }
  0xc0   :  { %v10901_v3 = vor.u32 %v15893_v56, %v10900_v55  ;;  %v15825_v5 = vld [vmem:[#allocation2 + $0x134] sm:$0xf0]  ;;  %v10884_v10 = vld [vmem:[#allocation2 + $0x328] sm:$0xf] }
  0xc1   :  { %2336 = vmatpush.bf16.msra.mxu1 %v11393_v25  ;;  %2349 = vmatpush.bf16.msra.mxu2 %v11521_v27  ;;  %v15869_v25 = vld [vmem:[#allocation2 + $0x294] sm:$0xf0]  ;;  %v10932_v27 = vld [vmem:[#allocation2 + $0x388] sm:$0xf] }
  0xc2   :  { %2362 = vmatpush.bf16.msra.mxu3 %v11649_v31  ;;  %v10805_v31 = vor.u32 %v15869_v25, %v10804_v24  ;;  %v10933_v35 = vor.u32 %v15901_v28, %v10932_v27  ;;  %v15857_v8 = vld [vmem:[#allocation2 + $0x234] sm:$0xf0]  ;;  %v10612_v18 = vld [vmem:[#allocation2 + $0x108] sm:$0xf] }
  0xc3   :  { %2324 = vmatpush.bf16.msra.mxu0 %v11249_v39  ;;  %v15865_v39 = vld [vmem:[#allocation2 + $0x274] sm:$0xf0]  ;;  %v10740_v23 = vld [vmem:[#allocation2 + $0x208] sm:$0xf] }
  0xc4   :  { %v15889_v11 = vld [vmem:[#allocation2 + $0x334] sm:$0xf0]  ;;  %v10868_v28 = vld [vmem:[#allocation2 + $0x308] sm:$0xf] }
  0xc5   :  { %2337 = vmatpush.bf16.msra.mxu1 %v11377_v46  ;;  %2350 = vmatpush.bf16.msra.mxu2 %v11505_v47  ;;  %v10661_v46 = vor.u32 %v15833_v36, %v10660_v34  ;;  %v10789_v47 = vor.u32 %v15865_v39, %v10788_v37  ;;  %v10885_v25 = vor.u32 %v15889_v11, %v10884_v10  ;;  %v15853_v27 = vld [vmem:[#allocation2 + $0x214] sm:$0xf0]  ;;  %v11236_v32 = vld [vmem:[#allocation2 + $0x5e8] sm:$0xf] }
  0xc6   :  { %2363 = vmatpush.bf16.msra.mxu3 %v11633_v50  ;;  %2325 = vmatmul.bf16.vlgmr.msra.gmra.mxu0 %v17441_v38  ;;  %v10644_v50 = vld [vmem:[#allocation2 + $0x148] sm:$0xf]  ;;  %v16009_v37 = vld [vmem:[#allocation2 + $0x6f4] sm:$0xf0] }
  0xc7   :  { %2369 = vmatpush.bf16.msrb.mxu0 %v10597_v51  ;;  %v10917_v51 = vor.u32 %v15897_v43, %v10916_v40  ;;  %v11364_v36 = vld [vmem:[#allocation2 + $0x6e8] sm:$0xf]  ;;  %v10741_v43 = vor.u32 %v15853_v27, %v10740_v23  ;;  %v16033_v11 = vld [vmem:[#allocation2 + $0x7b4] sm:$0xf0] }
  0xc8   :  { %2351 = vmatmul.bf16.vlgmr.msra.gmra.mxu2 %v17456_v22  ;;  %2338 = vmatmul.bf16.vlgmr.msra.gmra.mxu1 %v17445_v42  ;;  %v11220_v55 = vld [vmem:[#allocation2 + $0x5c8] sm:$0xf] }
  0xc9   :  { %2382 = vmatpush.bf16.msrb.mxu1 %v10725_v52  ;;  %2395 = vmatpush.bf16.msrb.mxu2 %v10853_v53  ;;  %v15829_v52 = vld [vmem:[#allocation2 + $0x154] sm:$0xf0]  ;;  %v10772_v53 = vld [vmem:[#allocation2 + $0x248] sm:$0xf] }
  0xca   :  { %2408 = vmatpush.bf16.msrb.mxu3 %v10981_v57  ;;  %v10645_v60 = vor.u32 %v15829_v52, %v10644_v50  ;;  %v10773_v61 = vor.u32 %v15861_v54, %v10772_v53  ;;  %v2144_v2 = vpop.f32.mrf.mxu2  ;;  %v11365_v52 = vor.u32 %v16009_v37, %v11364_v36  ;;  %v11092_v53 = vld [vmem:[#allocation2 + $0x4c8] sm:$0xf]  ;;  %v15941_v54 = vld [vmem:[#allocation2 + $0x4d4] sm:$0xf0] }
  0xcb   :  { %2364 = vmatmul.bf16.vlgmr.msra.gmra.mxu3 %v17458_v26  ;;  %2370 = vmatpush.bf16.msrb.mxu0 %v10581_v63  ;;  %v15793_v63 = vld [vmem:[#allocation2 + $0x34] sm:$0xf0]  ;;  %v2157_v9 = vpop.f32.mrf.mxu3  ;;  %v11460_v10 = vld [vmem:[#allocation2 + $0x7a8] sm:$0xf] }
  0xcc   :  { %v11316_v23 = vld [vmem:[#allocation2 + $0x688] sm:$0xf] }
  0xcd   :  { %2383 = vmatpush.bf16.msrb.mxu1 %v10709_v0  ;;  %2396 = vmatpush.bf16.msrb.mxu2 %v10837_v1  ;;  %v10628_v0 = vld [vmem:[#allocation2 + $0x128] sm:$0xf] }
  0xce   :  { %2409 = vmatpush.bf16.msrb.mxu3 %v10965_v7  ;;  %v10756_v7 = vld [vmem:[#allocation2 + $0x228] sm:$0xf]  ;;  %v10629_v16 = vor.u32 %v15825_v5, %v10628_v0 }
  0xcf   :  { %2371 = vmatpush.bf16.msrb.mxu0 %v10565_v13  ;;  %v10501_v13 = vor.u32 %v15793_v63, %v10500_v62  ;;  %v10757_v17 = vor.u32 %v15857_v8, %v10756_v7  ;;  %v11093_v62 = vor.u32 %v15941_v54, %v11092_v53  ;;  %v15969_v7 = vld [vmem:[#allocation2 + $0x5b4] sm:$0xf0]  ;;  %v11332_v8 = vld [vmem:[#allocation2 + $0x6a8] sm:$0xf] }
  0xd0   :  { %v11444_v27 = vld [vmem:[#allocation2 + $0x788] sm:$0xf]  ;;  %v15925_v53 = vld [vmem:[#allocation2 + $0x454] sm:$0xf0] }
  0xd1   :  { %2384 = vmatpush.bf16.msrb.mxu1 %v10693_v14  ;;  %2397 = vmatpush.bf16.msrb.mxu2 %v10821_v15  ;;  %v2118_v57 = vpop.f32.mrf.mxu0  ;;  %v2131_v59 = vpop.f32.mrf.mxu1  ;;  %v10484_v14 = vld [vmem:[#allocation2 + $0x8] sm:$0xf]  ;;  %v15789_v15 = vld [vmem:[#allocation2 + $0x14] sm:$0xf0] }
  0xd2   :  { %2410 = vmatpush.bf16.msrb.mxu3 %v10949_v19  ;;  %v2132_v1 = vadd.f32 %v2131_v59, %v2118_v57  ;;  %v15821_v19 = vld [vmem:[#allocation2 + $0x114] sm:$0xf0]  ;;  %v10485_v34 = vor.u32 %v15789_v15, %v10484_v14  ;;  %v11060_v15 = vld [vmem:[#allocation2 + $0x488] sm:$0xf] }
  0xd3   :  { %2372 = vmatpush.bf16.msrb.mxu0 %v10549_v29  ;;  %v15885_v29 = vld [vmem:[#allocation2 + $0x314] sm:$0xf0]  ;;  %v10613_v40 = vor.u32 %v15821_v19, %v10612_v18  ;;  %v2159_v50 = vpop.f32.mrf.mxu3  ;;  %v11461_v18 = vor.u32 %v16033_v11, %v11460_v10  ;;  %v11156_v54 = vld [vmem:[#allocation2 + $0x548] sm:$0xf] }
  0xd4   :  { %v2145_v12 = vadd.f32 %v2144_v2, %v2132_v1  ;;  %v10869_v48 = vor.u32 %v15885_v29, %v10868_v28  ;;  %v15973_v57 = vld [vmem:[#allocation2 + $0x5d4] sm:$0xf0]  ;;  %v11076_v1 = vld [vmem:[#allocation2 + $0x4a8] sm:$0xf] }
  0xd5   :  { %2385 = vmatpush.bf16.msrb.mxu1 %v10677_v30  ;;  %2398 = vmatpush.bf16.msrb.mxu2 %v10805_v31  ;;  %v11108_v30 = vld [vmem:[#allocation2 + $0x4e8] sm:$0xf]  ;;  %v15945_v31 = vld [vmem:[#allocation2 + $0x4f4] sm:$0xf0]  ;;  %v11221_v63 = vor.u32 %v15973_v57, %v11220_v55 }
  0xd6   :  { %2411 = vmatpush.bf16.msrb.mxu3 %v10933_v35  ;;  %v17472_v24 = vadd.f32 %v2157_v9, %v2145_v12  ;;  %v15977_v35 = vld [vmem:[#allocation2 + $0x5f4] sm:$0xf0]  ;;  %v11109_v49 = vor.u32 %v15945_v31, %v11108_v30  ;;  %v11284_v57 = vld [vmem:[#allocation2 + $0x648] sm:$0xf] }
  0xd7   :  { %2373 = vmatpush.bf16.msrb.mxu0 %v10533_v45  ;;  %v11492_v45 = vld [vmem:[#allocation2 + $0x7e8] sm:$0xf]  ;;  %v16005_v59 = vld [vmem:[#allocation2 + $0x6d4] sm:$0xf0] }
  0xd8   :  { %v15937_v2 = vld [vmem:[#allocation2 + $0x4b4] sm:$0xf0] }
  0xd9   :  { %2386 = vmatpush.bf16.msrb.mxu1 %v10661_v46  ;;  %2399 = vmatpush.bf16.msrb.mxu2 %v10789_v47  ;;  %v2120_v33 = vpop.f32.mrf.mxu0  ;;  %v2133_v39 = vpop.f32.mrf.mxu1  ;;  %v16041_v46 = vld [vmem:[#allocation2 + $0x7f4] sm:$0xf0]  ;;  %v11077_v12 = vor.u32 %v15937_v2, %v11076_v1 }
  0xda   :  { %2412 = vmatpush.bf16.msrb.mxu3 %v10917_v51  ;;  %v2146_v47 = vpop.f32.mrf.mxu2  ;;  %v11237_v51 = vor.u32 %v15977_v35, %v11236_v32  ;;  %v11493_v56 = vor.u32 %v16041_v46, %v11492_v45  ;;  %v16001_v9 = vld [vmem:[#allocation2 + $0x6b4] sm:$0xf0]  ;;  %v11044_v33 = vld [vmem:[#allocation2 + $0x468] sm:$0xf] }
  0xdb   :  { %2374 = vmatpush.bf16.msrb.mxu0 %v10517_v58  ;;  %v11348_v58 = vld [vmem:[#allocation2 + $0x6c8] sm:$0xf]  ;;  %v11333_v14 = vor.u32 %v16001_v9, %v11332_v8  ;;  %v15965_v19 = vld [vmem:[#allocation2 + $0x594] sm:$0xf0] }
  0xdc   :  { %v11349_v0 = vor.u32 %v16005_v59, %v11348_v58  ;;  %v16029_v28 = vld [vmem:[#allocation2 + $0x794] sm:$0xf0]  ;;  %v11172_v35 = vld [vmem:[#allocation2 + $0x568] sm:$0xf] }
  0xdd   :  { %2387 = vmatpush.bf16.msrb.mxu1 %v10645_v60  ;;  %2400 = vmatpush.bf16.msrb.mxu2 %v10773_v61  ;;  %v11476_v60 = vld [vmem:[#allocation2 + $0x7c8] sm:$0xf]  ;;  %v16037_v61 = vld [vmem:[#allocation2 + $0x7d4] sm:$0xf0]  ;;  %v11445_v39 = vor.u32 %v16029_v28, %v11444_v27 }
  0xde   :  { %2413 = vmatpush.bf16.msrb.mxu3 %v10901_v3  ;;  %v11204_v3 = vld [vmem:[#allocation2 + $0x5a8] sm:$0xf]  ;;  %v11477_v5 = vor.u32 %v16037_v61, %v11476_v60  ;;  %v15993_v45 = vld [vmem:[#allocation2 + $0x674] sm:$0xf0] }
  0xdf   :  { %2375 = vmatpush.bf16.msrb.mxu0 %v10501_v13  ;;  %v11205_v13 = vor.u32 %v15969_v7, %v11204_v3  ;;  %v11428_v46 = vld [vmem:[#allocation2 + $0x768] sm:$0xf]  ;;  %v16025_v47 = vld [vmem:[#allocation2 + $0x774] sm:$0xf0] }
  0xe0   :  { %v15989_v58 = vld [vmem:[#allocation2 + $0x654] sm:$0xf0]  ;;  %v11412_v61 = vld [vmem:[#allocation2 + $0x748] sm:$0xf] }
  0xe1   :  { %2388 = vmatpush.bf16.msrb.mxu1 %v10629_v16  ;;  %2401 = vmatpush.bf16.msrb.mxu2 %v10757_v17  ;;  %v15933_v16 = vld [vmem:[#allocation2 + $0x494] sm:$0xf0]  ;;  %v11188_v17 = vld [vmem:[#allocation2 + $0x588] sm:$0xf]  ;;  %v11285_v3 = vor.u32 %v15989_v58, %v11284_v57  ;;  %v15811_v58 = vld [vmem:[#allocation2 + $0xcc] sm:$0xf] }
  0xe2   :  { %2414 = vmatpush.bf16.msrb.mxu3 %v10885_v25  ;;  %v15997_v25 = vld [vmem:[#allocation2 + $0x694] sm:$0xf0]  ;;  %v11061_v29 = vor.u32 %v15933_v16, %v11060_v15  ;;  %v11189_v31 = vor.u32 %v15965_v19, %v11188_v17  ;;  %v11140_v8 = vld [vmem:[#allocation2 + $0x528] sm:$0xf] }
  0xe3   :  { %2376 = vmatpush.bf16.msrb.mxu0 %v10485_v34  ;;  %v11317_v32 = vor.u32 %v15997_v25, %v11316_v23  ;;  %v15929_v34 = vld [vmem:[#allocation2 + $0x474] sm:$0xf0]  ;;  %v10996_v17 = vld [vmem:[#allocation2 + $0x408] sm:$0xf] }
  0xe4   :  { %v15921_v7 = vld [vmem:[#allocation2 + $0x434] sm:$0xf0]  ;;  %v11124_v25 = vld [vmem:[#allocation2 + $0x508] sm:$0xf] }
  0xe5   :  { %2389 = vmatpush.bf16.msrb.mxu1 %v10613_v40  ;;  %2402 = vmatpush.bf16.msrb.mxu2 %v10741_v43  ;;  %v2170_v30 = vpop.f32.mrf.mxu0  ;;  %v15961_v40 = vld [vmem:[#allocation2 + $0x574] sm:$0xf0]  ;;  %v11300_v43 = vld [vmem:[#allocation2 + $0x668] sm:$0xf] }
  0xe6   :  { %2415 = vmatpush.bf16.msrb.mxu3 %v10869_v48  ;;  %2377 = vmatmul.bf16.vlgmr.msrb.gmra.mxu0 %v17428_v20  ;;  %v2171_v36 = vadd.f32 %v2170_v30, %v17472_v24  ;;  %v11173_v50 = vor.u32 %v15961_v40, %v11172_v35  ;;  %v11429_v24 = vor.u32 %v16025_v47, %v11428_v46  ;;  %v15953_v11 = vld [vmem:[#allocation2 + $0x534] sm:$0xf0]  ;;  %v11252_v28 = vld [vmem:[#allocation2 + $0x608] sm:$0xf] }
  0xe7   :  { %2421 = vmatpush.bf16.msra.mxu0 %v11109_v49  ;;  %v2183_v37 = vpop.f32.mrf.mxu1  ;;  %v11045_v49 = vor.u32 %v15929_v34, %v11044_v33  ;;  %v16017_v15 = vld [vmem:[#allocation2 + $0x734] sm:$0xf0]  ;;  %v11141_v19 = vor.u32 %v15953_v11, %v11140_v8  ;;  %v11620_v35 = vld [vmem:[#allocation2 + $0x8e8] sm:$0xf]  ;;  %v15839_v11 = vld [vmem:[#allocation2 + $0x1ac] sm:$0xf] }
  0xe8   :  { %2403 = vmatmul.bf16.vlgmr.msrb.gmra.mxu2 %v17420_v4  ;;  %2390 = vmatmul.bf16.vlgmr.msrb.gmra.mxu1 %v17431_v21  ;;  %v2184_v48 = vadd.f32 %v2183_v37, %v2171_v36  ;;  %v15949_v27 = vld [vmem:[#allocation2 + $0x514] sm:$0xf0]  ;;  %v11748_v37 = vld [vmem:[#allocation2 + $0x9e8] sm:$0xf] }
  0xe9   :  { %2434 = vmatpush.bf16.msra.mxu1 %v11237_v51  ;;  %2447 = vmatpush.bf16.msra.mxu2 %v11365_v52  ;;  %v11301_v51 = vor.u32 %v15993_v45, %v11300_v43  ;;  %v11028_v52 = vld [vmem:[#allocation2 + $0x448] sm:$0xf]  ;;  %v16013_v33 = vld [vmem:[#allocation2 + $0x714] sm:$0xf0]  ;;  %v15815_v43 = vld [vmem:[#allocation2 + $0xec] sm:$0xf]  ;;  %v11125_v46 = vor.u32 %v15949_v27, %v11124_v25 }
  0xea   :  { %2460 = vmatpush.bf16.msra.mxu3 %v11493_v56  ;;  %v15957_v56 = vld [vmem:[#allocation2 + $0x554] sm:$0xf0]  ;;  %v10598_v45 = vld [vmem:[#allocation2 + $0xf8] sm:$0xf0]  ;;  %v15803_v25 = vld [vmem:[#allocation2 + $0x8c] sm:$0xf] }
  0xeb   :  { %2416 = vmatmul.bf16.vlgmr.msrb.gmra.mxu3 %v17425_v6  ;;  %2422 = vmatpush.bf16.msra.mxu0 %v11093_v62  ;;  %v2196_v55 = vpop.f32.mrf.mxu2  ;;  %v16021_v62 = vld [vmem:[#allocation2 + $0x754] sm:$0xf0]  ;;  %v11157_v2 = vor.u32 %v15957_v56, %v11156_v54  ;;  %v11604_v54 = vld [vmem:[#allocation2 + $0x8c8] sm:$0xf]  ;;  %v10550_v27 = vld [vmem:[#allocation2 + $0x98] sm:$0xf0] }
  0xec   :  { %v2197_v59 = vadd.f32 %v2196_v55, %v2184_v48  ;;  %v11413_v10 = vor.u32 %v16021_v62, %v11412_v61  ;;  %v16073_v36 = vld [vmem:[#allocation2 + $0x8f4] sm:$0xf0]  ;;  %v15847_v48 = vld [vmem:[#allocation2 + $0x1ec] sm:$0xf]  ;;  %v10710_v61 = vld [vmem:[#allocation2 + $0x1d8] sm:$0xf0] }
  0xed   :  { %2435 = vmatpush.bf16.msra.mxu1 %v11221_v63  ;;  %2448 = vmatpush.bf16.msra.mxu2 %v11349_v0  ;;  %v11029_v63 = vor.u32 %v15925_v53, %v11028_v52  ;;  %v2172_v1 = vpop.f32.mrf.mxu0  ;;  %v16105_v40 = vld [vmem:[#allocation2 + $0x9f4] sm:$0xf0]  ;;  %v10601_v53 = vor.u32 %v15815_v43, %v10598_v45 }
  0xee   :  { %2461 = vmatpush.bf16.msra.mxu3 %v11477_v5  ;;  %v2209_v60 = vpop.f32.mrf.mxu3  ;;  %v11012_v5 = vld [vmem:[#allocation2 + $0x428] sm:$0xf]  ;;  %v11749_v52 = vor.u32 %v16105_v40, %v11748_v37  ;;  %v16069_v55 = vld [vmem:[#allocation2 + $0x8d4] sm:$0xf0] }
  0xef   :  { %2423 = vmatpush.bf16.msra.mxu0 %v11077_v12  ;;  %v17479_v0 = vadd.f32 %v2209_v60, %v2197_v59  ;;  %v2185_v9 = vpop.f32.mrf.mxu1  ;;  %v11268_v12 = vld [vmem:[#allocation2 + $0x628] sm:$0xf]  ;;  %v11013_v16 = vor.u32 %v15921_v7, %v11012_v5  ;;  %v16101_v57 = vld [vmem:[#allocation2 + $0x9d4] sm:$0xf0]  ;;  %v10582_v59 = vld [vmem:[#allocation2 + $0xd8] sm:$0xf0]  ;;  %v11605_v62 = vor.u32 %v16069_v55, %v11604_v54 }
  0xf0   :  { %v15843_v60 = vld [vmem:[#allocation2 + $0x1cc] sm:$0xf]  ;;  %v10585_v1 = vor.u32 %v15811_v58, %v10582_v59  ;;  %v11716_v5 = vld [vmem:[#allocation2 + $0x9a8] sm:$0xf]  ;;  %v16097_v8 = vld [vmem:[#allocation2 + $0x9b4] sm:$0xf0] }
  0xf1   :  { %2436 = vmatpush.bf16.msra.mxu1 %v11205_v13  ;;  %2449 = vmatpush.bf16.msra.mxu2 %v11333_v14  ;;  %v15985_v13 = vld [vmem:[#allocation2 + $0x634] sm:$0xf0]  ;;  %v11396_v14 = vld [vmem:[#allocation2 + $0x728] sm:$0xf]  ;;  %v10713_v7 = vor.u32 %v15843_v60, %v10710_v61  ;;  %v15807_v9 = vld [vmem:[#allocation2 + $0xac] sm:$0xf] }
  0xf2   :  { %2462 = vmatpush.bf16.msra.mxu3 %v11461_v18  ;;  %v15917_v18 = vld [vmem:[#allocation2 + $0x414] sm:$0xf0]  ;;  %v11269_v23 = vor.u32 %v15985_v13, %v11268_v12  ;;  %v11397_v30 = vor.u32 %v16017_v15, %v11396_v14  ;;  %v10694_v12 = vld [vmem:[#allocation2 + $0x1b8] sm:$0xf0]  ;;  %v11717_v14 = vor.u32 %v16097_v8, %v11716_v5  ;;  %v11668_v54 = vld [vmem:[#allocation2 + $0x948] sm:$0xf] }
  0xf3   :  { %2424 = vmatpush.bf16.msra.mxu0 %v11061_v29  ;;  %v2198_v29 = vpop.f32.mrf.mxu2  ;;  %v16057_v37 = vld [vmem:[#allocation2 + $0x874] sm:$0xf0]  ;;  %v15827_v59 = vld [vmem:[#allocation2 + $0x14c] sm:$0xf]  ;;  %v10646_v60 = vld [vmem:[#allocation2 + $0x158] sm:$0xf0] }
  0xf4   :  { %v15835_v29 = vld [vmem:[#allocation2 + $0x18c] sm:$0xf]  ;;  %v16089_v45 = vld [vmem:[#allocation2 + $0x974] sm:$0xf0] }
  0xf5   :  { %2437 = vmatpush.bf16.msra.mxu1 %v11189_v31  ;;  %2450 = vmatpush.bf16.msra.mxu2 %v11317_v32  ;;  %v15981_v31 = vld [vmem:[#allocation2 + $0x614] sm:$0xf0]  ;;  %v11380_v32 = vld [vmem:[#allocation2 + $0x708] sm:$0xf] }
  0xf6   :  { %2463 = vmatpush.bf16.msra.mxu3 %v11445_v39  ;;  %v2211_v34 = vpop.f32.mrf.mxu3  ;;  %v10997_v39 = vor.u32 %v15917_v18, %v10996_v17  ;;  %v11253_v47 = vor.u32 %v15981_v31, %v11252_v28  ;;  %v16061_v17 = vld [vmem:[#allocation2 + $0x894] sm:$0xf0]  ;;  %v11700_v18 = vld [vmem:[#allocation2 + $0x988] sm:$0xf] }
  0xf7   :  { %2425 = vmatpush.bf16.msra.mxu0 %v11045_v49  ;;  %v10726_v49 = vld [vmem:[#allocation2 + $0x1f8] sm:$0xf0]  ;;  %v16049_v8 = vld [vmem:[#allocation2 + $0x834] sm:$0xf0] }
  0xf8   :  { %v10729_v56 = vor.u32 %v15847_v48, %v10726_v49  ;;  %v15831_v48 = vld [vmem:[#allocation2 + $0x16c] sm:$0xf]  ;;  %v10662_v49 = vld [vmem:[#allocation2 + $0x178] sm:$0xf0] }
  0xf9   :  { %2438 = vmatpush.bf16.msra.mxu1 %v11173_v50  ;;  %2451 = vmatpush.bf16.msra.mxu2 %v11301_v51  ;;  %v11381_v50 = vor.u32 %v16013_v33, %v11380_v32  ;;  %v11621_v51 = vor.u32 %v16073_v36, %v11620_v35  ;;  %v10553_v35 = vor.u32 %v15803_v25, %v10550_v27  ;;  %v11556_v36 = vld [vmem:[#allocation2 + $0x868] sm:$0xf]  ;;  %v16077_v27 = vld [vmem:[#allocation2 + $0x914] sm:$0xf0] }
  0xfa   :  { %2464 = vmatpush.bf16.msra.mxu3 %v11429_v24  ;;  %v11732_v24 = vld [vmem:[#allocation2 + $0x9c8] sm:$0xf]  ;;  %v10665_v55 = vor.u32 %v15831_v48, %v10662_v49  ;;  %v15975_v49 = vld [vmem:[#allocation2 + $0x5ec] sm:$0xf] }
  0xfb   :  { %2426 = vmatpush.bf16.msra.mxu0 %v11029_v63  ;;  %v11733_v63 = vor.u32 %v16101_v57, %v11732_v24  ;;  %v16085_v24 = vld [vmem:[#allocation2 + $0x954] sm:$0xf0]  ;;  %v10518_v57 = vld [vmem:[#allocation2 + $0x58] sm:$0xf0]  ;;  %v11636_v25 = vld [vmem:[#allocation2 + $0x908] sm:$0xf] }
  0xfd   :  { %2439 = vmatpush.bf16.msra.mxu1 %v11157_v2  ;;  %2452 = vmatpush.bf16.msra.mxu2 %v11285_v3  ;;  %v11588_v2 = vld [vmem:[#allocation2 + $0x8a8] sm:$0xf]  ;;  %v16065_v3 = vld [vmem:[#allocation2 + $0x8b4] sm:$0xf0] }
  0xfe   :  { %2465 = vmatpush.bf16.msra.mxu3 %v11413_v10  ;;  %v10566_v10 = vld [vmem:[#allocation2 + $0xb8] sm:$0xf0]  ;;  %v11589_v13 = vor.u32 %v16065_v3, %v11588_v2  ;;  %v11669_v3 = vor.u32 %v16085_v24, %v11668_v54  ;;  %v15875_v54 = vld [vmem:[#allocation2 + $0x2cc] sm:$0xf] }
  0xff   :  { %2427 = vmatpush.bf16.msra.mxu0 %v11013_v16  ;;  %v10569_v15 = vor.u32 %v15807_v9, %v10566_v10  ;;  %v11572_v16 = vld [vmem:[#allocation2 + $0x888] sm:$0xf]  ;;  %v10649_v10 = vor.u32 %v15827_v59, %v10646_v60  ;;  %v15907_v24 = vld [vmem:[#allocation2 + $0x3cc] sm:$0xf]  ;;  %v11094_v59 = vld [vmem:[#allocation2 + $0x4d8] sm:$0xf0] }
 0x100   :  { %v11573_v32 = vor.u32 %v16061_v17, %v11572_v16  ;;  %v11652_v9 = vld [vmem:[#allocation2 + $0x928] sm:$0xf]  ;;  %v15971_v60 = vld [vmem:[#allocation2 + $0x5cc] sm:$0xf] }
 0x101   :  { %2440 = vmatpush.bf16.msra.mxu1 %v11141_v19  ;;  %2453 = vmatpush.bf16.msra.mxu2 %v11269_v23  ;;  %v10697_v19 = vor.u32 %v15839_v11, %v10694_v12  ;;  %v16093_v23 = vld [vmem:[#allocation2 + $0x994] sm:$0xf0]  ;;  %v15791_v12 = vld [vmem:[#allocation2 + $0x2c] sm:$0xf]  ;;  %v11508_v17 = vld [vmem:[#allocation2 + $0x808] sm:$0xf] }
 0x102   :  { %2466 = vmatpush.bf16.msra.mxu3 %v11397_v30  ;;  %v10678_v30 = vld [vmem:[#allocation2 + $0x198] sm:$0xf0]  ;;  %v11701_v34 = vor.u32 %v16093_v23, %v11700_v18  ;;  %v16081_v11 = vld [vmem:[#allocation2 + $0x934] sm:$0xf0] }
 0x103   :  { %2428 = vmatpush.bf16.msra.mxu0 %v10997_v39  ;;  %v2222_v28 = vpop.f32.mrf.mxu0  ;;  %v11684_v39 = vld [vmem:[#allocation2 + $0x968] sm:$0xf]  ;;  %v10681_v40 = vor.u32 %v15835_v29, %v10678_v30  ;;  %v16045_v18 = vld [vmem:[#allocation2 + $0x814] sm:$0xf0]  ;;  %v10486_v30 = vld [vmem:[#allocation2 + $0x18] sm:$0xf0] }
 0x104   :  { %v2223_v31 = vadd.f32 %v2222_v28, %v17479_v0  ;;  %v11557_v0 = vor.u32 %v16057_v37, %v11556_v36  ;;  %v15787_v28 = vld [vmem:[#allocation2 + $0xc] sm:$0xf] }
 0x105   :  { %2441 = vmatpush.bf16.msra.mxu1 %v11125_v46  ;;  %2454 = vmatpush.bf16.msra.mxu2 %v11253_v47  ;;  %v2235_v33 = vpop.f32.mrf.mxu1  ;;  %v15799_v46 = vld [vmem:[#allocation2 + $0x6c] sm:$0xf]  ;;  %v10534_v47 = vld [vmem:[#allocation2 + $0x78] sm:$0xf0]  ;;  %v10489_v48 = vor.u32 %v15787_v28, %v10486_v30 }
 0x106   :  { %2467 = vmatpush.bf16.msra.mxu3 %v11381_v50  ;;  %2429 = vmatmul.bf16.vlgmr.msra.gmra.mxu0 %v17443_v41  ;;  %v17486_v43 = vadd.f32 %v2235_v33, %v2223_v31  ;;  %v11685_v50 = vor.u32 %v16089_v45, %v11684_v39  ;;  %v15819_v31 = vld [vmem:[#allocation2 + $0x10c] sm:$0xf]  ;;  %v11509_v39 = vor.u32 %v16045_v18, %v11508_v17  ;;  %v10806_v18 = vld [vmem:[#allocation2 + $0x298] sm:$0xf0] }
 0x107   :  { %2473 = vmatpush.bf16.msrb.mxu0 %v11621_v51  ;;  %v10537_v51 = vor.u32 %v15799_v46, %v10534_v47  ;;  %v15911_v36 = vld [vmem:[#allocation2 + $0x3ec] sm:$0xf]  ;;  %v11110_v46 = vld [vmem:[#allocation2 + $0x4f8] sm:$0xf0]  ;;  %v11637_v47 = vor.u32 %v16077_v27, %v11636_v25 }
 0x108   :  { %2455 = vmatmul.bf16.vlgmr.msra.gmra.mxu2 %v17441_v38  ;;  %2442 = vmatmul.bf16.vlgmr.msra.gmra.mxu1 %v17447_v44  ;;  %v15943_v45 = vld [vmem:[#allocation2 + $0x4ec] sm:$0xf]  ;;  %v10934_v25 = vld [vmem:[#allocation2 + $0x398] sm:$0xf0] }
 0x109   :  { %2486 = vmatpush.bf16.msrb.mxu1 %v11749_v52  ;;  %2499 = vmatpush.bf16.msrb.mxu2 %v10601_v53  ;;  %v11540_v52 = vld [vmem:[#allocation2 + $0x848] sm:$0xf]  ;;  %v16053_v53 = vld [vmem:[#allocation2 + $0x854] sm:$0xf0]  ;;  %v15867_v17 = vld [vmem:[#allocation2 + $0x28c] sm:$0xf] }
 0x10a   :  { %2512 = vmatpush.bf16.msrb.mxu3 %v10729_v56  ;;  %v15795_v56 = vld [vmem:[#allocation2 + $0x4c] sm:$0xf]  ;;  %v11062_v28 = vld [vmem:[#allocation2 + $0x498] sm:$0xf0] }
 0x10b   :  { %2468 = vmatmul.bf16.vlgmr.msra.gmra.mxu3 %v17445_v42  ;;  %2474 = vmatpush.bf16.msrb.mxu0 %v11605_v62  ;;  %v2248_v58 = vpop.f32.mrf.mxu2  ;;  %v2224_v62 = vpop.f32.mrf.mxu0  ;;  %v10521_v5 = vor.u32 %v15795_v56, %v10518_v57  ;;  %v10966_v57 = vld [vmem:[#allocation2 + $0x3d8] sm:$0xf0]  ;;  %v15931_v27 = vld [vmem:[#allocation2 + $0x48c] sm:$0xf] }
 0x10c   :  { %v11190_v30 = vld [vmem:[#allocation2 + $0x598] sm:$0xf0] }
 0x10d   :  { %2487 = vmatpush.bf16.msrb.mxu1 %v11733_v63  ;;  %2500 = vmatpush.bf16.msrb.mxu2 %v10585_v1  ;;  %v11541_v63 = vor.u32 %v16053_v53, %v11540_v52  ;;  %v2237_v2 = vpop.f32.mrf.mxu1  ;;  %v11113_v53 = vor.u32 %v15943_v45, %v11110_v46  ;;  %v10918_v46 = vld [vmem:[#allocation2 + $0x378] sm:$0xf0] }
 0x10e   :  { %2513 = vmatpush.bf16.msrb.mxu3 %v10713_v7  ;;  %v2261_v61 = vpop.f32.mrf.mxu3  ;;  %v11524_v7 = vld [vmem:[#allocation2 + $0x828] sm:$0xf] }
 0x10f   :  { %2475 = vmatpush.bf16.msrb.mxu0 %v11589_v13  ;;  %v17488_v1 = vadd.f32 %v2261_v61, %v2248_v58  ;;  %v10502_v13 = vld [vmem:[#allocation2 + $0x38] sm:$0xf0]  ;;  %v11525_v16 = vor.u32 %v16049_v8, %v11524_v7  ;;  %v15939_v58 = vld [vmem:[#allocation2 + $0x4cc] sm:$0xf] }
 0x110   :  { %v10505_v23 = vor.u32 %v15791_v12, %v10502_v13  ;;  %v11222_v61 = vld [vmem:[#allocation2 + $0x5d8] sm:$0xf0]  ;;  %v11097_v2 = vor.u32 %v15939_v58, %v11094_v59  ;;  %v15903_v7 = vld [vmem:[#allocation2 + $0x3ac] sm:$0xf] }
 0x111   :  { %2488 = vmatpush.bf16.msrb.mxu1 %v11717_v14  ;;  %2501 = vmatpush.bf16.msrb.mxu2 %v10569_v15  ;;  %v15823_v14 = vld [vmem:[#allocation2 + $0x12c] sm:$0xf]  ;;  %v10630_v15 = vld [vmem:[#allocation2 + $0x138] sm:$0xf0]  ;;  %v11225_v8 = vor.u32 %v15971_v60, %v11222_v61 }
 0x112   :  { %2514 = vmatpush.bf16.msrb.mxu3 %v10697_v19  ;;  %v11653_v19 = vor.u32 %v16081_v11, %v11652_v9  ;;  %v10633_v29 = vor.u32 %v15823_v14, %v10630_v15  ;;  %v10950_v9 = vld [vmem:[#allocation2 + $0x3b8] sm:$0xf0]  ;;  %v15967_v12 = vld [vmem:[#allocation2 + $0x5ac] sm:$0xf] }
 0x113   :  { %2476 = vmatpush.bf16.msrb.mxu0 %v11573_v32  ;;  %v10614_v32 = vld [vmem:[#allocation2 + $0x118] sm:$0xf0]  ;;  %v2250_v33 = vpop.f32.mrf.mxu2  ;;  %v10953_v15 = vor.u32 %v15903_v7, %v10950_v9  ;;  %v15923_v58 = vld [vmem:[#allocation2 + $0x44c] sm:$0xf] }
 0x114   :  { %v11078_v11 = vld [vmem:[#allocation2 + $0x4b8] sm:$0xf0]  ;;  %v15855_v9 = vld [vmem:[#allocation2 + $0x22c] sm:$0xf] }
 0x115   :  { %2489 = vmatpush.bf16.msrb.mxu1 %v11701_v34  ;;  %2502 = vmatpush.bf16.msrb.mxu2 %v10553_v35  ;;  %v15879_v34 = vld [vmem:[#allocation2 + $0x2ec] sm:$0xf]  ;;  %v10854_v35 = vld [vmem:[#allocation2 + $0x2f8] sm:$0xf0] }
 0x116   :  { %2515 = vmatpush.bf16.msrb.mxu3 %v10681_v40  ;;  %v2263_v37 = vpop.f32.mrf.mxu3  ;;  %v10982_v40 = vld [vmem:[#allocation2 + $0x3f8] sm:$0xf0] }
 0x117   :  { %2477 = vmatpush.bf16.msrb.mxu0 %v11557_v0  ;;  %v11238_v0 = vld [vmem:[#allocation2 + $0x5f8] sm:$0xf0]  ;;  %v10985_v52 = vor.u32 %v15911_v36, %v10982_v40  ;;  %v15895_v37 = vld [vmem:[#allocation2 + $0x36c] sm:$0xf] }
 0x118   :  { %v11241_v56 = vor.u32 %v15975_v49, %v11238_v0  ;;  %v11206_v13 = vld [vmem:[#allocation2 + $0x5b8] sm:$0xf0]  ;;  %v15959_v49 = vld [vmem:[#allocation2 + $0x56c] sm:$0xf] }
 0x119   :  { %2490 = vmatpush.bf16.msrb.mxu1 %v11685_v50  ;;  %2503 = vmatpush.bf16.msrb.mxu2 %v10537_v51  ;;  %v10617_v50 = vor.u32 %v15819_v31, %v10614_v32  ;;  %v10857_v51 = vor.u32 %v15879_v34, %v10854_v35  ;;  %v10809_v31 = vor.u32 %v15867_v17, %v10806_v18  ;;  %v15863_v35 = vld [vmem:[#allocation2 + $0x26c] sm:$0xf]  ;;  %v10790_v36 = vld [vmem:[#allocation2 + $0x278] sm:$0xf0] }
 0x11a   :  { %2516 = vmatpush.bf16.msrb.mxu3 %v10665_v55  ;;  %v10838_v55 = vld [vmem:[#allocation2 + $0x2d8] sm:$0xf0]  ;;  %v11065_v34 = vor.u32 %v15931_v27, %v11062_v28  ;;  %v15951_v17 = vld [vmem:[#allocation2 + $0x52c] sm:$0xf] }
 0x11b   :  { %2478 = vmatpush.bf16.msrb.mxu0 %v11541_v63  ;;  %v10841_v62 = vor.u32 %v15875_v54, %v10838_v55  ;;  %v10969_v63 = vor.u32 %v15907_v24, %v10966_v57  ;;  %v11174_v0 = vld [vmem:[#allocation2 + $0x578] sm:$0xf0]  ;;  %v15859_v54 = vld [vmem:[#allocation2 + $0x24c] sm:$0xf] }
 0x11c   :  { %v10774_v55 = vld [vmem:[#allocation2 + $0x258] sm:$0xf0]  ;;  %v15891_v24 = vld [vmem:[#allocation2 + $0x34c] sm:$0xf] }
 0x11d   :  { %2491 = vmatpush.bf16.msrb.mxu1 %v11669_v3  ;;  %2504 = vmatpush.bf16.msrb.mxu2 %v10521_v5  ;;  %v15871_v3 = vld [vmem:[#allocation2 + $0x2ac] sm:$0xf]  ;;  %v10822_v5 = vld [vmem:[#allocation2 + $0x2b8] sm:$0xf0] }
 0x11e   :  { %2517 = vmatpush.bf16.msrb.mxu3 %v10649_v10  ;;  %v15935_v10 = vld [vmem:[#allocation2 + $0x4ac] sm:$0xf]  ;;  %v10825_v14 = vor.u32 %v15871_v3, %v10822_v5  ;;  %v10902_v57 = vld [vmem:[#allocation2 + $0x358] sm:$0xf0] }
 0x11f   :  { %2479 = vmatpush.bf16.msrb.mxu0 %v11525_v16  ;;  %v11081_v16 = vor.u32 %v15935_v10, %v11078_v11  ;;  %v11030_v59 = vld [vmem:[#allocation2 + $0x458] sm:$0xf0]  ;;  %v10905_v7 = vor.u32 %v15891_v24, %v10902_v57  ;;  %v15887_v11 = vld [vmem:[#allocation2 + $0x32c] sm:$0xf] }
 0x120   :  { %v10758_v10 = vld [vmem:[#allocation2 + $0x238] sm:$0xf0]  ;;  %v16035_v57 = vld [vmem:[#allocation2 + $0x7cc] sm:$0xf] }
 0x121   :  { %2492 = vmatpush.bf16.msrb.mxu1 %v11653_v19  ;;  %2505 = vmatpush.bf16.msrb.mxu2 %v10505_v23  ;;  %v15899_v19 = vld [vmem:[#allocation2 + $0x38c] sm:$0xf]  ;;  %v11209_v23 = vor.u32 %v15967_v12, %v11206_v13  ;;  %v11142_v18 = vld [vmem:[#allocation2 + $0x538] sm:$0xf0] }
 0x122   :  { %2518 = vmatpush.bf16.msrb.mxu3 %v10633_v29  ;;  %v15963_v29 = vld [vmem:[#allocation2 + $0x58c] sm:$0xf]  ;;  %v10937_v33 = vor.u32 %v15899_v19, %v10934_v25  ;;  %v10761_v19 = vor.u32 %v15855_v9, %v10758_v10  ;;  %v10742_v25 = vld [vmem:[#allocation2 + $0x218] sm:$0xf0] }
 0x123   :  { %2480 = vmatpush.bf16.msrb.mxu0 %v11509_v39  ;;  %v2274_v32 = vpop.f32.mrf.mxu0  ;;  %v11193_v45 = vor.u32 %v15963_v29, %v11190_v30  ;;  %v15883_v29 = vld [vmem:[#allocation2 + $0x30c] sm:$0xf]  ;;  %v10870_v30 = vld [vmem:[#allocation2 + $0x318] sm:$0xf0] }
 0x124   :  { %v2275_v39 = vadd.f32 %v2274_v32, %v17488_v1  ;;  %v11177_v1 = vor.u32 %v15959_v49, %v11174_v0  ;;  %v11622_v49 = vld [vmem:[#allocation2 + $0x8f8] sm:$0xf0]  ;;  %v10873_v0 = vor.u32 %v15883_v29, %v10870_v30  ;;  %v16031_v10 = vld [vmem:[#allocation2 + $0x7ac] sm:$0xf] }
 0x125   :  { %2493 = vmatpush.bf16.msrb.mxu1 %v11637_v47  ;;  %2506 = vmatpush.bf16.msrb.mxu2 %v10489_v48  ;;  %v2287_v40 = vpop.f32.mrf.mxu1  ;;  %v15927_v47 = vld [vmem:[#allocation2 + $0x46c] sm:$0xf]  ;;  %v11046_v48 = vld [vmem:[#allocation2 + $0x478] sm:$0xf0] }
 0x126   :  { %2519 = vmatpush.bf16.msrb.mxu3 %v10617_v50  ;;  %2481 = vmatmul.bf16.vlgmr.msrb.gmra.mxu0 %v17456_v22  ;;  %v2288_v50 = vadd.f32 %v2287_v40, %v2275_v39  ;;  %v16007_v39 = vld [vmem:[#allocation2 + $0x6ec] sm:$0xf]  ;;  %v11366_v40 = vld [vmem:[#allocation2 + $0x6f8] sm:$0xf0] }
 0x127   :  { %2525 = vmatpush.bf16.msra.mxu0 %v10857_v51  ;;  %v10793_v51 = vor.u32 %v15863_v35, %v10790_v36  ;;  %v15947_v35 = vld [vmem:[#allocation2 + $0x50c] sm:$0xf]  ;;  %v11126_v36 = vld [vmem:[#allocation2 + $0x518] sm:$0xf0] }
 0x128   :  { %2494 = vmatmul.bf16.vlgmr.msrb.gmra.mxu1 %v17458_v26  ;;  %2507 = vmatmul.bf16.vlgmr.msrb.gmra.mxu2 %v17428_v20  ;;  %v11334_v9 = vld [vmem:[#allocation2 + $0x6b8] sm:$0xf0]  ;;  %v16059_v30 = vld [vmem:[#allocation2 + $0x88c] sm:$0xf] }
 0x129   :  { %2538 = vmatpush.bf16.msra.mxu1 %v10985_v52  ;;  %2551 = vmatpush.bf16.msra.mxu2 %v11113_v53  ;;  %v10921_v52 = vor.u32 %v15895_v37, %v10918_v46  ;;  %v11049_v53 = vor.u32 %v15927_v47, %v11046_v48  ;;  %v11494_v47 = vld [vmem:[#allocation2 + $0x7f8] sm:$0xf0]  ;;  %v16071_v48 = vld [vmem:[#allocation2 + $0x8ec] sm:$0xf] }
 0x12a   :  { %2564 = vmatpush.bf16.msra.mxu3 %v11241_v56  ;;  %v11625_v24 = vor.u32 %v16071_v48, %v11622_v49  ;;  %v11446_v29 = vld [vmem:[#allocation2 + $0x798] sm:$0xf0] }
 0x12b   :  { %2526 = vmatpush.bf16.msra.mxu0 %v10841_v62  ;;  %2520 = vmatmul.bf16.vlgmr.msrb.gmra.mxu3 %v17431_v21  ;;  %v2300_v56 = vpop.f32.mrf.mxu2  ;;  %v15955_v62 = vld [vmem:[#allocation2 + $0x54c] sm:$0xf]  ;;  %v2276_v5 = vpop.f32.mrf.mxu0 }
 0x12c   :  { %v2301_v60 = vadd.f32 %v2300_v56, %v2288_v50  ;;  %v16003_v56 = vld [vmem:[#allocation2 + $0x6cc] sm:$0xf] }
 0x12d   :  { %2539 = vmatpush.bf16.msra.mxu1 %v10969_v63  ;;  %2552 = vmatpush.bf16.msra.mxu2 %v11097_v2  ;;  %v11158_v63 = vld [vmem:[#allocation2 + $0x558] sm:$0xf0]  ;;  %v10777_v2 = vor.u32 %v15859_v54, %v10774_v55  ;;  %v2289_v12 = vpop.f32.mrf.mxu1  ;;  %v11369_v54 = vor.u32 %v16007_v39, %v11366_v40 }
 0x12e   :  { %2565 = vmatpush.bf16.msra.mxu3 %v11225_v8  ;;  %v2313_v61 = vpop.f32.mrf.mxu3  ;;  %v11033_v8 = vor.u32 %v15923_v58, %v11030_v59  ;;  %v11161_v13 = vor.u32 %v15955_v62, %v11158_v63  ;;  %v11478_v59 = vld [vmem:[#allocation2 + $0x7d8] sm:$0xf0]  ;;  %v16099_v62 = vld [vmem:[#allocation2 + $0x9cc] sm:$0xf] }
 0x12f   :  { %2527 = vmatpush.bf16.msra.mxu0 %v10825_v14  ;;  %v17495_v3 = vadd.f32 %v2313_v61, %v2301_v60  ;;  %v10886_v14 = vld [vmem:[#allocation2 + $0x338] sm:$0xf0]  ;;  %v16067_v60 = vld [vmem:[#allocation2 + $0x8cc] sm:$0xf]  ;;  %v11481_v5 = vor.u32 %v16035_v57, %v11478_v59 }
 0x130   :  { %v10889_v27 = vor.u32 %v15887_v11, %v10886_v14  ;;  %v11606_v61 = vld [vmem:[#allocation2 + $0x8d8] sm:$0xf0] }
 0x131   :  { %2540 = vmatpush.bf16.msra.mxu1 %v10953_v15  ;;  %2553 = vmatpush.bf16.msra.mxu2 %v11081_v16  ;;  %v15919_v15 = vld [vmem:[#allocation2 + $0x42c] sm:$0xf]  ;;  %v11014_v16 = vld [vmem:[#allocation2 + $0x438] sm:$0xf0] }
 0x132   :  { %2566 = vmatpush.bf16.msra.mxu3 %v11209_v23  ;;  %v15851_v23 = vld [vmem:[#allocation2 + $0x20c] sm:$0xf]  ;;  %v11017_v28 = vor.u32 %v15919_v15, %v11014_v16  ;;  %v11734_v63 = vld [vmem:[#allocation2 + $0x9d8] sm:$0xf0] }
 0x133   :  { %2528 = vmatpush.bf16.msra.mxu0 %v10809_v31  ;;  %v15915_v31 = vld [vmem:[#allocation2 + $0x40c] sm:$0xf]  ;;  %v2302_v32 = vpop.f32.mrf.mxu2  ;;  %v10745_v46 = vor.u32 %v15851_v23, %v10742_v25  ;;  %v11737_v11 = vor.u32 %v16099_v62, %v11734_v63  ;;  %v11462_v12 = vld [vmem:[#allocation2 + $0x7b8] sm:$0xf0] }
 0x134   :  { %v11590_v14 = vld [vmem:[#allocation2 + $0x8b8] sm:$0xf0]  ;;  %v16095_v15 = vld [vmem:[#allocation2 + $0x9ac] sm:$0xf] }
 0x135   :  { %2541 = vmatpush.bf16.msra.mxu1 %v10937_v33  ;;  %2554 = vmatpush.bf16.msra.mxu2 %v11065_v34  ;;  %v11145_v33 = vor.u32 %v15951_v17, %v11142_v18  ;;  %v10998_v34 = vld [vmem:[#allocation2 + $0x418] sm:$0xf0]  ;;  %v11465_v18 = vor.u32 %v16031_v10, %v11462_v12  ;;  %v15995_v23 = vld [vmem:[#allocation2 + $0x68c] sm:$0xf] }
 0x136   :  { %2567 = vmatpush.bf16.msra.mxu3 %v11193_v45  ;;  %v2315_v37 = vpop.f32.mrf.mxu3  ;;  %v16039_v45 = vld [vmem:[#allocation2 + $0x7ec] sm:$0xf]  ;;  %v11001_v50 = vor.u32 %v15915_v31, %v10998_v34  ;;  %v11718_v16 = vld [vmem:[#allocation2 + $0x9b8] sm:$0xf0] }
 0x137   :  { %2529 = vmatpush.bf16.msra.mxu0 %v10793_v51  ;;  %v16103_v51 = vld [vmem:[#allocation2 + $0x9ec] sm:$0xf]  ;;  %v11497_v55 = vor.u32 %v16039_v45, %v11494_v47  ;;  %v11318_v25 = vld [vmem:[#allocation2 + $0x698] sm:$0xf0] }
 0x138   :  { %v11574_v31 = vld [vmem:[#allocation2 + $0x898] sm:$0xf0]  ;;  %v15991_v45 = vld [vmem:[#allocation2 + $0x66c] sm:$0xf] }
 0x139   :  { %2542 = vmatpush.bf16.msra.mxu1 %v10921_v52  ;;  %2555 = vmatpush.bf16.msra.mxu2 %v11049_v53  ;;  %v11750_v52 = vld [vmem:[#allocation2 + $0x9f8] sm:$0xf0]  ;;  %v11129_v53 = vor.u32 %v15947_v35, %v11126_v36  ;;  %v11321_v36 = vor.u32 %v15995_v23, %v11318_v25  ;;  %v11577_v40 = vor.u32 %v16059_v30, %v11574_v31  ;;  %v16023_v47 = vld [vmem:[#allocation2 + $0x76c] sm:$0xf] }
 0x13a   :  { %2568 = vmatpush.bf16.msra.mxu3 %v11177_v1  ;;  %v11350_v1 = vld [vmem:[#allocation2 + $0x6d8] sm:$0xf0]  ;;  %v11753_v58 = vor.u32 %v16103_v51, %v11750_v52  ;;  %v16087_v52 = vld [vmem:[#allocation2 + $0x96c] sm:$0xf] }
 0x13b   :  { %2530 = vmatpush.bf16.msra.mxu0 %v10777_v2  ;;  %v11353_v2 = vor.u32 %v16003_v56, %v11350_v1  ;;  %v11702_v34 = vld [vmem:[#allocation2 + $0x998] sm:$0xf0]  ;;  %v16019_v1 = vld [vmem:[#allocation2 + $0x74c] sm:$0xf] }
 0x13c   :  { %v11558_v51 = vld [vmem:[#allocation2 + $0x878] sm:$0xf0]  ;;  %v16079_v23 = vld [vmem:[#allocation2 + $0x92c] sm:$0xf] }
 0x13d   :  { %2543 = vmatpush.bf16.msra.mxu1 %v10905_v7  ;;  %2556 = vmatpush.bf16.msra.mxu2 %v11033_v8  ;;  %v11609_v7 = vor.u32 %v16067_v60, %v11606_v61  ;;  %v15999_v8 = vld [vmem:[#allocation2 + $0x6ac] sm:$0xf]  ;;  %v11286_v56 = vld [vmem:[#allocation2 + $0x658] sm:$0xf0] }
 0x13e   :  { %2569 = vmatpush.bf16.msra.mxu3 %v11161_v13  ;;  %v16063_v13 = vld [vmem:[#allocation2 + $0x8ac] sm:$0xf]  ;;  %v11337_v17 = vor.u32 %v15999_v8, %v11334_v9  ;;  %v11414_v59 = vld [vmem:[#allocation2 + $0x758] sm:$0xf0] }
 0x13f   :  { %2531 = vmatpush.bf16.msra.mxu0 %v10761_v19  ;;  %v11593_v19 = vor.u32 %v16063_v13, %v11590_v14  ;;  %v16051_v60 = vld [vmem:[#allocation2 + $0x84c] sm:$0xf]  ;;  %v11542_v61 = vld [vmem:[#allocation2 + $0x858] sm:$0xf0] }
 0x140   :  { %v11545_v12 = vor.u32 %v16051_v60, %v11542_v61  ;;  %v15983_v13 = vld [vmem:[#allocation2 + $0x62c] sm:$0xf]  ;;  %v11270_v14 = vld [vmem:[#allocation2 + $0x638] sm:$0xf0]  ;;  %v16164_v61 = vld [vmem:[#allocation2 + $0xbcc] sm:$0xf0] }
 0x141   :  { %2544 = vmatpush.bf16.msra.mxu1 %v10889_v27  ;;  %2557 = vmatpush.bf16.msra.mxu2 %v11017_v28  ;;  %v16027_v27 = vld [vmem:[#allocation2 + $0x78c] sm:$0xf]  ;;  %v11721_v28 = vor.u32 %v16095_v15, %v11718_v16  ;;  %v11654_v25 = vld [vmem:[#allocation2 + $0x938] sm:$0xf0] }
 0x142   :  { %2570 = vmatpush.bf16.msra.mxu3 %v11145_v33  ;;  %v16091_v33 = vld [vmem:[#allocation2 + $0x98c] sm:$0xf]  ;;  %v11449_v39 = vor.u32 %v16027_v27, %v11446_v29  ;;  %v11273_v27 = vor.u32 %v15983_v13, %v11270_v14  ;;  %v11254_v29 = vld [vmem:[#allocation2 + $0x618] sm:$0xf0]  ;;  %v11964_v13 = vld [vmem:[#allocation2 + $0xba0] sm:$0xf] }
 0x143   :  { %2532 = vmatpush.bf16.msra.mxu0 %v10745_v46  ;;  %v2326_v32 = vpop.f32.mrf.mxu0  ;;  %v11302_v46 = vld [vmem:[#allocation2 + $0x678] sm:$0xf0]  ;;  %v11705_v48 = vor.u32 %v16091_v33, %v11702_v34  ;;  %v16015_v15 = vld [vmem:[#allocation2 + $0x72c] sm:$0xf] }
 0x144   :  { %v2327_v35 = vadd.f32 %v2326_v32, %v17495_v3  ;;  %v16011_v32 = vld [vmem:[#allocation2 + $0x70c] sm:$0xf]  ;;  %v11382_v33 = vld [vmem:[#allocation2 + $0x718] sm:$0xf0] }
 0x145   :  { %2545 = vmatpush.bf16.msra.mxu1 %v10873_v0  ;;  %2558 = vmatpush.bf16.msra.mxu2 %v11001_v50  ;;  %v2339_v37 = vpop.f32.mrf.mxu1  ;;  %v11430_v0 = vld [vmem:[#allocation2 + $0x778] sm:$0xf0]  ;;  %v16055_v50 = vld [vmem:[#allocation2 + $0x86c] sm:$0xf] }
 0x146   :  { %2571 = vmatpush.bf16.msra.mxu3 %v11129_v53  ;;  %2533 = vmatmul.bf16.vlgmr.msra.gmra.mxu0 %v17420_v4  ;;  %v2340_v49 = vadd.f32 %v2339_v37, %v2327_v35  ;;  %v11686_v53 = vld [vmem:[#allocation2 + $0x978] sm:$0xf0]  ;;  %v11433_v3 = vor.u32 %v16023_v47, %v11430_v0  ;;  %v16043_v34 = vld [vmem:[#allocation2 + $0x80c] sm:$0xf]  ;;  %v11657_v35 = vor.u32 %v16079_v23, %v11654_v25  ;;  %v11996_v47 = vld [vmem:[#allocation2 + $0xbe0] sm:$0xf] }
 0x147   :  { %2577 = vmatpush.bf16.msrb.mxu0 %v11369_v54  ;;  %v11305_v54 = vor.u32 %v15991_v45, %v11302_v46  ;;  %v11689_v57 = vor.u32 %v16087_v52, %v11686_v53  ;;  %v16075_v37 = vld [vmem:[#allocation2 + $0x90c] sm:$0xf]  ;;  %v11868_v45 = vld [vmem:[#allocation2 + $0xae0] sm:$0xf]  ;;  %v16136_v46 = vld [vmem:[#allocation2 + $0xaec] sm:$0xf0]  ;;  %v11385_v52 = vor.u32 %v16011_v32, %v11382_v33 }
 0x148   :  { %2559 = vmatmul.bf16.vlgmr.msra.gmra.mxu2 %v17443_v41  ;;  %2546 = vmatmul.bf16.vlgmr.msra.gmra.mxu1 %v17425_v6  ;;  %v16168_v0 = vld [vmem:[#allocation2 + $0xbec] sm:$0xf0]  ;;  %v12076_v33 = vld [vmem:[#allocation2 + $0xc80] sm:$0xf] }
 0x149   :  { %2590 = vmatpush.bf16.msrb.mxu1 %v11497_v55  ;;  %2603 = vmatpush.bf16.msrb.mxu2 %v11625_v24  ;;  %v11561_v55 = vor.u32 %v16055_v50, %v11558_v51  ;;  %v15987_v24 = vld [vmem:[#allocation2 + $0x64c] sm:$0xf]  ;;  %v12124_v50 = vld [vmem:[#allocation2 + $0xce0] sm:$0xf]  ;;  %v16200_v51 = vld [vmem:[#allocation2 + $0xcec] sm:$0xf0] }
 0x14a   :  { %2616 = vmatpush.bf16.msrb.mxu3 %v11753_v58  ;;  %v11289_v8 = vor.u32 %v15987_v24, %v11286_v56  ;;  %v11869_v24 = vor.u32 %v16136_v46, %v11868_v45  ;;  %v11997_v56 = vor.u32 %v16168_v0, %v11996_v47  ;;  %v16156_v32 = vld [vmem:[#allocation2 + $0xb8c] sm:$0xf0]  ;;  %v11804_v46 = vld [vmem:[#allocation2 + $0xa60] sm:$0xf] }
 0x14b   :  { %2572 = vmatmul.bf16.vlgmr.msra.gmra.mxu3 %v17447_v44  ;;  %2578 = vmatpush.bf16.msrb.mxu0 %v11353_v2  ;;  %v2352_v58 = vpop.f32.mrf.mxu2  ;;  %v16083_v2 = vld [vmem:[#allocation2 + $0x94c] sm:$0xf]  ;;  %v16120_v47 = vld [vmem:[#allocation2 + $0xa6c] sm:$0xf0] }
 0x14c   :  { %v2353_v62 = vadd.f32 %v2352_v58, %v2340_v49  ;;  %v16132_v58 = vld [vmem:[#allocation2 + $0xacc] sm:$0xf0] }
 0x14d   :  { %2591 = vmatpush.bf16.msrb.mxu1 %v11481_v5  ;;  %2604 = vmatpush.bf16.msrb.mxu2 %v11609_v7  ;;  %v11670_v5 = vld [vmem:[#allocation2 + $0x958] sm:$0xf0]  ;;  %v2328_v7 = vpop.f32.mrf.mxu0  ;;  %v2341_v9 = vpop.f32.mrf.mxu1 }
 0x14e   :  { %2617 = vmatpush.bf16.msrb.mxu3 %v11737_v11  ;;  %v2365_v63 = vpop.f32.mrf.mxu3  ;;  %v11417_v11 = vor.u32 %v16019_v1, %v11414_v59  ;;  %v11673_v16 = vor.u32 %v16083_v2, %v11670_v5  ;;  %v12125_v1 = vor.u32 %v16200_v51, %v12124_v50  ;;  %v11980_v59 = vld [vmem:[#allocation2 + $0xbc0] sm:$0xf]  ;;  %v16228_v5 = vld [vmem:[#allocation2 + $0xdcc] sm:$0xf0] }
 0x14f   :  { %2579 = vmatpush.bf16.msrb.mxu0 %v11337_v17  ;;  %v17502_v10 = vadd.f32 %v2365_v63, %v2353_v62  ;;  %v11398_v17 = vld [vmem:[#allocation2 + $0x738] sm:$0xf0]  ;;  %v12108_v62 = vld [vmem:[#allocation2 + $0xcc0] sm:$0xf]  ;;  %v16196_v63 = vld [vmem:[#allocation2 + $0xccc] sm:$0xf0] }
 0x150   :  { %v11401_v30 = vor.u32 %v16015_v15, %v11398_v17  ;;  %v12236_v2 = vld [vmem:[#allocation2 + $0xdc0] sm:$0xf]  ;;  %v12109_v9 = vor.u32 %v16196_v63, %v12108_v62  ;;  %v16160_v15 = vld [vmem:[#allocation2 + $0xbac] sm:$0xf0] }
 0x151   :  { %2592 = vmatpush.bf16.msrb.mxu1 %v11465_v18  ;;  %2605 = vmatpush.bf16.msrb.mxu2 %v11593_v19  ;;  %v16047_v18 = vld [vmem:[#allocation2 + $0x82c] sm:$0xf]  ;;  %v11526_v19 = vld [vmem:[#allocation2 + $0x838] sm:$0xf0]  ;;  %v12237_v14 = vor.u32 %v16228_v5, %v12236_v2  ;;  %v16192_v17 = vld [vmem:[#allocation2 + $0xcac] sm:$0xf0]  ;;  %v11965_v25 = vor.u32 %v16160_v15, %v11964_v13 }
 0x152   :  { %2618 = vmatpush.bf16.msrb.mxu3 %v11721_v28  ;;  %v15979_v28 = vld [vmem:[#allocation2 + $0x60c] sm:$0xf]  ;;  %v11529_v31 = vor.u32 %v16047_v18, %v11526_v19  ;;  %v12220_v18 = vld [vmem:[#allocation2 + $0xda0] sm:$0xf]  ;;  %v16224_v19 = vld [vmem:[#allocation2 + $0xdac] sm:$0xf0] }
 0x153   :  { %2580 = vmatpush.bf16.msrb.mxu0 %v11321_v36  ;;  %v11510_v36 = vld [vmem:[#allocation2 + $0x818] sm:$0xf0]  ;;  %v11257_v49 = vor.u32 %v15979_v28, %v11254_v29  ;;  %v11820_v28 = vld [vmem:[#allocation2 + $0xa80] sm:$0xf]  ;;  %v16124_v29 = vld [vmem:[#allocation2 + $0xa8c] sm:$0xf0] }
 0x154   :  { %v11513_v53 = vor.u32 %v16043_v34, %v11510_v36  ;;  %v16188_v34 = vld [vmem:[#allocation2 + $0xc8c] sm:$0xf0]  ;;  %v12060_v51 = vld [vmem:[#allocation2 + $0xc60] sm:$0xf] }
 0x155   :  { %2593 = vmatpush.bf16.msrb.mxu1 %v11449_v39  ;;  %2606 = vmatpush.bf16.msrb.mxu2 %v11577_v40  ;;  %v11638_v39 = vld [vmem:[#allocation2 + $0x918] sm:$0xf0]  ;;  %v2354_v40 = vpop.f32.mrf.mxu2  ;;  %v16220_v36 = vld [vmem:[#allocation2 + $0xd8c] sm:$0xf0]  ;;  %v12077_v45 = vor.u32 %v16188_v34, %v12076_v33  ;;  %v12044_v62 = vld [vmem:[#allocation2 + $0xc40] sm:$0xf] }
 0x156   :  { %2619 = vmatpush.bf16.msrb.mxu3 %v11705_v48  ;;  %v2367_v48 = vpop.f32.mrf.mxu3  ;;  %v16152_v50 = vld [vmem:[#allocation2 + $0xb6c] sm:$0xf0]  ;;  %v11772_v15 = vld [vmem:[#allocation2 + $0xa20] sm:$0xf] }
 0x157   :  { %2581 = vmatpush.bf16.msrb.mxu0 %v11305_v54  ;;  %v12252_v54 = vld [vmem:[#allocation2 + $0xde0] sm:$0xf]  ;;  %v16180_v63 = vld [vmem:[#allocation2 + $0xc4c] sm:$0xf0] }
 0x158   :  { %v11932_v48 = vld [vmem:[#allocation2 + $0xb60] sm:$0xf] }
 0x159   :  { %2594 = vmatpush.bf16.msrb.mxu1 %v11433_v3  ;;  %2607 = vmatpush.bf16.msrb.mxu2 %v11561_v55  ;;  %v16232_v3 = vld [vmem:[#allocation2 + $0xdec] sm:$0xf0]  ;;  %v11641_v55 = vor.u32 %v16075_v37, %v11638_v39  ;;  %v11821_v37 = vor.u32 %v16124_v29, %v11820_v28  ;;  %v12156_v28 = vld [vmem:[#allocation2 + $0xd20] sm:$0xf] }
 0x15a   :  { %2620 = vmatpush.bf16.msrb.mxu3 %v11689_v57  ;;  %v11852_v57 = vld [vmem:[#allocation2 + $0xac0] sm:$0xf]  ;;  %v12253_v60 = vor.u32 %v16232_v3, %v12252_v54  ;;  %v16216_v3 = vld [vmem:[#allocation2 + $0xd6c] sm:$0xf0] }
 0x15b   :  { %2582 = vmatpush.bf16.msrb.mxu0 %v11289_v8  ;;  %v11853_v7 = vor.u32 %v16132_v58, %v11852_v57  ;;  %v11981_v8 = vor.u32 %v16164_v61, %v11980_v59  ;;  %v12188_v54 = vld [vmem:[#allocation2 + $0xd60] sm:$0xf]  ;;  %v16116_v57 = vld [vmem:[#allocation2 + $0xa4c] sm:$0xf0] }
 0x15c   :  { %v11916_v58 = vld [vmem:[#allocation2 + $0xb40] sm:$0xf]  ;;  %v16148_v61 = vld [vmem:[#allocation2 + $0xb4c] sm:$0xf0] }
 0x15d   :  { %2595 = vmatpush.bf16.msrb.mxu1 %v11417_v11  ;;  %2608 = vmatpush.bf16.msrb.mxu2 %v11545_v12  ;;  %v11836_v11 = vld [vmem:[#allocation2 + $0xaa0] sm:$0xf]  ;;  %v16128_v12 = vld [vmem:[#allocation2 + $0xaac] sm:$0xf0]  ;;  %v11917_v13 = vor.u32 %v16148_v61, %v11916_v58 }
 0x15e   :  { %2621 = vmatpush.bf16.msrb.mxu3 %v11673_v16  ;;  %v12092_v16 = vld [vmem:[#allocation2 + $0xca0] sm:$0xf]  ;;  %v11837_v23 = vor.u32 %v16128_v12, %v11836_v11  ;;  %v16208_v29 = vld [vmem:[#allocation2 + $0xd2c] sm:$0xf0] }
 0x15f   :  { %2583 = vmatpush.bf16.msrb.mxu0 %v11273_v27  ;;  %v12093_v27 = vor.u32 %v16192_v17, %v12092_v16  ;;  %v16112_v16 = vld [vmem:[#allocation2 + $0xa2c] sm:$0xf0]  ;;  %v11900_v17 = vld [vmem:[#allocation2 + $0xb20] sm:$0xf] }
 0x160   :  { %v16260_v61 = vld [vmem:[#allocation2 + $0xecc] sm:$0xf0] }
 0x161   :  { %2596 = vmatpush.bf16.msrb.mxu1 %v11401_v30  ;;  %2609 = vmatpush.bf16.msrb.mxu2 %v11529_v31  ;;  %v11948_v30 = vld [vmem:[#allocation2 + $0xb80] sm:$0xf]  ;;  %v12221_v31 = vor.u32 %v16224_v19, %v12220_v18 }
 0x162   :  { %2622 = vmatpush.bf16.msrb.mxu3 %v11657_v35  ;;  %v12204_v35 = vld [vmem:[#allocation2 + $0xd80] sm:$0xf]  ;;  %v11949_v40 = vor.u32 %v16156_v32, %v11948_v30  ;;  %v11773_v30 = vor.u32 %v16112_v16, %v11772_v15  ;;  %v16108_v32 = vld [vmem:[#allocation2 + $0xa0c] sm:$0xf0] }
 0x163   :  { %2584 = vmatpush.bf16.msrb.mxu0 %v11257_v49  ;;  %v2378_v39 = vpop.f32.mrf.mxu0  ;;  %v12205_v0 = vor.u32 %v16220_v36, %v12204_v35  ;;  %v11884_v35 = vld [vmem:[#allocation2 + $0xb00] sm:$0xf]  ;;  %v16140_v36 = vld [vmem:[#allocation2 + $0xb0c] sm:$0xf0] }
 0x164   :  { %v12348_v15 = vld [vmem:[#allocation2 + $0xea0] sm:$0xf]  ;;  %v16256_v16 = vld [vmem:[#allocation2 + $0xeac] sm:$0xf0] }
 0x165   :  { %2597 = vmatpush.bf16.msrb.mxu1 %v11385_v52  ;;  %2610 = vmatpush.bf16.msrb.mxu2 %v11513_v53  ;;  %v2391_v49 = vpop.f32.mrf.mxu1  ;;  %v16184_v52 = vld [vmem:[#allocation2 + $0xc6c] sm:$0xf0] }
 0x166   :  { %2623 = vmatpush.bf16.msrb.mxu3 %v11641_v55  ;;  %2585 = vmatmul.bf16.vlgmr.msrb.gmra.mxu0 %v17441_v38  ;;  %v2392_v53 = vadd.f32 %v2391_v49, %v2378_v39  ;;  %v11805_v55 = vor.u32 %v16120_v47, %v11804_v46  ;;  %v12140_v46 = vld [vmem:[#allocation2 + $0xd00] sm:$0xf]  ;;  %v16204_v47 = vld [vmem:[#allocation2 + $0xd0c] sm:$0xf0] }
 0x167   :  { %4550 = vmatpush.bf16.msra.mxu0 %v11869_v24  ;;  %v11933_v24 = vor.u32 %v16152_v50, %v11932_v48  ;;  %v12380_v49 = vld [vmem:[#allocation2 + $0xee0] sm:$0xf] }
 0x168   :  { %2611 = vmatmul.bf16.vlgmr.msrb.gmra.mxu2 %v17456_v22  ;;  %2598 = vmatmul.bf16.vlgmr.msrb.gmra.mxu1 %v17445_v42  ;;  %v12508_v50 = vld [vmem:[#allocation2 + $0xfe0] sm:$0xf] }
 0x169   :  { %4563 = vmatpush.bf16.msra.mxu1 %v11997_v56  ;;  %4576 = vmatpush.bf16.msra.mxu2 %v12125_v1  ;;  %v12061_v56 = vor.u32 %v16184_v52, %v12060_v51  ;;  %v11788_v1 = vld [vmem:[#allocation2 + $0xa40] sm:$0xf]  ;;  %v16296_v52 = vld [vmem:[#allocation2 + $0xfec] sm:$0xf0] }
 0x16a   :  { %4589 = vmatpush.bf16.msra.mxu3 %v12253_v60  ;;  %v12189_v60 = vor.u32 %v16216_v3, %v12188_v54  ;;  %v16328_v54 = vld [vmem:[#allocation2 + $0x10ec] sm:$0xf0]  ;;  %v11885_v3 = vor.u32 %v16140_v36, %v11884_v35  ;;  %v12509_v58 = vor.u32 %v16296_v52, %v12508_v50 }
 0x16b   :  { %2624 = vmatmul.bf16.vlgmr.msrb.gmra.mxu3 %v17458_v26  ;;  %4551 = vmatpush.bf16.msra.mxu0 %v11853_v7  ;;  %v2404_v59 = vpop.f32.mrf.mxu2  ;;  %v12172_v7 = vld [vmem:[#allocation2 + $0xd40] sm:$0xf]  ;;  %v2380_v12 = vpop.f32.mrf.mxu0  ;;  %v16284_v36 = vld [vmem:[#allocation2 + $0xf8c] sm:$0xf0] }
 0x16c   :  { %v2405_v2 = vadd.f32 %v2404_v59, %v2392_v53  ;;  %v12636_v53 = vld [vmem:[#allocation2 + $0x10e0] sm:$0xf]  ;;  %v16248_v50 = vld [vmem:[#allocation2 + $0xe6c] sm:$0xf0] }
 0x16d   :  { %4564 = vmatpush.bf16.msra.mxu1 %v11981_v8  ;;  %4577 = vmatpush.bf16.msra.mxu2 %v12109_v9  ;;  %v16212_v8 = vld [vmem:[#allocation2 + $0xd4c] sm:$0xf0]  ;;  %v11789_v9 = vor.u32 %v16116_v57, %v11788_v1  ;;  %v2393_v18 = vpop.f32.mrf.mxu1  ;;  %v12141_v1 = vor.u32 %v16204_v47, %v12140_v46  ;;  %v12637_v59 = vor.u32 %v16328_v54, %v12636_v53 }
 0x16e   :  { %4590 = vmatpush.bf16.msra.mxu3 %v12237_v14  ;;  %v2417_v5 = vpop.f32.mrf.mxu3  ;;  %v12045_v14 = vor.u32 %v16180_v63, %v12044_v62  ;;  %v12173_v19 = vor.u32 %v16212_v8, %v12172_v7  ;;  %v12492_v62 = vld [vmem:[#allocation2 + $0xfc0] sm:$0xf]  ;;  %v16324_v7 = vld [vmem:[#allocation2 + $0x10cc] sm:$0xf0] }
 0x16f   :  { %4552 = vmatpush.bf16.msra.mxu0 %v11837_v23  ;;  %v17508_v11 = vadd.f32 %v2417_v5, %v2405_v2  ;;  %v16144_v23 = vld [vmem:[#allocation2 + $0xb2c] sm:$0xf0]  ;;  %v12620_v5 = vld [vmem:[#allocation2 + $0x10c0] sm:$0xf] }
 0x170   :  { %v11901_v33 = vor.u32 %v16144_v23, %v11900_v17  ;;  %v16292_v2 = vld [vmem:[#allocation2 + $0xfcc] sm:$0xf0]  ;;  %v12748_v8 = vld [vmem:[#allocation2 + $0x11c0] sm:$0xf] }
 0x171   :  { %4565 = vmatpush.bf16.msra.mxu1 %v11965_v25  ;;  %4578 = vmatpush.bf16.msra.mxu2 %v12093_v27  ;;  %v12028_v25 = vld [vmem:[#allocation2 + $0xc20] sm:$0xf]  ;;  %v16176_v27 = vld [vmem:[#allocation2 + $0xc2c] sm:$0xf0] }
 0x172   :  { %4591 = vmatpush.bf16.msra.mxu3 %v12221_v31  ;;  %v11756_v31 = vld [vmem:[#allocation2 + $0xa00] sm:$0xf]  ;;  %v12029_v34 = vor.u32 %v16176_v27, %v12028_v25  ;;  %v16320_v25 = vld [vmem:[#allocation2 + $0x10ac] sm:$0xf0] }
 0x173   :  { %4553 = vmatpush.bf16.msra.mxu0 %v11821_v37  ;;  %v12012_v37 = vld [vmem:[#allocation2 + $0xc00] sm:$0xf]  ;;  %v2406_v39 = vpop.f32.mrf.mxu2  ;;  %v11757_v51 = vor.u32 %v16108_v32, %v11756_v31 }
 0x174   :  { %v12476_v17 = vld [vmem:[#allocation2 + $0xfa0] sm:$0xf]  ;;  %v16316_v39 = vld [vmem:[#allocation2 + $0x108c] sm:$0xf0] }
 0x175   :  { %4566 = vmatpush.bf16.msra.mxu1 %v11949_v40  ;;  %4579 = vmatpush.bf16.msra.mxu2 %v12077_v45  ;;  %v12157_v40 = vor.u32 %v16208_v29, %v12156_v28  ;;  %v16172_v45 = vld [vmem:[#allocation2 + $0xc0c] sm:$0xf0]  ;;  %v12604_v23 = vld [vmem:[#allocation2 + $0x10a0] sm:$0xf]  ;;  %v12349_v29 = vor.u32 %v16256_v16, %v12348_v15 }
 0x176   :  { %4592 = vmatpush.bf16.msra.mxu3 %v12205_v0  ;;  %v2419_v48 = vpop.f32.mrf.mxu3  ;;  %v16264_v0 = vld [vmem:[#allocation2 + $0xeec] sm:$0xf0]  ;;  %v12732_v27 = vld [vmem:[#allocation2 + $0x11a0] sm:$0xf]  ;;  %v12605_v31 = vor.u32 %v16320_v25, %v12604_v23 }
 0x177   :  { %4554 = vmatpush.bf16.msra.mxu0 %v11805_v55  ;;  %v12013_v55 = vor.u32 %v16172_v45, %v12012_v37  ;;  %v12381_v57 = vor.u32 %v16264_v0, %v12380_v49  ;;  %v16352_v28 = vld [vmem:[#allocation2 + $0x11ac] sm:$0xf0]  ;;  %v12332_v32 = vld [vmem:[#allocation2 + $0xe80] sm:$0xf] }
 0x178   :  { %v12733_v35 = vor.u32 %v16352_v28, %v12732_v27  ;;  %v12588_v37 = vld [vmem:[#allocation2 + $0x1080] sm:$0xf]  ;;  %v16348_v45 = vld [vmem:[#allocation2 + $0x118c] sm:$0xf0] }
 0x179   :  { %4567 = vmatpush.bf16.msra.mxu1 %v11933_v24  ;;  %4580 = vmatpush.bf16.msra.mxu2 %v12061_v56  ;;  %v12764_v24 = vld [vmem:[#allocation2 + $0x11e0] sm:$0xf]  ;;  %v16360_v56 = vld [vmem:[#allocation2 + $0x11ec] sm:$0xf0]  ;;  %v12589_v49 = vor.u32 %v16316_v39, %v12588_v37 }
 0x17a   :  { %4593 = vmatpush.bf16.msra.mxu3 %v12189_v60  ;;  %v12364_v60 = vld [vmem:[#allocation2 + $0xec0] sm:$0xf]  ;;  %v12765_v63 = vor.u32 %v16360_v56, %v12764_v24  ;;  %v16312_v24 = vld [vmem:[#allocation2 + $0x106c] sm:$0xf0] }
 0x17b   :  { %4555 = vmatpush.bf16.msra.mxu0 %v11789_v9  ;;  %v16356_v9 = vld [vmem:[#allocation2 + $0x11cc] sm:$0xf0]  ;;  %v12365_v12 = vor.u32 %v16260_v61, %v12364_v60  ;;  %v12316_v0 = vld [vmem:[#allocation2 + $0xe60] sm:$0xf] }
 0x17c   :  { %v12749_v18 = vor.u32 %v16356_v9, %v12748_v8  ;;  %v12700_v56 = vld [vmem:[#allocation2 + $0x1160] sm:$0xf]  ;;  %v16308_v8 = vld [vmem:[#allocation2 + $0x104c] sm:$0xf0] }
 0x17d   :  { %4568 = vmatpush.bf16.msra.mxu1 %v11917_v13  ;;  %4581 = vmatpush.bf16.msra.mxu2 %v12045_v14  ;;  %v12493_v13 = vor.u32 %v16292_v2, %v12492_v62  ;;  %v12621_v14 = vor.u32 %v16324_v7, %v12620_v5  ;;  %v12300_v61 = vld [vmem:[#allocation2 + $0xe40] sm:$0xf]  ;;  %v16244_v62 = vld [vmem:[#allocation2 + $0xe4c] sm:$0xf0] }
 0x17e   :  { %4594 = vmatpush.bf16.msra.mxu3 %v12173_v19  ;;  %v16288_v19 = vld [vmem:[#allocation2 + $0xfac] sm:$0xf0]  ;;  %v12556_v7 = vld [vmem:[#allocation2 + $0x1040] sm:$0xf]  ;;  %v12301_v15 = vor.u32 %v16244_v62, %v12300_v61 }
 0x17f   :  { %4556 = vmatpush.bf16.msra.mxu0 %v11773_v30  ;;  %v12477_v30 = vor.u32 %v16288_v19, %v12476_v17  ;;  %v16276_v5 = vld [vmem:[#allocation2 + $0xf4c] sm:$0xf0]  ;;  %v12557_v19 = vor.u32 %v16308_v8, %v12556_v7  ;;  %v12284_v23 = vld [vmem:[#allocation2 + $0xe20] sm:$0xf] }
 0x180   :  { %v16240_v25 = vld [vmem:[#allocation2 + $0xe2c] sm:$0xf0]  ;;  %v12412_v27 = vld [vmem:[#allocation2 + $0xf20] sm:$0xf] }
 0x181   :  { %4569 = vmatpush.bf16.msra.mxu1 %v11901_v33  ;;  %4582 = vmatpush.bf16.msra.mxu2 %v12029_v34  ;;  %v16252_v33 = vld [vmem:[#allocation2 + $0xe8c] sm:$0xf0]  ;;  %v12460_v34 = vld [vmem:[#allocation2 + $0xf80] sm:$0xf] }
 0x182   :  { %4595 = vmatpush.bf16.msra.mxu3 %v12157_v40  ;;  %v12716_v40 = vld [vmem:[#allocation2 + $0x1180] sm:$0xf]  ;;  %v12333_v46 = vor.u32 %v16252_v33, %v12332_v32  ;;  %v12461_v48 = vor.u32 %v16284_v36, %v12460_v34  ;;  %v16304_v32 = vld [vmem:[#allocation2 + $0x102c] sm:$0xf0] }
 0x183   :  { %4557 = vmatpush.bf16.msra.mxu0 %v11757_v51  ;;  %v2430_v47 = vpop.f32.mrf.mxu0  ;;  %v12444_v51 = vld [vmem:[#allocation2 + $0xf60] sm:$0xf]  ;;  %v12717_v54 = vor.u32 %v16348_v45, %v12716_v40  ;;  %v16336_v34 = vld [vmem:[#allocation2 + $0x112c] sm:$0xf0] }
 0x184   :  { %v2431_v52 = vadd.f32 %v2430_v47, %v17508_v11  ;;  %v12668_v33 = vld [vmem:[#allocation2 + $0x1120] sm:$0xf]  ;;  %v16236_v37 = vld [vmem:[#allocation2 + $0xe0c] sm:$0xf0] }
 0x185   :  { %4570 = vmatpush.bf16.msra.mxu1 %v11885_v3  ;;  %4583 = vmatpush.bf16.msra.mxu2 %v12013_v55  ;;  %v2443_v53 = vpop.f32.mrf.mxu1  ;;  %v16280_v3 = vld [vmem:[#allocation2 + $0xf6c] sm:$0xf0]  ;;  %v12572_v55 = vld [vmem:[#allocation2 + $0x1060] sm:$0xf] }
 0x186   :  { %4596 = vmatpush.bf16.msra.mxu3 %v12141_v1  ;;  %4558 = vmatmul.bf16.vlgmr.msra.gmra.mxu0 %v17428_v20  ;;  %v16344_v1 = vld [vmem:[#allocation2 + $0x116c] sm:$0xf0]  ;;  %v12573_v60 = vor.u32 %v16312_v24, %v12572_v55  ;;  %v12268_v36 = vld [vmem:[#allocation2 + $0xe00] sm:$0xf] }
 0x187   :  { %4602 = vmatpush.bf16.msrb.mxu0 %v12381_v57  ;;  %v2444_v57 = vadd.f32 %v2443_v53, %v2431_v52  ;;  %v12701_v11 = vor.u32 %v16344_v1, %v12700_v56  ;;  %v12396_v45 = vld [vmem:[#allocation2 + $0xf00] sm:$0xf]  ;;  %v12269_v55 = vor.u32 %v16236_v37, %v12268_v36  ;;  %v16424_v24 = vld [vmem:[#allocation2 + $0x13ec] sm:$0xf0]  ;;  %v16134_v56 = vld [vmem:[#allocation2 + $0xae4] sm:$0xf] }
 0x188   :  { %4584 = vmatmul.bf16.vlgmr.msra.gmra.mxu2 %v17420_v4  ;;  %4571 = vmatmul.bf16.vlgmr.msra.gmra.mxu1 %v17431_v21  ;;  %v12524_v47 = vld [vmem:[#allocation2 + $0x1000] sm:$0xf]  ;;  %v11870_v1 = vld [vmem:[#allocation2 + $0xaf0] sm:$0xf0] }
 0x189   :  { %4615 = vmatpush.bf16.msrb.mxu1 %v12509_v58  ;;  %4628 = vmatpush.bf16.msrb.mxu2 %v12637_v59  ;;  %v12317_v58 = vor.u32 %v16248_v50, %v12316_v0  ;;  %v12445_v59 = vor.u32 %v16280_v3, %v12444_v51  ;;  %v16300_v0 = vld [vmem:[#allocation2 + $0x100c] sm:$0xf0]  ;;  %v12652_v50 = vld [vmem:[#allocation2 + $0x1100] sm:$0xf] }
 0x18a   :  { %4641 = vmatpush.bf16.msrb.mxu3 %v12765_v63  ;;  %v12428_v63 = vld [vmem:[#allocation2 + $0xf40] sm:$0xf]  ;;  %v16332_v51 = vld [vmem:[#allocation2 + $0x110c] sm:$0xf0] }
 0x18b   :  { %4597 = vmatmul.bf16.vlgmr.msra.gmra.mxu3 %v17425_v6  ;;  %4603 = vmatpush.bf16.msrb.mxu0 %v12365_v12  ;;  %v2456_v2 = vpop.f32.mrf.mxu2  ;;  %v2432_v17 = vpop.f32.mrf.mxu0  ;;  %v12892_v53 = vld [vmem:[#allocation2 + $0x12e0] sm:$0xf]  ;;  %v12653_v61 = vor.u32 %v16332_v51, %v12652_v50  ;;  %v11950_v50 = vld [vmem:[#allocation2 + $0xb90] sm:$0xf0] }
 0x18c   :  { %v2457_v9 = vadd.f32 %v2456_v2, %v2444_v57  ;;  %v13020_v3 = vld [vmem:[#allocation2 + $0x13e0] sm:$0xf]  ;;  %v11873_v2 = vor.u32 %v16134_v56, %v11870_v1 }
 0x18d   :  { %4616 = vmatpush.bf16.msrb.mxu1 %v12493_v13  ;;  %4629 = vmatpush.bf16.msrb.mxu2 %v12621_v14  ;;  %v12684_v13 = vld [vmem:[#allocation2 + $0x1140] sm:$0xf]  ;;  %v16340_v14 = vld [vmem:[#allocation2 + $0x114c] sm:$0xf0]  ;;  %v2445_v28 = vpop.f32.mrf.mxu1 }
 0x18e   :  { %4642 = vmatpush.bf16.msrb.mxu3 %v12749_v18  ;;  %v2469_v12 = vpop.f32.mrf.mxu3  ;;  %v12429_v18 = vor.u32 %v16276_v5, %v12428_v63  ;;  %v13021_v63 = vor.u32 %v16424_v24, %v13020_v3  ;;  %v16388_v5 = vld [vmem:[#allocation2 + $0x12cc] sm:$0xf0]  ;;  %v13004_v7 = vld [vmem:[#allocation2 + $0x13c0] sm:$0xf] }
 0x18f   :  { %4604 = vmatpush.bf16.msrb.mxu0 %v12349_v29  ;;  %v17515_v16 = vadd.f32 %v2469_v12, %v2457_v9  ;;  %v12685_v29 = vor.u32 %v16340_v14, %v12684_v13  ;;  %v16420_v9 = vld [vmem:[#allocation2 + $0x13cc] sm:$0xf0]  ;;  %v16130_v12 = vld [vmem:[#allocation2 + $0xac4] sm:$0xf]  ;;  %v11854_v13 = vld [vmem:[#allocation2 + $0xad0] sm:$0xf0] }
 0x190   :  { %v16162_v14 = vld [vmem:[#allocation2 + $0xbc4] sm:$0xf]  ;;  %v12844_v37 = vld [vmem:[#allocation2 + $0x1280] sm:$0xf]  ;;  %v16376_v24 = vld [vmem:[#allocation2 + $0x126c] sm:$0xf0] }
 0x191   :  { %4617 = vmatpush.bf16.msrb.mxu1 %v12477_v30  ;;  %4630 = vmatpush.bf16.msrb.mxu2 %v12605_v31  ;;  %v16272_v30 = vld [vmem:[#allocation2 + $0xf2c] sm:$0xf0]  ;;  %v12540_v31 = vld [vmem:[#allocation2 + $0x1020] sm:$0xf] }
 0x192   :  { %4643 = vmatpush.bf16.msrb.mxu3 %v12733_v35  ;;  %v12285_v35 = vor.u32 %v16240_v25, %v12284_v23  ;;  %v12413_v39 = vor.u32 %v16272_v30, %v12412_v27  ;;  %v12541_v40 = vor.u32 %v16304_v32, %v12540_v31  ;;  %v12860_v23 = vld [vmem:[#allocation2 + $0x12a0] sm:$0xf]  ;;  %v16384_v25 = vld [vmem:[#allocation2 + $0x12ac] sm:$0xf0]  ;;  %v16126_v30 = vld [vmem:[#allocation2 + $0xaa4] sm:$0xf] }
 0x193   :  { %4605 = vmatpush.bf16.msrb.mxu0 %v12333_v46  ;;  %v16268_v46 = vld [vmem:[#allocation2 + $0xf0c] sm:$0xf0]  ;;  %v12988_v27 = vld [vmem:[#allocation2 + $0x13a0] sm:$0xf]  ;;  %v11838_v31 = vld [vmem:[#allocation2 + $0xab0] sm:$0xf0] }
 0x194   :  { %v12397_v57 = vor.u32 %v16268_v46, %v12396_v45  ;;  %v16158_v32 = vld [vmem:[#allocation2 + $0xba4] sm:$0xf]  ;;  %v11841_v36 = vor.u32 %v16126_v30, %v11838_v31  ;;  %v16412_v46 = vld [vmem:[#allocation2 + $0x138c] sm:$0xf0]  ;;  %v12956_v56 = vld [vmem:[#allocation2 + $0x1360] sm:$0xf] }
 0x195   :  { %4618 = vmatpush.bf16.msrb.mxu1 %v12461_v48  ;;  %4631 = vmatpush.bf16.msrb.mxu2 %v12589_v49  ;;  %v2458_v48 = vpop.f32.mrf.mxu2  ;;  %v12669_v49 = vor.u32 %v16336_v34, %v12668_v33  ;;  %v11966_v33 = vld [vmem:[#allocation2 + $0xbb0] sm:$0xf0]  ;;  %v12861_v34 = vor.u32 %v16384_v25, %v12860_v23  ;;  %v12796_v30 = vld [vmem:[#allocation2 + $0x1220] sm:$0xf]  ;;  %v16368_v31 = vld [vmem:[#allocation2 + $0x122c] sm:$0xf0] }
 0x196   :  { %4644 = vmatpush.bf16.msrb.mxu3 %v12717_v54  ;;  %v2471_v52 = vpop.f32.mrf.mxu3  ;;  %v16392_v54 = vld [vmem:[#allocation2 + $0x12ec] sm:$0xf0]  ;;  %v11969_v45 = vor.u32 %v16158_v32, %v11966_v33  ;;  %v11822_v48 = vld [vmem:[#allocation2 + $0xa90] sm:$0xf0]  ;;  %v12924_v32 = vld [vmem:[#allocation2 + $0x1320] sm:$0xf] }
 0x197   :  { %4606 = vmatpush.bf16.msrb.mxu0 %v12317_v58  ;;  %v12525_v58 = vor.u32 %v16300_v0, %v12524_v47  ;;  %v12893_v62 = vor.u32 %v16392_v54, %v12892_v53  ;;  %v16122_v47 = vld [vmem:[#allocation2 + $0xa84] sm:$0xf] }
 0x198   :  { %v16154_v0 = vld [vmem:[#allocation2 + $0xb84] sm:$0xf]  ;;  %v11825_v3 = vor.u32 %v16122_v47, %v11822_v48 }
 0x199   :  { %4619 = vmatpush.bf16.msrb.mxu1 %v12445_v59  ;;  %4632 = vmatpush.bf16.msrb.mxu2 %v12573_v60  ;;  %v16166_v59 = vld [vmem:[#allocation2 + $0xbe4] sm:$0xf]  ;;  %v11998_v60 = vld [vmem:[#allocation2 + $0xbf0] sm:$0xf0]  ;;  %v11953_v1 = vor.u32 %v16154_v0, %v11950_v50  ;;  %v16396_v0 = vld [vmem:[#allocation2 + $0x130c] sm:$0xf0] }
 0x19a   :  { %4645 = vmatpush.bf16.msrb.mxu3 %v12701_v11  ;;  %v12876_v11 = vld [vmem:[#allocation2 + $0x12c0] sm:$0xf]  ;;  %v12001_v8 = vor.u32 %v16166_v59, %v11998_v60  ;;  %v16118_v59 = vld [vmem:[#allocation2 + $0xa64] sm:$0xf]  ;;  %v11806_v60 = vld [vmem:[#allocation2 + $0xa70] sm:$0xf0] }
 0x19b   :  { %4607 = vmatpush.bf16.msrb.mxu0 %v12301_v15  ;;  %v11982_v15 = vld [vmem:[#allocation2 + $0xbd0] sm:$0xf0]  ;;  %v12877_v17 = vor.u32 %v16388_v5, %v12876_v11  ;;  %v12812_v11 = vld [vmem:[#allocation2 + $0x1240] sm:$0xf]  ;;  %v16372_v5 = vld [vmem:[#allocation2 + $0x124c] sm:$0xf0] }
 0x19c   :  { %v11985_v28 = vor.u32 %v16162_v14, %v11982_v15  ;;  %v16146_v15 = vld [vmem:[#allocation2 + $0xb44] sm:$0xf]  ;;  %v12813_v23 = vor.u32 %v16372_v5, %v12812_v11 }
 0x19d   :  { %4620 = vmatpush.bf16.msrb.mxu1 %v12429_v18  ;;  %4633 = vmatpush.bf16.msrb.mxu2 %v12557_v19  ;;  %v13005_v18 = vor.u32 %v16420_v9, %v13004_v7  ;;  %v11857_v19 = vor.u32 %v16130_v12, %v11854_v13  ;;  %v12940_v7 = vld [vmem:[#allocation2 + $0x1340] sm:$0xf]  ;;  %v16404_v9 = vld [vmem:[#allocation2 + $0x134c] sm:$0xf0]  ;;  %v16114_v12 = vld [vmem:[#allocation2 + $0xa44] sm:$0xf] }
 0x19e   :  { %4646 = vmatpush.bf16.msrb.mxu3 %v12685_v29  ;;  %v16416_v29 = vld [vmem:[#allocation2 + $0x13ac] sm:$0xf0]  ;;  %v11790_v13 = vld [vmem:[#allocation2 + $0xa50] sm:$0xf0]  ;;  %v16106_v50 = vld [vmem:[#allocation2 + $0xa04] sm:$0xf] }
 0x19f   :  { %4608 = vmatpush.bf16.msrb.mxu0 %v12285_v35  ;;  %v12989_v35 = vor.u32 %v16416_v29, %v12988_v27  ;;  %v11793_v29 = vor.u32 %v16114_v12, %v11790_v13  ;;  %v12110_v12 = vld [vmem:[#allocation2 + $0xcd0] sm:$0xf0]  ;;  %v16226_v13 = vld [vmem:[#allocation2 + $0xdc4] sm:$0xf] }
 0x1a1   :  { %4621 = vmatpush.bf16.msrb.mxu1 %v12413_v39  ;;  %4634 = vmatpush.bf16.msrb.mxu2 %v12541_v40  ;;  %v16380_v39 = vld [vmem:[#allocation2 + $0x128c] sm:$0xf0]  ;;  %v12972_v40 = vld [vmem:[#allocation2 + $0x1380] sm:$0xf] }
 0x1a2   :  { %4647 = vmatpush.bf16.msrb.mxu3 %v12669_v49  ;;  %v12845_v52 = vor.u32 %v16380_v39, %v12844_v37  ;;  %v12973_v54 = vor.u32 %v16412_v46, %v12972_v40  ;;  %v16142_v37 = vld [vmem:[#allocation2 + $0xb24] sm:$0xf]  ;;  %v11902_v39 = vld [vmem:[#allocation2 + $0xb30] sm:$0xf0]  ;;  %v12797_v40 = vor.u32 %v16368_v31, %v12796_v30  ;;  %v16364_v46 = vld [vmem:[#allocation2 + $0x120c] sm:$0xf0] }
 0x1a3   :  { %4609 = vmatpush.bf16.msrb.mxu0 %v12269_v55  ;;  %v2482_v49 = vpop.f32.mrf.mxu0  ;;  %v12828_v55 = vld [vmem:[#allocation2 + $0x1260] sm:$0xf]  ;;  %v16190_v30 = vld [vmem:[#allocation2 + $0xca4] sm:$0xf]  ;;  %v12094_v31 = vld [vmem:[#allocation2 + $0xcb0] sm:$0xf0] }
 0x1a4   :  { %v2483_v51 = vadd.f32 %v2482_v49, %v17515_v16  ;;  %v12829_v16 = vor.u32 %v16376_v24, %v12828_v55  ;;  %v12908_v49 = vld [vmem:[#allocation2 + $0x1300] sm:$0xf]  ;;  %v16198_v55 = vld [vmem:[#allocation2 + $0xce4] sm:$0xf]  ;;  %v12126_v24 = vld [vmem:[#allocation2 + $0xcf0] sm:$0xf0] }
 0x1a5   :  { %4622 = vmatpush.bf16.msrb.mxu1 %v12397_v57  ;;  %4635 = vmatpush.bf16.msrb.mxu2 %v12525_v58  ;;  %v2495_v53 = vpop.f32.mrf.mxu1  ;;  %v16408_v58 = vld [vmem:[#allocation2 + $0x136c] sm:$0xf0]  ;;  %v12129_v5 = vor.u32 %v16198_v55, %v12126_v24 }
 0x1a6   :  { %4648 = vmatpush.bf16.msrb.mxu3 %v12653_v61  ;;  %4610 = vmatmul.bf16.vlgmr.msrb.gmra.mxu0 %v17443_v41  ;;  %v17522_v57 = vadd.f32 %v2495_v53, %v2483_v51  ;;  %v16150_v61 = vld [vmem:[#allocation2 + $0xb64] sm:$0xf]  ;;  %v11905_v51 = vor.u32 %v16142_v37, %v11902_v39  ;;  %v12478_v39 = vld [vmem:[#allocation2 + $0xfb0] sm:$0xf0] }
 0x1a7   :  { %4654 = vmatpush.bf16.msra.mxu0 %v12893_v62  ;;  %v11934_v62 = vld [vmem:[#allocation2 + $0xb70] sm:$0xf0]  ;;  %v16138_v53 = vld [vmem:[#allocation2 + $0xb04] sm:$0xf] }
 0x1a8   :  { %4636 = vmatmul.bf16.vlgmr.msrb.gmra.mxu2 %v17441_v38  ;;  %4623 = vmatmul.bf16.vlgmr.msrb.gmra.mxu1 %v17447_v44  ;;  %v16286_v37 = vld [vmem:[#allocation2 + $0xfa4] sm:$0xf] }
 0x1a9   :  { %4667 = vmatpush.bf16.msra.mxu1 %v13021_v63  ;;  %4680 = vmatpush.bf16.msra.mxu2 %v11873_v2  ;;  %v12957_v63 = vor.u32 %v16408_v58, %v12956_v56  ;;  %v11809_v2 = vor.u32 %v16118_v59, %v11806_v60  ;;  %v16230_v56 = vld [vmem:[#allocation2 + $0xde4] sm:$0xf]  ;;  %v12254_v59 = vld [vmem:[#allocation2 + $0xdf0] sm:$0xf0] }
 0x1aa   :  { %4693 = vmatpush.bf16.msra.mxu3 %v12001_v8  ;;  %v11937_v8 = vor.u32 %v16150_v61, %v11934_v62  ;;  %v16262_v60 = vld [vmem:[#allocation2 + $0xee4] sm:$0xf]  ;;  %v12382_v61 = vld [vmem:[#allocation2 + $0xef0] sm:$0xf0]  ;;  %v12909_v62 = vor.u32 %v16396_v0, %v12908_v49  ;;  %v12481_v0 = vor.u32 %v16286_v37, %v12478_v39 }
 0x1ab   :  { %4649 = vmatmul.bf16.vlgmr.msrb.gmra.mxu3 %v17445_v42  ;;  %4655 = vmatpush.bf16.msra.mxu0 %v12877_v17  ;;  %v2508_v14 = vpop.f32.mrf.mxu2  ;;  %v11918_v17 = vld [vmem:[#allocation2 + $0xb50] sm:$0xf0]  ;;  %v16218_v49 = vld [vmem:[#allocation2 + $0xd84] sm:$0xf] }
 0x1ac   :  { %v11921_v33 = vor.u32 %v16146_v15, %v11918_v17  ;;  %v12238_v15 = vld [vmem:[#allocation2 + $0xdd0] sm:$0xf0]  ;;  %v16258_v17 = vld [vmem:[#allocation2 + $0xec4] sm:$0xf] }
 0x1ad   :  { %4668 = vmatpush.bf16.msra.mxu1 %v13005_v18  ;;  %4681 = vmatpush.bf16.msra.mxu2 %v11857_v19  ;;  %v2484_v19 = vpop.f32.mrf.mxu0  ;;  %v2497_v27 = vpop.f32.mrf.mxu1  ;;  %v12030_v37 = vld [vmem:[#allocation2 + $0xc30] sm:$0xf0]  ;;  %v16206_v39 = vld [vmem:[#allocation2 + $0xd24] sm:$0xf] }
 0x1ae   :  { %4694 = vmatpush.bf16.msra.mxu3 %v11985_v28  ;;  %v2521_v18 = vpop.f32.mrf.mxu3  ;;  %v12941_v28 = vor.u32 %v16404_v9, %v12940_v7  ;;  %v12257_v7 = vor.u32 %v16230_v56, %v12254_v59  ;;  %v16194_v9 = vld [vmem:[#allocation2 + $0xcc4] sm:$0xf] }
 0x1af   :  { %4656 = vmatpush.bf16.msra.mxu0 %v12861_v34  ;;  %v17524_v25 = vadd.f32 %v2521_v18, %v2508_v14  ;;  %v16400_v34 = vld [vmem:[#allocation2 + $0x132c] sm:$0xf0]  ;;  %v12366_v18 = vld [vmem:[#allocation2 + $0xed0] sm:$0xf0]  ;;  %v16290_v19 = vld [vmem:[#allocation2 + $0xfc4] sm:$0xf]  ;;  %v12113_v27 = vor.u32 %v16194_v9, %v12110_v12 }
 0x1b0   :  { %v12925_v47 = vor.u32 %v16400_v34, %v12924_v32  ;;  %v16222_v32 = vld [vmem:[#allocation2 + $0xda4] sm:$0xf]  ;;  %v12222_v34 = vld [vmem:[#allocation2 + $0xdb0] sm:$0xf0] }
 0x1b1   :  { %4669 = vmatpush.bf16.msra.mxu1 %v12989_v35  ;;  %4682 = vmatpush.bf16.msra.mxu2 %v11841_v36  ;;  %v16110_v35 = vld [vmem:[#allocation2 + $0xa24] sm:$0xf]  ;;  %v11774_v36 = vld [vmem:[#allocation2 + $0xa30] sm:$0xf0] }
 0x1b2   :  { %4695 = vmatpush.bf16.msra.mxu3 %v11969_v45  ;;  %v12780_v45 = vld [vmem:[#allocation2 + $0x1200] sm:$0xf]  ;;  %v11777_v48 = vor.u32 %v16110_v35, %v11774_v36  ;;  %v16254_v35 = vld [vmem:[#allocation2 + $0xea4] sm:$0xf]  ;;  %v12350_v36 = vld [vmem:[#allocation2 + $0xeb0] sm:$0xf0] }
 0x1b3   :  { %4657 = vmatpush.bf16.msra.mxu0 %v12845_v52  ;;  %v11758_v52 = vld [vmem:[#allocation2 + $0xa10] sm:$0xf0]  ;;  %v12781_v58 = vor.u32 %v16364_v46, %v12780_v45  ;;  %v12225_v45 = vor.u32 %v16222_v32, %v12222_v34  ;;  %v12353_v46 = vor.u32 %v16254_v35, %v12350_v36  ;;  %v16214_v59 = vld [vmem:[#allocation2 + $0xd64] sm:$0xf] }
 0x1b4   :  { %v16174_v36 = vld [vmem:[#allocation2 + $0xc24] sm:$0xf] }
 0x1b5   :  { %4670 = vmatpush.bf16.msra.mxu1 %v12973_v54  ;;  %4683 = vmatpush.bf16.msra.mxu2 %v11825_v3  ;;  %v11886_v54 = vld [vmem:[#allocation2 + $0xb10] sm:$0xf0]  ;;  %v2510_v3 = vpop.f32.mrf.mxu2 }
 0x1b6   :  { %4696 = vmatpush.bf16.msra.mxu3 %v11953_v1  ;;  %v2523_v1 = vpop.f32.mrf.mxu3  ;;  %v11889_v11 = vor.u32 %v16138_v53, %v11886_v54  ;;  %v16282_v53 = vld [vmem:[#allocation2 + $0xf84] sm:$0xf]  ;;  %v12462_v54 = vld [vmem:[#allocation2 + $0xf90] sm:$0xf0] }
 0x1b7   :  { %4658 = vmatpush.bf16.msra.mxu0 %v12829_v16  ;;  %v11761_v16 = vor.u32 %v16106_v50, %v11758_v52  ;;  %v12206_v50 = vld [vmem:[#allocation2 + $0xd90] sm:$0xf0]  ;;  %v16182_v1 = vld [vmem:[#allocation2 + $0xc64] sm:$0xf] }
 0x1b8   :  { %v12334_v52 = vld [vmem:[#allocation2 + $0xe90] sm:$0xf0]  ;;  %v12209_v24 = vor.u32 %v16218_v49, %v12206_v50  ;;  %v16270_v49 = vld [vmem:[#allocation2 + $0xf24] sm:$0xf]  ;;  %v12033_v50 = vor.u32 %v16174_v36, %v12030_v37 }
 0x1b9   :  { %4671 = vmatpush.bf16.msra.mxu1 %v12957_v63  ;;  %4684 = vmatpush.bf16.msra.mxu2 %v11809_v2  ;;  %v16294_v63 = vld [vmem:[#allocation2 + $0xfe4] sm:$0xf]  ;;  %v12510_v2 = vld [vmem:[#allocation2 + $0xff0] sm:$0xf0] }
 0x1ba   :  { %4697 = vmatpush.bf16.msra.mxu3 %v11937_v8  ;;  %v12385_v8 = vor.u32 %v16262_v60, %v12382_v61  ;;  %v12513_v14 = vor.u32 %v16294_v63, %v12510_v2  ;;  %v16246_v63 = vld [vmem:[#allocation2 + $0xe64] sm:$0xf]  ;;  %v12318_v2 = vld [vmem:[#allocation2 + $0xe70] sm:$0xf0] }
 0x1bb   :  { %4659 = vmatpush.bf16.msra.mxu0 %v12813_v23  ;;  %v12494_v23 = vld [vmem:[#allocation2 + $0xfd0] sm:$0xf0]  ;;  %v12321_v12 = vor.u32 %v16246_v63, %v12318_v2  ;;  %v16358_v63 = vld [vmem:[#allocation2 + $0x11e4] sm:$0xf] }
 0x1bc   :  { %v16318_v37 = vld [vmem:[#allocation2 + $0x10a4] sm:$0xf] }
 0x1bd   :  { %4672 = vmatpush.bf16.msra.mxu1 %v12941_v28  ;;  %4685 = vmatpush.bf16.msra.mxu2 %v11793_v29  ;;  %v12241_v28 = vor.u32 %v16226_v13, %v12238_v15  ;;  %v12369_v29 = vor.u32 %v16258_v17, %v12366_v18  ;;  %v16178_v13 = vld [vmem:[#allocation2 + $0xc44] sm:$0xf]  ;;  %v12174_v18 = vld [vmem:[#allocation2 + $0xd50] sm:$0xf0] }
 0x1be   :  { %4698 = vmatpush.bf16.msra.mxu3 %v11921_v33  ;;  %v12497_v33 = vor.u32 %v16290_v19, %v12494_v23  ;;  %v16210_v15 = vld [vmem:[#allocation2 + $0xd44] sm:$0xf]  ;;  %v12302_v23 = vld [vmem:[#allocation2 + $0xe50] sm:$0xf0] }
 0x1bf   :  { %4660 = vmatpush.bf16.msra.mxu0 %v12797_v40  ;;  %v12097_v40 = vor.u32 %v16190_v30, %v12094_v31  ;;  %v16242_v19 = vld [vmem:[#allocation2 + $0xe44] sm:$0xf]  ;;  %v12430_v30 = vld [vmem:[#allocation2 + $0xf50] sm:$0xf0]  ;;  %v12177_v34 = vor.u32 %v16210_v15, %v12174_v18 }
 0x1c0   :  { %v12305_v35 = vor.u32 %v16242_v19, %v12302_v23  ;;  %v16322_v18 = vld [vmem:[#allocation2 + $0x10c4] sm:$0xf]  ;;  %v12622_v19 = vld [vmem:[#allocation2 + $0x10d0] sm:$0xf0] }
 0x1c1   :  { %4673 = vmatpush.bf16.msra.mxu1 %v12925_v47  ;;  %4686 = vmatpush.bf16.msra.mxu2 %v11777_v48  ;;  %v16186_v47 = vld [vmem:[#allocation2 + $0xc84] sm:$0xf]  ;;  %v12078_v48 = vld [vmem:[#allocation2 + $0xc90] sm:$0xf0] }
 0x1c2   :  { %4699 = vmatpush.bf16.msra.mxu3 %v11905_v51  ;;  %v16250_v51 = vld [vmem:[#allocation2 + $0xe84] sm:$0xf]  ;;  %v12081_v3 = vor.u32 %v16186_v47, %v12078_v48  ;;  %v12286_v48 = vld [vmem:[#allocation2 + $0xe30] sm:$0xf0] }
 0x1c3   :  { %4661 = vmatpush.bf16.msra.mxu0 %v12781_v58  ;;  %v2534_v55 = vpop.f32.mrf.mxu0  ;;  %v12337_v56 = vor.u32 %v16250_v51, %v12334_v52  ;;  %v12062_v58 = vld [vmem:[#allocation2 + $0xc70] sm:$0xf0]  ;;  %v16238_v47 = vld [vmem:[#allocation2 + $0xe24] sm:$0xf] }
 0x1c4   :  { %v2535_v60 = vadd.f32 %v2534_v55, %v17524_v25  ;;  %v16170_v51 = vld [vmem:[#allocation2 + $0xc04] sm:$0xf]  ;;  %v12014_v52 = vld [vmem:[#allocation2 + $0xc10] sm:$0xf0] }
 0x1c5   :  { %4674 = vmatpush.bf16.msra.mxu1 %v12909_v62  ;;  %4687 = vmatpush.bf16.msra.mxu2 %v11761_v16  ;;  %v2547_v61 = vpop.f32.mrf.mxu1  ;;  %v12465_v62 = vor.u32 %v16282_v53, %v12462_v54  ;;  %v12190_v16 = vld [vmem:[#allocation2 + $0xd70] sm:$0xf0]  ;;  %v12289_v54 = vor.u32 %v16238_v47, %v12286_v48  ;;  %v12017_v2 = vor.u32 %v16170_v51, %v12014_v52  ;;  %v16354_v23 = vld [vmem:[#allocation2 + $0x11c4] sm:$0xf] }
 0x1c6   :  { %4700 = vmatpush.bf16.msra.mxu3 %v11889_v11  ;;  %4662 = vmatmul.bf16.vlgmr.msra.gmra.mxu0 %v17456_v22  ;;  %v16278_v11 = vld [vmem:[#allocation2 + $0xf64] sm:$0xf]  ;;  %v12193_v9 = vor.u32 %v16214_v59, %v12190_v16  ;;  %v12142_v55 = vld [vmem:[#allocation2 + $0xd10] sm:$0xf0] }
 0x1c7   :  { %4706 = vmatpush.bf16.msrb.mxu0 %v12129_v5  ;;  %v12446_v5 = vld [vmem:[#allocation2 + $0xf70] sm:$0xf0]  ;;  %v16266_v59 = vld [vmem:[#allocation2 + $0xf04] sm:$0xf] }
 0x1c8   :  { %4675 = vmatmul.bf16.vlgmr.msra.gmra.mxu1 %v17458_v26  ;;  %4688 = vmatmul.bf16.vlgmr.msra.gmra.mxu2 %v17428_v20  ;;  %v12449_v25 = vor.u32 %v16278_v11, %v12446_v5  ;;  %v12638_v16 = vld [vmem:[#allocation2 + $0x10f0] sm:$0xf0]  ;;  %v16390_v5 = vld [vmem:[#allocation2 + $0x12e4] sm:$0xf] }
 0x1c9   :  { %4719 = vmatpush.bf16.msrb.mxu1 %v12257_v7  ;;  %4732 = vmatpush.bf16.msrb.mxu2 %v12385_v8  ;;  %v2548_v7 = vadd.f32 %v2547_v61, %v2535_v60  ;;  %v12065_v8 = vor.u32 %v16182_v1, %v12062_v58  ;;  %v12270_v58 = vld [vmem:[#allocation2 + $0xe10] sm:$0xf0]  ;;  %v16382_v47 = vld [vmem:[#allocation2 + $0x12a4] sm:$0xf] }
 0x1ca   :  { %4745 = vmatpush.bf16.msrb.mxu3 %v12513_v14  ;;  %v12046_v14 = vld [vmem:[#allocation2 + $0xc50] sm:$0xf0] }
 0x1cb   :  { %4707 = vmatpush.bf16.msrb.mxu0 %v12113_v27  ;;  %4701 = vmatmul.bf16.vlgmr.msra.gmra.mxu3 %v17431_v21  ;;  %v2560_v17 = vpop.f32.mrf.mxu2  ;;  %v12049_v31 = vor.u32 %v16178_v13, %v12046_v14  ;;  %v12398_v60 = vld [vmem:[#allocation2 + $0xf10] sm:$0xf0] }
 0x1cc   :  { %v2561_v27 = vadd.f32 %v2560_v17, %v2548_v7  ;;  %v12766_v11 = vld [vmem:[#allocation2 + $0x11f0] sm:$0xf0]  ;;  %v12401_v14 = vor.u32 %v16266_v59, %v12398_v60  ;;  %v16410_v59 = vld [vmem:[#allocation2 + $0x1384] sm:$0xf] }
 0x1cd   :  { %4720 = vmatpush.bf16.msrb.mxu1 %v12241_v28  ;;  %4733 = vmatpush.bf16.msrb.mxu2 %v12369_v29  ;;  %v16274_v29 = vld [vmem:[#allocation2 + $0xf44] sm:$0xf]  ;;  %v12894_v7 = vld [vmem:[#allocation2 + $0x12f0] sm:$0xf0]  ;;  %v12769_v17 = vor.u32 %v16358_v63, %v12766_v11 }
 0x1ce   :  { %4746 = vmatpush.bf16.msrb.mxu3 %v12497_v33  ;;  %v2573_v28 = vpop.f32.mrf.mxu3  ;;  %v2536_v33 = vpop.f32.mrf.mxu0  ;;  %v13022_v13 = vld [vmem:[#allocation2 + $0x13f0] sm:$0xf0]  ;;  %v16310_v11 = vld [vmem:[#allocation2 + $0x1064] sm:$0xf] }
 0x1cf   :  { %4708 = vmatpush.bf16.msrb.mxu0 %v12097_v40  ;;  %v17531_v32 = vadd.f32 %v2573_v28, %v2561_v27  ;;  %v2549_v40 = vpop.f32.mrf.mxu1  ;;  %v12750_v28 = vld [vmem:[#allocation2 + $0x11d0] sm:$0xf0] }
 0x1d0   :  { %v13006_v33 = vld [vmem:[#allocation2 + $0x13d0] sm:$0xf0]  ;;  %v16350_v40 = vld [vmem:[#allocation2 + $0x11a4] sm:$0xf] }
 0x1d1   :  { %4721 = vmatpush.bf16.msrb.mxu1 %v12225_v45  ;;  %4734 = vmatpush.bf16.msrb.mxu2 %v12353_v46  ;;  %v12433_v45 = vor.u32 %v16274_v29, %v12430_v30  ;;  %v12158_v46 = vld [vmem:[#allocation2 + $0xd30] sm:$0xf0]  ;;  %v16386_v29 = vld [vmem:[#allocation2 + $0x12c4] sm:$0xf] }
 0x1d2   :  { %4747 = vmatpush.bf16.msrb.mxu3 %v12481_v0  ;;  %v12414_v0 = vld [vmem:[#allocation2 + $0xf30] sm:$0xf0]  ;;  %v12161_v53 = vor.u32 %v16206_v39, %v12158_v46 }
 0x1d3   :  { %4709 = vmatpush.bf16.msrb.mxu0 %v12081_v3  ;;  %v16202_v3 = vld [vmem:[#allocation2 + $0xd04] sm:$0xf]  ;;  %v12417_v1 = vor.u32 %v16270_v49, %v12414_v0  ;;  %v12878_v30 = vld [vmem:[#allocation2 + $0x12d0] sm:$0xf0] }
 0x1d4   :  { %v12881_v36 = vor.u32 %v16386_v29, %v12878_v30  ;;  %v12606_v39 = vld [vmem:[#allocation2 + $0x10b0] sm:$0xf0]  ;;  %v16414_v49 = vld [vmem:[#allocation2 + $0x13a4] sm:$0xf] }
 0x1d5   :  { %4722 = vmatpush.bf16.msrb.mxu1 %v12209_v24  ;;  %4735 = vmatpush.bf16.msrb.mxu2 %v12337_v56  ;;  %v16234_v24 = vld [vmem:[#allocation2 + $0xe04] sm:$0xf]  ;;  %v2562_v56 = vpop.f32.mrf.mxu2  ;;  %v12734_v46 = vld [vmem:[#allocation2 + $0x11b0] sm:$0xf0] }
 0x1d6   :  { %4748 = vmatpush.bf16.msrb.mxu3 %v12465_v62  ;;  %v2575_v61 = vpop.f32.mrf.mxu3  ;;  %v16326_v62 = vld [vmem:[#allocation2 + $0x10e4] sm:$0xf]  ;;  %v12862_v48 = vld [vmem:[#allocation2 + $0x12b0] sm:$0xf0]  ;;  %v12737_v51 = vor.u32 %v16350_v40, %v12734_v46 }
 0x1d7   :  { %4710 = vmatpush.bf16.msrb.mxu0 %v12065_v8  ;;  %v12145_v8 = vor.u32 %v16202_v3, %v12142_v55  ;;  %v12641_v15 = vor.u32 %v16326_v62, %v12638_v16  ;;  %v12990_v0 = vld [vmem:[#allocation2 + $0x13b0] sm:$0xf0]  ;;  %v12865_v52 = vor.u32 %v16382_v47, %v12862_v48  ;;  %v16346_v3 = vld [vmem:[#allocation2 + $0x1184] sm:$0xf] }
 0x1d8   :  { %v12993_v55 = vor.u32 %v16414_v49, %v12990_v0  ;;  %v16378_v56 = vld [vmem:[#allocation2 + $0x1284] sm:$0xf]  ;;  %v12974_v60 = vld [vmem:[#allocation2 + $0x1390] sm:$0xf0] }
 0x1d9   :  { %4723 = vmatpush.bf16.msrb.mxu1 %v12193_v9  ;;  %4736 = vmatpush.bf16.msrb.mxu2 %v12321_v12  ;;  %v12273_v9 = vor.u32 %v16234_v24, %v12270_v58  ;;  %v16422_v12 = vld [vmem:[#allocation2 + $0x13e4] sm:$0xf]  ;;  %v12718_v24 = vld [vmem:[#allocation2 + $0x1190] sm:$0xf0] }
 0x1da   :  { %4749 = vmatpush.bf16.msrb.mxu3 %v12449_v25  ;;  %v12897_v25 = vor.u32 %v16390_v5, %v12894_v7  ;;  %v13025_v27 = vor.u32 %v16422_v12, %v13022_v13  ;;  %v12721_v63 = vor.u32 %v16346_v3, %v12718_v24  ;;  %v12574_v5 = vld [vmem:[#allocation2 + $0x1070] sm:$0xf0]  ;;  %v16342_v7 = vld [vmem:[#allocation2 + $0x1164] sm:$0xf] }
 0x1db   :  { %4711 = vmatpush.bf16.msrb.mxu0 %v12049_v31  ;;  %v16418_v31 = vld [vmem:[#allocation2 + $0x13c4] sm:$0xf]  ;;  %v12702_v12 = vld [vmem:[#allocation2 + $0x1170] sm:$0xf0] }
 0x1dc   :  { %v16374_v13 = vld [vmem:[#allocation2 + $0x1264] sm:$0xf]  ;;  %v12686_v30 = vld [vmem:[#allocation2 + $0x1150] sm:$0xf0] }
 0x1dd   :  { %4724 = vmatpush.bf16.msrb.mxu1 %v12177_v34  ;;  %4737 = vmatpush.bf16.msrb.mxu2 %v12305_v35  ;;  %v12625_v34 = vor.u32 %v16322_v18, %v12622_v19  ;;  %v12753_v35 = vor.u32 %v16354_v23, %v12750_v28  ;;  %v16306_v19 = vld [vmem:[#allocation2 + $0x1044] sm:$0xf]  ;;  %v12558_v23 = vld [vmem:[#allocation2 + $0x1050] sm:$0xf0] }
 0x1de   :  { %4750 = vmatpush.bf16.msrb.mxu3 %v12433_v45  ;;  %v13009_v45 = vor.u32 %v16418_v31, %v13006_v33  ;;  %v16370_v31 = vld [vmem:[#allocation2 + $0x1244] sm:$0xf]  ;;  %v12814_v33 = vld [vmem:[#allocation2 + $0x1250] sm:$0xf0]  ;;  %v12561_v40 = vor.u32 %v16306_v19, %v12558_v23  ;;  %v16233_v19 = vld [vmem:[#allocation2 + $0xdf4] sm:$0xf0] }
 0x1df   :  { %4712 = vmatpush.bf16.msrb.mxu0 %v12033_v50  ;;  %v12609_v50 = vor.u32 %v16318_v37, %v12606_v39  ;;  %v12942_v37 = vld [vmem:[#allocation2 + $0x1350] sm:$0xf0]  ;;  %v12817_v48 = vor.u32 %v16370_v31, %v12814_v33  ;;  %v16302_v49 = vld [vmem:[#allocation2 + $0x1024] sm:$0xf]  ;;  %v16133_v31 = vld [vmem:[#allocation2 + $0xad4] sm:$0xf0] }
 0x1e0   :  { %v12542_v0 = vld [vmem:[#allocation2 + $0x1030] sm:$0xf0]  ;;  %v16398_v3 = vld [vmem:[#allocation2 + $0x1324] sm:$0xf]  ;;  %v11988_v33 = vld [vmem:[#allocation2 + $0xbc8] sm:$0xf] }
 0x1e1   :  { %4725 = vmatpush.bf16.msrb.mxu1 %v12161_v53  ;;  %4738 = vmatpush.bf16.msrb.mxu2 %v12289_v54  ;;  %v16314_v53 = vld [vmem:[#allocation2 + $0x1084] sm:$0xf]  ;;  %v12590_v54 = vld [vmem:[#allocation2 + $0x1090] sm:$0xf0]  ;;  %v12545_v24 = vor.u32 %v16302_v49, %v12542_v0  ;;  %v11844_v49 = vld [vmem:[#allocation2 + $0xaa8] sm:$0xf] }
 0x1e2   :  { %4751 = vmatpush.bf16.msrb.mxu3 %v12417_v1  ;;  %v12846_v1 = vld [vmem:[#allocation2 + $0x1290] sm:$0xf0]  ;;  %v12593_v62 = vor.u32 %v16314_v53, %v12590_v54  ;;  %v16366_v53 = vld [vmem:[#allocation2 + $0x1224] sm:$0xf]  ;;  %v16129_v0 = vld [vmem:[#allocation2 + $0xab4] sm:$0xf0] }
 0x1e3   :  { %4713 = vmatpush.bf16.msrb.mxu0 %v12017_v2  ;;  %v2586_v58 = vpop.f32.mrf.mxu0  ;;  %v12849_v2 = vor.u32 %v16378_v56, %v12846_v1  ;;  %v12798_v54 = vld [vmem:[#allocation2 + $0x1230] sm:$0xf0]  ;;  %v16298_v56 = vld [vmem:[#allocation2 + $0x1004] sm:$0xf] }
 0x1e4   :  { %v2587_v61 = vadd.f32 %v2586_v58, %v17531_v32  ;;  %v12705_v32 = vor.u32 %v16342_v7, %v12702_v12  ;;  %v12526_v1 = vld [vmem:[#allocation2 + $0x1010] sm:$0xf0]  ;;  %v11876_v7 = vld [vmem:[#allocation2 + $0xae8] sm:$0xf] }
 0x1e5   :  { %4726 = vmatpush.bf16.msrb.mxu1 %v12145_v8  ;;  %4739 = vmatpush.bf16.msrb.mxu2 %v12273_v9  ;;  %v2599_v16 = vpop.f32.mrf.mxu1  ;;  %v12977_v8 = vor.u32 %v16410_v59, %v12974_v60  ;;  %v12801_v59 = vor.u32 %v16366_v53, %v12798_v54  ;;  %v16330_v60 = vld [vmem:[#allocation2 + $0x1104] sm:$0xf]  ;;  %v12100_v53 = vld [vmem:[#allocation2 + $0xca8] sm:$0xf]  ;;  %v16193_v54 = vld [vmem:[#allocation2 + $0xcb4] sm:$0xf0] }
 0x1e6   :  { %4752 = vmatpush.bf16.msrb.mxu3 %v12401_v14  ;;  %4714 = vmatmul.bf16.vlgmr.msrb.gmra.mxu0 %v17420_v4  ;;  %v2600_v9 = vadd.f32 %v2599_v16, %v2587_v61  ;;  %v12830_v14 = vld [vmem:[#allocation2 + $0x1270] sm:$0xf0] }
 0x1e7   :  { %4758 = vmatpush.bf16.msra.mxu0 %v12641_v15  ;;  %v16406_v15 = vld [vmem:[#allocation2 + $0x1364] sm:$0xf]  ;;  %v12833_v18 = vor.u32 %v16374_v13, %v12830_v14  ;;  %v12654_v61 = vld [vmem:[#allocation2 + $0x1110] sm:$0xf0]  ;;  %v12529_v13 = vor.u32 %v16298_v56, %v12526_v1  ;;  %v16169_v14 = vld [vmem:[#allocation2 + $0xbf4] sm:$0xf0]  ;;  %v12101_v1 = vor.u32 %v16193_v54, %v12100_v53 }
 0x1e8   :  { %4740 = vmatmul.bf16.vlgmr.msrb.gmra.mxu2 %v17443_v41  ;;  %4727 = vmatmul.bf16.vlgmr.msrb.gmra.mxu1 %v17425_v6  ;;  %v11780_v54 = vld [vmem:[#allocation2 + $0xa28] sm:$0xf] }
 0x1e9   :  { %4771 = vmatpush.bf16.msra.mxu1 %v12769_v17  ;;  %4784 = vmatpush.bf16.msra.mxu2 %v12897_v25  ;;  %v12958_v17 = vld [vmem:[#allocation2 + $0x1370] sm:$0xf0]  ;;  %v12577_v25 = vor.u32 %v16310_v11, %v12574_v5 }
 0x1ea   :  { %4797 = vmatpush.bf16.msra.mxu3 %v13025_v27  ;;  %v16338_v27 = vld [vmem:[#allocation2 + $0x1144] sm:$0xf]  ;;  %v12961_v28 = vor.u32 %v16406_v15, %v12958_v17  ;;  %v12910_v11 = vld [vmem:[#allocation2 + $0x1310] sm:$0xf0]  ;;  %v12132_v15 = vld [vmem:[#allocation2 + $0xce8] sm:$0xf] }
 0x1eb   :  { %4753 = vmatmul.bf16.vlgmr.msrb.gmra.mxu3 %v17447_v44  ;;  %4759 = vmatpush.bf16.msra.mxu0 %v12625_v34  ;;  %v2612_v29 = vpop.f32.mrf.mxu2  ;;  %v2588_v39 = vpop.f32.mrf.mxu0  ;;  %v12689_v47 = vor.u32 %v16338_v27, %v12686_v30  ;;  %v16201_v17 = vld [vmem:[#allocation2 + $0xcf4] sm:$0xf0]  ;;  %v11860_v30 = vld [vmem:[#allocation2 + $0xac8] sm:$0xf] }
 0x1ec   :  { %v2613_v34 = vadd.f32 %v2612_v29, %v2600_v9  ;;  %v12004_v9 = vld [vmem:[#allocation2 + $0xbe8] sm:$0xf]  ;;  %v12133_v29 = vor.u32 %v16201_v17, %v12132_v15 }
 0x1ed   :  { %4772 = vmatpush.bf16.msra.mxu1 %v12753_v35  ;;  %4785 = vmatpush.bf16.msra.mxu2 %v12881_v36  ;;  %v16402_v36 = vld [vmem:[#allocation2 + $0x1344] sm:$0xf]  ;;  %v12244_v39 = vld [vmem:[#allocation2 + $0xdc8] sm:$0xf] }
 0x1ee   :  { %4798 = vmatpush.bf16.msra.mxu3 %v13009_v45  ;;  %v2625_v35 = vpop.f32.mrf.mxu3  ;;  %v2601_v45 = vpop.f32.mrf.mxu1 }
 0x1ef   :  { %4760 = vmatpush.bf16.msra.mxu0 %v12609_v50  ;;  %v17538_v46 = vadd.f32 %v2625_v35, %v2613_v34  ;;  %v16334_v50 = vld [vmem:[#allocation2 + $0x1124] sm:$0xf]  ;;  %v16165_v35 = vld [vmem:[#allocation2 + $0xbd4] sm:$0xf0]  ;;  %v11861_v45 = vor.u32 %v16133_v31, %v11860_v30  ;;  %v11796_v31 = vld [vmem:[#allocation2 + $0xa48] sm:$0xf] }
 0x1f1   :  { %4773 = vmatpush.bf16.msra.mxu1 %v12737_v51  ;;  %4786 = vmatpush.bf16.msra.mxu2 %v12865_v52  ;;  %v12945_v51 = vor.u32 %v16402_v36, %v12942_v37  ;;  %v12670_v52 = vld [vmem:[#allocation2 + $0x1130] sm:$0xf0]  ;;  %v12116_v36 = vld [vmem:[#allocation2 + $0xcc8] sm:$0xf]  ;;  %v16197_v37 = vld [vmem:[#allocation2 + $0xcd4] sm:$0xf0] }
 0x1f2   :  { %4799 = vmatpush.bf16.msra.mxu3 %v12993_v55  ;;  %v12926_v55 = vld [vmem:[#allocation2 + $0x1330] sm:$0xf0]  ;;  %v12673_v58 = vor.u32 %v16334_v50, %v12670_v52  ;;  %v11972_v50 = vld [vmem:[#allocation2 + $0xba8] sm:$0xf]  ;;  %v16161_v52 = vld [vmem:[#allocation2 + $0xbb4] sm:$0xf0] }
 0x1f3   :  { %4761 = vmatpush.bf16.msra.mxu0 %v12593_v62  ;;  %v16362_v62 = vld [vmem:[#allocation2 + $0x1204] sm:$0xf]  ;;  %v12929_v16 = vor.u32 %v16398_v3, %v12926_v55  ;;  %v2614_v5 = vpop.f32.mrf.mxu2  ;;  %v12228_v3 = vld [vmem:[#allocation2 + $0xda8] sm:$0xf]  ;;  %v16225_v55 = vld [vmem:[#allocation2 + $0xdb4] sm:$0xf0]  ;;  %v11973_v56 = vor.u32 %v16161_v52, %v11972_v50 }
 0x1f5   :  { %4774 = vmatpush.bf16.msra.mxu1 %v12721_v63  ;;  %4787 = vmatpush.bf16.msra.mxu2 %v12849_v2  ;;  %v12782_v63 = vld [vmem:[#allocation2 + $0x1210] sm:$0xf0]  ;;  %v16394_v2 = vld [vmem:[#allocation2 + $0x1304] sm:$0xf] }
 0x1f6   :  { %4800 = vmatpush.bf16.msra.mxu3 %v12977_v8  ;;  %v16137_v8 = vld [vmem:[#allocation2 + $0xaf4] sm:$0xf0]  ;;  %v2627_v12 = vpop.f32.mrf.mxu3  ;;  %v12913_v23 = vor.u32 %v16394_v2, %v12910_v11  ;;  %v12212_v2 = vld [vmem:[#allocation2 + $0xd88] sm:$0xf] }
 0x1f7   :  { %4762 = vmatpush.bf16.msra.mxu0 %v12577_v25  ;;  %v12657_v25 = vor.u32 %v16330_v60, %v12654_v61  ;;  %v11877_v27 = vor.u32 %v16137_v8, %v11876_v7  ;;  %v11956_v60 = vld [vmem:[#allocation2 + $0xb88] sm:$0xf]  ;;  %v12229_v61 = vor.u32 %v16225_v55, %v12228_v3  ;;  %v16221_v11 = vld [vmem:[#allocation2 + $0xd94] sm:$0xf0] }
 0x1f8   :  { %v11812_v12 = vld [vmem:[#allocation2 + $0xa68] sm:$0xf]  ;;  %v12213_v17 = vor.u32 %v16221_v11, %v12212_v2  ;;  %v16113_v3 = vld [vmem:[#allocation2 + $0xa34] sm:$0xf0] }
 0x1f9   :  { %4775 = vmatpush.bf16.msra.mxu1 %v12705_v32  ;;  %4788 = vmatpush.bf16.msra.mxu2 %v12833_v18  ;;  %v12785_v32 = vor.u32 %v16362_v62, %v12782_v63  ;;  %v12260_v18 = vld [vmem:[#allocation2 + $0xde8] sm:$0xf]  ;;  %v16157_v62 = vld [vmem:[#allocation2 + $0xb94] sm:$0xf0] }
 0x1fa   :  { %4801 = vmatpush.bf16.msra.mxu3 %v12961_v28  ;;  %v12005_v28 = vor.u32 %v16169_v14, %v12004_v9  ;;  %v12261_v34 = vor.u32 %v16233_v19, %v12260_v18  ;;  %v16189_v63 = vld [vmem:[#allocation2 + $0xc94] sm:$0xf0]  ;;  %v11957_v8 = vor.u32 %v16157_v62, %v11956_v60  ;;  %v11940_v14 = vld [vmem:[#allocation2 + $0xb68] sm:$0xf]  ;;  %v11781_v62 = vor.u32 %v16113_v3, %v11780_v54 }
 0x1fb   :  { %4763 = vmatpush.bf16.msra.mxu0 %v12561_v40  ;;  %v16229_v40 = vld [vmem:[#allocation2 + $0xdd4] sm:$0xf0]  ;;  %v11908_v55 = vld [vmem:[#allocation2 + $0xb28] sm:$0xf] }
 0x1fc   :  { %v16185_v18 = vld [vmem:[#allocation2 + $0xc74] sm:$0xf0]  ;;  %v12164_v60 = vld [vmem:[#allocation2 + $0xd28] sm:$0xf] }
 0x1fd   :  { %4776 = vmatpush.bf16.msra.mxu1 %v12689_v47  ;;  %4789 = vmatpush.bf16.msra.mxu2 %v12817_v48  ;;  %v11989_v47 = vor.u32 %v16165_v35, %v11988_v33  ;;  %v12117_v48 = vor.u32 %v16197_v37, %v12116_v36  ;;  %v16117_v33 = vld [vmem:[#allocation2 + $0xa54] sm:$0xf0] }
 0x1fe   :  { %4802 = vmatpush.bf16.msra.mxu3 %v12945_v51  ;;  %v12245_v51 = vor.u32 %v16229_v40, %v12244_v39  ;;  %v16149_v37 = vld [vmem:[#allocation2 + $0xb54] sm:$0xf0]  ;;  %v12052_v39 = vld [vmem:[#allocation2 + $0xc48] sm:$0xf] }
 0x1ff   :  { %4764 = vmatpush.bf16.msra.mxu0 %v12545_v24  ;;  %v11845_v24 = vor.u32 %v16129_v0, %v11844_v49  ;;  %v16181_v40 = vld [vmem:[#allocation2 + $0xc54] sm:$0xf0]  ;;  %v11797_v0 = vor.u32 %v16117_v33, %v11796_v31  ;;  %v12772_v31 = vld [vmem:[#allocation2 + $0x11e8] sm:$0xf] }
 0x200   :  { %v16213_v49 = vld [vmem:[#allocation2 + $0xd54] sm:$0xf0]  ;;  %v12053_v53 = vor.u32 %v16181_v40, %v12052_v39  ;;  %v12372_v39 = vld [vmem:[#allocation2 + $0xec8] sm:$0xf] }
 0x201   :  { %4777 = vmatpush.bf16.msra.mxu1 %v12673_v58  ;;  %4790 = vmatpush.bf16.msra.mxu2 %v12801_v59  ;;  %v11828_v58 = vld [vmem:[#allocation2 + $0xa88] sm:$0xf]  ;;  %v16125_v59 = vld [vmem:[#allocation2 + $0xa94] sm:$0xf0] }
 0x202   :  { %4803 = vmatpush.bf16.msra.mxu3 %v12929_v16  ;;  %v12084_v16 = vld [vmem:[#allocation2 + $0xc88] sm:$0xf]  ;;  %v11829_v5 = vor.u32 %v16125_v59, %v11828_v58  ;;  %v16177_v59 = vld [vmem:[#allocation2 + $0xc34] sm:$0xf0] }
 0x203   :  { %4765 = vmatpush.bf16.msra.mxu0 %v12529_v13  ;;  %v4559_v7 = vpop.f32.mrf.mxu0  ;;  %v12085_v9 = vor.u32 %v16189_v63, %v12084_v16  ;;  %v16121_v13 = vld [vmem:[#allocation2 + $0xa74] sm:$0xf0]  ;;  %v12036_v58 = vld [vmem:[#allocation2 + $0xc28] sm:$0xf] }
 0x204   :  { %v11764_v16 = vld [vmem:[#allocation2 + $0xa08] sm:$0xf]  ;;  %v16109_v63 = vld [vmem:[#allocation2 + $0xa14] sm:$0xf0]  ;;  %v12037_v11 = vor.u32 %v16177_v59, %v12036_v58 }
 0x205   :  { %4778 = vmatpush.bf16.msra.mxu1 %v12657_v25  ;;  %4791 = vmatpush.bf16.msra.mxu2 %v12785_v32  ;;  %v4572_v15 = vpop.f32.mrf.mxu1  ;;  %v16153_v25 = vld [vmem:[#allocation2 + $0xb74] sm:$0xf0]  ;;  %v12068_v32 = vld [vmem:[#allocation2 + $0xc68] sm:$0xf] }
 0x206   :  { %4804 = vmatpush.bf16.msra.mxu3 %v12913_v23  ;;  %4766 = vmatmul.bf16.vlgmr.msra.gmra.mxu0 %v17441_v38  ;;  %v4573_v19 = vadd.f32 %v4572_v15, %v4559_v7  ;;  %v12196_v23 = vld [vmem:[#allocation2 + $0xd68] sm:$0xf]  ;;  %v12069_v30 = vor.u32 %v16185_v18, %v12068_v32  ;;  %v16141_v7 = vld [vmem:[#allocation2 + $0xb14] sm:$0xf0] }
 0x207   :  { %4810 = vmatpush.bf16.msrb.mxu0 %v11877_v27  ;;  %v16217_v27 = vld [vmem:[#allocation2 + $0xd74] sm:$0xf0]  ;;  %v12516_v18 = vld [vmem:[#allocation2 + $0xfe8] sm:$0xf] }
 0x208   :  { %4792 = vmatmul.bf16.vlgmr.msra.gmra.mxu2 %v17456_v22  ;;  %4779 = vmatmul.bf16.vlgmr.msra.gmra.mxu1 %v17445_v42  ;;  %v12197_v36 = vor.u32 %v16217_v27, %v12196_v23  ;;  %v16205_v15 = vld [vmem:[#allocation2 + $0xd14] sm:$0xf0]  ;;  %v12644_v27 = vld [vmem:[#allocation2 + $0x10e8] sm:$0xf] }
 0x209   :  { %4823 = vmatpush.bf16.msrb.mxu1 %v12005_v28  ;;  %4836 = vmatpush.bf16.msrb.mxu2 %v12133_v29  ;;  %v11813_v28 = vor.u32 %v16121_v13, %v11812_v12  ;;  %v11941_v29 = vor.u32 %v16153_v25, %v11940_v14  ;;  %v16173_v13 = vld [vmem:[#allocation2 + $0xc14] sm:$0xf0]  ;;  %v12148_v14 = vld [vmem:[#allocation2 + $0xd08] sm:$0xf] }
 0x20a   :  { %4849 = vmatpush.bf16.msrb.mxu3 %v12261_v34  ;;  %v11924_v34 = vld [vmem:[#allocation2 + $0xb48] sm:$0xf]  ;;  %v16265_v32 = vld [vmem:[#allocation2 + $0xef4] sm:$0xf0] }
 0x20b   :  { %4805 = vmatmul.bf16.vlgmr.msra.gmra.mxu3 %v17458_v26  ;;  %4811 = vmatpush.bf16.msrb.mxu0 %v11861_v45  ;;  %v4585_v35 = vpop.f32.mrf.mxu2  ;;  %v11925_v52 = vor.u32 %v16149_v37, %v11924_v34  ;;  %v12388_v25 = vld [vmem:[#allocation2 + $0xee8] sm:$0xf]  ;;  %v16297_v23 = vld [vmem:[#allocation2 + $0xff4] sm:$0xf0]  ;;  %v12149_v34 = vor.u32 %v16205_v15, %v12148_v14 }
 0x20c   :  { %v4586_v45 = vadd.f32 %v4585_v35, %v4573_v19  ;;  %v11765_v19 = vor.u32 %v16109_v63, %v11764_v16  ;;  %v16361_v33 = vld [vmem:[#allocation2 + $0x11f4] sm:$0xf0]  ;;  %v12389_v35 = vor.u32 %v16265_v32, %v12388_v25  ;;  %v12612_v59 = vld [vmem:[#allocation2 + $0x10a8] sm:$0xf] }
 0x20d   :  { %4824 = vmatpush.bf16.msrb.mxu1 %v11989_v47  ;;  %4837 = vmatpush.bf16.msrb.mxu2 %v12117_v48  ;;  %v12180_v48 = vld [vmem:[#allocation2 + $0xd48] sm:$0xf]  ;;  %v16261_v40 = vld [vmem:[#allocation2 + $0xed4] sm:$0xf0] }
 0x20e   :  { %4850 = vmatpush.bf16.msrb.mxu3 %v12245_v51  ;;  %v4598_v47 = vpop.f32.mrf.mxu3  ;;  %v4561_v51 = vpop.f32.mrf.mxu0  ;;  %v16289_v58 = vld [vmem:[#allocation2 + $0xfb4] sm:$0xf0]  ;;  %v12724_v14 = vld [vmem:[#allocation2 + $0x1188] sm:$0xf] }
 0x20f   :  { %4812 = vmatpush.bf16.msrb.mxu0 %v11845_v24  ;;  %v17544_v50 = vadd.f32 %v4598_v47, %v4586_v45  ;;  %v4574_v24 = vpop.f32.mrf.mxu1  ;;  %v12500_v45 = vld [vmem:[#allocation2 + $0xfc8] sm:$0xf]  ;;  %v12773_v47 = vor.u32 %v16361_v33, %v12772_v31  ;;  %v16349_v15 = vld [vmem:[#allocation2 + $0x1194] sm:$0xf0] }
 0x210   :  { %v12756_v51 = vld [vmem:[#allocation2 + $0x11c8] sm:$0xf]  ;;  %v16257_v24 = vld [vmem:[#allocation2 + $0xeb4] sm:$0xf0] }
 0x211   :  { %4825 = vmatpush.bf16.msrb.mxu1 %v11973_v56  ;;  %4838 = vmatpush.bf16.msrb.mxu2 %v12101_v1  ;;  %v12181_v56 = vor.u32 %v16213_v49, %v12180_v48  ;;  %v16145_v1 = vld [vmem:[#allocation2 + $0xb34] sm:$0xf0]  ;;  %v12628_v49 = vld [vmem:[#allocation2 + $0x10c8] sm:$0xf] }
 0x212   :  { %4851 = vmatpush.bf16.msrb.mxu3 %v12229_v61  ;;  %v16209_v61 = vld [vmem:[#allocation2 + $0xd34] sm:$0xf0]  ;;  %v11909_v2 = vor.u32 %v16145_v1, %v11908_v55  ;;  %v12356_v55 = vld [vmem:[#allocation2 + $0xea8] sm:$0xf] }
 0x213   :  { %4813 = vmatpush.bf16.msrb.mxu0 %v11829_v5  ;;  %v11892_v5 = vld [vmem:[#allocation2 + $0xb08] sm:$0xf]  ;;  %v12165_v12 = vor.u32 %v16209_v61, %v12164_v60  ;;  %v16293_v48 = vld [vmem:[#allocation2 + $0xfd4] sm:$0xf0]  ;;  %v12357_v16 = vor.u32 %v16257_v24, %v12356_v55 }
 0x214   :  { %v12501_v54 = vor.u32 %v16293_v48, %v12500_v45  ;;  %v16321_v60 = vld [vmem:[#allocation2 + $0x10b4] sm:$0xf0]  ;;  %v12740_v61 = vld [vmem:[#allocation2 + $0x11a8] sm:$0xf] }
 0x215   :  { %4826 = vmatpush.bf16.msrb.mxu1 %v11957_v8  ;;  %4839 = vmatpush.bf16.msrb.mxu2 %v12085_v9  ;;  %v12020_v8 = vld [vmem:[#allocation2 + $0xc08] sm:$0xf]  ;;  %v4587_v9 = vpop.f32.mrf.mxu2  ;;  %v16281_v31 = vld [vmem:[#allocation2 + $0xf74] sm:$0xf0] }
 0x216   :  { %4852 = vmatpush.bf16.msrb.mxu3 %v12213_v17  ;;  %v4600_v17 = vpop.f32.mrf.mxu3  ;;  %v16285_v9 = vld [vmem:[#allocation2 + $0xf94] sm:$0xf0]  ;;  %v12580_v33 = vld [vmem:[#allocation2 + $0x1068] sm:$0xf] }
 0x217   :  { %4814 = vmatpush.bf16.msrb.mxu0 %v11813_v28  ;;  %v16329_v28 = vld [vmem:[#allocation2 + $0x10f4] sm:$0xf0]  ;;  %v12692_v55 = vld [vmem:[#allocation2 + $0x1148] sm:$0xf] }
 0x218   :  { %v12645_v37 = vor.u32 %v16329_v28, %v12644_v27  ;;  %v12452_v27 = vld [vmem:[#allocation2 + $0xf68] sm:$0xf]  ;;  %v16245_v48 = vld [vmem:[#allocation2 + $0xe54] sm:$0xf0] }
 0x219   :  { %4827 = vmatpush.bf16.msrb.mxu1 %v11941_v29  ;;  %4840 = vmatpush.bf16.msrb.mxu2 %v12069_v30  ;;  %v11893_v29 = vor.u32 %v16141_v7, %v11892_v5  ;;  %v12021_v30 = vor.u32 %v16173_v13, %v12020_v8  ;;  %v16253_v5 = vld [vmem:[#allocation2 + $0xe94] sm:$0xf0]  ;;  %v12468_v7 = vld [vmem:[#allocation2 + $0xf88] sm:$0xf] }
 0x21a   :  { %4853 = vmatpush.bf16.msrb.mxu3 %v12197_v36  ;;  %v12517_v36 = vor.u32 %v16297_v23, %v12516_v18  ;;  %v16317_v13 = vld [vmem:[#allocation2 + $0x1094] sm:$0xf0]  ;;  %v12469_v32 = vor.u32 %v16285_v9, %v12468_v7 }
 0x21b   :  { %4815 = vmatpush.bf16.msrb.mxu0 %v11797_v0  ;;  %v16325_v0 = vld [vmem:[#allocation2 + $0x10d4] sm:$0xf0] }
 0x21c   :  { %v12629_v3 = vor.u32 %v16325_v0, %v12628_v49  ;;  %v16249_v23 = vld [vmem:[#allocation2 + $0xe74] sm:$0xf0]  ;;  %v12436_v49 = vld [vmem:[#allocation2 + $0xf48] sm:$0xf] }
 0x21d   :  { %4828 = vmatpush.bf16.msrb.mxu1 %v11925_v52  ;;  %4841 = vmatpush.bf16.msrb.mxu2 %v12053_v53  ;;  %v16357_v52 = vld [vmem:[#allocation2 + $0x11d4] sm:$0xf0]  ;;  %v12373_v53 = vor.u32 %v16261_v40, %v12372_v39  ;;  %v12453_v40 = vor.u32 %v16281_v31, %v12452_v27  ;;  %v12900_v31 = vld [vmem:[#allocation2 + $0x12e8] sm:$0xf] }
 0x21e   :  { %4854 = vmatpush.bf16.msrb.mxu3 %v12181_v56  ;;  %v12484_v56 = vld [vmem:[#allocation2 + $0xfa8] sm:$0xf]  ;;  %v12757_v1 = vor.u32 %v16357_v52, %v12756_v51  ;;  %v16277_v51 = vld [vmem:[#allocation2 + $0xf54] sm:$0xf0] }
 0x21f   :  { %4816 = vmatpush.bf16.msrb.mxu0 %v11781_v62  ;;  %v16353_v62 = vld [vmem:[#allocation2 + $0x11b4] sm:$0xf0]  ;;  %v12485_v63 = vor.u32 %v16289_v58, %v12484_v56  ;;  %v12564_v52 = vld [vmem:[#allocation2 + $0x1048] sm:$0xf] }
 0x220   :  { %v12741_v8 = vor.u32 %v16353_v62, %v12740_v61  ;;  %v16341_v24 = vld [vmem:[#allocation2 + $0x1154] sm:$0xf0]  ;;  %v12292_v61 = vld [vmem:[#allocation2 + $0xe28] sm:$0xf] }
 0x221   :  { %4829 = vmatpush.bf16.msrb.mxu1 %v11909_v2  ;;  %4842 = vmatpush.bf16.msrb.mxu2 %v12037_v11  ;;  %v12613_v2 = vor.u32 %v16321_v60, %v12612_v59  ;;  %v12340_v11 = vld [vmem:[#allocation2 + $0xe88] sm:$0xf]  ;;  %v12437_v59 = vor.u32 %v16277_v51, %v12436_v49  ;;  %v16241_v62 = vld [vmem:[#allocation2 + $0xe34] sm:$0xf0] }
 0x222   :  { %4855 = vmatpush.bf16.msrb.mxu3 %v12165_v12  ;;  %v12596_v12 = vld [vmem:[#allocation2 + $0x1088] sm:$0xf]  ;;  %v12341_v17 = vor.u32 %v16253_v5, %v12340_v11  ;;  %v16273_v11 = vld [vmem:[#allocation2 + $0xf34] sm:$0xf0] }
 0x223   :  { %4817 = vmatpush.bf16.msrb.mxu0 %v11765_v19  ;;  %v4611_v25 = vpop.f32.mrf.mxu0  ;;  %v12597_v18 = vor.u32 %v16317_v13, %v12596_v12  ;;  %v12324_v19 = vld [vmem:[#allocation2 + $0xe68] sm:$0xf]  ;;  %v16305_v7 = vld [vmem:[#allocation2 + $0x1034] sm:$0xf0]  ;;  %v12293_v12 = vor.u32 %v16241_v62, %v12292_v61 }
 0x224   :  { %v4612_v28 = vadd.f32 %v4611_v25, %v17544_v50  ;;  %v12325_v39 = vor.u32 %v16249_v23, %v12324_v19  ;;  %v12548_v5 = vld [vmem:[#allocation2 + $0x1028] sm:$0xf]  ;;  %v16337_v9 = vld [vmem:[#allocation2 + $0x1134] sm:$0xf0] }
 0x225   :  { %4830 = vmatpush.bf16.msrb.mxu1 %v11893_v29  ;;  %4843 = vmatpush.bf16.msrb.mxu2 %v12021_v30  ;;  %v4624_v29 = vpop.f32.mrf.mxu1  ;;  %v12725_v30 = vor.u32 %v16349_v15, %v12724_v14  ;;  %v12276_v13 = vld [vmem:[#allocation2 + $0xe08] sm:$0xf]  ;;  %v16237_v14 = vld [vmem:[#allocation2 + $0xe14] sm:$0xf0] }
 0x226   :  { %4856 = vmatpush.bf16.msrb.mxu3 %v12149_v34  ;;  %4818 = vmatmul.bf16.vlgmr.msrb.gmra.mxu0 %v17428_v20  ;;  %v16313_v34 = vld [vmem:[#allocation2 + $0x1074] sm:$0xf0]  ;;  %v12404_v25 = vld [vmem:[#allocation2 + $0xf08] sm:$0xf] }
 0x227   :  { %4862 = vmatpush.bf16.msra.mxu0 %v12389_v35  ;;  %v12708_v35 = vld [vmem:[#allocation2 + $0x1168] sm:$0xf]  ;;  %v12581_v45 = vor.u32 %v16313_v34, %v12580_v33  ;;  %v16301_v27 = vld [vmem:[#allocation2 + $0x1014] sm:$0xf0] }
 0x228   :  { %4844 = vmatmul.bf16.vlgmr.msrb.gmra.mxu2 %v17420_v4  ;;  %4831 = vmatmul.bf16.vlgmr.msrb.gmra.mxu1 %v17431_v21  ;;  %v16393_v33 = vld [vmem:[#allocation2 + $0x12f4] sm:$0xf0]  ;;  %v13028_v34 = vld [vmem:[#allocation2 + $0x13e8] sm:$0xf] }
 0x229   :  { %4875 = vmatpush.bf16.msra.mxu1 %v12517_v36  ;;  %4888 = vmatpush.bf16.msra.mxu2 %v12645_v37  ;;  %v16345_v36 = vld [vmem:[#allocation2 + $0x1174] sm:$0xf0]  ;;  %v4625_v37 = vadd.f32 %v4624_v29, %v4612_v28  ;;  %v12660_v28 = vld [vmem:[#allocation2 + $0x1108] sm:$0xf] }
 0x22a   :  { %4901 = vmatpush.bf16.msra.mxu3 %v12773_v47  ;;  %v12308_v47 = vld [vmem:[#allocation2 + $0xe48] sm:$0xf]  ;;  %v12709_v50 = vor.u32 %v16345_v36, %v12708_v35  ;;  %v16333_v29 = vld [vmem:[#allocation2 + $0x1114] sm:$0xf0]  ;;  %v12277_v35 = vor.u32 %v16237_v14, %v12276_v13 }
 0x22b   :  { %4857 = vmatmul.bf16.vlgmr.msrb.gmra.mxu3 %v17425_v6  ;;  %4863 = vmatpush.bf16.msra.mxu0 %v12373_v53  ;;  %v4637_v0 = vpop.f32.mrf.mxu2  ;;  %v16309_v53 = vld [vmem:[#allocation2 + $0x1054] sm:$0xf0]  ;;  %v12309_v56 = vor.u32 %v16245_v48, %v12308_v47  ;;  %v4613_v58 = vpop.f32.mrf.mxu0  ;;  %v16167_v47 = vld [vmem:[#allocation2 + $0xbec] sm:$0xf]  ;;  %v12006_v48 = vld [vmem:[#allocation2 + $0xbf8] sm:$0xf0]  ;;  %v12661_v49 = vor.u32 %v16333_v29, %v12660_v28 }
 0x22c   :  { %v12565_v60 = vor.u32 %v16309_v53, %v12564_v52  ;;  %v16425_v36 = vld [vmem:[#allocation2 + $0x13f4] sm:$0xf0]  ;;  %v12884_v52 = vld [vmem:[#allocation2 + $0x12c8] sm:$0xf]  ;;  %v16163_v58 = vld [vmem:[#allocation2 + $0xbcc] sm:$0xf] }
 0x22d   :  { %4876 = vmatpush.bf16.msra.mxu1 %v12501_v54  ;;  %4889 = vmatpush.bf16.msra.mxu2 %v12629_v3  ;;  %v4638_v54 = vadd.f32 %v4637_v0, %v4625_v37  ;;  %v16135_v37 = vld [vmem:[#allocation2 + $0xaec] sm:$0xf]  ;;  %v12901_v0 = vor.u32 %v16393_v33, %v12900_v31  ;;  %v16389_v53 = vld [vmem:[#allocation2 + $0x12d4] sm:$0xf0] }
 0x22e   :  { %4902 = vmatpush.bf16.msra.mxu3 %v12757_v1  ;;  %v4650_v3 = vpop.f32.mrf.mxu3  ;;  %v16155_v29 = vld [vmem:[#allocation2 + $0xb8c] sm:$0xf] }
 0x22f   :  { %4864 = vmatpush.bf16.msra.mxu0 %v12357_v16  ;;  %v17551_v1 = vadd.f32 %v4650_v3, %v4638_v54  ;;  %v12420_v16 = vld [vmem:[#allocation2 + $0xf28] sm:$0xf]  ;;  %v12009_v3 = vor.u32 %v16167_v47, %v12006_v48  ;;  %v16409_v48 = vld [vmem:[#allocation2 + $0x1374] sm:$0xf0] }
 0x230   :  { %v12421_v15 = vor.u32 %v16273_v11, %v12420_v16  ;;  %v13012_v54 = vld [vmem:[#allocation2 + $0x13c8] sm:$0xf] }
 0x231   :  { %4877 = vmatpush.bf16.msra.mxu1 %v12485_v63  ;;  %4890 = vmatpush.bf16.msra.mxu2 %v12613_v2  ;;  %v4626_v63 = vpop.f32.mrf.mxu1  ;;  %v12693_v2 = vor.u32 %v16341_v24, %v12692_v55  ;;  %v16421_v55 = vld [vmem:[#allocation2 + $0x13d4] sm:$0xf0]  ;;  %v16131_v24 = vld [vmem:[#allocation2 + $0xacc] sm:$0xf]  ;;  %v12868_v16 = vld [vmem:[#allocation2 + $0x12a8] sm:$0xf] }
 0x232   :  { %4903 = vmatpush.bf16.msra.mxu3 %v12741_v8  ;;  %v12676_v8 = vld [vmem:[#allocation2 + $0x1128] sm:$0xf]  ;;  %v13013_v61 = vor.u32 %v16421_v55, %v13012_v54  ;;  %v16385_v63 = vld [vmem:[#allocation2 + $0x12b4] sm:$0xf0] }
 0x233   :  { %4865 = vmatpush.bf16.msra.mxu0 %v12341_v17  ;;  %v12549_v17 = vor.u32 %v16305_v7, %v12548_v5  ;;  %v4639_v19 = vpop.f32.mrf.mxu2  ;;  %v12677_v23 = vor.u32 %v16337_v9, %v12676_v8  ;;  %v16417_v5 = vld [vmem:[#allocation2 + $0x13b4] sm:$0xf0]  ;;  %v16127_v7 = vld [vmem:[#allocation2 + $0xaac] sm:$0xf]  ;;  %v11846_v8 = vld [vmem:[#allocation2 + $0xab8] sm:$0xf0]  ;;  %v12869_v13 = vor.u32 %v16385_v63, %v12868_v16 }
 0x234   :  { %v16159_v9 = vld [vmem:[#allocation2 + $0xbac] sm:$0xf]  ;;  %v16413_v19 = vld [vmem:[#allocation2 + $0x1394] sm:$0xf0]  ;;  %v11926_v16 = vld [vmem:[#allocation2 + $0xb58] sm:$0xf0] }
 0x235   :  { %4878 = vmatpush.bf16.msra.mxu1 %v12469_v32  ;;  %4891 = vmatpush.bf16.msra.mxu2 %v12597_v18  ;;  %v16269_v32 = vld [vmem:[#allocation2 + $0xf14] sm:$0xf0]  ;;  %v12532_v18 = vld [vmem:[#allocation2 + $0x1008] sm:$0xf] }
 0x236   :  { %4904 = vmatpush.bf16.msra.mxu3 %v12725_v30  ;;  %v4652_v30 = vpop.f32.mrf.mxu3  ;;  %v16373_v55 = vld [vmem:[#allocation2 + $0x1254] sm:$0xf0] }
 0x237   :  { %4866 = vmatpush.bf16.msra.mxu0 %v12325_v39  ;;  %v11878_v39 = vld [vmem:[#allocation2 + $0xaf8] sm:$0xf0] }
 0x238   :  { %v11881_v51 = vor.u32 %v16135_v37, %v11878_v39  ;;  %v11958_v30 = vld [vmem:[#allocation2 + $0xb98] sm:$0xf0]  ;;  %v12836_v37 = vld [vmem:[#allocation2 + $0x1268] sm:$0xf]  ;;  %v16377_v39 = vld [vmem:[#allocation2 + $0x1274] sm:$0xf0] }
 0x239   :  { %4879 = vmatpush.bf16.msra.mxu1 %v12453_v40  ;;  %4892 = vmatpush.bf16.msra.mxu2 %v12581_v45  ;;  %v12405_v40 = vor.u32 %v16269_v32, %v12404_v25  ;;  %v12533_v45 = vor.u32 %v16301_v27, %v12532_v18  ;;  %v16381_v25 = vld [vmem:[#allocation2 + $0x1294] sm:$0xf0]  ;;  %v12980_v32 = vld [vmem:[#allocation2 + $0x1388] sm:$0xf]  ;;  %v11830_v27 = vld [vmem:[#allocation2 + $0xa98] sm:$0xf0] }
 0x23a   :  { %4905 = vmatpush.bf16.msra.mxu3 %v12709_v50  ;;  %v13029_v50 = vor.u32 %v16425_v36, %v13028_v34 }
 0x23b   :  { %4867 = vmatpush.bf16.msra.mxu0 %v12309_v56  ;;  %v11862_v56 = vld [vmem:[#allocation2 + $0xad8] sm:$0xf0] }
 0x23c   :  { %v11865_v62 = vor.u32 %v16131_v24, %v11862_v56  ;;  %v12948_v24 = vld [vmem:[#allocation2 + $0x1348] sm:$0xf] }
 0x23d   :  { %4880 = vmatpush.bf16.msra.mxu1 %v12437_v59  ;;  %4893 = vmatpush.bf16.msra.mxu2 %v12565_v60  ;;  %v11990_v59 = vld [vmem:[#allocation2 + $0xbd8] sm:$0xf0]  ;;  %v12885_v60 = vor.u32 %v16389_v53, %v12884_v52  ;;  %v12837_v52 = vor.u32 %v16377_v39, %v12836_v37  ;;  %v16139_v37 = vld [vmem:[#allocation2 + $0xb0c] sm:$0xf] }
 0x23e   :  { %4906 = vmatpush.bf16.msra.mxu3 %v12693_v2  ;;  %v12996_v2 = vld [vmem:[#allocation2 + $0x13a8] sm:$0xf]  ;;  %v11993_v11 = vor.u32 %v16163_v58, %v11990_v59  ;;  %v16405_v58 = vld [vmem:[#allocation2 + $0x1354] sm:$0xf0]  ;;  %v16115_v59 = vld [vmem:[#allocation2 + $0xa4c] sm:$0xf] }
 0x23f   :  { %4868 = vmatpush.bf16.msra.mxu0 %v12293_v12  ;;  %v11974_v12 = vld [vmem:[#allocation2 + $0xbb8] sm:$0xf0]  ;;  %v12997_v14 = vor.u32 %v16417_v5, %v12996_v2 }
 0x240   :  { %v11977_v18 = vor.u32 %v16159_v9, %v11974_v12  ;;  %v12804_v12 = vld [vmem:[#allocation2 + $0x1228] sm:$0xf]  ;;  %v11894_v39 = vld [vmem:[#allocation2 + $0xb18] sm:$0xf0] }
 0x241   :  { %4881 = vmatpush.bf16.msra.mxu1 %v12421_v15  ;;  %4894 = vmatpush.bf16.msra.mxu2 %v12549_v17  ;;  %v11849_v15 = vor.u32 %v16127_v7, %v11846_v8  ;;  %v12852_v17 = vld [vmem:[#allocation2 + $0x1288] sm:$0xf]  ;;  %v12949_v8 = vor.u32 %v16405_v58, %v12948_v24  ;;  %v12518_v24 = vld [vmem:[#allocation2 + $0xff8] sm:$0xf0] }
 0x242   :  { %4907 = vmatpush.bf16.msra.mxu3 %v12677_v23  ;;  %v16123_v23 = vld [vmem:[#allocation2 + $0xa8c] sm:$0xf]  ;;  %v12853_v33 = vor.u32 %v16381_v25, %v12852_v17  ;;  %v16401_v17 = vld [vmem:[#allocation2 + $0x1334] sm:$0xf0] }
 0x243   :  { %4869 = vmatpush.bf16.msra.mxu0 %v12277_v35  ;;  %v4663_v28 = vpop.f32.mrf.mxu0  ;;  %v12981_v35 = vor.u32 %v16413_v19, %v12980_v32  ;;  %v11833_v36 = vor.u32 %v16123_v23, %v11830_v27  ;;  %v16111_v25 = vld [vmem:[#allocation2 + $0xa2c] sm:$0xf]  ;;  %v11782_v32 = vld [vmem:[#allocation2 + $0xa38] sm:$0xf0]  ;;  %v12788_v27 = vld [vmem:[#allocation2 + $0x1208] sm:$0xf] }
 0x244   :  { %v4664_v31 = vadd.f32 %v4663_v28, %v17551_v1  ;;  %v11910_v19 = vld [vmem:[#allocation2 + $0xb38] sm:$0xf0]  ;;  %v16365_v28 = vld [vmem:[#allocation2 + $0x1214] sm:$0xf0] }
 0x245   :  { %4882 = vmatpush.bf16.msra.mxu1 %v12405_v40  ;;  %4895 = vmatpush.bf16.msra.mxu2 %v12533_v45  ;;  %v4676_v34 = vpop.f32.mrf.mxu1  ;;  %v12964_v40 = vld [vmem:[#allocation2 + $0x1368] sm:$0xf]  ;;  %v11961_v45 = vor.u32 %v16155_v29, %v11958_v30  ;;  %v11785_v30 = vor.u32 %v16111_v25, %v11782_v32  ;;  %v16223_v25 = vld [vmem:[#allocation2 + $0xdac] sm:$0xf] }
 0x246   :  { %4908 = vmatpush.bf16.msra.mxu3 %v12661_v49  ;;  %4870 = vmatmul.bf16.vlgmr.msra.gmra.mxu0 %v17443_v41  ;;  %v17558_v47 = vadd.f32 %v4676_v34, %v4664_v31  ;;  %v16119_v49 = vld [vmem:[#allocation2 + $0xa6c] sm:$0xf]  ;;  %v12965_v53 = vor.u32 %v16409_v48, %v12964_v40  ;;  %v12916_v31 = vld [vmem:[#allocation2 + $0x1308] sm:$0xf]  ;;  %v12134_v48 = vld [vmem:[#allocation2 + $0xcf8] sm:$0xf0] }
 0x247   :  { %4914 = vmatpush.bf16.msrb.mxu0 %v12901_v0  ;;  %v11814_v0 = vld [vmem:[#allocation2 + $0xa78] sm:$0xf0]  ;;  %v16107_v34 = vld [vmem:[#allocation2 + $0xa0c] sm:$0xf] }
 0x248   :  { %4896 = vmatmul.bf16.vlgmr.msra.gmra.mxu2 %v17441_v38  ;;  %4883 = vmatmul.bf16.vlgmr.msra.gmra.mxu1 %v17447_v44  ;;  %v5070_v1 = vmax.f32 %v17486_v43, %v17558_v47  ;;  %v11817_v54 = vor.u32 %v16119_v49, %v11814_v0  ;;  %v16231_v49 = vld [vmem:[#allocation2 + $0xdec] sm:$0xf] }
 0x249   :  { %4927 = vmatpush.bf16.msrb.mxu1 %v13029_v50  ;;  %4940 = vmatpush.bf16.msrb.mxu2 %v11881_v51  ;;  %v16151_v50 = vld [vmem:[#allocation2 + $0xb6c] sm:$0xf]  ;;  %v11942_v51 = vld [vmem:[#allocation2 + $0xb78] sm:$0xf0] }
 0x24a   :  { %4953 = vmatpush.bf16.msrb.mxu3 %v12009_v3  ;;  %v12820_v3 = vld [vmem:[#allocation2 + $0x1248] sm:$0xf]  ;;  %v11945_v56 = vor.u32 %v16151_v50, %v11942_v51  ;;  %v12789_v50 = vor.u32 %v16365_v28, %v12788_v27  ;;  %v12262_v51 = vld [vmem:[#allocation2 + $0xdf8] sm:$0xf0]  ;;  %v16287_v27 = vld [vmem:[#allocation2 + $0xfac] sm:$0xf] }
 0x24b   :  { %4909 = vmatmul.bf16.vlgmr.msra.gmra.mxu3 %v17445_v42  ;;  %4915 = vmatpush.bf16.msrb.mxu0 %v12885_v60  ;;  %v11798_v60 = vld [vmem:[#allocation2 + $0xa58] sm:$0xf0]  ;;  %v4665_v2 = vpop.f32.mrf.mxu0 }
 0x24c   :  { %v11801_v9 = vor.u32 %v16115_v59, %v11798_v60  ;;  %v12265_v59 = vor.u32 %v16231_v49, %v12262_v51  ;;  %v12246_v2 = vld [vmem:[#allocation2 + $0xdd8] sm:$0xf0] }
 0x24d   :  { %4928 = vmatpush.bf16.msrb.mxu1 %v13013_v61  ;;  %4941 = vmatpush.bf16.msrb.mxu2 %v11865_v62  ;;  %v4689_v61 = vpop.f32.mrf.mxu2  ;;  %v16147_v62 = vld [vmem:[#allocation2 + $0xb4c] sm:$0xf]  ;;  %v4678_v7 = vpop.f32.mrf.mxu1  ;;  %v12486_v28 = vld [vmem:[#allocation2 + $0xfb8] sm:$0xf0] }
 0x24e   :  { %4954 = vmatpush.bf16.msrb.mxu3 %v11993_v11  ;;  %v4702_v63 = vpop.f32.mrf.mxu3  ;;  %v12821_v11 = vor.u32 %v16373_v55, %v12820_v3  ;;  %v16295_v55 = vld [vmem:[#allocation2 + $0xfec] sm:$0xf]  ;;  %v12374_v7 = vld [vmem:[#allocation2 + $0xed8] sm:$0xf0] }
 0x24f   :  { %4916 = vmatpush.bf16.msrb.mxu0 %v12869_v13  ;;  %v17562_v5 = vadd.f32 %v4702_v63, %v4689_v61  ;;  %v16369_v13 = vld [vmem:[#allocation2 + $0x1234] sm:$0xf0]  ;;  %v16195_v61 = vld [vmem:[#allocation2 + $0xccc] sm:$0xf]  ;;  %v12521_v63 = vor.u32 %v16295_v55, %v12518_v24 }
 0x250   :  { %v12805_v23 = vor.u32 %v16369_v13, %v12804_v12 }
 0x251   :  { %4929 = vmatpush.bf16.msrb.mxu1 %v12997_v14  ;;  %4942 = vmatpush.bf16.msrb.mxu2 %v11849_v15  ;;  %v12932_v14 = vld [vmem:[#allocation2 + $0x1328] sm:$0xf]  ;;  %v11929_v15 = vor.u32 %v16147_v62, %v11926_v16  ;;  %v12118_v62 = vld [vmem:[#allocation2 + $0xcd8] sm:$0xf0]  ;;  %v16227_v16 = vld [vmem:[#allocation2 + $0xdcc] sm:$0xf] }
 0x252   :  { %4955 = vmatpush.bf16.msrb.mxu3 %v11977_v18  ;;  %v16143_v18 = vld [vmem:[#allocation2 + $0xb2c] sm:$0xf]  ;;  %v12933_v29 = vor.u32 %v16401_v17, %v12932_v14  ;;  %v12121_v12 = vor.u32 %v16195_v61, %v12118_v62  ;;  %v12249_v13 = vor.u32 %v16227_v16, %v12246_v2  ;;  %v12102_v17 = vld [vmem:[#allocation2 + $0xcb8] sm:$0xf0] }
 0x253   :  { %4917 = vmatpush.bf16.msrb.mxu0 %v12853_v33  ;;  %v16397_v33 = vld [vmem:[#allocation2 + $0x1314] sm:$0xf0]  ;;  %v12454_v61 = vld [vmem:[#allocation2 + $0xf78] sm:$0xf0] }
 0x255   :  { %4930 = vmatpush.bf16.msrb.mxu1 %v12981_v35  ;;  %4943 = vmatpush.bf16.msrb.mxu2 %v11833_v36  ;;  %v11913_v35 = vor.u32 %v16143_v18, %v11910_v19  ;;  %v11766_v36 = vld [vmem:[#allocation2 + $0xa18] sm:$0xf0]  ;;  %v4691_v40 = vpop.f32.mrf.mxu2  ;;  %v16255_v19 = vld [vmem:[#allocation2 + $0xeac] sm:$0xf] }
 0x256   :  { %4956 = vmatpush.bf16.msrb.mxu3 %v11961_v45  ;;  %v16199_v45 = vld [vmem:[#allocation2 + $0xcec] sm:$0xf]  ;;  %v4704_v0 = vpop.f32.mrf.mxu3  ;;  %v11769_v3 = vor.u32 %v16107_v34, %v11766_v36  ;;  %v12230_v18 = vld [vmem:[#allocation2 + $0xdb8] sm:$0xf0]  ;;  %v12489_v36 = vor.u32 %v16287_v27, %v12486_v28 }
 0x257   :  { %4918 = vmatpush.bf16.msrb.mxu0 %v12837_v52  ;;  %v16263_v52 = vld [vmem:[#allocation2 + $0xeec] sm:$0xf]  ;;  %v12137_v58 = vor.u32 %v16199_v45, %v12134_v48  ;;  %v12086_v34 = vld [vmem:[#allocation2 + $0xc98] sm:$0xf0] }
 0x258   :  { %v12342_v40 = vld [vmem:[#allocation2 + $0xe98] sm:$0xf0]  ;;  %v16283_v45 = vld [vmem:[#allocation2 + $0xf8c] sm:$0xf] }
 0x259   :  { %4931 = vmatpush.bf16.msrb.mxu1 %v12965_v53  ;;  %4944 = vmatpush.bf16.msrb.mxu2 %v11817_v54  ;;  %v12390_v53 = vld [vmem:[#allocation2 + $0xef8] sm:$0xf0]  ;;  %v12917_v54 = vor.u32 %v16397_v33, %v12916_v31  ;;  %v16187_v33 = vld [vmem:[#allocation2 + $0xc8c] sm:$0xf] }
 0x25a   :  { %4957 = vmatpush.bf16.msrb.mxu3 %v11945_v56  ;;  %v11897_v56 = vor.u32 %v16139_v37, %v11894_v39  ;;  %v12393_v60 = vor.u32 %v16263_v52, %v12390_v53  ;;  %v12214_v37 = vld [vmem:[#allocation2 + $0xd98] sm:$0xf0]  ;;  %v16251_v39 = vld [vmem:[#allocation2 + $0xe8c] sm:$0xf]  ;;  %v12089_v49 = vor.u32 %v16187_v33, %v12086_v34 }
 0x25b   :  { %4919 = vmatpush.bf16.msrb.mxu0 %v12821_v11  ;;  %v16259_v11 = vld [vmem:[#allocation2 + $0xecc] sm:$0xf]  ;;  %v12470_v48 = vld [vmem:[#allocation2 + $0xf98] sm:$0xf0]  ;;  %v12345_v51 = vor.u32 %v16251_v39, %v12342_v40 }
 0x25c   :  { %v12377_v14 = vor.u32 %v16259_v11, %v12374_v7  ;;  %v16183_v52 = vld [vmem:[#allocation2 + $0xc6c] sm:$0xf]  ;;  %v12070_v53 = vld [vmem:[#allocation2 + $0xc78] sm:$0xf0]  ;;  %v12473_v24 = vor.u32 %v16283_v45, %v12470_v48 }
 0x25d   :  { %4932 = vmatpush.bf16.msrb.mxu1 %v12949_v8  ;;  %4945 = vmatpush.bf16.msrb.mxu2 %v11801_v9  ;;  %v16291_v8 = vld [vmem:[#allocation2 + $0xfcc] sm:$0xf]  ;;  %v12502_v9 = vld [vmem:[#allocation2 + $0xfd8] sm:$0xf0]  ;;  %v12073_v16 = vor.u32 %v16183_v52, %v12070_v53 }
 0x25e   :  { %4958 = vmatpush.bf16.msrb.mxu3 %v11929_v15  ;;  %v16191_v15 = vld [vmem:[#allocation2 + $0xcac] sm:$0xf]  ;;  %v12505_v32 = vor.u32 %v16291_v8, %v12502_v9  ;;  %v12054_v7 = vld [vmem:[#allocation2 + $0xc58] sm:$0xf0] }
 0x25f   :  { %4920 = vmatpush.bf16.msrb.mxu0 %v12805_v23  ;;  %v12358_v23 = vld [vmem:[#allocation2 + $0xeb8] sm:$0xf0]  ;;  %v16179_v11 = vld [vmem:[#allocation2 + $0xc4c] sm:$0xf] }
 0x260   :  { %v12361_v31 = vor.u32 %v16255_v19, %v12358_v23  ;;  %v16211_v8 = vld [vmem:[#allocation2 + $0xd4c] sm:$0xf]  ;;  %v12422_v40 = vld [vmem:[#allocation2 + $0xf38] sm:$0xf0] }
 0x261   :  { %4933 = vmatpush.bf16.msrb.mxu1 %v12933_v29  ;;  %4946 = vmatpush.bf16.msrb.mxu2 %v11785_v30  ;;  %v12105_v29 = vor.u32 %v16191_v15, %v12102_v17  ;;  %v12233_v30 = vor.u32 %v16223_v25, %v12230_v18  ;;  %v16275_v25 = vld [vmem:[#allocation2 + $0xf4c] sm:$0xf]  ;;  %v12057_v18 = vor.u32 %v16179_v11, %v12054_v7  ;;  %v12150_v52 = vld [vmem:[#allocation2 + $0xd18] sm:$0xf0] }
 0x262   :  { %4959 = vmatpush.bf16.msrb.mxu3 %v11913_v35  ;;  %v16219_v35 = vld [vmem:[#allocation2 + $0xd8c] sm:$0xf] }
 0x263   :  { %4921 = vmatpush.bf16.msrb.mxu0 %v12789_v50  ;;  %v4715_v0 = vpop.f32.mrf.mxu0  ;;  %v12217_v50 = vor.u32 %v16219_v35, %v12214_v37  ;;  %v12166_v35 = vld [vmem:[#allocation2 + $0xd38] sm:$0xf0]  ;;  %v16271_v39 = vld [vmem:[#allocation2 + $0xf2c] sm:$0xf] }
 0x264   :  { %v12294_v37 = vld [vmem:[#allocation2 + $0xe38] sm:$0xf0]  ;;  %v16171_v48 = vld [vmem:[#allocation2 + $0xc0c] sm:$0xf] }
 0x265   :  { %4934 = vmatpush.bf16.msrb.mxu1 %v12917_v54  ;;  %4947 = vmatpush.bf16.msrb.mxu2 %v11769_v3  ;;  %v16215_v54 = vld [vmem:[#allocation2 + $0xd6c] sm:$0xf]  ;;  %v4716_v3 = vadd.f32 %v4715_v0, %v17562_v5  ;;  %v4728_v55 = vpop.f32.mrf.mxu1 }
 0x266   :  { %4960 = vmatpush.bf16.msrb.mxu3 %v11897_v56  ;;  %4922 = vmatmul.bf16.vlgmr.msrb.gmra.mxu0 %v17456_v22  ;;  %v12198_v56 = vld [vmem:[#allocation2 + $0xd78] sm:$0xf0]  ;;  %v16235_v53 = vld [vmem:[#allocation2 + $0xe0c] sm:$0xf] }
 0x267   :  { %4966 = vmatpush.bf16.msra.mxu0 %v12137_v58  ;;  %v16247_v58 = vld [vmem:[#allocation2 + $0xe6c] sm:$0xf]  ;;  %v4729_v62 = vadd.f32 %v4728_v55, %v4716_v3  ;;  %v12425_v3 = vor.u32 %v16271_v39, %v12422_v40  ;;  %v12278_v55 = vld [vmem:[#allocation2 + $0xe18] sm:$0xf0] }
 0x268   :  { %4935 = vmatmul.bf16.vlgmr.msrb.gmra.mxu1 %v17458_v26  ;;  %4948 = vmatmul.bf16.vlgmr.msrb.gmra.mxu2 %v17428_v20  ;;  %v12281_v7 = vor.u32 %v16235_v53, %v12278_v55  ;;  %v12742_v39 = vld [vmem:[#allocation2 + $0x11b8] sm:$0xf0]  ;;  %v16383_v40 = vld [vmem:[#allocation2 + $0x12ac] sm:$0xf] }
 0x269   :  { %4979 = vmatpush.bf16.msra.mxu1 %v12265_v59  ;;  %4992 = vmatpush.bf16.msra.mxu2 %v12393_v60  ;;  %v12326_v59 = vld [vmem:[#allocation2 + $0xe78] sm:$0xf0]  ;;  %v16279_v60 = vld [vmem:[#allocation2 + $0xf6c] sm:$0xf] }
 0x26a   :  { %5005 = vmatpush.bf16.msra.mxu3 %v12521_v63  ;;  %v12201_v63 = vor.u32 %v16215_v54, %v12198_v56  ;;  %v12329_v2 = vor.u32 %v16247_v58, %v12326_v59  ;;  %v12457_v5 = vor.u32 %v16279_v60, %v12454_v61  ;;  %v12406_v56 = vld [vmem:[#allocation2 + $0xf18] sm:$0xf0]  ;;  %v16327_v59 = vld [vmem:[#allocation2 + $0x10ec] sm:$0xf] }
 0x26b   :  { %4967 = vmatpush.bf16.msra.mxu0 %v12121_v12  ;;  %4961 = vmatmul.bf16.vlgmr.msrb.gmra.mxu3 %v17431_v21  ;;  %v4741_v9 = vpop.f32.mrf.mxu2  ;;  %v12182_v12 = vld [vmem:[#allocation2 + $0xd58] sm:$0xf0]  ;;  %v4717_v23 = vpop.f32.mrf.mxu0  ;;  %v16359_v61 = vld [vmem:[#allocation2 + $0x11ec] sm:$0xf] }
 0x26c   :  { %v4742_v15 = vadd.f32 %v4741_v9, %v4729_v62  ;;  %v12185_v27 = vor.u32 %v16211_v8, %v12182_v12  ;;  %v12646_v60 = vld [vmem:[#allocation2 + $0x10f8] sm:$0xf0]  ;;  %v16423_v8 = vld [vmem:[#allocation2 + $0x13ec] sm:$0xf] }
 0x26d   :  { %4980 = vmatpush.bf16.msra.mxu1 %v12249_v13  ;;  %4993 = vmatpush.bf16.msra.mxu2 %v12377_v14  ;;  %v16243_v13 = vld [vmem:[#allocation2 + $0xe4c] sm:$0xf]  ;;  %v12310_v14 = vld [vmem:[#allocation2 + $0xe58] sm:$0xf0]  ;;  %v4730_v33 = vpop.f32.mrf.mxu1  ;;  %v12649_v12 = vor.u32 %v16327_v59, %v12646_v60 }
 0x26e   :  { %5006 = vmatpush.bf16.msra.mxu3 %v12505_v32  ;;  %v4754_v17 = vpop.f32.mrf.mxu3  ;;  %v12438_v32 = vld [vmem:[#allocation2 + $0xf58] sm:$0xf0]  ;;  %v12313_v28 = vor.u32 %v16243_v13, %v12310_v14  ;;  %v16387_v23 = vld [vmem:[#allocation2 + $0x12cc] sm:$0xf] }
 0x26f   :  { %4968 = vmatpush.bf16.msra.mxu0 %v12105_v29  ;;  %v17569_v19 = vadd.f32 %v4754_v17, %v4742_v15  ;;  %v16175_v29 = vld [vmem:[#allocation2 + $0xc2c] sm:$0xf]  ;;  %v12441_v34 = vor.u32 %v16275_v25, %v12438_v32  ;;  %v13030_v9 = vld [vmem:[#allocation2 + $0x13f8] sm:$0xf0] }
 0x270   :  { %v16323_v15 = vld [vmem:[#allocation2 + $0x10cc] sm:$0xf]  ;;  %v12630_v17 = vld [vmem:[#allocation2 + $0x10d8] sm:$0xf0]  ;;  %v13033_v32 = vor.u32 %v16423_v8, %v13030_v9 }
 0x271   :  { %4981 = vmatpush.bf16.msra.mxu1 %v12233_v30  ;;  %4994 = vmatpush.bf16.msra.mxu2 %v12361_v31  ;;  %v12038_v30 = vld [vmem:[#allocation2 + $0xc38] sm:$0xf0]  ;;  %v16207_v31 = vld [vmem:[#allocation2 + $0xd2c] sm:$0xf] }
 0x272   :  { %5007 = vmatpush.bf16.msra.mxu3 %v12489_v36  ;;  %v16239_v36 = vld [vmem:[#allocation2 + $0xe2c] sm:$0xf]  ;;  %v12041_v45 = vor.u32 %v16175_v29, %v12038_v30  ;;  %v12169_v0 = vor.u32 %v16207_v31, %v12166_v35  ;;  %v13014_v29 = vld [vmem:[#allocation2 + $0x13d8] sm:$0xf0]  ;;  %v12633_v30 = vor.u32 %v16323_v15, %v12630_v17 }
 0x273   :  { %4969 = vmatpush.bf16.msra.mxu0 %v12089_v49  ;;  %v12022_v49 = vld [vmem:[#allocation2 + $0xc18] sm:$0xf0]  ;;  %v4743_v54 = vpop.f32.mrf.mxu2  ;;  %v16355_v25 = vld [vmem:[#allocation2 + $0x11cc] sm:$0xf] }
 0x274   :  { %v12025_v62 = vor.u32 %v16171_v48, %v12022_v49  ;;  %v12614_v35 = vld [vmem:[#allocation2 + $0x10b8] sm:$0xf0]  ;;  %v16415_v48 = vld [vmem:[#allocation2 + $0x13ac] sm:$0xf] }
 0x275   :  { %4982 = vmatpush.bf16.msra.mxu1 %v12217_v50  ;;  %4995 = vmatpush.bf16.msra.mxu2 %v12345_v51  ;;  %v12297_v50 = vor.u32 %v16239_v36, %v12294_v37  ;;  %v16203_v51 = vld [vmem:[#allocation2 + $0xd0c] sm:$0xf]  ;;  %v12998_v49 = vld [vmem:[#allocation2 + $0x13b8] sm:$0xf0] }
 0x276   :  { %5008 = vmatpush.bf16.msra.mxu3 %v12473_v24  ;;  %v16267_v24 = vld [vmem:[#allocation2 + $0xf0c] sm:$0xf]  ;;  %v4756_v58 = vpop.f32.mrf.mxu3  ;;  %v12153_v11 = vor.u32 %v16203_v51, %v12150_v52  ;;  %v12598_v53 = vld [vmem:[#allocation2 + $0x1098] sm:$0xf0] }
 0x277   :  { %4970 = vmatpush.bf16.msra.mxu0 %v12073_v16  ;;  %v12774_v16 = vld [vmem:[#allocation2 + $0x11f8] sm:$0xf0]  ;;  %v16351_v36 = vld [vmem:[#allocation2 + $0x11ac] sm:$0xf] }
 0x278   :  { %v12777_v13 = vor.u32 %v16359_v61, %v12774_v16  ;;  %v16315_v52 = vld [vmem:[#allocation2 + $0x108c] sm:$0xf]  ;;  %v12726_v55 = vld [vmem:[#allocation2 + $0x1198] sm:$0xf0] }
 0x279   :  { %4983 = vmatpush.bf16.msra.mxu1 %v12201_v63  ;;  %4996 = vmatpush.bf16.msra.mxu2 %v12329_v2  ;;  %v16391_v63 = vld [vmem:[#allocation2 + $0x12ec] sm:$0xf]  ;;  %v12902_v2 = vld [vmem:[#allocation2 + $0x12f8] sm:$0xf0] }
 0x27a   :  { %5009 = vmatpush.bf16.msra.mxu3 %v12457_v5  ;;  %v12409_v5 = vor.u32 %v16267_v24, %v12406_v56  ;;  %v12905_v14 = vor.u32 %v16391_v63, %v12902_v2  ;;  %v16347_v54 = vld [vmem:[#allocation2 + $0x118c] sm:$0xf]  ;;  %v12854_v56 = vld [vmem:[#allocation2 + $0x1298] sm:$0xf0] }
 0x27b   :  { %4971 = vmatpush.bf16.msra.mxu0 %v12057_v18  ;;  %v12758_v18 = vld [vmem:[#allocation2 + $0x11d8] sm:$0xf0]  ;;  %v16379_v24 = vld [vmem:[#allocation2 + $0x128c] sm:$0xf]  ;;  %v12729_v63 = vor.u32 %v16347_v54, %v12726_v55 }
 0x27c   :  { %v12761_v31 = vor.u32 %v16355_v25, %v12758_v18  ;;  %v16411_v59 = vld [vmem:[#allocation2 + $0x138c] sm:$0xf]  ;;  %v12982_v60 = vld [vmem:[#allocation2 + $0x1398] sm:$0xf0]  ;;  %v12857_v2 = vor.u32 %v16379_v24, %v12854_v56 }
 0x27d   :  { %4984 = vmatpush.bf16.msra.mxu1 %v12185_v27  ;;  %4997 = vmatpush.bf16.msra.mxu2 %v12313_v28  ;;  %v12886_v27 = vld [vmem:[#allocation2 + $0x12d8] sm:$0xf0]  ;;  %v16419_v28 = vld [vmem:[#allocation2 + $0x13cc] sm:$0xf]  ;;  %v12985_v9 = vor.u32 %v16411_v59, %v12982_v60 }
 0x27e   :  { %5010 = vmatpush.bf16.msra.mxu3 %v12441_v34  ;;  %v12889_v33 = vor.u32 %v16387_v23, %v12886_v27  ;;  %v16319_v34 = vld [vmem:[#allocation2 + $0x10ac] sm:$0xf]  ;;  %v13017_v37 = vor.u32 %v16419_v28, %v13014_v29  ;;  %v12966_v17 = vld [vmem:[#allocation2 + $0x1378] sm:$0xf0] }
 0x27f   :  { %4972 = vmatpush.bf16.msra.mxu0 %v12041_v45  ;;  %v12870_v45 = vld [vmem:[#allocation2 + $0x12b8] sm:$0xf0]  ;;  %v16343_v8 = vld [vmem:[#allocation2 + $0x116c] sm:$0xf] }
 0x280   :  { %v12873_v51 = vor.u32 %v16383_v40, %v12870_v45  ;;  %v16407_v15 = vld [vmem:[#allocation2 + $0x136c] sm:$0xf]  ;;  %v12566_v23 = vld [vmem:[#allocation2 + $0x1058] sm:$0xf0] }
 0x281   :  { %4985 = vmatpush.bf16.msra.mxu1 %v12169_v0  ;;  %4998 = vmatpush.bf16.msra.mxu2 %v12297_v50  ;;  %v12617_v0 = vor.u32 %v16319_v34, %v12614_v35  ;;  %v12745_v50 = vor.u32 %v16351_v36, %v12742_v39  ;;  %v16307_v18 = vld [vmem:[#allocation2 + $0x104c] sm:$0xf]  ;;  %v12969_v28 = vor.u32 %v16407_v15, %v12966_v17  ;;  %v12678_v54 = vld [vmem:[#allocation2 + $0x1138] sm:$0xf0]  ;;  %v13276_v15 = vld [vmem:[#allocation2 + $0x15e0] sm:$0xf] }
 0x282   :  { %5011 = vmatpush.bf16.msra.mxu3 %v12425_v3  ;;  %v13001_v3 = vor.u32 %v16415_v48, %v12998_v49  ;;  %v16339_v27 = vld [vmem:[#allocation2 + $0x114c] sm:$0xf]  ;;  %v12569_v40 = vor.u32 %v16307_v18, %v12566_v23  ;;  %v12806_v55 = vld [vmem:[#allocation2 + $0x1238] sm:$0xf0]  ;;  %v16520_v18 = vld [vmem:[#allocation2 + $0x16ec] sm:$0xf0] }
 0x283   :  { %4973 = vmatpush.bf16.msra.mxu0 %v12025_v62  ;;  %v4767_v58 = vpop.f32.mrf.mxu0  ;;  %v12601_v62 = vor.u32 %v16315_v52, %v12598_v53  ;;  %v16403_v36 = vld [vmem:[#allocation2 + $0x134c] sm:$0xf] }
 0x284   :  { %v4768_v61 = vadd.f32 %v4767_v58, %v17569_v19  ;;  %v16335_v52 = vld [vmem:[#allocation2 + $0x112c] sm:$0xf]  ;;  %v12934_v58 = vld [vmem:[#allocation2 + $0x1338] sm:$0xf0] }
 0x285   :  { %4986 = vmatpush.bf16.msra.mxu1 %v12153_v11  ;;  %4999 = vmatpush.bf16.msra.mxu2 %v12281_v7  ;;  %v4780_v16 = vpop.f32.mrf.mxu1  ;;  %v16311_v11 = vld [vmem:[#allocation2 + $0x106c] sm:$0xf]  ;;  %v12582_v7 = vld [vmem:[#allocation2 + $0x1078] sm:$0xf0] }
 0x286   :  { %5012 = vmatpush.bf16.msra.mxu3 %v12409_v5  ;;  %4974 = vmatmul.bf16.vlgmr.msra.gmra.mxu0 %v17420_v4  ;;  %v4781_v5 = vadd.f32 %v4780_v16, %v4768_v61  ;;  %v12585_v25 = vor.u32 %v16311_v11, %v12582_v7  ;;  %v16399_v56 = vld [vmem:[#allocation2 + $0x132c] sm:$0xf]  ;;  %v12534_v61 = vld [vmem:[#allocation2 + $0x1018] sm:$0xf0] }
 0x287   :  { %5018 = vmatpush.bf16.msrb.mxu0 %v12649_v12  ;;  %v12710_v12 = vld [vmem:[#allocation2 + $0x1178] sm:$0xf0]  ;;  %v16299_v60 = vld [vmem:[#allocation2 + $0x100c] sm:$0xf]  ;;  %v12937_v7 = vor.u32 %v16399_v56, %v12934_v58  ;;  %v16480_v58 = vld [vmem:[#allocation2 + $0x15ac] sm:$0xf0] }
 0x288   :  { %5000 = vmatmul.bf16.vlgmr.msra.gmra.mxu2 %v17443_v41  ;;  %4987 = vmatmul.bf16.vlgmr.msra.gmra.mxu1 %v17425_v6  ;;  %v12713_v19 = vor.u32 %v16343_v8, %v12710_v12  ;;  %v16363_v11 = vld [vmem:[#allocation2 + $0x120c] sm:$0xf]  ;;  %v12790_v8 = vld [vmem:[#allocation2 + $0x1218] sm:$0xf0] }
 0x289   :  { %5031 = vmatpush.bf16.msrb.mxu1 %v12777_v13  ;;  %5044 = vmatpush.bf16.msrb.mxu2 %v12905_v14  ;;  %v16375_v13 = vld [vmem:[#allocation2 + $0x126c] sm:$0xf]  ;;  %v12838_v14 = vld [vmem:[#allocation2 + $0x1278] sm:$0xf0] }
 0x28a   :  { %5057 = vmatpush.bf16.msrb.mxu3 %v13033_v32  ;;  %v12841_v32 = vor.u32 %v16375_v13, %v12838_v14  ;;  %v13148_v13 = vld [vmem:[#allocation2 + $0x14e0] sm:$0xf]  ;;  %v16456_v14 = vld [vmem:[#allocation2 + $0x14ec] sm:$0xf0] }
 0x28b   :  { %5013 = vmatmul.bf16.vlgmr.msra.gmra.mxu3 %v17447_v44  ;;  %5019 = vmatpush.bf16.msrb.mxu0 %v12633_v30  ;;  %v4793_v29 = vpop.f32.mrf.mxu2  ;;  %v12694_v30 = vld [vmem:[#allocation2 + $0x1158] sm:$0xf0]  ;;  %v4769_v39 = vpop.f32.mrf.mxu0 }
 0x28c   :  { %v4794_v34 = vadd.f32 %v4793_v29, %v4781_v5  ;;  %v12697_v49 = vor.u32 %v16339_v27, %v12694_v30  ;;  %v12918_v5 = vld [vmem:[#allocation2 + $0x1318] sm:$0xf0]  ;;  %v12793_v27 = vor.u32 %v16363_v11, %v12790_v8  ;;  %v16552_v29 = vld [vmem:[#allocation2 + $0x17ec] sm:$0xf0]  ;;  %v13100_v11 = vld [vmem:[#allocation2 + $0x1480] sm:$0xf] }
 0x28d   :  { %5032 = vmatpush.bf16.msrb.mxu1 %v12761_v31  ;;  %5045 = vmatpush.bf16.msrb.mxu2 %v12889_v33  ;;  %v16371_v31 = vld [vmem:[#allocation2 + $0x124c] sm:$0xf]  ;;  %v12822_v33 = vld [vmem:[#allocation2 + $0x1258] sm:$0xf0]  ;;  %v4782_v45 = vpop.f32.mrf.mxu1  ;;  %v13228_v8 = vld [vmem:[#allocation2 + $0x1580] sm:$0xf] }
 0x28e   :  { %5058 = vmatpush.bf16.msrb.mxu3 %v13017_v37  ;;  %v4806_v35 = vpop.f32.mrf.mxu3  ;;  %v12950_v37 = vld [vmem:[#allocation2 + $0x1358] sm:$0xf0]  ;;  %v13388_v45 = vld [vmem:[#allocation2 + $0x16c0] sm:$0xf] }
 0x28f   :  { %5020 = vmatpush.bf16.msrb.mxu0 %v12617_v0  ;;  %v17576_v48 = vadd.f32 %v4806_v35, %v4794_v34  ;;  %v12825_v0 = vor.u32 %v16371_v31, %v12822_v33  ;;  %v12953_v53 = vor.u32 %v16403_v36, %v12950_v37  ;;  %v13149_v31 = vor.u32 %v16456_v14, %v13148_v13  ;;  %v13132_v35 = vld [vmem:[#allocation2 + $0x14c0] sm:$0xf]  ;;  %v16452_v36 = vld [vmem:[#allocation2 + $0x14cc] sm:$0xf0] }
 0x290   :  { %v13260_v37 = vld [vmem:[#allocation2 + $0x15c0] sm:$0xf]  ;;  %v16508_v13 = vld [vmem:[#allocation2 + $0x168c] sm:$0xf0] }
 0x291   :  { %5033 = vmatpush.bf16.msrb.mxu1 %v12745_v50  ;;  %5046 = vmatpush.bf16.msrb.mxu2 %v12873_v51  ;;  %v16303_v50 = vld [vmem:[#allocation2 + $0x102c] sm:$0xf]  ;;  %v12550_v51 = vld [vmem:[#allocation2 + $0x1038] sm:$0xf0]  ;;  %v5071_v24 = vmax.f32 %v17502_v10, %v17576_v48  ;;  %v13484_v14 = vld [vmem:[#allocation2 + $0x1780] sm:$0xf] }
 0x292   :  { %5059 = vmatpush.bf16.msrb.mxu3 %v13001_v3  ;;  %v16367_v3 = vld [vmem:[#allocation2 + $0x122c] sm:$0xf]  ;;  %v12553_v59 = vor.u32 %v16303_v50, %v12550_v51  ;;  %v16548_v50 = vld [vmem:[#allocation2 + $0x17cc] sm:$0xf0]  ;;  %v13133_v51 = vor.u32 %v16452_v36, %v13132_v35  ;;  %v13468_v35 = vld [vmem:[#allocation2 + $0x1760] sm:$0xf] }
 0x293   :  { %5021 = vmatpush.bf16.msrb.mxu0 %v12601_v62  ;;  %v12681_v62 = vor.u32 %v16335_v52, %v12678_v54  ;;  %v12809_v16 = vor.u32 %v16367_v3, %v12806_v55  ;;  %v4795_v12 = vpop.f32.mrf.mxu2  ;;  %v13116_v54 = vld [vmem:[#allocation2 + $0x14a0] sm:$0xf]  ;;  %v16448_v3 = vld [vmem:[#allocation2 + $0x14ac] sm:$0xf0]  ;;  %v14198_v10 = vld [vmem:[#allocation2 + $0x1d18] sm:$0xf0] }
 0x294   :  { %v13244_v55 = vld [vmem:[#allocation2 + $0x15a0] sm:$0xf]  ;;  %v16536_v36 = vld [vmem:[#allocation2 + $0x176c] sm:$0xf0] }
 0x295   :  { %5034 = vmatpush.bf16.msrb.mxu1 %v12729_v63  ;;  %5047 = vmatpush.bf16.msrb.mxu2 %v12857_v2  ;;  %v16331_v63 = vld [vmem:[#allocation2 + $0x110c] sm:$0xf]  ;;  %v12662_v2 = vld [vmem:[#allocation2 + $0x1118] sm:$0xf0]  ;;  %v13356_v12 = vld [vmem:[#allocation2 + $0x1680] sm:$0xf] }
 0x296   :  { %5060 = vmatpush.bf16.msrb.mxu3 %v12985_v9  ;;  %v16395_v9 = vld [vmem:[#allocation2 + $0x130c] sm:$0xf]  ;;  %v4808_v17 = vpop.f32.mrf.mxu3  ;;  %v12665_v23 = vor.u32 %v16331_v63, %v12662_v2  ;;  %v13245_v63 = vor.u32 %v16480_v58, %v13244_v55  ;;  %v16532_v58 = vld [vmem:[#allocation2 + $0x174c] sm:$0xf0] }
 0x297   :  { %5022 = vmatpush.bf16.msrb.mxu0 %v12585_v25  ;;  %v12537_v25 = vor.u32 %v16299_v60, %v12534_v61  ;;  %v12921_v30 = vor.u32 %v16395_v9, %v12918_v5  ;;  %v16512_v60 = vld [vmem:[#allocation2 + $0x16ac] sm:$0xf0]  ;;  %v13500_v61 = vld [vmem:[#allocation2 + $0x17a0] sm:$0xf] }
 0x298   :  { %v16476_v5 = vld [vmem:[#allocation2 + $0x158c] sm:$0xf0] }
 0x299   :  { %5035 = vmatpush.bf16.msrb.mxu1 %v12713_v19  ;;  %5048 = vmatpush.bf16.msrb.mxu2 %v12841_v32  ;;  %v16488_v19 = vld [vmem:[#allocation2 + $0x15ec] sm:$0xf0]  ;;  %v13404_v32 = vld [vmem:[#allocation2 + $0x16e0] sm:$0xf] }
 0x29a   :  { %5061 = vmatpush.bf16.msrb.mxu3 %v12969_v28  ;;  %v13532_v28 = vld [vmem:[#allocation2 + $0x17e0] sm:$0xf]  ;;  %v13277_v33 = vor.u32 %v16488_v19, %v13276_v15  ;;  %v13405_v34 = vor.u32 %v16520_v18, %v13404_v32  ;;  %v16540_v15 = vld [vmem:[#allocation2 + $0x178c] sm:$0xf0]  ;;  %v13229_v19 = vor.u32 %v16476_v5, %v13228_v8  ;;  %v13357_v32 = vor.u32 %v16508_v13, %v13356_v12 }
 0x29b   :  { %5023 = vmatpush.bf16.msrb.mxu0 %v12569_v40  ;;  %v13533_v39 = vor.u32 %v16552_v29, %v13532_v28  ;;  %v16484_v40 = vld [vmem:[#allocation2 + $0x15cc] sm:$0xf0]  ;;  %v13084_v18 = vld [vmem:[#allocation2 + $0x1460] sm:$0xf]  ;;  %v13485_v29 = vor.u32 %v16540_v15, %v13484_v14 }
 0x29c   :  { %v13261_v52 = vor.u32 %v16484_v40, %v13260_v37  ;;  %v13308_v5 = vld [vmem:[#allocation2 + $0x1620] sm:$0xf]  ;;  %v16496_v12 = vld [vmem:[#allocation2 + $0x162c] sm:$0xf0] }
 0x29d   :  { %5036 = vmatpush.bf16.msrb.mxu1 %v12697_v49  ;;  %5049 = vmatpush.bf16.msrb.mxu2 %v12825_v0  ;;  %v16516_v49 = vld [vmem:[#allocation2 + $0x16cc] sm:$0xf0]  ;;  %v13516_v0 = vld [vmem:[#allocation2 + $0x17c0] sm:$0xf] }
 0x29e   :  { %5062 = vmatpush.bf16.msrb.mxu3 %v12953_v53  ;;  %v13389_v53 = vor.u32 %v16516_v49, %v13388_v45  ;;  %v13517_v56 = vor.u32 %v16548_v50, %v13516_v0  ;;  %v13068_v45 = vld [vmem:[#allocation2 + $0x1440] sm:$0xf]  ;;  %v16436_v49 = vld [vmem:[#allocation2 + $0x144c] sm:$0xf0] }
 0x29f   :  { %5024 = vmatpush.bf16.msrb.mxu0 %v12553_v59  ;;  %v13372_v59 = vld [vmem:[#allocation2 + $0x16a0] sm:$0xf]  ;;  %v16528_v14 = vld [vmem:[#allocation2 + $0x172c] sm:$0xf0] }
 0x2a0   :  { %v13373_v2 = vor.u32 %v16512_v60, %v13372_v59  ;;  %v13196_v0 = vld [vmem:[#allocation2 + $0x1540] sm:$0xf]  ;;  %v13069_v59 = vor.u32 %v16436_v49, %v13068_v45  ;;  %v16648_v49 = vld [vmem:[#allocation2 + $0x1aec] sm:$0xf0] }
 0x2a1   :  { %5037 = vmatpush.bf16.msrb.mxu1 %v12681_v62  ;;  %5050 = vmatpush.bf16.msrb.mxu2 %v12809_v16  ;;  %v16544_v62 = vld [vmem:[#allocation2 + $0x17ac] sm:$0xf0]  ;;  %v13117_v16 = vor.u32 %v16448_v3, %v13116_v54  ;;  %v13436_v13 = vld [vmem:[#allocation2 + $0x1720] sm:$0xf] }
 0x2a2   :  { %5063 = vmatpush.bf16.msrb.mxu3 %v12937_v7  ;;  %v16444_v7 = vld [vmem:[#allocation2 + $0x148c] sm:$0xf0]  ;;  %v13501_v9 = vor.u32 %v16544_v62, %v13500_v61  ;;  %v13916_v45 = vld [vmem:[#allocation2 + $0x1ae0] sm:$0xf] }
 0x2a3   :  { %5025 = vmatpush.bf16.msrb.mxu0 %v12537_v25  ;;  %v13101_v17 = vor.u32 %v16444_v7, %v13100_v11  ;;  %v4819_v25 = vpop.f32.mrf.mxu0  ;;  %v16500_v54 = vld [vmem:[#allocation2 + $0x164c] sm:$0xf0]  ;;  %v13180_v11 = vld [vmem:[#allocation2 + $0x1520] sm:$0xf] }
 0x2a5   :  { %5038 = vmatpush.bf16.msrb.mxu1 %v12665_v23  ;;  %5051 = vmatpush.bf16.msrb.mxu2 %v12793_v27  ;;  %v16440_v23 = vld [vmem:[#allocation2 + $0x146c] sm:$0xf0]  ;;  %v13212_v27 = vld [vmem:[#allocation2 + $0x1560] sm:$0xf]  ;;  %v4832_v28 = vpop.f32.mrf.mxu1 }
 0x2a6   :  { %5064 = vmatpush.bf16.msrb.mxu3 %v12921_v30  ;;  %5026 = vmatmul.bf16.vlgmr.msrb.gmra.mxu0 %v17441_v38  ;;  %v16472_v30 = vld [vmem:[#allocation2 + $0x156c] sm:$0xf0]  ;;  %v13085_v37 = vor.u32 %v16440_v23, %v13084_v18  ;;  %v13164_v18 = vld [vmem:[#allocation2 + $0x1500] sm:$0xf] }
 0x2a7   :  { %6995 = vmatpush.bf16.msra.mxu0 %v13149_v31  ;;  %v13340_v31 = vld [vmem:[#allocation2 + $0x1660] sm:$0xf]  ;;  %v16460_v23 = vld [vmem:[#allocation2 + $0x150c] sm:$0xf0] }
 0x2a8   :  { %5052 = vmatmul.bf16.vlgmr.msrb.gmra.mxu2 %v17456_v22  ;;  %5039 = vmatmul.bf16.vlgmr.msrb.gmra.mxu1 %v17445_v42 }
 0x2a9   :  { %7008 = vmatpush.bf16.msra.mxu1 %v13277_v33  ;;  %7021 = vmatpush.bf16.msra.mxu2 %v13405_v34  ;;  %v16504_v33 = vld [vmem:[#allocation2 + $0x166c] sm:$0xf0]  ;;  %v4833_v34 = vadd.f32 %v4832_v28, %v4819_v25 }
 0x2aa   :  { %7034 = vmatpush.bf16.msra.mxu3 %v13533_v39  ;;  %v13213_v39 = vor.u32 %v16472_v30, %v13212_v27  ;;  %v13341_v40 = vor.u32 %v16504_v33, %v13340_v31  ;;  %v16428_v25 = vld [vmem:[#allocation2 + $0x140c] sm:$0xf0]  ;;  %v13292_v27 = vld [vmem:[#allocation2 + $0x1600] sm:$0xf] }
 0x2ab   :  { %5065 = vmatmul.bf16.vlgmr.msrb.gmra.mxu3 %v17458_v26  ;;  %6996 = vmatpush.bf16.msra.mxu0 %v13133_v51  ;;  %v4845_v50 = vpop.f32.mrf.mxu2  ;;  %v13469_v51 = vor.u32 %v16536_v36, %v13468_v35  ;;  %v4821_v61 = vpop.f32.mrf.mxu0  ;;  %v16492_v30 = vld [vmem:[#allocation2 + $0x160c] sm:$0xf0]  ;;  %v13420_v31 = vld [vmem:[#allocation2 + $0x1700] sm:$0xf] }
 0x2ac   :  { %v4846_v3 = vadd.f32 %v4845_v50, %v4833_v34  ;;  %v16524_v33 = vld [vmem:[#allocation2 + $0x170c] sm:$0xf0]  ;;  %v13660_v35 = vld [vmem:[#allocation2 + $0x18e0] sm:$0xf]  ;;  %v13293_v50 = vor.u32 %v16492_v30, %v13292_v27 }
 0x2ad   :  { %7009 = vmatpush.bf16.msra.mxu1 %v13261_v52  ;;  %7022 = vmatpush.bf16.msra.mxu2 %v13389_v53  ;;  %v16468_v52 = vld [vmem:[#allocation2 + $0x154c] sm:$0xf0]  ;;  %v13324_v53 = vld [vmem:[#allocation2 + $0x1640] sm:$0xf]  ;;  %v4834_v7 = vpop.f32.mrf.mxu1 }
 0x2ae   :  { %7035 = vmatpush.bf16.msra.mxu3 %v13517_v56  ;;  %v4858_v55 = vpop.f32.mrf.mxu3  ;;  %v13452_v56 = vld [vmem:[#allocation2 + $0x1740] sm:$0xf]  ;;  %v13197_v62 = vor.u32 %v16468_v52, %v13196_v0  ;;  %v16584_v36 = vld [vmem:[#allocation2 + $0x18ec] sm:$0xf0]  ;;  %v13165_v0 = vor.u32 %v16460_v23, %v13164_v18 }
 0x2af   :  { %6997 = vmatpush.bf16.msra.mxu0 %v13117_v16  ;;  %v17584_v60 = vadd.f32 %v4858_v55, %v4846_v3  ;;  %v13325_v16 = vor.u32 %v16500_v54, %v13324_v53  ;;  %v13453_v8 = vor.u32 %v16532_v58, %v13452_v56  ;;  %v16680_v52 = vld [vmem:[#allocation2 + $0x1bec] sm:$0xf0]  ;;  %v13421_v53 = vor.u32 %v16524_v33, %v13420_v31  ;;  %v13644_v56 = vld [vmem:[#allocation2 + $0x18c0] sm:$0xf] }
 0x2b0   :  { %v13661_v54 = vor.u32 %v16584_v36, %v13660_v35  ;;  %v13917_v55 = vor.u32 %v16648_v49, %v13916_v45  ;;  %v16580_v58 = vld [vmem:[#allocation2 + $0x18cc] sm:$0xf0]  ;;  %v13740_v30 = vld [vmem:[#allocation2 + $0x1980] sm:$0xf] }
 0x2b1   :  { %7010 = vmatpush.bf16.msra.mxu1 %v13245_v63  ;;  %7023 = vmatpush.bf16.msra.mxu2 %v13373_v2  ;;  %v13052_v63 = vld [vmem:[#allocation2 + $0x1420] sm:$0xf]  ;;  %v16432_v2 = vld [vmem:[#allocation2 + $0x142c] sm:$0xf0]  ;;  %v13645_v7 = vor.u32 %v16580_v58, %v13644_v56 }
 0x2b2   :  { %7036 = vmatpush.bf16.msra.mxu3 %v13501_v9  ;;  %v16464_v9 = vld [vmem:[#allocation2 + $0x152c] sm:$0xf0]  ;;  %v13053_v15 = vor.u32 %v16432_v2, %v13052_v63  ;;  %v14028_v2 = vld [vmem:[#allocation2 + $0x1bc0] sm:$0xf] }
 0x2b3   :  { %6998 = vmatpush.bf16.msra.mxu0 %v13101_v17  ;;  %v13036_v17 = vld [vmem:[#allocation2 + $0x1400] sm:$0xf]  ;;  %v4847_v28 = vpop.f32.mrf.mxu2  ;;  %v16644_v63 = vld [vmem:[#allocation2 + $0x1acc] sm:$0xf0] }
 0x2b4   :  { %v13612_v28 = vld [vmem:[#allocation2 + $0x1880] sm:$0xf]  ;;  %v16604_v33 = vld [vmem:[#allocation2 + $0x198c] sm:$0xf0] }
 0x2b5   :  { %7011 = vmatpush.bf16.msra.mxu1 %v13229_v19  ;;  %7024 = vmatpush.bf16.msra.mxu2 %v13357_v32  ;;  %v13181_v19 = vor.u32 %v16464_v9, %v13180_v11  ;;  %v13309_v32 = vor.u32 %v16496_v12, %v13308_v5  ;;  %v16676_v11 = vld [vmem:[#allocation2 + $0x1bcc] sm:$0xf0]  ;;  %v13628_v5 = vld [vmem:[#allocation2 + $0x18a0] sm:$0xf]  ;;  %v13741_v45 = vor.u32 %v16604_v33, %v13740_v30 }
 0x2b6   :  { %7037 = vmatpush.bf16.msra.mxu3 %v13485_v29  ;;  %v13437_v29 = vor.u32 %v16528_v14, %v13436_v13  ;;  %v4860_v34 = vpop.f32.mrf.mxu3  ;;  %v16576_v12 = vld [vmem:[#allocation2 + $0x18ac] sm:$0xf0]  ;;  %v13756_v13 = vld [vmem:[#allocation2 + $0x19a0] sm:$0xf]  ;;  %v14029_v14 = vor.u32 %v16676_v11, %v14028_v2 }
 0x2b7   :  { %6999 = vmatpush.bf16.msra.mxu0 %v13085_v37  ;;  %v13788_v37 = vld [vmem:[#allocation2 + $0x19e0] sm:$0xf]  ;;  %v13629_v18 = vor.u32 %v16576_v12, %v13628_v5  ;;  %v16636_v35 = vld [vmem:[#allocation2 + $0x1a8c] sm:$0xf0] }
 0x2b8   :  { %v13868_v34 = vld [vmem:[#allocation2 + $0x1a80] sm:$0xf]  ;;  %v16632_v56 = vld [vmem:[#allocation2 + $0x1a6c] sm:$0xf0] }
 0x2b9   :  { %7012 = vmatpush.bf16.msra.mxu1 %v13213_v39  ;;  %7025 = vmatpush.bf16.msra.mxu2 %v13341_v40  ;;  %v13037_v39 = vor.u32 %v16428_v25, %v13036_v17  ;;  %v16616_v40 = vld [vmem:[#allocation2 + $0x19ec] sm:$0xf0]  ;;  %v13884_v17 = vld [vmem:[#allocation2 + $0x1aa0] sm:$0xf]  ;;  %v13869_v49 = vor.u32 %v16636_v35, %v13868_v34 }
 0x2ba   :  { %7038 = vmatpush.bf16.msra.mxu3 %v13469_v51  ;;  %v14044_v51 = vld [vmem:[#allocation2 + $0x1be0] sm:$0xf]  ;;  %v13789_v3 = vor.u32 %v16616_v40, %v13788_v37  ;;  %v16640_v25 = vld [vmem:[#allocation2 + $0x1aac] sm:$0xf0] }
 0x2bb   :  { %7000 = vmatpush.bf16.msra.mxu0 %v13069_v59  ;;  %v13772_v59 = vld [vmem:[#allocation2 + $0x19c0] sm:$0xf]  ;;  %v14045_v61 = vor.u32 %v16680_v52, %v14044_v51  ;;  %v13885_v27 = vor.u32 %v16640_v25, %v13884_v17  ;;  %v16668_v37 = vld [vmem:[#allocation2 + $0x1b8c] sm:$0xf0] }
 0x2bc   :  { %v13996_v36 = vld [vmem:[#allocation2 + $0x1b80] sm:$0xf]  ;;  %v16564_v11 = vld [vmem:[#allocation2 + $0x184c] sm:$0xf0] }
 0x2bd   :  { %7013 = vmatpush.bf16.msra.mxu1 %v13197_v62  ;;  %7026 = vmatpush.bf16.msra.mxu2 %v13325_v16  ;;  %v16612_v62 = vld [vmem:[#allocation2 + $0x19cc] sm:$0xf0]  ;;  %v13900_v16 = vld [vmem:[#allocation2 + $0x1ac0] sm:$0xf] }
 0x2be   :  { %7039 = vmatpush.bf16.msra.mxu3 %v13453_v8  ;;  %v13773_v8 = vor.u32 %v16612_v62, %v13772_v59  ;;  %v13901_v9 = vor.u32 %v16644_v63, %v13900_v16  ;;  %v13724_v51 = vld [vmem:[#allocation2 + $0x1960] sm:$0xf]  ;;  %v16664_v59 = vld [vmem:[#allocation2 + $0x1b6c] sm:$0xf0] }
 0x2bf   :  { %7001 = vmatpush.bf16.msra.mxu0 %v13053_v15  ;;  %v16608_v15 = vld [vmem:[#allocation2 + $0x19ac] sm:$0xf0]  ;;  %v13980_v58 = vld [vmem:[#allocation2 + $0x1b60] sm:$0xf] }
 0x2c0   :  { %v13757_v23 = vor.u32 %v16608_v15, %v13756_v13  ;;  %v13580_v2 = vld [vmem:[#allocation2 + $0x1840] sm:$0xf]  ;;  %v16628_v12 = vld [vmem:[#allocation2 + $0x1a4c] sm:$0xf0] }
 0x2c1   :  { %7014 = vmatpush.bf16.msra.mxu1 %v13181_v19  ;;  %7027 = vmatpush.bf16.msra.mxu2 %v13309_v32  ;;  %v14012_v19 = vld [vmem:[#allocation2 + $0x1ba0] sm:$0xf]  ;;  %v16672_v32 = vld [vmem:[#allocation2 + $0x1bac] sm:$0xf0]  ;;  %v13581_v25 = vor.u32 %v16564_v11, %v13580_v2  ;;  %v16454_v2 = vld [vmem:[#allocation2 + $0x14e4] sm:$0xf] }
 0x2c2   :  { %7040 = vmatpush.bf16.msra.mxu3 %v13437_v29  ;;  %v16572_v29 = vld [vmem:[#allocation2 + $0x188c] sm:$0xf0]  ;;  %v14013_v31 = vor.u32 %v16672_v32, %v14012_v19  ;;  %v13836_v5 = vld [vmem:[#allocation2 + $0x1a40] sm:$0xf]  ;;  %v13150_v11 = vld [vmem:[#allocation2 + $0x14f0] sm:$0xf0] }
 0x2c3   :  { %7002 = vmatpush.bf16.msra.mxu0 %v13037_v39  ;;  %v13613_v39 = vor.u32 %v16572_v29, %v13612_v28  ;;  %v4871_v40 = vpop.f32.mrf.mxu0  ;;  %v13964_v15 = vld [vmem:[#allocation2 + $0x1b40] sm:$0xf]  ;;  %v16660_v17 = vld [vmem:[#allocation2 + $0x1b4c] sm:$0xf0] }
 0x2c4   :  { %v4872_v52 = vadd.f32 %v4871_v40, %v17584_v60  ;;  %v13981_v60 = vor.u32 %v16664_v59, %v13980_v58  ;;  %v16560_v28 = vld [vmem:[#allocation2 + $0x182c] sm:$0xf0]  ;;  %v13692_v29 = vld [vmem:[#allocation2 + $0x1920] sm:$0xf] }
 0x2c5   :  { %7015 = vmatpush.bf16.msra.mxu1 %v13165_v0  ;;  %7028 = vmatpush.bf16.msra.mxu2 %v13293_v50  ;;  %v13596_v0 = vld [vmem:[#allocation2 + $0x1860] sm:$0xf]  ;;  %v16568_v50 = vld [vmem:[#allocation2 + $0x186c] sm:$0xf0] }
 0x2c6   :  { %7041 = vmatpush.bf16.msra.mxu3 %v13421_v53  ;;  %7003 = vmatmul.bf16.vlgmr.msra.gmra.mxu0 %v17428_v20  ;;  %v4884_v53 = vpop.f32.mrf.mxu1  ;;  %v13597_v62 = vor.u32 %v16568_v50, %v13596_v0  ;;  %v16592_v33 = vld [vmem:[#allocation2 + $0x192c] sm:$0xf0]  ;;  %v13820_v34 = vld [vmem:[#allocation2 + $0x1a20] sm:$0xf] }
 0x2c7   :  { %7047 = vmatpush.bf16.msrb.mxu0 %v13661_v54  ;;  %v13997_v54 = vor.u32 %v16668_v37, %v13996_v36  ;;  %v16624_v35 = vld [vmem:[#allocation2 + $0x1a2c] sm:$0xf0]  ;;  %v13948_v36 = vld [vmem:[#allocation2 + $0x1b20] sm:$0xf] }
 0x2c8   :  { %7029 = vmatmul.bf16.vlgmr.msra.gmra.mxu2 %v17420_v4  ;;  %7016 = vmatmul.bf16.vlgmr.msra.gmra.mxu1 %v17431_v21  ;;  %v16656_v37 = vld [vmem:[#allocation2 + $0x1b2c] sm:$0xf0]  ;;  %v13548_v40 = vld [vmem:[#allocation2 + $0x1800] sm:$0xf]  ;;  %v13821_v0 = vor.u32 %v16624_v35, %v13820_v34 }
 0x2c9   :  { %7060 = vmatpush.bf16.msrb.mxu1 %v13789_v3  ;;  %7073 = vmatpush.bf16.msrb.mxu2 %v13917_v55  ;;  %v16600_v3 = vld [vmem:[#allocation2 + $0x196c] sm:$0xf0]  ;;  %v13852_v55 = vld [vmem:[#allocation2 + $0x1a60] sm:$0xf] }
 0x2ca   :  { %7086 = vmatpush.bf16.msrb.mxu3 %v14045_v61  ;;  %v4885_v61 = vadd.f32 %v4884_v53, %v4872_v52  ;;  %v13725_v16 = vor.u32 %v16600_v3, %v13724_v51  ;;  %v13853_v63 = vor.u32 %v16632_v56, %v13852_v55  ;;  %v13676_v50 = vld [vmem:[#allocation2 + $0x1900] sm:$0xf]  ;;  %v16588_v51 = vld [vmem:[#allocation2 + $0x190c] sm:$0xf0] }
 0x2cb   :  { %7042 = vmatmul.bf16.vlgmr.msra.gmra.mxu3 %v17425_v6  ;;  %7048 = vmatpush.bf16.msrb.mxu0 %v13645_v7  ;;  %v13708_v7 = vld [vmem:[#allocation2 + $0x1940] sm:$0xf]  ;;  %v4873_v32 = vpop.f32.mrf.mxu0  ;;  %v16620_v3 = vld [vmem:[#allocation2 + $0x1a0c] sm:$0xf0] }
 0x2cc   :  { %v13804_v52 = vld [vmem:[#allocation2 + $0x1a00] sm:$0xf]  ;;  %v16652_v56 = vld [vmem:[#allocation2 + $0x1b0c] sm:$0xf0] }
 0x2cd   :  { %7061 = vmatpush.bf16.msrb.mxu1 %v13773_v8  ;;  %7074 = vmatpush.bf16.msrb.mxu2 %v13901_v9  ;;  %v4897_v8 = vpop.f32.mrf.mxu2  ;;  %v16596_v9 = vld [vmem:[#allocation2 + $0x194c] sm:$0xf0]  ;;  %v13932_v55 = vld [vmem:[#allocation2 + $0x1b00] sm:$0xf] }
 0x2ce   :  { %7087 = vmatpush.bf16.msrb.mxu3 %v14029_v14  ;;  %v4898_v13 = vadd.f32 %v4897_v8, %v4885_v61  ;;  %v4910_v14 = vpop.f32.mrf.mxu3  ;;  %v4886_v30 = vpop.f32.mrf.mxu1  ;;  %v14172_v59 = vld [vmem:[#allocation2 + $0x1ce0] sm:$0xf]  ;;  %v16712_v61 = vld [vmem:[#allocation2 + $0x1cec] sm:$0xf0]  ;;  %v13805_v8 = vor.u32 %v16620_v3, %v13804_v52 }
 0x2cf   :  { %7049 = vmatpush.bf16.msrb.mxu0 %v13629_v18  ;;  %v13709_v18 = vor.u32 %v16596_v9, %v13708_v7  ;;  %v13677_v7 = vor.u32 %v16588_v51, %v13676_v50  ;;  %v13278_v9 = vld [vmem:[#allocation2 + $0x15f0] sm:$0xf0]  ;;  %v14140_v34 = vld [vmem:[#allocation2 + $0x1ca0] sm:$0xf]  ;;  %v16704_v35 = vld [vmem:[#allocation2 + $0x1cac] sm:$0xf0] }
 0x2d0   :  { %v17591_v19 = vadd.f32 %v4910_v14, %v4898_v13  ;;  %v13153_v14 = vor.u32 %v16454_v2, %v13150_v11  ;;  %v14141_v50 = vor.u32 %v16704_v35, %v14140_v34  ;;  %v14252_v3 = vld [vmem:[#allocation2 + $0x1d80] sm:$0xf]  ;;  %v16434_v34 = vld [vmem:[#allocation2 + $0x1444] sm:$0xf]  ;;  %v13070_v35 = vld [vmem:[#allocation2 + $0x1450] sm:$0xf0] }
 0x2d1   :  { %7062 = vmatpush.bf16.msrb.mxu1 %v13757_v23  ;;  %7075 = vmatpush.bf16.msrb.mxu2 %v13885_v27  ;;  %v13837_v23 = vor.u32 %v16628_v12, %v13836_v5  ;;  %v13564_v27 = vld [vmem:[#allocation2 + $0x1820] sm:$0xf]  ;;  %v13933_v5 = vor.u32 %v16652_v56, %v13932_v55  ;;  %v14173_v12 = vor.u32 %v16712_v61, %v14172_v59  ;;  %v16732_v56 = vld [vmem:[#allocation2 + $0x1d8c] sm:$0xf0]  ;;  %v13102_v59 = vld [vmem:[#allocation2 + $0x1490] sm:$0xf0] }
 0x2d2   :  { %7088 = vmatpush.bf16.msrb.mxu3 %v14013_v31  ;;  %v13965_v31 = vor.u32 %v16660_v17, %v13964_v15  ;;  %v14156_v15 = vld [vmem:[#allocation2 + $0x1cc0] sm:$0xf]  ;;  %v16708_v17 = vld [vmem:[#allocation2 + $0x1ccc] sm:$0xf0] }
 0x2d3   :  { %7050 = vmatpush.bf16.msrb.mxu0 %v13613_v39  ;;  %v13565_v39 = vor.u32 %v16560_v28, %v13564_v27  ;;  %v13134_v27 = vld [vmem:[#allocation2 + $0x14d0] sm:$0xf0]  ;;  %v16482_v28 = vld [vmem:[#allocation2 + $0x15c4] sm:$0xf]  ;;  %v14157_v30 = vor.u32 %v16708_v17, %v14156_v15 }
 0x2d4   :  { %v16438_v15 = vld [vmem:[#allocation2 + $0x1464] sm:$0xf]  ;;  %v13086_v17 = vld [vmem:[#allocation2 + $0x1470] sm:$0xf0] }
 0x2d5   :  { %7063 = vmatpush.bf16.msrb.mxu1 %v13741_v45  ;;  %7076 = vmatpush.bf16.msrb.mxu2 %v13869_v49  ;;  %v16556_v45 = vld [vmem:[#allocation2 + $0x180c] sm:$0xf0]  ;;  %v13693_v49 = vor.u32 %v16592_v33, %v13692_v29  ;;  %v4899_v53 = vpop.f32.mrf.mxu2  ;;  %v13262_v29 = vld [vmem:[#allocation2 + $0x15d0] sm:$0xf0] }
 0x2d6   :  { %7089 = vmatpush.bf16.msrb.mxu3 %v13997_v54  ;;  %v13949_v54 = vor.u32 %v16656_v37, %v13948_v36  ;;  %v4912_v58 = vpop.f32.mrf.mxu3  ;;  %v14268_v36 = vld [vmem:[#allocation2 + $0x1da0] sm:$0xf]  ;;  %v13265_v37 = vor.u32 %v16482_v28, %v13262_v29  ;;  %v16692_v29 = vld [vmem:[#allocation2 + $0x1c4c] sm:$0xf0] }
 0x2d7   :  { %7051 = vmatpush.bf16.msrb.mxu0 %v13597_v62  ;;  %v14300_v62 = vld [vmem:[#allocation2 + $0x1de0] sm:$0xf]  ;;  %v16442_v58 = vld [vmem:[#allocation2 + $0x1484] sm:$0xf] }
 0x2d8   :  { %v14124_v53 = vld [vmem:[#allocation2 + $0x1c80] sm:$0xf] }
 0x2d9   :  { %7064 = vmatpush.bf16.msrb.mxu1 %v13725_v16  ;;  %7077 = vmatpush.bf16.msrb.mxu2 %v13853_v63  ;;  %v13549_v16 = vor.u32 %v16556_v45, %v13548_v40  ;;  %v16744_v63 = vld [vmem:[#allocation2 + $0x1dec] sm:$0xf0]  ;;  %v16446_v40 = vld [vmem:[#allocation2 + $0x14a4] sm:$0xf]  ;;  %v13118_v45 = vld [vmem:[#allocation2 + $0x14b0] sm:$0xf0] }
 0x2da   :  { %7090 = vmatpush.bf16.msrb.mxu3 %v13981_v60  ;;  %v16486_v60 = vld [vmem:[#allocation2 + $0x15e4] sm:$0xf]  ;;  %v14301_v13 = vor.u32 %v16744_v63, %v14300_v62  ;;  %v13121_v52 = vor.u32 %v16446_v40, %v13118_v45  ;;  %v14092_v28 = vld [vmem:[#allocation2 + $0x1c40] sm:$0xf] }
 0x2db   :  { %7052 = vmatpush.bf16.msrb.mxu0 %v13581_v25  ;;  %v14284_v25 = vld [vmem:[#allocation2 + $0x1dc0] sm:$0xf]  ;;  %v13281_v32 = vor.u32 %v16486_v60, %v13278_v9  ;;  %v16474_v62 = vld [vmem:[#allocation2 + $0x1584] sm:$0xf]  ;;  %v16696_v9 = vld [vmem:[#allocation2 + $0x1c6c] sm:$0xf0] }
 0x2dc   :  { %v14108_v60 = vld [vmem:[#allocation2 + $0x1c60] sm:$0xf] }
 0x2dd   :  { %7065 = vmatpush.bf16.msrb.mxu1 %v13709_v18  ;;  %7078 = vmatpush.bf16.msrb.mxu2 %v13837_v23  ;;  %v16740_v18 = vld [vmem:[#allocation2 + $0x1dcc] sm:$0xf0]  ;;  %v16450_v23 = vld [vmem:[#allocation2 + $0x14c4] sm:$0xf] }
 0x2de   :  { %7091 = vmatpush.bf16.msrb.mxu3 %v13965_v31  ;;  %v14285_v31 = vor.u32 %v16740_v18, %v14284_v25  ;;  %v13137_v33 = vor.u32 %v16450_v23, %v13134_v27  ;;  %v16470_v25 = vld [vmem:[#allocation2 + $0x1564] sm:$0xf]  ;;  %v14109_v18 = vor.u32 %v16696_v9, %v14108_v60  ;;  %v13089_v27 = vor.u32 %v16438_v15, %v13086_v17  ;;  %v16716_v60 = vld [vmem:[#allocation2 + $0x1d0c] sm:$0xf0]  ;;  %v13166_v15 = vld [vmem:[#allocation2 + $0x1510] sm:$0xf0] }
 0x2df   :  { %7053 = vmatpush.bf16.msrb.mxu0 %v13565_v39  ;;  %v16736_v39 = vld [vmem:[#allocation2 + $0x1dac] sm:$0xf0]  ;;  %v16426_v9 = vld [vmem:[#allocation2 + $0x1404] sm:$0xf] }
 0x2e0   :  { %v14269_v51 = vor.u32 %v16736_v39, %v14268_v36  ;;  %v13198_v39 = vld [vmem:[#allocation2 + $0x1550] sm:$0xf0] }
 0x2e1   :  { %7066 = vmatpush.bf16.msrb.mxu1 %v13693_v49  ;;  %7079 = vmatpush.bf16.msrb.mxu2 %v13821_v0  ;;  %v16478_v49 = vld [vmem:[#allocation2 + $0x15a4] sm:$0xf]  ;;  %v13246_v0 = vld [vmem:[#allocation2 + $0x15b0] sm:$0xf0] }
 0x2e2   :  { %7092 = vmatpush.bf16.msrb.mxu3 %v13949_v54  ;;  %v16700_v54 = vld [vmem:[#allocation2 + $0x1c8c] sm:$0xf0]  ;;  %v13249_v55 = vor.u32 %v16478_v49, %v13246_v0  ;;  %v14093_v49 = vor.u32 %v16692_v29, %v14092_v28  ;;  %v13534_v28 = vld [vmem:[#allocation2 + $0x17f0] sm:$0xf0]  ;;  %v16582_v29 = vld [vmem:[#allocation2 + $0x18e4] sm:$0xf] }
 0x2e3   :  { %7054 = vmatpush.bf16.msrb.mxu0 %v13549_v16  ;;  %v4923_v61 = vpop.f32.mrf.mxu0  ;;  %v13230_v16 = vld [vmem:[#allocation2 + $0x1590] sm:$0xf0]  ;;  %v14125_v2 = vor.u32 %v16700_v54, %v14124_v53  ;;  %v14076_v53 = vld [vmem:[#allocation2 + $0x1c20] sm:$0xf]  ;;  %v16688_v54 = vld [vmem:[#allocation2 + $0x1c2c] sm:$0xf0] }
 0x2e4   :  { %v4924_v63 = vadd.f32 %v4923_v61, %v17591_v19  ;;  %v16462_v61 = vld [vmem:[#allocation2 + $0x1524] sm:$0xf] }
 0x2e5   :  { %7067 = vmatpush.bf16.msrb.mxu1 %v13677_v7  ;;  %7080 = vmatpush.bf16.msrb.mxu2 %v13805_v8  ;;  %v4936_v11 = vpop.f32.mrf.mxu1  ;;  %v14253_v7 = vor.u32 %v16732_v56, %v14252_v3  ;;  %v13105_v8 = vor.u32 %v16442_v58, %v13102_v59  ;;  %v14204_v3 = vld [vmem:[#allocation2 + $0x1d20] sm:$0xf]  ;;  %v16720_v56 = vld [vmem:[#allocation2 + $0x1d2c] sm:$0xf0]  ;;  %v16430_v58 = vld [vmem:[#allocation2 + $0x1424] sm:$0xf] }
 0x2e6   :  { %7093 = vmatpush.bf16.msrb.mxu3 %v13933_v5  ;;  %7055 = vmatmul.bf16.vlgmr.msrb.gmra.mxu0 %v17443_v41  ;;  %v14236_v5 = vld [vmem:[#allocation2 + $0x1d60] sm:$0xf]  ;;  %v13054_v59 = vld [vmem:[#allocation2 + $0x1430] sm:$0xf0] }
 0x2e7   :  { %7099 = vmatpush.bf16.msra.mxu0 %v14173_v12  ;;  %v13233_v12 = vor.u32 %v16474_v62, %v13230_v16  ;;  %v13182_v62 = vld [vmem:[#allocation2 + $0x1530] sm:$0xf0]  ;;  %v14077_v16 = vor.u32 %v16688_v54, %v14076_v53  ;;  %v16578_v53 = vld [vmem:[#allocation2 + $0x18c4] sm:$0xf] }
 0x2e8   :  { %7081 = vmatmul.bf16.vlgmr.msrb.gmra.mxu2 %v17441_v38  ;;  %7068 = vmatmul.bf16.vlgmr.msrb.gmra.mxu1 %v17447_v44  ;;  %v13646_v54 = vld [vmem:[#allocation2 + $0x18d0] sm:$0xf0] }
 0x2e9   :  { %7112 = vmatpush.bf16.msra.mxu1 %v14301_v13  ;;  %7125 = vmatpush.bf16.msra.mxu2 %v13153_v14  ;;  %v17598_v13 = vadd.f32 %v4936_v11, %v4924_v63  ;;  %v16728_v14 = vld [vmem:[#allocation2 + $0x1d6c] sm:$0xf0]  ;;  %v14060_v63 = vld [vmem:[#allocation2 + $0x1c00] sm:$0xf]  ;;  %v14205_v11 = vor.u32 %v16720_v56, %v14204_v3  ;;  %v16610_v3 = vld [vmem:[#allocation2 + $0x19c4] sm:$0xf] }
 0x2ea   :  { %7138 = vmatpush.bf16.msra.mxu3 %v13281_v32  ;;  %v13214_v32 = vld [vmem:[#allocation2 + $0x1570] sm:$0xf0]  ;;  %v14237_v23 = vor.u32 %v16728_v14, %v14236_v5  ;;  %v13185_v5 = vor.u32 %v16462_v61, %v13182_v62  ;;  %v16458_v14 = vld [vmem:[#allocation2 + $0x1504] sm:$0xf] }
 0x2eb   :  { %7094 = vmatmul.bf16.vlgmr.msrb.gmra.mxu3 %v17445_v42  ;;  %7100 = vmatpush.bf16.msra.mxu0 %v14157_v30  ;;  %v5072_v19 = vmax.f32 %v17522_v57, %v17598_v13  ;;  %v14220_v30 = vld [vmem:[#allocation2 + $0x1d40] sm:$0xf]  ;;  %v4949_v36 = vpop.f32.mrf.mxu2  ;;  %v4925_v45 = vpop.f32.mrf.mxu0  ;;  %v16510_v61 = vld [vmem:[#allocation2 + $0x16a4] sm:$0xf]  ;;  %v13374_v62 = vld [vmem:[#allocation2 + $0x16b0] sm:$0xf0] }
 0x2ec   :  { %v16514_v45 = vld [vmem:[#allocation2 + $0x16c4] sm:$0xf] }
 0x2ed   :  { %7113 = vmatpush.bf16.msra.mxu1 %v14285_v31  ;;  %7126 = vmatpush.bf16.msra.mxu2 %v13137_v33  ;;  %v13217_v31 = vor.u32 %v16470_v25, %v13214_v32  ;;  %v16724_v33 = vld [vmem:[#allocation2 + $0x1d4c] sm:$0xf0]  ;;  %v16518_v25 = vld [vmem:[#allocation2 + $0x16e4] sm:$0xf]  ;;  %v13406_v32 = vld [vmem:[#allocation2 + $0x16f0] sm:$0xf0] }
 0x2ee   :  { %7139 = vmatpush.bf16.msra.mxu3 %v13265_v37  ;;  %v16466_v37 = vld [vmem:[#allocation2 + $0x1544] sm:$0xf]  ;;  %v4962_v40 = vpop.f32.mrf.mxu3 }
 0x2ef   :  { %7101 = vmatpush.bf16.msra.mxu0 %v14141_v50  ;;  %v17602_v0 = vadd.f32 %v4962_v40, %v4949_v36  ;;  %v4938_v50 = vpop.f32.mrf.mxu1  ;;  %v13169_v36 = vor.u32 %v16458_v14, %v13166_v15  ;;  %v16506_v14 = vld [vmem:[#allocation2 + $0x1684] sm:$0xf]  ;;  %v13358_v15 = vld [vmem:[#allocation2 + $0x1690] sm:$0xf0] }
 0x2f0   :  { %v16546_v50 = vld [vmem:[#allocation2 + $0x17c4] sm:$0xf] }
 0x2f1   :  { %7114 = vmatpush.bf16.msra.mxu1 %v14269_v51  ;;  %7127 = vmatpush.bf16.msra.mxu2 %v13121_v52  ;;  %v14221_v51 = vor.u32 %v16724_v33, %v14220_v30  ;;  %v13073_v52 = vor.u32 %v16434_v34, %v13070_v35  ;;  %v13662_v30 = vld [vmem:[#allocation2 + $0x18f0] sm:$0xf0]  ;;  %v16614_v34 = vld [vmem:[#allocation2 + $0x19e4] sm:$0xf] }
 0x2f2   :  { %7140 = vmatpush.bf16.msra.mxu3 %v13249_v55  ;;  %v13201_v55 = vor.u32 %v16466_v37, %v13198_v39  ;;  %v13790_v35 = vld [vmem:[#allocation2 + $0x19f0] sm:$0xf0]  ;;  %v13409_v37 = vor.u32 %v16518_v25, %v13406_v32  ;;  %v13665_v40 = vor.u32 %v16582_v29, %v13662_v30  ;;  %v13361_v29 = vor.u32 %v16506_v14, %v13358_v15  ;;  %v16494_v15 = vld [vmem:[#allocation2 + $0x1624] sm:$0xf] }
 0x2f3   :  { %7102 = vmatpush.bf16.msra.mxu0 %v14125_v2  ;;  %v16684_v2 = vld [vmem:[#allocation2 + $0x1c0c] sm:$0xf0]  ;;  %v4951_v17 = vpop.f32.mrf.mxu2  ;;  %v13486_v32 = vld [vmem:[#allocation2 + $0x1790] sm:$0xf0] }
 0x2f4   :  { %v16538_v17 = vld [vmem:[#allocation2 + $0x1784] sm:$0xf] }
 0x2f5   :  { %7115 = vmatpush.bf16.msra.mxu1 %v14253_v7  ;;  %7128 = vmatpush.bf16.msra.mxu2 %v13105_v8  ;;  %v13057_v7 = vor.u32 %v16430_v58, %v13054_v59  ;;  %v14188_v8 = vld [vmem:[#allocation2 + $0x1d00] sm:$0xf]  ;;  %v13649_v59 = vor.u32 %v16578_v53, %v13646_v54 }
 0x2f6   :  { %7141 = vmatpush.bf16.msra.mxu3 %v13233_v12  ;;  %v13038_v12 = vld [vmem:[#allocation2 + $0x1410] sm:$0xf0] }
 0x2f7   :  { %7103 = vmatpush.bf16.msra.mxu0 %v14109_v18  ;;  %v16550_v18 = vld [vmem:[#allocation2 + $0x17e4] sm:$0xf]  ;;  %v13041_v33 = vor.u32 %v16426_v9, %v13038_v12  ;;  %v13377_v9 = vor.u32 %v16510_v61, %v13374_v62  ;;  %v13454_v62 = vld [vmem:[#allocation2 + $0x1750] sm:$0xf0] }
 0x2f8   :  { %v13537_v39 = vor.u32 %v16550_v18, %v13534_v28  ;;  %v16570_v18 = vld [vmem:[#allocation2 + $0x1884] sm:$0xf]  ;;  %v13742_v28 = vld [vmem:[#allocation2 + $0x1990] sm:$0xf0] }
 0x2f9   :  { %7116 = vmatpush.bf16.msra.mxu1 %v14237_v23  ;;  %7129 = vmatpush.bf16.msra.mxu2 %v13089_v27  ;;  %v4964_v23 = vpop.f32.mrf.mxu3  ;;  %v14061_v27 = vor.u32 %v16684_v2, %v14060_v63  ;;  %v13502_v2 = vld [vmem:[#allocation2 + $0x17b0] sm:$0xf0] }
 0x2fa   :  { %7142 = vmatpush.bf16.msra.mxu3 %v13217_v31  ;;  %v14189_v31 = vor.u32 %v16716_v60, %v14188_v8  ;;  %v16606_v8 = vld [vmem:[#allocation2 + $0x19a4] sm:$0xf]  ;;  %v13758_v60 = vld [vmem:[#allocation2 + $0x19b0] sm:$0xf0] }
 0x2fb   :  { %7104 = vmatpush.bf16.msra.mxu0 %v14093_v49  ;;  %v13390_v49 = vld [vmem:[#allocation2 + $0x16d0] sm:$0xf0]  ;;  %v13761_v25 = vor.u32 %v16606_v8, %v13758_v60 }
 0x2fc   :  { %v13393_v56 = vor.u32 %v16514_v45, %v13390_v49  ;;  %v13614_v23 = vld [vmem:[#allocation2 + $0x1890] sm:$0xf0]  ;;  %v16566_v49 = vld [vmem:[#allocation2 + $0x1864] sm:$0xf] }
 0x2fd   :  { %7117 = vmatpush.bf16.msra.mxu1 %v14221_v51  ;;  %7130 = vmatpush.bf16.msra.mxu2 %v13073_v52  ;;  %v13793_v51 = vor.u32 %v16614_v34, %v13790_v35  ;;  %v13518_v52 = vld [vmem:[#allocation2 + $0x17d0] sm:$0xf0]  ;;  %v16502_v34 = vld [vmem:[#allocation2 + $0x1664] sm:$0xf] }
 0x2fe   :  { %7143 = vmatpush.bf16.msra.mxu3 %v13201_v55  ;;  %v13774_v55 = vld [vmem:[#allocation2 + $0x19d0] sm:$0xf0]  ;;  %v13521_v58 = vor.u32 %v16546_v50, %v13518_v52 }
 0x2ff   :  { %7105 = vmatpush.bf16.msra.mxu0 %v14077_v16  ;;  %v16542_v16 = vld [vmem:[#allocation2 + $0x17a4] sm:$0xf]  ;;  %v13777_v63 = vor.u32 %v16610_v3, %v13774_v55  ;;  %v13342_v35 = vld [vmem:[#allocation2 + $0x1670] sm:$0xf0] }
 0x300   :  { %v13470_v45 = vld [vmem:[#allocation2 + $0x1770] sm:$0xf0]  ;;  %v13345_v54 = vor.u32 %v16502_v34, %v13342_v35 }
 0x301   :  { %7118 = vmatpush.bf16.msra.mxu1 %v14205_v11  ;;  %7131 = vmatpush.bf16.msra.mxu2 %v13057_v7  ;;  %v16574_v11 = vld [vmem:[#allocation2 + $0x18a4] sm:$0xf]  ;;  %v13630_v7 = vld [vmem:[#allocation2 + $0x18b0] sm:$0xf0] }
 0x302   :  { %7144 = vmatpush.bf16.msra.mxu3 %v13185_v5  ;;  %v13505_v5 = vor.u32 %v16542_v16, %v13502_v2  ;;  %v13633_v12 = vor.u32 %v16574_v11, %v13630_v7  ;;  %v13598_v50 = vld [vmem:[#allocation2 + $0x1870] sm:$0xf0]  ;;  %v16562_v16 = vld [vmem:[#allocation2 + $0x1844] sm:$0xf] }
 0x303   :  { %7106 = vmatpush.bf16.msra.mxu0 %v14061_v27  ;;  %v16602_v27 = vld [vmem:[#allocation2 + $0x1984] sm:$0xf]  ;;  %v4975_v30 = vpop.f32.mrf.mxu0  ;;  %v13726_v52 = vld [vmem:[#allocation2 + $0x1970] sm:$0xf0]  ;;  %v13601_v55 = vor.u32 %v16566_v49, %v13598_v50 }
 0x304   :  { %v16594_v7 = vld [vmem:[#allocation2 + $0x1944] sm:$0xf]  ;;  %v13710_v8 = vld [vmem:[#allocation2 + $0x1950] sm:$0xf0] }
 0x305   :  { %7119 = vmatpush.bf16.msra.mxu1 %v14189_v31  ;;  %7132 = vmatpush.bf16.msra.mxu2 %v13041_v33  ;;  %v13489_v31 = vor.u32 %v16538_v17, %v13486_v32  ;;  %v13617_v33 = vor.u32 %v16570_v18, %v13614_v23  ;;  %v13310_v17 = vld [vmem:[#allocation2 + $0x1630] sm:$0xf0]  ;;  %v13713_v18 = vor.u32 %v16594_v7, %v13710_v8 }
 0x306   :  { %7145 = vmatpush.bf16.msra.mxu3 %v13169_v36  ;;  %7107 = vmatmul.bf16.vlgmr.msra.gmra.mxu0 %v17456_v22  ;;  %v16534_v36 = vld [vmem:[#allocation2 + $0x1764] sm:$0xf]  ;;  %v13438_v23 = vld [vmem:[#allocation2 + $0x1730] sm:$0xf0] }
 0x307   :  { %7151 = vmatpush.bf16.msrb.mxu0 %v13409_v37  ;;  %v4976_v37 = vadd.f32 %v4975_v30, %v17602_v0  ;;  %v13473_v3 = vor.u32 %v16534_v36, %v13470_v45  ;;  %v13694_v30 = vld [vmem:[#allocation2 + $0x1930] sm:$0xf0] }
 0x308   :  { %7120 = vmatmul.bf16.vlgmr.msra.gmra.mxu1 %v17458_v26  ;;  %7133 = vmatmul.bf16.vlgmr.msra.gmra.mxu2 %v17428_v20  ;;  %v13294_v34 = vld [vmem:[#allocation2 + $0x1610] sm:$0xf0] }
 0x309   :  { %7164 = vmatpush.bf16.msrb.mxu1 %v13537_v39  ;;  %7177 = vmatpush.bf16.msrb.mxu2 %v13665_v40  ;;  %v4988_v39 = vpop.f32.mrf.mxu1  ;;  %v13745_v40 = vor.u32 %v16602_v27, %v13742_v28  ;;  %v16558_v27 = vld [vmem:[#allocation2 + $0x1824] sm:$0xf]  ;;  %v13566_v28 = vld [vmem:[#allocation2 + $0x1830] sm:$0xf0] }
 0x30a   :  { %7190 = vmatpush.bf16.msrb.mxu3 %v13793_v51  ;;  %v16598_v51 = vld [vmem:[#allocation2 + $0x1964] sm:$0xf]  ;;  %v4989_v53 = vadd.f32 %v4988_v39, %v4976_v37  ;;  %v13569_v36 = vor.u32 %v16558_v27, %v13566_v28  ;;  %v13422_v39 = vld [vmem:[#allocation2 + $0x1710] sm:$0xf0] }
 0x30b   :  { %7152 = vmatpush.bf16.msrb.mxu0 %v13393_v56  ;;  %7146 = vmatmul.bf16.vlgmr.msra.gmra.mxu3 %v17431_v21  ;;  %v16498_v56 = vld [vmem:[#allocation2 + $0x1644] sm:$0xf]  ;;  %v5001_v61 = vpop.f32.mrf.mxu2  ;;  %v13729_v0 = vor.u32 %v16598_v51, %v13726_v52  ;;  %v13550_v50 = vld [vmem:[#allocation2 + $0x1810] sm:$0xf0] }
 0x30c   :  { %v5002_v2 = vadd.f32 %v5001_v61, %v4989_v53  ;;  %v16522_v37 = vld [vmem:[#allocation2 + $0x1704] sm:$0xf]  ;;  %v13678_v52 = vld [vmem:[#allocation2 + $0x1910] sm:$0xf0] }
 0x30d   :  { %7165 = vmatpush.bf16.msrb.mxu1 %v13521_v58  ;;  %7178 = vmatpush.bf16.msrb.mxu2 %v13649_v59  ;;  %v13326_v58 = vld [vmem:[#allocation2 + $0x1650] sm:$0xf0]  ;;  %v16530_v59 = vld [vmem:[#allocation2 + $0x1744] sm:$0xf] }
 0x30e   :  { %7191 = vmatpush.bf16.msrb.mxu3 %v13777_v63  ;;  %v13582_v63 = vld [vmem:[#allocation2 + $0x1850] sm:$0xf0]  ;;  %v5014_v11 = vpop.f32.mrf.mxu3  ;;  %v13329_v60 = vor.u32 %v16498_v56, %v13326_v58  ;;  %v16586_v51 = vld [vmem:[#allocation2 + $0x1904] sm:$0xf] }
 0x30f   :  { %7153 = vmatpush.bf16.msrb.mxu0 %v13377_v9  ;;  %v17609_v9 = vadd.f32 %v5014_v11, %v5002_v2  ;;  %v13585_v14 = vor.u32 %v16562_v16, %v13582_v63  ;;  %v14046_v58 = vld [vmem:[#allocation2 + $0x1bf0] sm:$0xf0]  ;;  %v16742_v16 = vld [vmem:[#allocation2 + $0x1de4] sm:$0xf]  ;;  %v13681_v2 = vor.u32 %v16586_v51, %v13678_v52 }
 0x310   :  { %v14174_v61 = vld [vmem:[#allocation2 + $0x1cf0] sm:$0xf0]  ;;  %v16666_v52 = vld [vmem:[#allocation2 + $0x1b84] sm:$0xf] }
 0x311   :  { %7166 = vmatpush.bf16.msrb.mxu1 %v13505_v5  ;;  %7179 = vmatpush.bf16.msrb.mxu2 %v13633_v12  ;;  %v4977_v5 = vpop.f32.mrf.mxu0  ;;  %v13457_v12 = vor.u32 %v16530_v59, %v13454_v62  ;;  %v4990_v32 = vpop.f32.mrf.mxu1  ;;  %v16710_v59 = vld [vmem:[#allocation2 + $0x1ce4] sm:$0xf]  ;;  %v14302_v63 = vld [vmem:[#allocation2 + $0x1df0] sm:$0xf0] }
 0x312   :  { %7192 = vmatpush.bf16.msrb.mxu3 %v13761_v25  ;;  %v16526_v25 = vld [vmem:[#allocation2 + $0x1724] sm:$0xf]  ;;  %v14177_v8 = vor.u32 %v16710_v59, %v14174_v61  ;;  %v13902_v5 = vld [vmem:[#allocation2 + $0x1ad0] sm:$0xf0] }
 0x313   :  { %7154 = vmatpush.bf16.msrb.mxu0 %v13361_v29  ;;  %v16590_v29 = vld [vmem:[#allocation2 + $0x1924] sm:$0xf]  ;;  %v13441_v35 = vor.u32 %v16526_v25, %v13438_v23  ;;  %v5003_v45 = vpop.f32.mrf.mxu2  ;;  %v14158_v25 = vld [vmem:[#allocation2 + $0x1cd0] sm:$0xf0] }
 0x314   :  { %v13697_v49 = vor.u32 %v16590_v29, %v13694_v30  ;;  %v16738_v32 = vld [vmem:[#allocation2 + $0x1dc4] sm:$0xf]  ;;  %v13886_v30 = vld [vmem:[#allocation2 + $0x1ab0] sm:$0xf0] }
 0x315   :  { %7167 = vmatpush.bf16.msrb.mxu1 %v13489_v31  ;;  %7180 = vmatpush.bf16.msrb.mxu2 %v13617_v33  ;;  %v13313_v31 = vor.u32 %v16494_v15, %v13310_v17  ;;  %v16490_v33 = vld [vmem:[#allocation2 + $0x1604] sm:$0xf]  ;;  %v14030_v15 = vld [vmem:[#allocation2 + $0x1bd0] sm:$0xf0] }
 0x316   :  { %7193 = vmatpush.bf16.msrb.mxu3 %v13745_v40  ;;  %v16554_v40 = vld [vmem:[#allocation2 + $0x1804] sm:$0xf]  ;;  %v5016_v53 = vpop.f32.mrf.mxu3  ;;  %v13297_v56 = vor.u32 %v16490_v33, %v13294_v34  ;;  %v14014_v34 = vld [vmem:[#allocation2 + $0x1bb0] sm:$0xf0] }
 0x317   :  { %7155 = vmatpush.bf16.msrb.mxu0 %v13345_v54  ;;  %v16646_v54 = vld [vmem:[#allocation2 + $0x1ae4] sm:$0xf]  ;;  %v13553_v62 = vor.u32 %v16554_v40, %v13550_v50  ;;  %v13870_v51 = vld [vmem:[#allocation2 + $0x1a90] sm:$0xf0] }
 0x318   :  { %v16706_v17 = vld [vmem:[#allocation2 + $0x1cc4] sm:$0xf]  ;;  %v14254_v59 = vld [vmem:[#allocation2 + $0x1d90] sm:$0xf0] }
 0x319   :  { %7168 = vmatpush.bf16.msrb.mxu1 %v13473_v3  ;;  %7181 = vmatpush.bf16.msrb.mxu2 %v13601_v55  ;;  %v13918_v3 = vld [vmem:[#allocation2 + $0x1af0] sm:$0xf0]  ;;  %v16678_v55 = vld [vmem:[#allocation2 + $0x1be4] sm:$0xf]  ;;  %v14161_v28 = vor.u32 %v16706_v17, %v14158_v25 }
 0x31a   :  { %7194 = vmatpush.bf16.msrb.mxu3 %v13729_v0  ;;  %v13425_v0 = vor.u32 %v16522_v37, %v13422_v39  ;;  %v13921_v11 = vor.u32 %v16646_v54, %v13918_v3  ;;  %v14049_v7 = vor.u32 %v16678_v55, %v14046_v58  ;;  %v16638_v29 = vld [vmem:[#allocation2 + $0x1aa4] sm:$0xf]  ;;  %v14270_v39 = vld [vmem:[#allocation2 + $0x1db0] sm:$0xf0] }
 0x31b   :  { %7156 = vmatpush.bf16.msrb.mxu0 %v13329_v60  ;;  %v16642_v60 = vld [vmem:[#allocation2 + $0x1ac4] sm:$0xf]  ;;  %v13889_v40 = vor.u32 %v16638_v29, %v13886_v30  ;;  %v13998_v54 = vld [vmem:[#allocation2 + $0x1b90] sm:$0xf0] }
 0x31c   :  { %v13905_v23 = vor.u32 %v16642_v60, %v13902_v5  ;;  %v16734_v37 = vld [vmem:[#allocation2 + $0x1da4] sm:$0xf]  ;;  %v14126_v55 = vld [vmem:[#allocation2 + $0x1c90] sm:$0xf0] }
 0x31d   :  { %7169 = vmatpush.bf16.msrb.mxu1 %v13457_v12  ;;  %7182 = vmatpush.bf16.msrb.mxu2 %v13585_v14  ;;  %v16674_v12 = vld [vmem:[#allocation2 + $0x1bc4] sm:$0xf]  ;;  %v14305_v14 = vor.u32 %v16742_v16, %v14302_v63  ;;  %v14273_v53 = vor.u32 %v16734_v37, %v14270_v39  ;;  %v14001_v16 = vor.u32 %v16666_v52, %v13998_v54  ;;  %v13982_v5 = vld [vmem:[#allocation2 + $0x1b70] sm:$0xf0] }
 0x31e   :  { %7195 = vmatpush.bf16.msrb.mxu3 %v13713_v18  ;;  %v14286_v18 = vld [vmem:[#allocation2 + $0x1dd0] sm:$0xf0]  ;;  %v14033_v27 = vor.u32 %v16674_v12, %v14030_v15  ;;  %v16634_v50 = vld [vmem:[#allocation2 + $0x1a84] sm:$0xf] }
 0x31f   :  { %7157 = vmatpush.bf16.msrb.mxu0 %v13313_v31  ;;  %v16670_v31 = vld [vmem:[#allocation2 + $0x1ba4] sm:$0xf]  ;;  %v14289_v33 = vor.u32 %v16738_v32, %v14286_v18  ;;  %v14238_v17 = vld [vmem:[#allocation2 + $0x1d70] sm:$0xf0] }
 0x320   :  { %v14017_v45 = vor.u32 %v16670_v31, %v14014_v34  ;;  %v16698_v3 = vld [vmem:[#allocation2 + $0x1c84] sm:$0xf]  ;;  %v13966_v30 = vld [vmem:[#allocation2 + $0x1b50] sm:$0xf0] }
 0x321   :  { %7170 = vmatpush.bf16.msrb.mxu1 %v13441_v35  ;;  %7183 = vmatpush.bf16.msrb.mxu2 %v13569_v36  ;;  %v16702_v35 = vld [vmem:[#allocation2 + $0x1ca4] sm:$0xf]  ;;  %v14142_v36 = vld [vmem:[#allocation2 + $0x1cb0] sm:$0xf0]  ;;  %v14129_v63 = vor.u32 %v16698_v3, %v14126_v55 }
 0x322   :  { %7196 = vmatpush.bf16.msrb.mxu3 %v13697_v49  ;;  %v14145_v49 = vor.u32 %v16702_v35, %v14142_v36  ;;  %v16730_v58 = vld [vmem:[#allocation2 + $0x1d84] sm:$0xf]  ;;  %v14222_v37 = vld [vmem:[#allocation2 + $0x1d50] sm:$0xf0] }
 0x323   :  { %7158 = vmatpush.bf16.msrb.mxu0 %v13297_v56  ;;  %v5027_v56 = vpop.f32.mrf.mxu0  ;;  %v16694_v12 = vld [vmem:[#allocation2 + $0x1c64] sm:$0xf]  ;;  %v13950_v55 = vld [vmem:[#allocation2 + $0x1b30] sm:$0xf0] }
 0x324   :  { %v5028_v61 = vadd.f32 %v5027_v56, %v17609_v9  ;;  %v16726_v15 = vld [vmem:[#allocation2 + $0x1d64] sm:$0xf] }
 0x325   :  { %7171 = vmatpush.bf16.msrb.mxu1 %v13425_v0  ;;  %7184 = vmatpush.bf16.msrb.mxu2 %v13553_v62  ;;  %v13873_v0 = vor.u32 %v16634_v50, %v13870_v51  ;;  %v5040_v62 = vpop.f32.mrf.mxu1  ;;  %v16626_v18 = vld [vmem:[#allocation2 + $0x1a44] sm:$0xf] }
 0x326   :  { %7197 = vmatpush.bf16.msrb.mxu3 %v13681_v2  ;;  %7159 = vmatmul.bf16.vlgmr.msrb.gmra.mxu0 %v17420_v4  ;;  %v16630_v2 = vld [vmem:[#allocation2 + $0x1a64] sm:$0xf]  ;;  %v5041_v60 = vadd.f32 %v5040_v62, %v5028_v61 }
 0x327   :  { %7203 = vmatpush.bf16.msra.mxu0 %v13921_v11  ;;  %v13854_v11 = vld [vmem:[#allocation2 + $0x1a70] sm:$0xf0]  ;;  %v16690_v31 = vld [vmem:[#allocation2 + $0x1c44] sm:$0xf] }
 0x328   :  { %7185 = vmatmul.bf16.vlgmr.msrb.gmra.mxu2 %v17443_v41  ;;  %7172 = vmatmul.bf16.vlgmr.msrb.gmra.mxu1 %v17425_v6  ;;  %v13857_v25 = vor.u32 %v16630_v2, %v13854_v11  ;;  %v16722_v36 = vld [vmem:[#allocation2 + $0x1d44] sm:$0xf] }
 0x329   :  { %7216 = vmatpush.bf16.msra.mxu1 %v14049_v7  ;;  %7229 = vmatpush.bf16.msra.mxu2 %v14177_v8  ;;  %v16662_v7 = vld [vmem:[#allocation2 + $0x1b64] sm:$0xf]  ;;  %v14257_v8 = vor.u32 %v16730_v58, %v14254_v59  ;;  %v14225_v3 = vor.u32 %v16722_v36, %v14222_v37  ;;  %v14078_v58 = vld [vmem:[#allocation2 + $0x1c30] sm:$0xf0] }
 0x32a   :  { %7242 = vmatpush.bf16.msra.mxu3 %v14305_v14  ;;  %v14110_v14 = vld [vmem:[#allocation2 + $0x1c70] sm:$0xf0]  ;;  %v13985_v9 = vor.u32 %v16662_v7, %v13982_v5  ;;  %v16622_v52 = vld [vmem:[#allocation2 + $0x1a24] sm:$0xf] }
 0x32b   :  { %7198 = vmatmul.bf16.vlgmr.msrb.gmra.mxu3 %v17447_v44  ;;  %7204 = vmatpush.bf16.msra.mxu0 %v13905_v23  ;;  %v14113_v32 = vor.u32 %v16694_v12, %v14110_v14  ;;  %v13838_v23 = vld [vmem:[#allocation2 + $0x1a50] sm:$0xf0]  ;;  %v5053_v29 = vpop.f32.mrf.mxu2  ;;  %v5029_v39 = vpop.f32.mrf.mxu0  ;;  %v16654_v54 = vld [vmem:[#allocation2 + $0x1b24] sm:$0xf] }
 0x32c   :  { %v5054_v34 = vadd.f32 %v5053_v29, %v5041_v60  ;;  %v16686_v56 = vld [vmem:[#allocation2 + $0x1c24] sm:$0xf]  ;;  %v13953_v2 = vor.u32 %v16654_v54, %v13950_v55  ;;  %v14062_v12 = vld [vmem:[#allocation2 + $0x1c10] sm:$0xf0]  ;;  %v16521_v29 = vld [vmem:[#allocation2 + $0x16f4] sm:$0xf0] }
 0x32d   :  { %7217 = vmatpush.bf16.msra.mxu1 %v14033_v27  ;;  %7230 = vmatpush.bf16.msra.mxu2 %v14161_v28  ;;  %v16658_v27 = vld [vmem:[#allocation2 + $0x1b44] sm:$0xf]  ;;  %v14241_v28 = vor.u32 %v16726_v15, %v14238_v17  ;;  %v14081_v11 = vor.u32 %v16686_v56, %v14078_v58  ;;  %v14190_v15 = vld [vmem:[#allocation2 + $0x1d10] sm:$0xf0]  ;;  %v16517_v54 = vld [vmem:[#allocation2 + $0x16d4] sm:$0xf0] }
 0x32e   :  { %7243 = vmatpush.bf16.msra.mxu3 %v14289_v33  ;;  %v14094_v33 = vld [vmem:[#allocation2 + $0x1c50] sm:$0xf0]  ;;  %v5066_v35 = vpop.f32.mrf.mxu3  ;;  %v13969_v50 = vor.u32 %v16658_v27, %v13966_v30  ;;  %v16718_v61 = vld [vmem:[#allocation2 + $0x1d24] sm:$0xf]  ;;  %v16489_v27 = vld [vmem:[#allocation2 + $0x15f4] sm:$0xf0] }
 0x32f   :  { %7205 = vmatpush.bf16.msra.mxu0 %v13889_v40  ;;  %v13841_v40 = vor.u32 %v16626_v18, %v13838_v23  ;;  %v14097_v51 = vor.u32 %v16690_v31, %v14094_v33  ;;  %v16650_v7 = vld [vmem:[#allocation2 + $0x1b04] sm:$0xf]  ;;  %v13540_v33 = vld [vmem:[#allocation2 + $0x17e8] sm:$0xf]  ;;  %v16549_v55 = vld [vmem:[#allocation2 + $0x17d4] sm:$0xf0] }
 0x330   :  { %v16682_v60 = vld [vmem:[#allocation2 + $0x1c04] sm:$0xf] }
 0x331   :  { %7218 = vmatpush.bf16.msra.mxu1 %v14017_v45  ;;  %7231 = vmatpush.bf16.msra.mxu2 %v14145_v49  ;;  %v5042_v45 = vpop.f32.mrf.mxu1  ;;  %v17616_v49 = vadd.f32 %v5066_v35, %v5054_v34  ;;  %v16714_v14 = vld [vmem:[#allocation2 + $0x1d04] sm:$0xf]  ;;  %v14065_v31 = vor.u32 %v16682_v60, %v14062_v12  ;;  %v16553_v34 = vld [vmem:[#allocation2 + $0x17f4] sm:$0xf0] }
 0x332   :  { %7244 = vmatpush.bf16.msra.mxu3 %v14273_v53  ;;  %v13822_v53 = vld [vmem:[#allocation2 + $0x1a30] sm:$0xf0]  ;;  %v14193_v35 = vor.u32 %v16714_v14, %v14190_v15  ;;  %v16453_v45 = vld [vmem:[#allocation2 + $0x14d4] sm:$0xf0]  ;;  %v13108_v15 = vld [vmem:[#allocation2 + $0x1488] sm:$0xf] }
 0x333   :  { %7206 = vmatpush.bf16.msra.mxu0 %v13873_v0  ;;  %v5073_v59 = vmax.f32 %v17538_v46, %v17616_v49  ;;  %v14206_v0 = vld [vmem:[#allocation2 + $0x1d30] sm:$0xf0]  ;;  %v13825_v62 = vor.u32 %v16622_v52, %v13822_v53  ;;  %v5055_v17 = vpop.f32.mrf.mxu2  ;;  %v16485_v52 = vld [vmem:[#allocation2 + $0x15d4] sm:$0xf0]  ;;  %v13396_v53 = vld [vmem:[#allocation2 + $0x16c8] sm:$0xf] }
 0x334   :  { %v14209_v5 = vor.u32 %v16718_v61, %v14206_v0  ;;  %v13397_v61 = vor.u32 %v16517_v54, %v13396_v53  ;;  %v13124_v0 = vld [vmem:[#allocation2 + $0x14a8] sm:$0xf]  ;;  %v16545_v60 = vld [vmem:[#allocation2 + $0x17b4] sm:$0xf0]  ;;  %v15470_v46 = vld [vmem:[#allocation2 + $0x2710] sm:$0xf0] }
 0x335   :  { %7219 = vmatpush.bf16.msra.mxu1 %v14001_v16  ;;  %7232 = vmatpush.bf16.msra.mxu2 %v14129_v63  ;;  %v16618_v16 = vld [vmem:[#allocation2 + $0x1a04] sm:$0xf]  ;;  %v13806_v63 = vld [vmem:[#allocation2 + $0x1a10] sm:$0xf0]  ;;  %v16445_v17 = vld [vmem:[#allocation2 + $0x1494] sm:$0xf0] }
 0x336   :  { %7245 = vmatpush.bf16.msra.mxu3 %v14257_v8  ;;  %v13934_v8 = vld [vmem:[#allocation2 + $0x1b10] sm:$0xf0]  ;;  %v5068_v18 = vpop.f32.mrf.mxu3  ;;  %v13809_v23 = vor.u32 %v16618_v16, %v13806_v63  ;;  %v13252_v16 = vld [vmem:[#allocation2 + $0x15a8] sm:$0xf]  ;;  %v16537_v53 = vld [vmem:[#allocation2 + $0x1774] sm:$0xf0] }
 0x337   :  { %7207 = vmatpush.bf16.msra.mxu0 %v13857_v25  ;;  %v13156_v25 = vld [vmem:[#allocation2 + $0x14e8] sm:$0xf]  ;;  %v13937_v30 = vor.u32 %v16650_v7, %v13934_v8  ;;  %v16513_v7 = vld [vmem:[#allocation2 + $0x16b4] sm:$0xf0] }
 0x338   :  { %v13508_v8 = vld [vmem:[#allocation2 + $0x17a8] sm:$0xf] }
 0x339   :  { %7220 = vmatpush.bf16.msra.mxu1 %v13985_v9  ;;  %7233 = vmatpush.bf16.msra.mxu2 %v14113_v32  ;;  %v16457_v9 = vld [vmem:[#allocation2 + $0x14f4] sm:$0xf0]  ;;  %v13284_v32 = vld [vmem:[#allocation2 + $0x15e8] sm:$0xf] }
 0x33a   :  { %7246 = vmatpush.bf16.msra.mxu3 %v14241_v28  ;;  %v13412_v28 = vld [vmem:[#allocation2 + $0x16e8] sm:$0xf]  ;;  %v13157_v36 = vor.u32 %v16457_v9, %v13156_v25  ;;  %v13285_v37 = vor.u32 %v16489_v27, %v13284_v32  ;;  %v13509_v9 = vor.u32 %v16545_v60, %v13508_v8  ;;  %v16477_v32 = vld [vmem:[#allocation2 + $0x1594] sm:$0xf0] }
 0x33b   :  { %7208 = vmatpush.bf16.msra.mxu0 %v13841_v40  ;;  %v13413_v39 = vor.u32 %v16521_v29, %v13412_v28  ;;  %v13140_v40 = vld [vmem:[#allocation2 + $0x14c8] sm:$0xf]  ;;  %v16541_v28 = vld [vmem:[#allocation2 + $0x1794] sm:$0xf0]  ;;  %v13109_v29 = vor.u32 %v16445_v17, %v13108_v15 }
 0x33c   :  { %v13141_v56 = vor.u32 %v16453_v45, %v13140_v40  ;;  %v13236_v25 = vld [vmem:[#allocation2 + $0x1588] sm:$0xf]  ;;  %v16473_v40 = vld [vmem:[#allocation2 + $0x1574] sm:$0xf0] }
 0x33d   :  { %7221 = vmatpush.bf16.msra.mxu1 %v13969_v50  ;;  %7234 = vmatpush.bf16.msra.mxu2 %v14097_v51  ;;  %v13268_v50 = vld [vmem:[#allocation2 + $0x15c8] sm:$0xf]  ;;  %v13541_v51 = vor.u32 %v16553_v34, %v13540_v33  ;;  %v16533_v60 = vld [vmem:[#allocation2 + $0x1754] sm:$0xf0] }
 0x33e   :  { %7247 = vmatpush.bf16.msra.mxu3 %v14225_v3  ;;  %v13524_v3 = vld [vmem:[#allocation2 + $0x17c8] sm:$0xf]  ;;  %v13269_v58 = vor.u32 %v16485_v52, %v13268_v50  ;;  %v16505_v50 = vld [vmem:[#allocation2 + $0x1674] sm:$0xf0] }
 0x33f   :  { %7209 = vmatpush.bf16.msra.mxu0 %v13825_v62  ;;  %v16449_v62 = vld [vmem:[#allocation2 + $0x14b4] sm:$0xf0]  ;;  %v13525_v63 = vor.u32 %v16549_v55, %v13524_v3  ;;  %v13364_v18 = vld [vmem:[#allocation2 + $0x1688] sm:$0xf] }
 0x340   :  { %v13492_v27 = vld [vmem:[#allocation2 + $0x1788] sm:$0xf] }
 0x341   :  { %7222 = vmatpush.bf16.msra.mxu1 %v13953_v2  ;;  %7235 = vmatpush.bf16.msra.mxu2 %v14081_v11  ;;  %v16481_v2 = vld [vmem:[#allocation2 + $0x15b4] sm:$0xf0]  ;;  %v13380_v11 = vld [vmem:[#allocation2 + $0x16a8] sm:$0xf] }
 0x342   :  { %7248 = vmatpush.bf16.msra.mxu3 %v14209_v5  ;;  %v13125_v5 = vor.u32 %v16449_v62, %v13124_v0  ;;  %v13253_v12 = vor.u32 %v16481_v2, %v13252_v16  ;;  %v13381_v14 = vor.u32 %v16513_v7, %v13380_v11  ;;  %v13092_v34 = vld [vmem:[#allocation2 + $0x1468] sm:$0xf]  ;;  %v16469_v16 = vld [vmem:[#allocation2 + $0x1554] sm:$0xf0] }
 0x343   :  { %7210 = vmatpush.bf16.msra.mxu0 %v13809_v23  ;;  %v16509_v23 = vld [vmem:[#allocation2 + $0x1694] sm:$0xf0]  ;;  %v13348_v45 = vld [vmem:[#allocation2 + $0x1668] sm:$0xf] }
 0x344   :  { %v13365_v33 = vor.u32 %v16509_v23, %v13364_v18  ;;  %v13476_v52 = vld [vmem:[#allocation2 + $0x1768] sm:$0xf]  ;;  %v13349_v55 = vor.u32 %v16505_v50, %v13348_v45  ;;  %v16501_v2 = vld [vmem:[#allocation2 + $0x1654] sm:$0xf0] }
 0x345   :  { %7223 = vmatpush.bf16.msra.mxu1 %v13937_v30  ;;  %7236 = vmatpush.bf16.msra.mxu2 %v14065_v31  ;;  %v7004_v30 = vpop.f32.mrf.mxu0  ;;  %v13237_v31 = vor.u32 %v16477_v32, %v13236_v25  ;;  %v13477_v62 = vor.u32 %v16537_v53, %v13476_v52  ;;  %v13460_v8 = vld [vmem:[#allocation2 + $0x1748] sm:$0xf]  ;;  %v16493_v52 = vld [vmem:[#allocation2 + $0x1614] sm:$0xf0] }
 0x346   :  { %7249 = vmatpush.bf16.msra.mxu3 %v14193_v35  ;;  %7211 = vmatmul.bf16.vlgmr.msra.gmra.mxu0 %v17441_v38  ;;  %v16441_v35 = vld [vmem:[#allocation2 + $0x1474] sm:$0xf0]  ;;  %v13060_v25 = vld [vmem:[#allocation2 + $0x1428] sm:$0xf]  ;;  %v13461_v23 = vor.u32 %v16533_v60, %v13460_v8 }
 0x347   :  { %7255 = vmatpush.bf16.msrb.mxu0 %v13157_v36  ;;  %v13220_v36 = vld [vmem:[#allocation2 + $0x1568] sm:$0xf]  ;;  %v13093_v54 = vor.u32 %v16441_v35, %v13092_v34  ;;  %v16429_v35 = vld [vmem:[#allocation2 + $0x1414] sm:$0xf0] }
 0x348   :  { %7237 = vmatmul.bf16.vlgmr.msra.gmra.mxu2 %v17456_v22  ;;  %7224 = vmatmul.bf16.vlgmr.msra.gmra.mxu1 %v17445_v42  ;;  %v13221_v3 = vor.u32 %v16473_v40, %v13220_v36  ;;  %v13188_v32 = vld [vmem:[#allocation2 + $0x1528] sm:$0xf]  ;;  %v16461_v40 = vld [vmem:[#allocation2 + $0x1514] sm:$0xf0] }
 0x349   :  { %7268 = vmatpush.bf16.msrb.mxu1 %v13285_v37  ;;  %7281 = vmatpush.bf16.msrb.mxu2 %v13413_v39  ;;  %v7017_v37 = vpop.f32.mrf.mxu1  ;;  %v13493_v39 = vor.u32 %v16541_v28, %v13492_v27  ;;  %v16465_v27 = vld [vmem:[#allocation2 + $0x1534] sm:$0xf0]  ;;  %v13316_v28 = vld [vmem:[#allocation2 + $0x1628] sm:$0xf] }
 0x34a   :  { %7294 = vmatpush.bf16.msrb.mxu3 %v13541_v51  ;;  %v7018_v51 = vadd.f32 %v7017_v37, %v7004_v30  ;;  %v13444_v30 = vld [vmem:[#allocation2 + $0x1728] sm:$0xf]  ;;  %v13189_v36 = vor.u32 %v16465_v27, %v13188_v32  ;;  %v16613_v32 = vld [vmem:[#allocation2 + $0x19d4] sm:$0xf0] }
 0x34b   :  { %7250 = vmatmul.bf16.vlgmr.msra.gmra.mxu3 %v17458_v26  ;;  %7256 = vmatpush.bf16.msrb.mxu0 %v13141_v56  ;;  %v13076_v56 = vld [vmem:[#allocation2 + $0x1448] sm:$0xf]  ;;  %v7030_v0 = vpop.f32.mrf.mxu2 }
 0x34c   :  { %v7031_v11 = vadd.f32 %v7030_v0, %v7018_v51  ;;  %v13044_v34 = vld [vmem:[#allocation2 + $0x1408] sm:$0xf]  ;;  %v16617_v0 = vld [vmem:[#allocation2 + $0x19f4] sm:$0xf0] }
 0x34d   :  { %7269 = vmatpush.bf16.msrb.mxu1 %v13269_v58  ;;  %7282 = vmatpush.bf16.msrb.mxu2 %v13397_v61  ;;  %v16437_v58 = vld [vmem:[#allocation2 + $0x1454] sm:$0xf0]  ;;  %v13204_v61 = vld [vmem:[#allocation2 + $0x1548] sm:$0xf] }
 0x34e   :  { %7295 = vmatpush.bf16.msrb.mxu3 %v13525_v63  ;;  %v13332_v63 = vld [vmem:[#allocation2 + $0x1648] sm:$0xf]  ;;  %v7043_v7 = vpop.f32.mrf.mxu3  ;;  %v13205_v15 = vor.u32 %v16469_v16, %v13204_v61  ;;  %v13045_v61 = vor.u32 %v16429_v35, %v13044_v34  ;;  %v16649_v16 = vld [vmem:[#allocation2 + $0x1af4] sm:$0xf0] }
 0x34f   :  { %7257 = vmatpush.bf16.msrb.mxu0 %v13125_v5  ;;  %v13077_v5 = vor.u32 %v16437_v58, %v13076_v56  ;;  %v13333_v17 = vor.u32 %v16501_v2, %v13332_v63  ;;  %v13300_v45 = vld [vmem:[#allocation2 + $0x1608] sm:$0xf]  ;;  %v16585_v56 = vld [vmem:[#allocation2 + $0x18f4] sm:$0xf0] }
 0x350   :  { %v13428_v53 = vld [vmem:[#allocation2 + $0x1708] sm:$0xf]  ;;  %v13301_v2 = vor.u32 %v16493_v52, %v13300_v45  ;;  %v16577_v34 = vld [vmem:[#allocation2 + $0x18b4] sm:$0xf0] }
 0x351   :  { %7270 = vmatpush.bf16.msrb.mxu1 %v13253_v12  ;;  %7283 = vmatpush.bf16.msrb.mxu2 %v13381_v14  ;;  %v17624_v12 = vadd.f32 %v7043_v7, %v7031_v11  ;;  %v7006_v14 = vpop.f32.mrf.mxu0  ;;  %v7019_v18 = vpop.f32.mrf.mxu1  ;;  %v13796_v58 = vld [vmem:[#allocation2 + $0x19e8] sm:$0xf]  ;;  %v16681_v7 = vld [vmem:[#allocation2 + $0x1bf4] sm:$0xf0] }
 0x352   :  { %7296 = vmatpush.bf16.msrb.mxu3 %v13509_v9  ;;  %v16433_v9 = vld [vmem:[#allocation2 + $0x1434] sm:$0xf0]  ;;  %v14052_v11 = vld [vmem:[#allocation2 + $0x1be8] sm:$0xf] }
 0x353   :  { %7258 = vmatpush.bf16.msrb.mxu0 %v13109_v29  ;;  %v16497_v29 = vld [vmem:[#allocation2 + $0x1634] sm:$0xf0]  ;;  %v7032_v50 = vpop.f32.mrf.mxu2  ;;  %v13908_v18 = vld [vmem:[#allocation2 + $0x1ac8] sm:$0xf] }
 0x354   :  { %v13317_v37 = vor.u32 %v16497_v29, %v13316_v28  ;;  %v14036_v27 = vld [vmem:[#allocation2 + $0x1bc8] sm:$0xf]  ;;  %v16677_v28 = vld [vmem:[#allocation2 + $0x1bd4] sm:$0xf0] }
 0x355   :  { %7271 = vmatpush.bf16.msrb.mxu1 %v13237_v31  ;;  %7284 = vmatpush.bf16.msrb.mxu2 %v13365_v33  ;;  %v16529_v31 = vld [vmem:[#allocation2 + $0x1734] sm:$0xf0]  ;;  %v13061_v33 = vor.u32 %v16433_v9, %v13060_v25  ;;  %v13780_v25 = vld [vmem:[#allocation2 + $0x19c8] sm:$0xf]  ;;  %v14053_v9 = vor.u32 %v16681_v7, %v14052_v11 }
 0x356   :  { %7297 = vmatpush.bf16.msrb.mxu3 %v13493_v39  ;;  %v13172_v39 = vld [vmem:[#allocation2 + $0x1508] sm:$0xf]  ;;  %v13445_v51 = vor.u32 %v16529_v31, %v13444_v30  ;;  %v13781_v30 = vor.u32 %v16613_v32, %v13780_v25  ;;  %v16673_v50 = vld [vmem:[#allocation2 + $0x1bb4] sm:$0xf0] }
 0x357   :  { %7259 = vmatpush.bf16.msrb.mxu0 %v13093_v54  ;;  %v16525_v54 = vld [vmem:[#allocation2 + $0x1714] sm:$0xf0]  ;;  %v13173_v63 = vor.u32 %v16461_v40, %v13172_v39  ;;  %v13764_v35 = vld [vmem:[#allocation2 + $0x19a8] sm:$0xf] }
 0x358   :  { %v13429_v8 = vor.u32 %v16525_v54, %v13428_v53  ;;  %v13892_v39 = vld [vmem:[#allocation2 + $0x1aa8] sm:$0xf]  ;;  %v16641_v40 = vld [vmem:[#allocation2 + $0x1ab4] sm:$0xf0] }
 0x359   :  { %7272 = vmatpush.bf16.msrb.mxu1 %v13221_v3  ;;  %7285 = vmatpush.bf16.msrb.mxu2 %v13349_v55  ;;  %v7045_v3 = vpop.f32.mrf.mxu3  ;;  %v13668_v55 = vld [vmem:[#allocation2 + $0x18e8] sm:$0xf]  ;;  %v13893_v53 = vor.u32 %v16641_v40, %v13892_v39  ;;  %v16601_v25 = vld [vmem:[#allocation2 + $0x1974] sm:$0xf0] }
 0x35a   :  { %7298 = vmatpush.bf16.msrb.mxu3 %v13477_v62  ;;  %v13924_v62 = vld [vmem:[#allocation2 + $0x1ae8] sm:$0xf]  ;;  %v13669_v60 = vor.u32 %v16585_v56, %v13668_v55  ;;  %v16573_v3 = vld [vmem:[#allocation2 + $0x1894] sm:$0xf0] }
 0x35b   :  { %7260 = vmatpush.bf16.msrb.mxu0 %v13077_v5  ;;  %v13797_v5 = vor.u32 %v16617_v0, %v13796_v58  ;;  %v13925_v14 = vor.u32 %v16649_v16, %v13924_v62  ;;  %v14020_v45 = vld [vmem:[#allocation2 + $0x1ba8] sm:$0xf]  ;;  %v16605_v58 = vld [vmem:[#allocation2 + $0x1994] sm:$0xf0] }
 0x35c   :  { %v13620_v54 = vld [vmem:[#allocation2 + $0x1888] sm:$0xf]  ;;  %v14021_v56 = vor.u32 %v16673_v50, %v14020_v45  ;;  %v16637_v0 = vld [vmem:[#allocation2 + $0x1a94] sm:$0xf0] }
 0x35d   :  { %7273 = vmatpush.bf16.msrb.mxu1 %v13205_v15  ;;  %7286 = vmatpush.bf16.msrb.mxu2 %v13333_v17  ;;  %v13652_v15 = vld [vmem:[#allocation2 + $0x18c8] sm:$0xf]  ;;  %v16581_v17 = vld [vmem:[#allocation2 + $0x18d4] sm:$0xf0] }
 0x35e   :  { %7299 = vmatpush.bf16.msrb.mxu3 %v13461_v23  ;;  %v16645_v23 = vld [vmem:[#allocation2 + $0x1ad4] sm:$0xf0]  ;;  %v13653_v29 = vor.u32 %v16581_v17, %v13652_v15  ;;  %v13748_v55 = vld [vmem:[#allocation2 + $0x1988] sm:$0xf] }
 0x35f   :  { %7261 = vmatpush.bf16.msrb.mxu0 %v13061_v33  ;;  %v13909_v31 = vor.u32 %v16645_v23, %v13908_v18  ;;  %v13636_v33 = vld [vmem:[#allocation2 + $0x18a8] sm:$0xf]  ;;  %v16669_v16 = vld [vmem:[#allocation2 + $0x1b94] sm:$0xf0]  ;;  %v13749_v11 = vor.u32 %v16605_v58, %v13748_v55 }
 0x360   :  { %v14004_v62 = vld [vmem:[#allocation2 + $0x1b88] sm:$0xf]  ;;  %v16633_v32 = vld [vmem:[#allocation2 + $0x1a74] sm:$0xf0] }
 0x361   :  { %7274 = vmatpush.bf16.msrb.mxu1 %v13189_v36  ;;  %7287 = vmatpush.bf16.msrb.mxu2 %v13317_v37  ;;  %v14037_v36 = vor.u32 %v16677_v28, %v14036_v27  ;;  %v16609_v37 = vld [vmem:[#allocation2 + $0x19b4] sm:$0xf0]  ;;  %v14005_v17 = vor.u32 %v16669_v16, %v14004_v62  ;;  %v13988_v18 = vld [vmem:[#allocation2 + $0x1b68] sm:$0xf] }
 0x362   :  { %7300 = vmatpush.bf16.msrb.mxu3 %v13445_v51  ;;  %v13637_v51 = vor.u32 %v16577_v34, %v13636_v33  ;;  %v13765_v52 = vor.u32 %v16609_v37, %v13764_v35  ;;  %v16665_v23 = vld [vmem:[#allocation2 + $0x1b74] sm:$0xf0]  ;;  %v13716_v34 = vld [vmem:[#allocation2 + $0x1948] sm:$0xf] }
 0x363   :  { %7262 = vmatpush.bf16.msrb.mxu0 %v13045_v61  ;;  %v13876_v61 = vld [vmem:[#allocation2 + $0x1a88] sm:$0xf]  ;;  %v16565_v33 = vld [vmem:[#allocation2 + $0x1854] sm:$0xf0] }
 0x364   :  { %v13877_v7 = vor.u32 %v16637_v0, %v13876_v61  ;;  %v13844_v37 = vld [vmem:[#allocation2 + $0x1a48] sm:$0xf]  ;;  %v16629_v39 = vld [vmem:[#allocation2 + $0x1a54] sm:$0xf0] }
 0x365   :  { %7275 = vmatpush.bf16.msrb.mxu1 %v13173_v63  ;;  %7288 = vmatpush.bf16.msrb.mxu2 %v13301_v2  ;;  %v13621_v63 = vor.u32 %v16573_v3, %v13620_v54  ;;  %v7056_v2 = vpop.f32.mrf.mxu0  ;;  %v7069_v15 = vpop.f32.mrf.mxu1  ;;  %v13972_v50 = vld [vmem:[#allocation2 + $0x1b48] sm:$0xf]  ;;  %v13845_v55 = vor.u32 %v16629_v39, %v13844_v37  ;;  %v16561_v58 = vld [vmem:[#allocation2 + $0x1834] sm:$0xf0] }
 0x366   :  { %7301 = vmatpush.bf16.msrb.mxu3 %v13429_v8  ;;  %7263 = vmatmul.bf16.vlgmr.msrb.gmra.mxu0 %v17428_v20  ;;  %v13604_v8 = vld [vmem:[#allocation2 + $0x1868] sm:$0xf]  ;;  %v16593_v16 = vld [vmem:[#allocation2 + $0x1934] sm:$0xf0] }
 0x367   :  { %7307 = vmatpush.bf16.msra.mxu0 %v13669_v60  ;;  %v16569_v60 = vld [vmem:[#allocation2 + $0x1874] sm:$0xf0]  ;;  %v13700_v61 = vld [vmem:[#allocation2 + $0x1928] sm:$0xf] }
 0x368   :  { %7289 = vmatmul.bf16.vlgmr.msrb.gmra.mxu2 %v17420_v4  ;;  %7276 = vmatmul.bf16.vlgmr.msrb.gmra.mxu1 %v17431_v21  ;;  %v13605_v28 = vor.u32 %v16569_v60, %v13604_v8  ;;  %v13556_v60 = vld [vmem:[#allocation2 + $0x1808] sm:$0xf] }
 0x369   :  { %7320 = vmatpush.bf16.msra.mxu1 %v13797_v5  ;;  %7333 = vmatpush.bf16.msra.mxu2 %v13925_v14  ;;  %v13732_v5 = vld [vmem:[#allocation2 + $0x1968] sm:$0xf]  ;;  %v7057_v14 = vadd.f32 %v7056_v2, %v17624_v12  ;;  %v13989_v12 = vor.u32 %v16665_v23, %v13988_v18  ;;  %v16625_v2 = vld [vmem:[#allocation2 + $0x1a34] sm:$0xf0] }
 0x36a   :  { %7346 = vmatpush.bf16.msra.mxu3 %v14053_v9  ;;  %v13860_v9 = vld [vmem:[#allocation2 + $0x1a68] sm:$0xf]  ;;  %v16621_v23 = vld [vmem:[#allocation2 + $0x1a14] sm:$0xf0] }
 0x36b   :  { %7302 = vmatmul.bf16.vlgmr.msrb.gmra.mxu3 %v17425_v6  ;;  %7308 = vmatpush.bf16.msra.mxu0 %v13653_v29  ;;  %v7070_v27 = vadd.f32 %v7069_v15, %v7057_v14  ;;  %v13733_v29 = vor.u32 %v16601_v25, %v13732_v5  ;;  %v7082_v35 = vpop.f32.mrf.mxu2  ;;  %v16557_v5 = vld [vmem:[#allocation2 + $0x1814] sm:$0xf0]  ;;  %v13701_v14 = vor.u32 %v16593_v16, %v13700_v61  ;;  %v16483_v16 = vld [vmem:[#allocation2 + $0x15cc] sm:$0xf] }
 0x36c   :  { %v16589_v25 = vld [vmem:[#allocation2 + $0x1914] sm:$0xf0] }
 0x36d   :  { %7321 = vmatpush.bf16.msra.mxu1 %v13781_v30  ;;  %7334 = vmatpush.bf16.msra.mxu2 %v13909_v31  ;;  %v13861_v30 = vor.u32 %v16633_v32, %v13860_v9  ;;  %v13588_v31 = vld [vmem:[#allocation2 + $0x1848] sm:$0xf]  ;;  %v7083_v40 = vadd.f32 %v7082_v35, %v7070_v27  ;;  %v7058_v54 = vpop.f32.mrf.mxu0  ;;  %v7071_v0 = vpop.f32.mrf.mxu1  ;;  %v16745_v35 = vld [vmem:[#allocation2 + $0x1df4] sm:$0xf0] }
 0x36e   :  { %7347 = vmatpush.bf16.msra.mxu3 %v14037_v36  ;;  %v16597_v36 = vld [vmem:[#allocation2 + $0x1954] sm:$0xf0]  ;;  %v7095_v45 = vpop.f32.mrf.mxu3  ;;  %v13812_v9 = vld [vmem:[#allocation2 + $0x1a08] sm:$0xf]  ;;  %v16451_v0 = vld [vmem:[#allocation2 + $0x14cc] sm:$0xf] }
 0x36f   :  { %7309 = vmatpush.bf16.msra.mxu0 %v13637_v51  ;;  %v16661_v51 = vld [vmem:[#allocation2 + $0x1b54] sm:$0xf0]  ;;  %v13717_v3 = vor.u32 %v16597_v36, %v13716_v34  ;;  %v13940_v27 = vld [vmem:[#allocation2 + $0x1b08] sm:$0xf]  ;;  %v13557_v34 = vor.u32 %v16557_v5, %v13556_v60  ;;  %v13158_v36 = vld [vmem:[#allocation2 + $0x14f8] sm:$0xf0]  ;;  %v13813_v39 = vor.u32 %v16621_v23, %v13812_v9 }
 0x370   :  { %v13973_v62 = vor.u32 %v16661_v51, %v13972_v50  ;;  %v16741_v61 = vld [vmem:[#allocation2 + $0x1dd4] sm:$0xf0]  ;;  %v14276_v5 = vld [vmem:[#allocation2 + $0x1da8] sm:$0xf]  ;;  %v16479_v9 = vld [vmem:[#allocation2 + $0x15ac] sm:$0xf] }
 0x371   :  { %7322 = vmatpush.bf16.msra.mxu1 %v13765_v52  ;;  %7335 = vmatpush.bf16.msra.mxu2 %v13893_v53  ;;  %v13589_v52 = vor.u32 %v16565_v33, %v13588_v31  ;;  %v17631_v53 = vadd.f32 %v7095_v45, %v7083_v40  ;;  %v16713_v31 = vld [vmem:[#allocation2 + $0x1cf4] sm:$0xf0]  ;;  %v14308_v33 = vld [vmem:[#allocation2 + $0x1de8] sm:$0xf]  ;;  %v16487_v40 = vld [vmem:[#allocation2 + $0x15ec] sm:$0xf] }
 0x372   :  { %7348 = vmatpush.bf16.msra.mxu3 %v14021_v56  ;;  %v13572_v56 = vld [vmem:[#allocation2 + $0x1828] sm:$0xf]  ;;  %v13286_v45 = vld [vmem:[#allocation2 + $0x15f8] sm:$0xf0]  ;;  %v16705_v60 = vld [vmem:[#allocation2 + $0x1cb4] sm:$0xf0] }
 0x373   :  { %7310 = vmatpush.bf16.msra.mxu0 %v13621_v63  ;;  %v13828_v63 = vld [vmem:[#allocation2 + $0x1a28] sm:$0xf]  ;;  %v13573_v8 = vor.u32 %v16561_v58, %v13572_v56  ;;  %v7084_v32 = vpop.f32.mrf.mxu2  ;;  %v13289_v58 = vor.u32 %v16487_v40, %v13286_v45 }
 0x374   :  { %v13829_v15 = vor.u32 %v16625_v2, %v13828_v63  ;;  %v14292_v56 = vld [vmem:[#allocation2 + $0x1dc8] sm:$0xf]  ;;  %v13270_v63 = vld [vmem:[#allocation2 + $0x15d8] sm:$0xf0] }
 0x375   :  { %7323 = vmatpush.bf16.msra.mxu1 %v13749_v11  ;;  %7336 = vmatpush.bf16.msra.mxu2 %v13877_v7  ;;  %v13956_v11 = vld [vmem:[#allocation2 + $0x1b28] sm:$0xf]  ;;  %v16657_v7 = vld [vmem:[#allocation2 + $0x1b34] sm:$0xf0]  ;;  %v13254_v32 = vld [vmem:[#allocation2 + $0x15b8] sm:$0xf0] }
 0x376   :  { %7349 = vmatpush.bf16.msra.mxu3 %v14005_v17  ;;  %v13684_v17 = vld [vmem:[#allocation2 + $0x1908] sm:$0xf]  ;;  %v13957_v18 = vor.u32 %v16657_v7, %v13956_v11  ;;  %v14293_v11 = vor.u32 %v16741_v61, %v14292_v56  ;;  %v16439_v61 = vld [vmem:[#allocation2 + $0x146c] sm:$0xf] }
 0x377   :  { %7311 = vmatpush.bf16.msra.mxu0 %v13605_v28  ;;  %v16653_v28 = vld [vmem:[#allocation2 + $0x1b14] sm:$0xf0]  ;;  %v13685_v37 = vor.u32 %v16589_v25, %v13684_v17  ;;  %v16447_v17 = vld [vmem:[#allocation2 + $0x14ac] sm:$0xf]  ;;  %v13126_v25 = vld [vmem:[#allocation2 + $0x14b8] sm:$0xf0] }
 0x378   :  { %v13941_v50 = vor.u32 %v16653_v28, %v13940_v27  ;;  %v13129_v27 = vor.u32 %v16447_v17, %v13126_v25  ;;  %v14132_v28 = vld [vmem:[#allocation2 + $0x1c88] sm:$0xf]  ;;  %v13078_v17 = vld [vmem:[#allocation2 + $0x1458] sm:$0xf0] }
 0x379   :  { %7324 = vmatpush.bf16.msra.mxu1 %v13733_v29  ;;  %7337 = vmatpush.bf16.msra.mxu2 %v13861_v30  ;;  %v7097_v29 = vpop.f32.mrf.mxu3  ;;  %v14180_v30 = vld [vmem:[#allocation2 + $0x1ce8] sm:$0xf] }
 0x37a   :  { %7350 = vmatpush.bf16.msra.mxu3 %v13989_v12  ;;  %v16455_v12 = vld [vmem:[#allocation2 + $0x14ec] sm:$0xf]  ;;  %v14181_v51 = vor.u32 %v16713_v31, %v14180_v30  ;;  %v16701_v29 = vld [vmem:[#allocation2 + $0x1c94] sm:$0xf0]  ;;  %v14260_v30 = vld [vmem:[#allocation2 + $0x1d88] sm:$0xf]  ;;  %v13257_v31 = vor.u32 %v16479_v9, %v13254_v32 }
 0x37b   :  { %7312 = vmatpush.bf16.msra.mxu0 %v13589_v52  ;;  %v14309_v52 = vor.u32 %v16745_v35, %v14308_v33  ;;  %v13161_v54 = vor.u32 %v16455_v12, %v13158_v36  ;;  %v16733_v33 = vld [vmem:[#allocation2 + $0x1d94] sm:$0xf0]  ;;  %v13110_v35 = vld [vmem:[#allocation2 + $0x1498] sm:$0xf0]  ;;  %v16475_v36 = vld [vmem:[#allocation2 + $0x158c] sm:$0xf]  ;;  %v14133_v40 = vor.u32 %v16701_v29, %v14132_v28 }
 0x37c   :  { %v16467_v9 = vld [vmem:[#allocation2 + $0x154c] sm:$0xf]  ;;  %v13206_v32 = vld [vmem:[#allocation2 + $0x1558] sm:$0xf0]  ;;  %v14084_v29 = vld [vmem:[#allocation2 + $0x1c28] sm:$0xf] }
 0x37d   :  { %7325 = vmatpush.bf16.msra.mxu1 %v13717_v3  ;;  %7338 = vmatpush.bf16.msra.mxu2 %v13845_v55  ;;  %v14164_v3 = vld [vmem:[#allocation2 + $0x1cc8] sm:$0xf]  ;;  %v16709_v55 = vld [vmem:[#allocation2 + $0x1cd4] sm:$0xf0] }
 0x37e   :  { %7351 = vmatpush.bf16.msra.mxu3 %v13973_v62  ;;  %v13142_v62 = vld [vmem:[#allocation2 + $0x14d8] sm:$0xf0]  ;;  %v14165_v2 = vor.u32 %v16709_v55, %v14164_v3  ;;  %v14244_v3 = vld [vmem:[#allocation2 + $0x1d68] sm:$0xf] }
 0x37f   :  { %7313 = vmatpush.bf16.msra.mxu0 %v13573_v8  ;;  %v13145_v7 = vor.u32 %v16451_v0, %v13142_v62  ;;  %v14148_v8 = vld [vmem:[#allocation2 + $0x1ca8] sm:$0xf]  ;;  %v13094_v0 = vld [vmem:[#allocation2 + $0x1478] sm:$0xf0]  ;;  %v16471_v62 = vld [vmem:[#allocation2 + $0x156c] sm:$0xf] }
 0x381   :  { %7326 = vmatpush.bf16.msra.mxu1 %v13701_v14  ;;  %7339 = vmatpush.bf16.msra.mxu2 %v13829_v15  ;;  %v13273_v14 = vor.u32 %v16483_v16, %v13270_v63  ;;  %v16737_v15 = vld [vmem:[#allocation2 + $0x1db4] sm:$0xf0]  ;;  %v13222_v16 = vld [vmem:[#allocation2 + $0x1578] sm:$0xf0] }
 0x382   :  { %7352 = vmatpush.bf16.msra.mxu3 %v13957_v18  ;;  %v14149_v18 = vor.u32 %v16705_v60, %v14148_v8  ;;  %v14277_v23 = vor.u32 %v16737_v15, %v14276_v5  ;;  %v16693_v8 = vld [vmem:[#allocation2 + $0x1c54] sm:$0xf0]  ;;  %v14228_v60 = vld [vmem:[#allocation2 + $0x1d48] sm:$0xf]  ;;  %v13225_v5 = vor.u32 %v16471_v62, %v13222_v16  ;;  %v16435_v15 = vld [vmem:[#allocation2 + $0x144c] sm:$0xf] }
 0x383   :  { %7314 = vmatpush.bf16.msra.mxu0 %v13557_v34  ;;  %v16443_v34 = vld [vmem:[#allocation2 + $0x148c] sm:$0xf]  ;;  %v7108_v12 = vpop.f32.mrf.mxu0  ;;  %v13081_v28 = vor.u32 %v16435_v15, %v13078_v17  ;;  %v13414_v16 = vld [vmem:[#allocation2 + $0x16f8] sm:$0xf0] }
 0x384   :  { %v16519_v62 = vld [vmem:[#allocation2 + $0x16ec] sm:$0xf]  ;;  %v13798_v17 = vld [vmem:[#allocation2 + $0x19f8] sm:$0xf0] }
 0x385   :  { %7327 = vmatpush.bf16.msra.mxu1 %v13685_v37  ;;  %7340 = vmatpush.bf16.msra.mxu2 %v13813_v39  ;;  %v13238_v37 = vld [vmem:[#allocation2 + $0x1598] sm:$0xf0]  ;;  %v7109_v39 = vadd.f32 %v7108_v12, %v17631_v53  ;;  %v7121_v45 = vpop.f32.mrf.mxu1  ;;  %v16615_v15 = vld [vmem:[#allocation2 + $0x19ec] sm:$0xf] }
 0x386   :  { %7353 = vmatpush.bf16.msra.mxu3 %v13941_v50  ;;  %7315 = vmatmul.bf16.vlgmr.msra.gmra.mxu0 %v17443_v41  ;;  %v14261_v50 = vor.u32 %v16733_v33, %v14260_v30  ;;  %v13241_v55 = vor.u32 %v16475_v36, %v13238_v37  ;;  %v16689_v30 = vld [vmem:[#allocation2 + $0x1c34] sm:$0xf0]  ;;  %v13209_v33 = vor.u32 %v16467_v9, %v13206_v32  ;;  %v13062_v12 = vld [vmem:[#allocation2 + $0x1438] sm:$0xf0]  ;;  %v16463_v36 = vld [vmem:[#allocation2 + $0x152c] sm:$0xf] }
 0x387   :  { %7359 = vmatpush.bf16.msrb.mxu0 %v14181_v51  ;;  %v13113_v51 = vor.u32 %v16443_v34, %v13110_v35  ;;  %v7122_v56 = vadd.f32 %v7121_v45, %v7109_v39  ;;  %v16721_v34 = vld [vmem:[#allocation2 + $0x1d34] sm:$0xf0]  ;;  %v16431_v35 = vld [vmem:[#allocation2 + $0x142c] sm:$0xf]  ;;  %v13190_v37 = vld [vmem:[#allocation2 + $0x1538] sm:$0xf0]  ;;  %v14085_v39 = vor.u32 %v16689_v30, %v14084_v29  ;;  %v13417_v9 = vor.u32 %v16519_v62, %v13414_v16 }
 0x388   :  { %7341 = vmatmul.bf16.vlgmr.msra.gmra.mxu2 %v17441_v38  ;;  %7328 = vmatmul.bf16.vlgmr.msra.gmra.mxu1 %v17447_v44  ;;  %v16685_v45 = vld [vmem:[#allocation2 + $0x1c14] sm:$0xf0]  ;;  %v16579_v29 = vld [vmem:[#allocation2 + $0x18cc] sm:$0xf]  ;;  %v13654_v30 = vld [vmem:[#allocation2 + $0x18d8] sm:$0xf0] }
 0x389   :  { %7372 = vmatpush.bf16.msrb.mxu1 %v14309_v52  ;;  %7385 = vmatpush.bf16.msrb.mxu2 %v13161_v54  ;;  %v14116_v52 = vld [vmem:[#allocation2 + $0x1c68] sm:$0xf]  ;;  %v16697_v54 = vld [vmem:[#allocation2 + $0x1c74] sm:$0xf0]  ;;  %v17641_v53 = vmax.f32 %v5070_v1, %v7122_v56  ;;  %v13046_v56 = vld [vmem:[#allocation2 + $0x1418] sm:$0xf0] }
 0x38a   :  { %7398 = vmatpush.bf16.msrb.mxu3 %v13289_v58  ;;  %v16729_v58 = vld [vmem:[#allocation2 + $0x1d74] sm:$0xf0]  ;;  %v14117_v63 = vor.u32 %v16697_v54, %v14116_v52  ;;  %v14196_v52 = vld [vmem:[#allocation2 + $0x1d08] sm:$0xf]  ;;  %v13494_v16 = vld [vmem:[#allocation2 + $0x1798] sm:$0xf0] }
 0x38b   :  { %7354 = vmatmul.bf16.vlgmr.msra.gmra.mxu3 %v17445_v42  ;;  %7360 = vmatpush.bf16.msrb.mxu0 %v14165_v2  ;;  %v14245_v2 = vor.u32 %v16729_v58, %v14244_v3  ;;  %v7134_v25 = vpop.f32.mrf.mxu2  ;;  %v7110_v43 = vpop.f32.mrf.mxu0  ;;  %v16717_v54 = vld [vmem:[#allocation2 + $0x1d14] sm:$0xf0]  ;;  %v16427_v3 = vld [vmem:[#allocation2 + $0x140c] sm:$0xf] }
 0x38c   :  { %v16459_v58 = vld [vmem:[#allocation2 + $0x150c] sm:$0xf] }
 0x38d   :  { %7373 = vmatpush.bf16.msrb.mxu1 %v14293_v11  ;;  %7386 = vmatpush.bf16.msrb.mxu2 %v13145_v7  ;;  %v13097_v11 = vor.u32 %v16439_v61, %v13094_v0  ;;  %v14100_v7 = vld [vmem:[#allocation2 + $0x1c48] sm:$0xf]  ;;  %v13174_v61 = vld [vmem:[#allocation2 + $0x1518] sm:$0xf0]  ;;  %v16515_v43 = vld [vmem:[#allocation2 + $0x16cc] sm:$0xf] }
 0x38e   :  { %7399 = vmatpush.bf16.msrb.mxu3 %v13273_v14  ;;  %v16725_v14 = vld [vmem:[#allocation2 + $0x1d54] sm:$0xf0]  ;;  %v14101_v47 = vor.u32 %v16693_v8, %v14100_v7  ;;  %v13542_v7 = vld [vmem:[#allocation2 + $0x17f8] sm:$0xf0]  ;;  %v16583_v8 = vld [vmem:[#allocation2 + $0x18ec] sm:$0xf] }
 0x38f   :  { %7361 = vmatpush.bf16.msrb.mxu0 %v14149_v18  ;;  %v7147_v18 = vpop.f32.mrf.mxu3 }
 0x390   :  { %v17643_v1 = vadd.f32 %v7147_v18, %v7134_v25  ;;  %v13177_v25 = vor.u32 %v16459_v58, %v13174_v61  ;;  %v16507_v58 = vld [vmem:[#allocation2 + $0x168c] sm:$0xf]  ;;  %v13366_v61 = vld [vmem:[#allocation2 + $0x1698] sm:$0xf0] }
 0x391   :  { %7374 = vmatpush.bf16.msrb.mxu1 %v14277_v23  ;;  %7387 = vmatpush.bf16.msrb.mxu2 %v13129_v27  ;;  %v7123_v23 = vpop.f32.mrf.mxu1  ;;  %v14229_v27 = vor.u32 %v16725_v14, %v14228_v60  ;;  %v13670_v60 = vld [vmem:[#allocation2 + $0x18f8] sm:$0xf0]  ;;  %v13049_v14 = vor.u32 %v16427_v3, %v13046_v56 }
 0x392   :  { %7400 = vmatpush.bf16.msrb.mxu3 %v13257_v31  ;;  %v14212_v31 = vld [vmem:[#allocation2 + $0x1d28] sm:$0xf]  ;;  %v13673_v18 = vor.u32 %v16583_v8, %v13670_v60  ;;  %v16547_v23 = vld [vmem:[#allocation2 + $0x17cc] sm:$0xf]  ;;  %v13369_v8 = vor.u32 %v16507_v58, %v13366_v61 }
 0x393   :  { %7362 = vmatpush.bf16.msrb.mxu0 %v14133_v40  ;;  %v14068_v40 = vld [vmem:[#allocation2 + $0x1c08] sm:$0xf]  ;;  %v7136_v0 = vpop.f32.mrf.mxu2  ;;  %v16495_v61 = vld [vmem:[#allocation2 + $0x162c] sm:$0xf] }
 0x394   :  { %v16539_v0 = vld [vmem:[#allocation2 + $0x178c] sm:$0xf] }
 0x395   :  { %7375 = vmatpush.bf16.msrb.mxu1 %v14261_v50  ;;  %7388 = vmatpush.bf16.msrb.mxu2 %v13113_v51  ;;  %v14213_v50 = vor.u32 %v16721_v34, %v14212_v31  ;;  %v13065_v51 = vor.u32 %v16431_v35, %v13062_v12  ;;  %v16611_v31 = vld [vmem:[#allocation2 + $0x19cc] sm:$0xf]  ;;  %v13657_v12 = vor.u32 %v16579_v29, %v13654_v30 }
 0x396   :  { %7401 = vmatpush.bf16.msrb.mxu3 %v13241_v55  ;;  %v13193_v55 = vor.u32 %v16463_v36, %v13190_v37  ;;  %v16511_v36 = vld [vmem:[#allocation2 + $0x16ac] sm:$0xf]  ;;  %v13382_v37 = vld [vmem:[#allocation2 + $0x16b8] sm:$0xf0] }
 0x397   :  { %7363 = vmatpush.bf16.msrb.mxu0 %v14117_v63  ;;  %v16551_v63 = vld [vmem:[#allocation2 + $0x17ec] sm:$0xf]  ;;  %v13385_v3 = vor.u32 %v16511_v36, %v13382_v37  ;;  %v13462_v37 = vld [vmem:[#allocation2 + $0x1758] sm:$0xf0] }
 0x398   :  { %v13545_v32 = vor.u32 %v16551_v63, %v13542_v7  ;;  %v16571_v63 = vld [vmem:[#allocation2 + $0x188c] sm:$0xf]  ;;  %v13750_v7 = vld [vmem:[#allocation2 + $0x1998] sm:$0xf0] }
 0x399   :  { %7376 = vmatpush.bf16.msrb.mxu1 %v14245_v2  ;;  %7389 = vmatpush.bf16.msrb.mxu2 %v13097_v11  ;;  %v7149_v2 = vpop.f32.mrf.mxu3  ;;  %v14069_v11 = vor.u32 %v16685_v45, %v14068_v40  ;;  %v13510_v45 = vld [vmem:[#allocation2 + $0x17b8] sm:$0xf0] }
 0x39a   :  { %7402 = vmatpush.bf16.msrb.mxu3 %v13225_v5  ;;  %v14197_v5 = vor.u32 %v16717_v54, %v14196_v52  ;;  %v16607_v52 = vld [vmem:[#allocation2 + $0x19ac] sm:$0xf]  ;;  %v13766_v54 = vld [vmem:[#allocation2 + $0x19b8] sm:$0xf0] }
 0x39b   :  { %7364 = vmatpush.bf16.msrb.mxu0 %v14101_v47  ;;  %v13398_v47 = vld [vmem:[#allocation2 + $0x16d8] sm:$0xf0]  ;;  %v13769_v62 = vor.u32 %v16607_v52, %v13766_v54 }
 0x39c   :  { %v13401_v34 = vor.u32 %v16515_v43, %v13398_v47  ;;  %v13622_v2 = vld [vmem:[#allocation2 + $0x1898] sm:$0xf0]  ;;  %v16567_v47 = vld [vmem:[#allocation2 + $0x186c] sm:$0xf] }
 0x39d   :  { %7377 = vmatpush.bf16.msrb.mxu1 %v14229_v27  ;;  %7390 = vmatpush.bf16.msrb.mxu2 %v13081_v28  ;;  %v13801_v27 = vor.u32 %v16615_v15, %v13798_v17  ;;  %v13526_v28 = vld [vmem:[#allocation2 + $0x17d8] sm:$0xf0]  ;;  %v16503_v15 = vld [vmem:[#allocation2 + $0x166c] sm:$0xf] }
 0x39e   :  { %7403 = vmatpush.bf16.msrb.mxu3 %v13209_v33  ;;  %v13782_v33 = vld [vmem:[#allocation2 + $0x19d8] sm:$0xf0]  ;;  %v13529_v35 = vor.u32 %v16547_v23, %v13526_v28 }
 0x39f   :  { %7365 = vmatpush.bf16.msrb.mxu0 %v14085_v39  ;;  %v16543_v39 = vld [vmem:[#allocation2 + $0x17ac] sm:$0xf]  ;;  %v13785_v40 = vor.u32 %v16611_v31, %v13782_v33  ;;  %v13350_v17 = vld [vmem:[#allocation2 + $0x1678] sm:$0xf0] }
 0x3a0   :  { %v13478_v43 = vld [vmem:[#allocation2 + $0x1778] sm:$0xf0]  ;;  %v13353_v30 = vor.u32 %v16503_v15, %v13350_v17 }
 0x3a1   :  { %7378 = vmatpush.bf16.msrb.mxu1 %v14213_v50  ;;  %7391 = vmatpush.bf16.msrb.mxu2 %v13065_v51  ;;  %v16575_v50 = vld [vmem:[#allocation2 + $0x18ac] sm:$0xf]  ;;  %v13638_v51 = vld [vmem:[#allocation2 + $0x18b8] sm:$0xf0] }
 0x3a2   :  { %7404 = vmatpush.bf16.msrb.mxu3 %v13193_v55  ;;  %v13513_v55 = vor.u32 %v16543_v39, %v13510_v45  ;;  %v13641_v56 = vor.u32 %v16575_v50, %v13638_v51  ;;  %v13606_v23 = vld [vmem:[#allocation2 + $0x1878] sm:$0xf0]  ;;  %v16563_v39 = vld [vmem:[#allocation2 + $0x184c] sm:$0xf] }
 0x3a3   :  { %7366 = vmatpush.bf16.msrb.mxu0 %v14069_v11  ;;  %v16603_v11 = vld [vmem:[#allocation2 + $0x198c] sm:$0xf]  ;;  %v7160_v60 = vpop.f32.mrf.mxu0  ;;  %v13734_v28 = vld [vmem:[#allocation2 + $0x1978] sm:$0xf0]  ;;  %v13609_v33 = vor.u32 %v16567_v47, %v13606_v23 }
 0x3a4   :  { %v16595_v51 = vld [vmem:[#allocation2 + $0x194c] sm:$0xf]  ;;  %v13718_v52 = vld [vmem:[#allocation2 + $0x1958] sm:$0xf0] }
 0x3a5   :  { %7379 = vmatpush.bf16.msrb.mxu1 %v14197_v5  ;;  %7392 = vmatpush.bf16.msrb.mxu2 %v13049_v14  ;;  %v13497_v5 = vor.u32 %v16539_v0, %v13494_v16  ;;  %v13625_v14 = vor.u32 %v16571_v63, %v13622_v2  ;;  %v13318_v0 = vld [vmem:[#allocation2 + $0x1638] sm:$0xf0]  ;;  %v13721_v63 = vor.u32 %v16595_v51, %v13718_v52 }
 0x3a6   :  { %7405 = vmatpush.bf16.msrb.mxu3 %v13177_v25  ;;  %7367 = vmatmul.bf16.vlgmr.msrb.gmra.mxu0 %v17456_v22  ;;  %v16535_v25 = vld [vmem:[#allocation2 + $0x176c] sm:$0xf]  ;;  %v13446_v2 = vld [vmem:[#allocation2 + $0x1738] sm:$0xf0] }
 0x3a7   :  { %7411 = vmatpush.bf16.msra.mxu0 %v13417_v9  ;;  %v7161_v9 = vadd.f32 %v7160_v60, %v17643_v1  ;;  %v13481_v31 = vor.u32 %v16535_v25, %v13478_v43  ;;  %v13702_v60 = vld [vmem:[#allocation2 + $0x1938] sm:$0xf0] }
 0x3a8   :  { %7380 = vmatmul.bf16.vlgmr.msrb.gmra.mxu1 %v17458_v26  ;;  %7393 = vmatmul.bf16.vlgmr.msrb.gmra.mxu2 %v17428_v20  ;;  %v13302_v15 = vld [vmem:[#allocation2 + $0x1618] sm:$0xf0] }
 0x3a9   :  { %7424 = vmatpush.bf16.msra.mxu1 %v13545_v32  ;;  %7437 = vmatpush.bf16.msra.mxu2 %v13673_v18  ;;  %v7173_v32 = vpop.f32.mrf.mxu1  ;;  %v13753_v18 = vor.u32 %v16603_v11, %v13750_v7  ;;  %v16559_v11 = vld [vmem:[#allocation2 + $0x182c] sm:$0xf]  ;;  %v13574_v7 = vld [vmem:[#allocation2 + $0x1838] sm:$0xf0] }
 0x3aa   :  { %7450 = vmatpush.bf16.msra.mxu3 %v13801_v27  ;;  %v16599_v27 = vld [vmem:[#allocation2 + $0x196c] sm:$0xf]  ;;  %v7174_v29 = vadd.f32 %v7173_v32, %v7161_v9  ;;  %v13577_v25 = vor.u32 %v16559_v11, %v13574_v7  ;;  %v13430_v32 = vld [vmem:[#allocation2 + $0x1718] sm:$0xf0] }
 0x3ab   :  { %7412 = vmatpush.bf16.msra.mxu0 %v13401_v34  ;;  %7406 = vmatmul.bf16.vlgmr.msrb.gmra.mxu3 %v17431_v21  ;;  %v16499_v34 = vld [vmem:[#allocation2 + $0x164c] sm:$0xf]  ;;  %v7186_v36 = vpop.f32.mrf.mxu2  ;;  %v13737_v1 = vor.u32 %v16599_v27, %v13734_v28  ;;  %v13558_v23 = vld [vmem:[#allocation2 + $0x1818] sm:$0xf0] }
 0x3ac   :  { %v7187_v45 = vadd.f32 %v7186_v36, %v7174_v29  ;;  %v16523_v9 = vld [vmem:[#allocation2 + $0x170c] sm:$0xf]  ;;  %v13686_v28 = vld [vmem:[#allocation2 + $0x1918] sm:$0xf0] }
 0x3ad   :  { %7425 = vmatpush.bf16.msra.mxu1 %v13529_v35  ;;  %7438 = vmatpush.bf16.msra.mxu2 %v13657_v12  ;;  %v13334_v35 = vld [vmem:[#allocation2 + $0x1658] sm:$0xf0]  ;;  %v16531_v12 = vld [vmem:[#allocation2 + $0x174c] sm:$0xf] }
 0x3ae   :  { %7451 = vmatpush.bf16.msra.mxu3 %v13785_v40  ;;  %v13590_v40 = vld [vmem:[#allocation2 + $0x1858] sm:$0xf0]  ;;  %v7199_v50 = vpop.f32.mrf.mxu3  ;;  %v13337_v54 = vor.u32 %v16499_v34, %v13334_v35  ;;  %v16587_v27 = vld [vmem:[#allocation2 + $0x190c] sm:$0xf] }
 0x3af   :  { %7413 = vmatpush.bf16.msra.mxu0 %v13385_v3  ;;  %v17650_v3 = vadd.f32 %v7199_v50, %v7187_v45  ;;  %v13593_v58 = vor.u32 %v16563_v39, %v13590_v40  ;;  %v14054_v35 = vld [vmem:[#allocation2 + $0x1bf8] sm:$0xf0]  ;;  %v16743_v39 = vld [vmem:[#allocation2 + $0x1dec] sm:$0xf]  ;;  %v13689_v45 = vor.u32 %v16587_v27, %v13686_v28 }
 0x3b0   :  { %v14182_v36 = vld [vmem:[#allocation2 + $0x1cf8] sm:$0xf0]  ;;  %v16667_v28 = vld [vmem:[#allocation2 + $0x1b8c] sm:$0xf] }
 0x3b1   :  { %7426 = vmatpush.bf16.msra.mxu1 %v13513_v55  ;;  %7439 = vmatpush.bf16.msra.mxu2 %v13641_v56  ;;  %v7162_v55 = vpop.f32.mrf.mxu0  ;;  %v13465_v56 = vor.u32 %v16531_v12, %v13462_v37  ;;  %v7175_v16 = vpop.f32.mrf.mxu1  ;;  %v16711_v12 = vld [vmem:[#allocation2 + $0x1cec] sm:$0xf]  ;;  %v14310_v40 = vld [vmem:[#allocation2 + $0x1df8] sm:$0xf0] }
 0x3b2   :  { %7452 = vmatpush.bf16.msra.mxu3 %v13769_v62  ;;  %v16527_v62 = vld [vmem:[#allocation2 + $0x172c] sm:$0xf]  ;;  %v14185_v52 = vor.u32 %v16711_v12, %v14182_v36  ;;  %v13910_v55 = vld [vmem:[#allocation2 + $0x1ad8] sm:$0xf0] }
 0x3b3   :  { %7414 = vmatpush.bf16.msra.mxu0 %v13369_v8  ;;  %v16591_v8 = vld [vmem:[#allocation2 + $0x192c] sm:$0xf]  ;;  %v13449_v17 = vor.u32 %v16527_v62, %v13446_v2  ;;  %v7188_v43 = vpop.f32.mrf.mxu2  ;;  %v14166_v62 = vld [vmem:[#allocation2 + $0x1cd8] sm:$0xf0] }
 0x3b4   :  { %v13705_v47 = vor.u32 %v16591_v8, %v13702_v60  ;;  %v16739_v16 = vld [vmem:[#allocation2 + $0x1dcc] sm:$0xf]  ;;  %v13894_v60 = vld [vmem:[#allocation2 + $0x1ab8] sm:$0xf0] }
 0x3b5   :  { %7427 = vmatpush.bf16.msra.mxu1 %v13497_v5  ;;  %7440 = vmatpush.bf16.msra.mxu2 %v13625_v14  ;;  %v13321_v5 = vor.u32 %v16495_v61, %v13318_v0  ;;  %v16491_v14 = vld [vmem:[#allocation2 + $0x160c] sm:$0xf]  ;;  %v14038_v61 = vld [vmem:[#allocation2 + $0x1bd8] sm:$0xf0] }
 0x3b6   :  { %7453 = vmatpush.bf16.msra.mxu3 %v13753_v18  ;;  %v16555_v18 = vld [vmem:[#allocation2 + $0x180c] sm:$0xf]  ;;  %v7201_v29 = vpop.f32.mrf.mxu3  ;;  %v13305_v34 = vor.u32 %v16491_v14, %v13302_v15  ;;  %v14022_v15 = vld [vmem:[#allocation2 + $0x1bb8] sm:$0xf0] }
 0x3b7   :  { %7415 = vmatpush.bf16.msra.mxu0 %v13353_v30  ;;  %v16647_v30 = vld [vmem:[#allocation2 + $0x1aec] sm:$0xf]  ;;  %v13561_v37 = vor.u32 %v16555_v18, %v13558_v23  ;;  %v13878_v27 = vld [vmem:[#allocation2 + $0x1a98] sm:$0xf0] }
 0x3b8   :  { %v16707_v0 = vld [vmem:[#allocation2 + $0x1ccc] sm:$0xf]  ;;  %v14262_v12 = vld [vmem:[#allocation2 + $0x1d98] sm:$0xf0] }
 0x3b9   :  { %7428 = vmatpush.bf16.msra.mxu1 %v13481_v31  ;;  %7441 = vmatpush.bf16.msra.mxu2 %v13609_v33  ;;  %v13926_v31 = vld [vmem:[#allocation2 + $0x1af8] sm:$0xf0]  ;;  %v16679_v33 = vld [vmem:[#allocation2 + $0x1bec] sm:$0xf]  ;;  %v14169_v7 = vor.u32 %v16707_v0, %v14166_v62 }
 0x3ba   :  { %7454 = vmatpush.bf16.msra.mxu3 %v13737_v1  ;;  %v13433_v1 = vor.u32 %v16523_v9, %v13430_v32  ;;  %v13929_v50 = vor.u32 %v16647_v30, %v13926_v31  ;;  %v14057_v51 = vor.u32 %v16679_v33, %v14054_v35  ;;  %v16639_v8 = vld [vmem:[#allocation2 + $0x1aac] sm:$0xf]  ;;  %v14278_v32 = vld [vmem:[#allocation2 + $0x1db8] sm:$0xf0] }
 0x3bb   :  { %7416 = vmatpush.bf16.msra.mxu0 %v13337_v54  ;;  %v16643_v54 = vld [vmem:[#allocation2 + $0x1acc] sm:$0xf]  ;;  %v13897_v18 = vor.u32 %v16639_v8, %v13894_v60  ;;  %v14006_v30 = vld [vmem:[#allocation2 + $0x1b98] sm:$0xf0] }
 0x3bc   :  { %v13913_v2 = vor.u32 %v16643_v54, %v13910_v55  ;;  %v16735_v9 = vld [vmem:[#allocation2 + $0x1dac] sm:$0xf]  ;;  %v14134_v33 = vld [vmem:[#allocation2 + $0x1c98] sm:$0xf0] }
 0x3bd   :  { %7429 = vmatpush.bf16.msra.mxu1 %v13465_v56  ;;  %7442 = vmatpush.bf16.msra.mxu2 %v13593_v58  ;;  %v16675_v56 = vld [vmem:[#allocation2 + $0x1bcc] sm:$0xf]  ;;  %v14313_v58 = vor.u32 %v16743_v39, %v14310_v40  ;;  %v14281_v29 = vor.u32 %v16735_v9, %v14278_v32  ;;  %v14009_v39 = vor.u32 %v16667_v28, %v14006_v30  ;;  %v13990_v55 = vld [vmem:[#allocation2 + $0x1b78] sm:$0xf0] }
 0x3be   :  { %7455 = vmatpush.bf16.msra.mxu3 %v13721_v63  ;;  %v14294_v63 = vld [vmem:[#allocation2 + $0x1dd8] sm:$0xf0]  ;;  %v14041_v11 = vor.u32 %v16675_v56, %v14038_v61  ;;  %v16635_v23 = vld [vmem:[#allocation2 + $0x1a8c] sm:$0xf] }
 0x3bf   :  { %7417 = vmatpush.bf16.msra.mxu0 %v13321_v5  ;;  %v16671_v5 = vld [vmem:[#allocation2 + $0x1bac] sm:$0xf]  ;;  %v14297_v14 = vor.u32 %v16739_v16, %v14294_v63  ;;  %v14246_v0 = vld [vmem:[#allocation2 + $0x1d78] sm:$0xf0] }
 0x3c0   :  { %v14025_v43 = vor.u32 %v16671_v5, %v14022_v15  ;;  %v16699_v31 = vld [vmem:[#allocation2 + $0x1c8c] sm:$0xf]  ;;  %v13974_v60 = vld [vmem:[#allocation2 + $0x1b58] sm:$0xf0] }
 0x3c1   :  { %7430 = vmatpush.bf16.msra.mxu1 %v13449_v17  ;;  %7443 = vmatpush.bf16.msra.mxu2 %v13577_v25  ;;  %v16703_v17 = vld [vmem:[#allocation2 + $0x1cac] sm:$0xf]  ;;  %v14150_v25 = vld [vmem:[#allocation2 + $0x1cb8] sm:$0xf0]  ;;  %v14137_v40 = vor.u32 %v16699_v31, %v14134_v33 }
 0x3c2   :  { %7456 = vmatpush.bf16.msra.mxu3 %v13705_v47  ;;  %v14153_v47 = vor.u32 %v16703_v17, %v14150_v25  ;;  %v16731_v35 = vld [vmem:[#allocation2 + $0x1d8c] sm:$0xf]  ;;  %v14230_v9 = vld [vmem:[#allocation2 + $0x1d58] sm:$0xf0] }
 0x3c3   :  { %7418 = vmatpush.bf16.msra.mxu0 %v13305_v34  ;;  %v7212_v34 = vpop.f32.mrf.mxu0  ;;  %v16695_v56 = vld [vmem:[#allocation2 + $0x1c6c] sm:$0xf]  ;;  %v13958_v33 = vld [vmem:[#allocation2 + $0x1b38] sm:$0xf0] }
 0x3c4   :  { %v7213_v36 = vadd.f32 %v7212_v34, %v17650_v3  ;;  %v16727_v61 = vld [vmem:[#allocation2 + $0x1d6c] sm:$0xf] }
 0x3c5   :  { %7431 = vmatpush.bf16.msra.mxu1 %v13433_v1  ;;  %7444 = vmatpush.bf16.msra.mxu2 %v13561_v37  ;;  %v13881_v1 = vor.u32 %v16635_v23, %v13878_v27  ;;  %v7225_v37 = vpop.f32.mrf.mxu1  ;;  %v16627_v63 = vld [vmem:[#allocation2 + $0x1a4c] sm:$0xf] }
 0x3c6   :  { %7457 = vmatpush.bf16.msra.mxu3 %v13689_v45  ;;  %7419 = vmatmul.bf16.vlgmr.msra.gmra.mxu0 %v17420_v4  ;;  %v16631_v45 = vld [vmem:[#allocation2 + $0x1a6c] sm:$0xf]  ;;  %v7226_v54 = vadd.f32 %v7225_v37, %v7213_v36 }
 0x3c7   :  { %7463 = vmatpush.bf16.msrb.mxu0 %v13929_v50  ;;  %v13862_v50 = vld [vmem:[#allocation2 + $0x1a78] sm:$0xf0]  ;;  %v16691_v5 = vld [vmem:[#allocation2 + $0x1c4c] sm:$0xf] }
 0x3c8   :  { %7445 = vmatmul.bf16.vlgmr.msra.gmra.mxu2 %v17443_v41  ;;  %7432 = vmatmul.bf16.vlgmr.msra.gmra.mxu1 %v17425_v6  ;;  %v13865_v62 = vor.u32 %v16631_v45, %v13862_v50  ;;  %v16723_v25 = vld [vmem:[#allocation2 + $0x1d4c] sm:$0xf] }
 0x3c9   :  { %7476 = vmatpush.bf16.msrb.mxu1 %v14057_v51  ;;  %7489 = vmatpush.bf16.msrb.mxu2 %v14185_v52  ;;  %v16663_v51 = vld [vmem:[#allocation2 + $0x1b6c] sm:$0xf]  ;;  %v14265_v52 = vor.u32 %v16731_v35, %v14262_v12  ;;  %v14233_v31 = vor.u32 %v16723_v25, %v14230_v9  ;;  %v14086_v35 = vld [vmem:[#allocation2 + $0x1c38] sm:$0xf0]  ;;  %v14412_v25 = vld [vmem:[#allocation2 + $0x1ec0] sm:$0xf] }
 0x3ca   :  { %7502 = vmatpush.bf16.msrb.mxu3 %v14313_v58  ;;  %v14118_v58 = vld [vmem:[#allocation2 + $0x1c78] sm:$0xf0]  ;;  %v13993_v3 = vor.u32 %v16663_v51, %v13990_v55  ;;  %v16623_v28 = vld [vmem:[#allocation2 + $0x1a2c] sm:$0xf]  ;;  %v16772_v9 = vld [vmem:[#allocation2 + $0x1ecc] sm:$0xf0] }
 0x3cb   :  { %7458 = vmatmul.bf16.vlgmr.msra.gmra.mxu3 %v17447_v44  ;;  %7464 = vmatpush.bf16.msrb.mxu0 %v13913_v2  ;;  %v14121_v16 = vor.u32 %v16695_v56, %v14118_v58  ;;  %v13846_v2 = vld [vmem:[#allocation2 + $0x1a58] sm:$0xf0]  ;;  %v7238_v8 = vpop.f32.mrf.mxu2  ;;  %v7214_v32 = vpop.f32.mrf.mxu0  ;;  %v16655_v30 = vld [vmem:[#allocation2 + $0x1b2c] sm:$0xf] }
 0x3cc   :  { %v7239_v15 = vadd.f32 %v7238_v8, %v7226_v54  ;;  %v16687_v34 = vld [vmem:[#allocation2 + $0x1c2c] sm:$0xf]  ;;  %v13961_v45 = vor.u32 %v16655_v30, %v13958_v33  ;;  %v14070_v56 = vld [vmem:[#allocation2 + $0x1c18] sm:$0xf0]  ;;  %v14812_v8 = vld [vmem:[#allocation2 + $0x21e0] sm:$0xf] }
 0x3cd   :  { %7477 = vmatpush.bf16.msrb.mxu1 %v14041_v11  ;;  %7490 = vmatpush.bf16.msrb.mxu2 %v14169_v7  ;;  %v16659_v11 = vld [vmem:[#allocation2 + $0x1b4c] sm:$0xf]  ;;  %v14249_v7 = vor.u32 %v16727_v61, %v14246_v0  ;;  %v14089_v50 = vor.u32 %v16687_v34, %v14086_v35  ;;  %v16776_v61 = vld [vmem:[#allocation2 + $0x1eec] sm:$0xf0]  ;;  %v14556_v0 = vld [vmem:[#allocation2 + $0x1fe0] sm:$0xf] }
 0x3ce   :  { %7503 = vmatpush.bf16.msrb.mxu3 %v14297_v14  ;;  %v14102_v14 = vld [vmem:[#allocation2 + $0x1c58] sm:$0xf0]  ;;  %v7251_v17 = vpop.f32.mrf.mxu3  ;;  %v13977_v23 = vor.u32 %v16659_v11, %v13974_v60  ;;  %v16719_v36 = vld [vmem:[#allocation2 + $0x1d2c] sm:$0xf]  ;;  %v16872_v60 = vld [vmem:[#allocation2 + $0x21ec] sm:$0xf0] }
 0x3cf   :  { %7465 = vmatpush.bf16.msrb.mxu0 %v13897_v18  ;;  %v13849_v18 = vor.u32 %v16627_v63, %v13846_v2  ;;  %v14105_v27 = vor.u32 %v16691_v5, %v14102_v14  ;;  %v16651_v51 = vld [vmem:[#allocation2 + $0x1b0c] sm:$0xf]  ;;  %v14684_v63 = vld [vmem:[#allocation2 + $0x20e0] sm:$0xf]  ;;  %v16840_v2 = vld [vmem:[#allocation2 + $0x20ec] sm:$0xf0] }
 0x3d0   :  { %v16683_v54 = vld [vmem:[#allocation2 + $0x1c0c] sm:$0xf]  ;;  %v14540_v32 = vld [vmem:[#allocation2 + $0x1fc0] sm:$0xf]  ;;  %v16768_v34 = vld [vmem:[#allocation2 + $0x1eac] sm:$0xf0] }
 0x3d1   :  { %7478 = vmatpush.bf16.msrb.mxu1 %v14025_v43  ;;  %7491 = vmatpush.bf16.msrb.mxu2 %v14153_v47  ;;  %v7227_v43 = vpop.f32.mrf.mxu1  ;;  %v7252_v47 = vadd.f32 %v7251_v17, %v7239_v15  ;;  %v16715_v58 = vld [vmem:[#allocation2 + $0x1d0c] sm:$0xf]  ;;  %v14685_v17 = vor.u32 %v16840_v2, %v14684_v63  ;;  %v14396_v33 = vld [vmem:[#allocation2 + $0x1ea0] sm:$0xf] }
 0x3d2   :  { %7504 = vmatpush.bf16.msrb.mxu3 %v14281_v29  ;;  %v13830_v29 = vld [vmem:[#allocation2 + $0x1a38] sm:$0xf0]  ;;  %v14201_v5 = vor.u32 %v16715_v58, %v14198_v10  ;;  %v16804_v43 = vld [vmem:[#allocation2 + $0x1fcc] sm:$0xf0]  ;;  %v14524_v35 = vld [vmem:[#allocation2 + $0x1fa0] sm:$0xf] }
 0x3d3   :  { %7466 = vmatpush.bf16.msrb.mxu0 %v13881_v1  ;;  %v17660_v12 = vmax.f32 %v5071_v24, %v7252_v47  ;;  %v14214_v1 = vld [vmem:[#allocation2 + $0x1d38] sm:$0xf0]  ;;  %v13833_v37 = vor.u32 %v16623_v28, %v13830_v29  ;;  %v7240_v48 = vpop.f32.mrf.mxu2  ;;  %v14428_v24 = vld [vmem:[#allocation2 + $0x1ee0] sm:$0xf]  ;;  %v16868_v28 = vld [vmem:[#allocation2 + $0x21cc] sm:$0xf0]  ;;  %v14413_v29 = vor.u32 %v16772_v9, %v14412_v25  ;;  %v14541_v30 = vor.u32 %v16804_v43, %v14540_v32 }
 0x3d4   :  { %v14217_v55 = vor.u32 %v16719_v36, %v14214_v1  ;;  %v14429_v14 = vor.u32 %v16776_v61, %v14428_v24  ;;  %v14668_v47 = vld [vmem:[#allocation2 + $0x20c0] sm:$0xf]  ;;  %v16800_v1 = vld [vmem:[#allocation2 + $0x1fac] sm:$0xf0] }
 0x3d5   :  { %7479 = vmatpush.bf16.msrb.mxu1 %v14009_v39  ;;  %7492 = vmatpush.bf16.msrb.mxu2 %v14137_v40  ;;  %v16619_v39 = vld [vmem:[#allocation2 + $0x1a0c] sm:$0xf]  ;;  %v13814_v40 = vld [vmem:[#allocation2 + $0x1a18] sm:$0xf0]  ;;  %v16796_v10 = vld [vmem:[#allocation2 + $0x1f8c] sm:$0xf0] }
 0x3d6   :  { %7505 = vmatpush.bf16.msrb.mxu3 %v14265_v52  ;;  %v13942_v52 = vld [vmem:[#allocation2 + $0x1b18] sm:$0xf0]  ;;  %v14636_v48 = vld [vmem:[#allocation2 + $0x2080] sm:$0xf]  ;;  %v16828_v24 = vld [vmem:[#allocation2 + $0x208c] sm:$0xf0] }
 0x3d7   :  { %7467 = vmatpush.bf16.msrb.mxu0 %v13865_v62  ;;  %v7253_v62 = vpop.f32.mrf.mxu3  ;;  %v13945_v11 = vor.u32 %v16651_v51, %v13942_v52  ;;  %v14525_v51 = vor.u32 %v16800_v1, %v14524_v35  ;;  %v14764_v61 = vld [vmem:[#allocation2 + $0x2180] sm:$0xf]  ;;  %v14637_v63 = vor.u32 %v16828_v24, %v14636_v48  ;;  %v16856_v9 = vld [vmem:[#allocation2 + $0x216c] sm:$0xf0] }
 0x3d8   :  { %v14364_v2 = vld [vmem:[#allocation2 + $0x1e60] sm:$0xf]  ;;  %v16852_v1 = vld [vmem:[#allocation2 + $0x214c] sm:$0xf0] }
 0x3d9   :  { %7480 = vmatpush.bf16.msrb.mxu1 %v13993_v3  ;;  %7493 = vmatpush.bf16.msrb.mxu2 %v14121_v16  ;;  %v13817_v3 = vor.u32 %v16619_v39, %v13814_v40  ;;  %v16808_v16 = vld [vmem:[#allocation2 + $0x1fec] sm:$0xf0]  ;;  %v14780_v40 = vld [vmem:[#allocation2 + $0x21a0] sm:$0xf] }
 0x3da   :  { %7506 = vmatpush.bf16.msrb.mxu3 %v14249_v7  ;;  %v14073_v7 = vor.u32 %v16683_v54, %v14070_v56  ;;  %v14557_v15 = vor.u32 %v16808_v16, %v14556_v0  ;;  %v16832_v39 = vld [vmem:[#allocation2 + $0x20ac] sm:$0xf0]  ;;  %v14380_v54 = vld [vmem:[#allocation2 + $0x1e80] sm:$0xf] }
 0x3db   :  { %7468 = vmatpush.bf16.msrb.mxu0 %v13849_v18  ;;  %v14813_v18 = vor.u32 %v16872_v60, %v14812_v8  ;;  %v14508_v56 = vld [vmem:[#allocation2 + $0x1f80] sm:$0xf]  ;;  %v16860_v0 = vld [vmem:[#allocation2 + $0x218c] sm:$0xf0] }
 0x3dc   :  { %v14509_v16 = vor.u32 %v16796_v10, %v14508_v56  ;;  %v14765_v60 = vor.u32 %v16860_v0, %v14764_v61  ;;  %v14748_v25 = vld [vmem:[#allocation2 + $0x2160] sm:$0xf]  ;;  %v16816_v48 = vld [vmem:[#allocation2 + $0x202c] sm:$0xf0] }
 0x3dd   :  { %7481 = vmatpush.bf16.msrb.mxu1 %v13977_v23  ;;  %7494 = vmatpush.bf16.msrb.mxu2 %v14105_v27  ;;  %v16836_v23 = vld [vmem:[#allocation2 + $0x20cc] sm:$0xf0]  ;;  %v14796_v27 = vld [vmem:[#allocation2 + $0x21c0] sm:$0xf] }
 0x3de   :  { %7507 = vmatpush.bf16.msrb.mxu3 %v14233_v31  ;;  %v14669_v31 = vor.u32 %v16836_v23, %v14668_v47  ;;  %v14797_v36 = vor.u32 %v16868_v28, %v14796_v27  ;;  %v14348_v47 = vld [vmem:[#allocation2 + $0x1e40] sm:$0xf]  ;;  %v16756_v23 = vld [vmem:[#allocation2 + $0x1e4c] sm:$0xf0] }
 0x3df   :  { %7469 = vmatpush.bf16.msrb.mxu0 %v13833_v37  ;;  %v14652_v37 = vld [vmem:[#allocation2 + $0x20a0] sm:$0xf]  ;;  %v16848_v61 = vld [vmem:[#allocation2 + $0x212c] sm:$0xf0] }
 0x3e0   :  { %v14653_v52 = vor.u32 %v16832_v39, %v14652_v37  ;;  %v14476_v27 = vld [vmem:[#allocation2 + $0x1f40] sm:$0xf]  ;;  %v14349_v37 = vor.u32 %v16756_v23, %v14348_v47  ;;  %v16968_v23 = vld [vmem:[#allocation2 + $0x24ec] sm:$0xf0] }
 0x3e1   :  { %7482 = vmatpush.bf16.msrb.mxu1 %v13961_v45  ;;  %7495 = vmatpush.bf16.msrb.mxu2 %v14089_v50  ;;  %v16864_v45 = vld [vmem:[#allocation2 + $0x21ac] sm:$0xf0]  ;;  %v14397_v50 = vor.u32 %v16768_v34, %v14396_v33  ;;  %v14588_v10 = vld [vmem:[#allocation2 + $0x2020] sm:$0xf] }
 0x3e2   :  { %7508 = vmatpush.bf16.msrb.mxu3 %v14217_v55  ;;  %v16764_v55 = vld [vmem:[#allocation2 + $0x1e8c] sm:$0xf0]  ;;  %v14781_v58 = vor.u32 %v16864_v45, %v14780_v40  ;;  %v14716_v24 = vld [vmem:[#allocation2 + $0x2120] sm:$0xf] }
 0x3e3   :  { %7470 = vmatpush.bf16.msrb.mxu0 %v13817_v3  ;;  %v14381_v62 = vor.u32 %v16764_v55, %v14380_v54  ;;  %v7264_v3 = vpop.f32.mrf.mxu0  ;;  %v16820_v33 = vld [vmem:[#allocation2 + $0x204c] sm:$0xf0]  ;;  %v14460_v54 = vld [vmem:[#allocation2 + $0x1f20] sm:$0xf] }
 0x3e4   :  { %v15196_v47 = vld [vmem:[#allocation2 + $0x24e0] sm:$0xf] }
 0x3e5   :  { %7483 = vmatpush.bf16.msrb.mxu1 %v13945_v11  ;;  %7496 = vmatpush.bf16.msrb.mxu2 %v14073_v7  ;;  %v16760_v11 = vld [vmem:[#allocation2 + $0x1e6c] sm:$0xf0]  ;;  %v14492_v7 = vld [vmem:[#allocation2 + $0x1f60] sm:$0xf]  ;;  %v7277_v8 = vpop.f32.mrf.mxu1 }
 0x3e6   :  { %7509 = vmatpush.bf16.msrb.mxu3 %v14201_v5  ;;  %7471 = vmatmul.bf16.vlgmr.msrb.gmra.mxu0 %v17441_v38  ;;  %v16792_v5 = vld [vmem:[#allocation2 + $0x1f6c] sm:$0xf0]  ;;  %v14365_v32 = vor.u32 %v16760_v11, %v14364_v2  ;;  %v14444_v2 = vld [vmem:[#allocation2 + $0x1f00] sm:$0xf] }
 0x3e7   :  { %9440 = vmatpush.bf16.msra.mxu0 %v14429_v14  ;;  %v14620_v14 = vld [vmem:[#allocation2 + $0x2060] sm:$0xf]  ;;  %v16780_v11 = vld [vmem:[#allocation2 + $0x1f0c] sm:$0xf0] }
 0x3e8   :  { %7497 = vmatmul.bf16.vlgmr.msrb.gmra.mxu2 %v17456_v22  ;;  %7484 = vmatmul.bf16.vlgmr.msrb.gmra.mxu1 %v17445_v42 }
 0x3e9   :  { %9453 = vmatpush.bf16.msra.mxu1 %v14557_v15  ;;  %9466 = vmatpush.bf16.msra.mxu2 %v14685_v17  ;;  %v16824_v15 = vld [vmem:[#allocation2 + $0x206c] sm:$0xf0]  ;;  %v7278_v17 = vadd.f32 %v7277_v8, %v7264_v3 }
 0x3ea   :  { %9479 = vmatpush.bf16.msra.mxu3 %v14813_v18  ;;  %v14493_v18 = vor.u32 %v16792_v5, %v14492_v7  ;;  %v14621_v43 = vor.u32 %v16824_v15, %v14620_v14  ;;  %v16748_v3 = vld [vmem:[#allocation2 + $0x1e0c] sm:$0xf0]  ;;  %v14572_v7 = vld [vmem:[#allocation2 + $0x2000] sm:$0xf] }
 0x3eb   :  { %7510 = vmatmul.bf16.vlgmr.msrb.gmra.mxu3 %v17458_v26  ;;  %9441 = vmatpush.bf16.msra.mxu0 %v14413_v29  ;;  %v7290_v28 = vpop.f32.mrf.mxu2  ;;  %v14749_v29 = vor.u32 %v16856_v9, %v14748_v25  ;;  %v7266_v40 = vpop.f32.mrf.mxu0  ;;  %v16812_v5 = vld [vmem:[#allocation2 + $0x200c] sm:$0xf0]  ;;  %v14700_v14 = vld [vmem:[#allocation2 + $0x2100] sm:$0xf] }
 0x3ec   :  { %v7291_v34 = vadd.f32 %v7290_v28, %v7278_v17  ;;  %v16844_v15 = vld [vmem:[#allocation2 + $0x210c] sm:$0xf0]  ;;  %v14940_v25 = vld [vmem:[#allocation2 + $0x22e0] sm:$0xf]  ;;  %v14573_v28 = vor.u32 %v16812_v5, %v14572_v7 }
 0x3ed   :  { %9454 = vmatpush.bf16.msra.mxu1 %v14541_v30  ;;  %9467 = vmatpush.bf16.msra.mxu2 %v14669_v31  ;;  %v16788_v30 = vld [vmem:[#allocation2 + $0x1f4c] sm:$0xf0]  ;;  %v14604_v31 = vld [vmem:[#allocation2 + $0x2040] sm:$0xf]  ;;  %v7279_v55 = vpop.f32.mrf.mxu1 }
 0x3ee   :  { %9480 = vmatpush.bf16.msra.mxu3 %v14797_v36  ;;  %v7303_v35 = vpop.f32.mrf.mxu3  ;;  %v14732_v36 = vld [vmem:[#allocation2 + $0x2140] sm:$0xf]  ;;  %v14477_v45 = vor.u32 %v16788_v30, %v14476_v27  ;;  %v16904_v9 = vld [vmem:[#allocation2 + $0x22ec] sm:$0xf0]  ;;  %v14445_v27 = vor.u32 %v16780_v11, %v14444_v2 }
 0x3ef   :  { %9442 = vmatpush.bf16.msra.mxu0 %v14397_v50  ;;  %v17666_v39 = vadd.f32 %v7303_v35, %v7291_v34  ;;  %v14605_v50 = vor.u32 %v16820_v33, %v14604_v31  ;;  %v14733_v56 = vor.u32 %v16852_v1, %v14732_v36  ;;  %v17000_v30 = vld [vmem:[#allocation2 + $0x25ec] sm:$0xf0]  ;;  %v14701_v31 = vor.u32 %v16844_v15, %v14700_v14  ;;  %v14924_v36 = vld [vmem:[#allocation2 + $0x22c0] sm:$0xf] }
 0x3f0   :  { %v14941_v33 = vor.u32 %v16904_v9, %v14940_v25  ;;  %v15197_v35 = vor.u32 %v16968_v23, %v15196_v47  ;;  %v16900_v1 = vld [vmem:[#allocation2 + $0x22cc] sm:$0xf0]  ;;  %v15020_v5 = vld [vmem:[#allocation2 + $0x2380] sm:$0xf] }
 0x3f1   :  { %9455 = vmatpush.bf16.msra.mxu1 %v14525_v51  ;;  %9468 = vmatpush.bf16.msra.mxu2 %v14653_v52  ;;  %v14332_v51 = vld [vmem:[#allocation2 + $0x1e20] sm:$0xf]  ;;  %v16752_v52 = vld [vmem:[#allocation2 + $0x1e2c] sm:$0xf0]  ;;  %v14925_v55 = vor.u32 %v16900_v1, %v14924_v36 }
 0x3f2   :  { %9481 = vmatpush.bf16.msra.mxu3 %v14781_v58  ;;  %v16784_v58 = vld [vmem:[#allocation2 + $0x1f2c] sm:$0xf0]  ;;  %v14333_v0 = vor.u32 %v16752_v52, %v14332_v51  ;;  %v15308_v52 = vld [vmem:[#allocation2 + $0x25c0] sm:$0xf] }
 0x3f3   :  { %9443 = vmatpush.bf16.msra.mxu0 %v14381_v62  ;;  %v14316_v62 = vld [vmem:[#allocation2 + $0x1e00] sm:$0xf]  ;;  %v7292_v8 = vpop.f32.mrf.mxu2  ;;  %v16964_v51 = vld [vmem:[#allocation2 + $0x24cc] sm:$0xf0] }
 0x3f4   :  { %v14892_v8 = vld [vmem:[#allocation2 + $0x2280] sm:$0xf]  ;;  %v16924_v15 = vld [vmem:[#allocation2 + $0x238c] sm:$0xf0] }
 0x3f5   :  { %9456 = vmatpush.bf16.msra.mxu1 %v14509_v16  ;;  %9469 = vmatpush.bf16.msra.mxu2 %v14637_v63  ;;  %v14461_v16 = vor.u32 %v16784_v58, %v14460_v54  ;;  %v14589_v63 = vor.u32 %v16816_v48, %v14588_v10  ;;  %v16996_v54 = vld [vmem:[#allocation2 + $0x25cc] sm:$0xf0]  ;;  %v14908_v10 = vld [vmem:[#allocation2 + $0x22a0] sm:$0xf]  ;;  %v15021_v47 = vor.u32 %v16924_v15, %v15020_v5 }
 0x3f6   :  { %9482 = vmatpush.bf16.msra.mxu3 %v14765_v60  ;;  %v14717_v60 = vor.u32 %v16848_v61, %v14716_v24  ;;  %v7305_v17 = vpop.f32.mrf.mxu3  ;;  %v16896_v48 = vld [vmem:[#allocation2 + $0x22ac] sm:$0xf0]  ;;  %v15036_v24 = vld [vmem:[#allocation2 + $0x23a0] sm:$0xf]  ;;  %v15309_v61 = vor.u32 %v16996_v54, %v15308_v52 }
 0x3f7   :  { %9444 = vmatpush.bf16.msra.mxu0 %v14365_v32  ;;  %v15068_v32 = vld [vmem:[#allocation2 + $0x23e0] sm:$0xf]  ;;  %v14909_v2 = vor.u32 %v16896_v48, %v14908_v10  ;;  %v16956_v25 = vld [vmem:[#allocation2 + $0x248c] sm:$0xf0] }
 0x3f8   :  { %v15148_v17 = vld [vmem:[#allocation2 + $0x2480] sm:$0xf]  ;;  %v16952_v36 = vld [vmem:[#allocation2 + $0x246c] sm:$0xf0] }
 0x3f9   :  { %9457 = vmatpush.bf16.msra.mxu1 %v14493_v18  ;;  %9470 = vmatpush.bf16.msra.mxu2 %v14621_v43  ;;  %v14317_v18 = vor.u32 %v16748_v3, %v14316_v62  ;;  %v16936_v43 = vld [vmem:[#allocation2 + $0x23ec] sm:$0xf0]  ;;  %v15164_v62 = vld [vmem:[#allocation2 + $0x24a0] sm:$0xf]  ;;  %v15149_v23 = vor.u32 %v16956_v25, %v15148_v17 }
 0x3fa   :  { %9483 = vmatpush.bf16.msra.mxu3 %v14749_v29  ;;  %v15324_v29 = vld [vmem:[#allocation2 + $0x25e0] sm:$0xf]  ;;  %v15069_v34 = vor.u32 %v16936_v43, %v15068_v32  ;;  %v16960_v3 = vld [vmem:[#allocation2 + $0x24ac] sm:$0xf0] }
 0x3fb   :  { %9445 = vmatpush.bf16.msra.mxu0 %v14349_v37  ;;  %v15052_v37 = vld [vmem:[#allocation2 + $0x23c0] sm:$0xf]  ;;  %v15325_v40 = vor.u32 %v17000_v30, %v15324_v29  ;;  %v15165_v7 = vor.u32 %v16960_v3, %v15164_v62  ;;  %v16988_v32 = vld [vmem:[#allocation2 + $0x258c] sm:$0xf0] }
 0x3fc   :  { %v15276_v9 = vld [vmem:[#allocation2 + $0x2580] sm:$0xf]  ;;  %v16884_v54 = vld [vmem:[#allocation2 + $0x224c] sm:$0xf0] }
 0x3fd   :  { %9458 = vmatpush.bf16.msra.mxu1 %v14477_v45  ;;  %9471 = vmatpush.bf16.msra.mxu2 %v14605_v50  ;;  %v16932_v45 = vld [vmem:[#allocation2 + $0x23cc] sm:$0xf0]  ;;  %v15180_v50 = vld [vmem:[#allocation2 + $0x24c0] sm:$0xf] }
 0x3fe   :  { %9484 = vmatpush.bf16.msra.mxu3 %v14733_v56  ;;  %v15053_v56 = vor.u32 %v16932_v45, %v15052_v37  ;;  %v15181_v58 = vor.u32 %v16964_v51, %v15180_v50  ;;  %v15004_v29 = vld [vmem:[#allocation2 + $0x2360] sm:$0xf]  ;;  %v16984_v37 = vld [vmem:[#allocation2 + $0x256c] sm:$0xf0] }
 0x3ff   :  { %9446 = vmatpush.bf16.msra.mxu0 %v14333_v0  ;;  %v16928_v0 = vld [vmem:[#allocation2 + $0x23ac] sm:$0xf0]  ;;  %v15260_v1 = vld [vmem:[#allocation2 + $0x2560] sm:$0xf] }
 0x400   :  { %v15037_v11 = vor.u32 %v16928_v0, %v15036_v24  ;;  %v14860_v52 = vld [vmem:[#allocation2 + $0x2240] sm:$0xf]  ;;  %v16948_v48 = vld [vmem:[#allocation2 + $0x244c] sm:$0xf0] }
 0x401   :  { %9459 = vmatpush.bf16.msra.mxu1 %v14461_v16  ;;  %9472 = vmatpush.bf16.msra.mxu2 %v14589_v63  ;;  %v15292_v16 = vld [vmem:[#allocation2 + $0x25a0] sm:$0xf]  ;;  %v16992_v63 = vld [vmem:[#allocation2 + $0x25ac] sm:$0xf0]  ;;  %v14861_v3 = vor.u32 %v16884_v54, %v14860_v52  ;;  %v16774_v52 = vld [vmem:[#allocation2 + $0x1ee4] sm:$0xf] }
 0x402   :  { %9485 = vmatpush.bf16.msra.mxu3 %v14717_v60  ;;  %v16892_v60 = vld [vmem:[#allocation2 + $0x228c] sm:$0xf0]  ;;  %v15293_v14 = vor.u32 %v16992_v63, %v15292_v16  ;;  %v15116_v10 = vld [vmem:[#allocation2 + $0x2440] sm:$0xf]  ;;  %v14430_v54 = vld [vmem:[#allocation2 + $0x1ef0] sm:$0xf0] }
 0x403   :  { %9447 = vmatpush.bf16.msra.mxu0 %v14317_v18  ;;  %v14893_v18 = vor.u32 %v16892_v60, %v14892_v8  ;;  %v7316_v43 = vpop.f32.mrf.mxu0  ;;  %v15244_v0 = vld [vmem:[#allocation2 + $0x2540] sm:$0xf]  ;;  %v16980_v62 = vld [vmem:[#allocation2 + $0x254c] sm:$0xf0] }
 0x404   :  { %v7317_v30 = vadd.f32 %v7316_v43, %v17666_v39  ;;  %v15261_v39 = vor.u32 %v16984_v37, %v15260_v1  ;;  %v16880_v8 = vld [vmem:[#allocation2 + $0x222c] sm:$0xf0]  ;;  %v14972_v60 = vld [vmem:[#allocation2 + $0x2320] sm:$0xf] }
 0x405   :  { %9460 = vmatpush.bf16.msra.mxu1 %v14445_v27  ;;  %9473 = vmatpush.bf16.msra.mxu2 %v14573_v28  ;;  %v14876_v27 = vld [vmem:[#allocation2 + $0x2260] sm:$0xf]  ;;  %v16888_v28 = vld [vmem:[#allocation2 + $0x226c] sm:$0xf0] }
 0x406   :  { %9486 = vmatpush.bf16.msra.mxu3 %v14701_v31  ;;  %9448 = vmatmul.bf16.vlgmr.msra.gmra.mxu0 %v17428_v20  ;;  %v7329_v31 = vpop.f32.mrf.mxu1  ;;  %v14877_v45 = vor.u32 %v16888_v28, %v14876_v27  ;;  %v16912_v15 = vld [vmem:[#allocation2 + $0x232c] sm:$0xf0]  ;;  %v15100_v17 = vld [vmem:[#allocation2 + $0x2420] sm:$0xf] }
 0x407   :  { %9492 = vmatpush.bf16.msrb.mxu0 %v14941_v33  ;;  %v15277_v33 = vor.u32 %v16988_v32, %v15276_v9  ;;  %v16944_v25 = vld [vmem:[#allocation2 + $0x242c] sm:$0xf0]  ;;  %v15228_v9 = vld [vmem:[#allocation2 + $0x2520] sm:$0xf] }
 0x408   :  { %9474 = vmatmul.bf16.vlgmr.msra.gmra.mxu2 %v17420_v4  ;;  %9461 = vmatmul.bf16.vlgmr.msra.gmra.mxu1 %v17431_v21  ;;  %v16976_v32 = vld [vmem:[#allocation2 + $0x252c] sm:$0xf0]  ;;  %v14828_v43 = vld [vmem:[#allocation2 + $0x2200] sm:$0xf]  ;;  %v15101_v27 = vor.u32 %v16944_v25, %v15100_v17 }
 0x409   :  { %9505 = vmatpush.bf16.msrb.mxu1 %v15069_v34  ;;  %9518 = vmatpush.bf16.msrb.mxu2 %v15197_v35  ;;  %v16920_v34 = vld [vmem:[#allocation2 + $0x236c] sm:$0xf0]  ;;  %v15132_v35 = vld [vmem:[#allocation2 + $0x2460] sm:$0xf] }
 0x40a   :  { %9531 = vmatpush.bf16.msrb.mxu3 %v15325_v40  ;;  %v7330_v40 = vadd.f32 %v7329_v31, %v7317_v30  ;;  %v15005_v50 = vor.u32 %v16920_v34, %v15004_v29  ;;  %v15133_v51 = vor.u32 %v16952_v36, %v15132_v35  ;;  %v14956_v28 = vld [vmem:[#allocation2 + $0x2300] sm:$0xf]  ;;  %v16908_v29 = vld [vmem:[#allocation2 + $0x230c] sm:$0xf0] }
 0x40b   :  { %9487 = vmatmul.bf16.vlgmr.msra.gmra.mxu3 %v17425_v6  ;;  %9493 = vmatpush.bf16.msrb.mxu0 %v14925_v55  ;;  %v14988_v55 = vld [vmem:[#allocation2 + $0x2340] sm:$0xf]  ;;  %v7318_v63 = vpop.f32.mrf.mxu0  ;;  %v16940_v34 = vld [vmem:[#allocation2 + $0x240c] sm:$0xf0] }
 0x40c   :  { %v15084_v30 = vld [vmem:[#allocation2 + $0x2400] sm:$0xf]  ;;  %v16972_v36 = vld [vmem:[#allocation2 + $0x250c] sm:$0xf0] }
 0x40d   :  { %9506 = vmatpush.bf16.msrb.mxu1 %v15053_v56  ;;  %9519 = vmatpush.bf16.msrb.mxu2 %v15181_v58  ;;  %v7342_v56 = vpop.f32.mrf.mxu2  ;;  %v16916_v58 = vld [vmem:[#allocation2 + $0x234c] sm:$0xf0]  ;;  %v15212_v35 = vld [vmem:[#allocation2 + $0x2500] sm:$0xf] }
 0x40e   :  { %9532 = vmatpush.bf16.msrb.mxu3 %v15309_v61  ;;  %v7343_v24 = vadd.f32 %v7342_v56, %v7330_v40  ;;  %v7355_v61 = vpop.f32.mrf.mxu3  ;;  %v7331_v5 = vpop.f32.mrf.mxu1  ;;  %v15452_v37 = vld [vmem:[#allocation2 + $0x26e0] sm:$0xf]  ;;  %v17032_v40 = vld [vmem:[#allocation2 + $0x26ec] sm:$0xf0]  ;;  %v15085_v56 = vor.u32 %v16940_v34, %v15084_v30 }
 0x40f   :  { %9494 = vmatpush.bf16.msrb.mxu0 %v14909_v2  ;;  %v14989_v2 = vor.u32 %v16916_v58, %v14988_v55  ;;  %v14957_v55 = vor.u32 %v16908_v29, %v14956_v28  ;;  %v14558_v58 = vld [vmem:[#allocation2 + $0x1ff0] sm:$0xf0]  ;;  %v15420_v17 = vld [vmem:[#allocation2 + $0x26a0] sm:$0xf]  ;;  %v17024_v25 = vld [vmem:[#allocation2 + $0x26ac] sm:$0xf0] }
 0x410   :  { %v17673_v16 = vadd.f32 %v7355_v61, %v7343_v24  ;;  %v14433_v61 = vor.u32 %v16774_v52, %v14430_v54  ;;  %v15421_v28 = vor.u32 %v17024_v25, %v15420_v17  ;;  %v15532_v34 = vld [vmem:[#allocation2 + $0x2780] sm:$0xf]  ;;  %v16754_v17 = vld [vmem:[#allocation2 + $0x1e44] sm:$0xf]  ;;  %v14350_v25 = vld [vmem:[#allocation2 + $0x1e50] sm:$0xf0] }
 0x411   :  { %9507 = vmatpush.bf16.msrb.mxu1 %v15037_v11  ;;  %9520 = vmatpush.bf16.msrb.mxu2 %v15165_v7  ;;  %v15117_v11 = vor.u32 %v16948_v48, %v15116_v10  ;;  %v14844_v7 = vld [vmem:[#allocation2 + $0x2220] sm:$0xf]  ;;  %v15213_v10 = vor.u32 %v16972_v36, %v15212_v35  ;;  %v15453_v48 = vor.u32 %v17032_v40, %v15452_v37  ;;  %v17052_v36 = vld [vmem:[#allocation2 + $0x278c] sm:$0xf0]  ;;  %v14382_v37 = vld [vmem:[#allocation2 + $0x1e90] sm:$0xf0] }
 0x412   :  { %9533 = vmatpush.bf16.msrb.mxu3 %v15293_v14  ;;  %v15245_v14 = vor.u32 %v16980_v62, %v15244_v0  ;;  %v15436_v0 = vld [vmem:[#allocation2 + $0x26c0] sm:$0xf]  ;;  %v17028_v62 = vld [vmem:[#allocation2 + $0x26cc] sm:$0xf0] }
 0x413   :  { %9495 = vmatpush.bf16.msrb.mxu0 %v14893_v18  ;;  %v14845_v18 = vor.u32 %v16880_v8, %v14844_v7  ;;  %v14414_v7 = vld [vmem:[#allocation2 + $0x1ed0] sm:$0xf0]  ;;  %v16802_v8 = vld [vmem:[#allocation2 + $0x1fc4] sm:$0xf]  ;;  %v15437_v5 = vor.u32 %v17028_v62, %v15436_v0 }
 0x414   :  { %v16758_v0 = vld [vmem:[#allocation2 + $0x1e64] sm:$0xf]  ;;  %v14366_v62 = vld [vmem:[#allocation2 + $0x1e70] sm:$0xf0] }
 0x415   :  { %9508 = vmatpush.bf16.msrb.mxu1 %v15021_v47  ;;  %9521 = vmatpush.bf16.msrb.mxu2 %v15149_v23  ;;  %v16876_v47 = vld [vmem:[#allocation2 + $0x220c] sm:$0xf0]  ;;  %v14973_v23 = vor.u32 %v16912_v15, %v14972_v60  ;;  %v7344_v31 = vpop.f32.mrf.mxu2  ;;  %v14542_v60 = vld [vmem:[#allocation2 + $0x1fd0] sm:$0xf0] }
 0x416   :  { %9534 = vmatpush.bf16.msrb.mxu3 %v15277_v33  ;;  %v15229_v33 = vor.u32 %v16976_v32, %v15228_v9  ;;  %v7357_v1 = vpop.f32.mrf.mxu3  ;;  %v15548_v9 = vld [vmem:[#allocation2 + $0x27a0] sm:$0xf]  ;;  %v14545_v32 = vor.u32 %v16802_v8, %v14542_v60  ;;  %v17012_v60 = vld [vmem:[#allocation2 + $0x264c] sm:$0xf0] }
 0x417   :  { %9496 = vmatpush.bf16.msrb.mxu0 %v14877_v45  ;;  %v15580_v45 = vld [vmem:[#allocation2 + $0x27e0] sm:$0xf]  ;;  %v16762_v1 = vld [vmem:[#allocation2 + $0x1e84] sm:$0xf] }
 0x418   :  { %v15404_v31 = vld [vmem:[#allocation2 + $0x2680] sm:$0xf] }
 0x419   :  { %9509 = vmatpush.bf16.msrb.mxu1 %v15005_v50  ;;  %9522 = vmatpush.bf16.msrb.mxu2 %v15133_v51  ;;  %v14829_v50 = vor.u32 %v16876_v47, %v14828_v43  ;;  %v17064_v51 = vld [vmem:[#allocation2 + $0x27ec] sm:$0xf0]  ;;  %v16766_v43 = vld [vmem:[#allocation2 + $0x1ea4] sm:$0xf]  ;;  %v14398_v47 = vld [vmem:[#allocation2 + $0x1eb0] sm:$0xf0] }
 0x41a   :  { %9535 = vmatpush.bf16.msrb.mxu3 %v15261_v39  ;;  %v16806_v39 = vld [vmem:[#allocation2 + $0x1fe4] sm:$0xf]  ;;  %v15581_v24 = vor.u32 %v17064_v51, %v15580_v45  ;;  %v14401_v30 = vor.u32 %v16766_v43, %v14398_v47  ;;  %v15372_v8 = vld [vmem:[#allocation2 + $0x2640] sm:$0xf] }
 0x41b   :  { %9497 = vmatpush.bf16.msrb.mxu0 %v14861_v3  ;;  %v15564_v3 = vld [vmem:[#allocation2 + $0x27c0] sm:$0xf]  ;;  %v14561_v63 = vor.u32 %v16806_v39, %v14558_v58  ;;  %v16794_v45 = vld [vmem:[#allocation2 + $0x1f84] sm:$0xf]  ;;  %v17016_v58 = vld [vmem:[#allocation2 + $0x266c] sm:$0xf0]  ;;  %v15373_v13 = vor.u32 %v17012_v60, %v15372_v8 }
 0x41c   :  { %v15388_v39 = vld [vmem:[#allocation2 + $0x2660] sm:$0xf]  ;;  %v16934_v60 = vld [vmem:[#allocation2 + $0x23e4] sm:$0xf] }
 0x41d   :  { %9510 = vmatpush.bf16.msrb.mxu1 %v14989_v2  ;;  %9523 = vmatpush.bf16.msrb.mxu2 %v15117_v11  ;;  %v17060_v2 = vld [vmem:[#allocation2 + $0x27cc] sm:$0xf0]  ;;  %v16770_v11 = vld [vmem:[#allocation2 + $0x1ec4] sm:$0xf] }
 0x41e   :  { %9536 = vmatpush.bf16.msrb.mxu3 %v15245_v14  ;;  %v15565_v14 = vor.u32 %v17060_v2, %v15564_v3  ;;  %v14417_v15 = vor.u32 %v16770_v11, %v14414_v7  ;;  %v16790_v3 = vld [vmem:[#allocation2 + $0x1f64] sm:$0xf]  ;;  %v15389_v2 = vor.u32 %v17016_v58, %v15388_v39  ;;  %v14369_v7 = vor.u32 %v16758_v0, %v14366_v62  ;;  %v14318_v39 = vld [vmem:[#allocation2 + $0x1e10] sm:$0xf0] }
 0x41f   :  { %9498 = vmatpush.bf16.msrb.mxu0 %v14845_v18  ;;  %v17056_v18 = vld [vmem:[#allocation2 + $0x27ac] sm:$0xf0]  ;;  %v16778_v58 = vld [vmem:[#allocation2 + $0x1f04] sm:$0xf] }
 0x420   :  { %v15549_v29 = vor.u32 %v17056_v18, %v15548_v9  ;;  %v14478_v18 = vld [vmem:[#allocation2 + $0x1f50] sm:$0xf0]  ;;  %v16870_v0 = vld [vmem:[#allocation2 + $0x21e4] sm:$0xf] }
 0x421   :  { %9511 = vmatpush.bf16.msrb.mxu1 %v14973_v23  ;;  %9524 = vmatpush.bf16.msrb.mxu2 %v15101_v27  ;;  %v16798_v23 = vld [vmem:[#allocation2 + $0x1fa4] sm:$0xf]  ;;  %v14526_v27 = vld [vmem:[#allocation2 + $0x1fb0] sm:$0xf0] }
 0x422   :  { %9537 = vmatpush.bf16.msrb.mxu3 %v15229_v33  ;;  %v17020_v33 = vld [vmem:[#allocation2 + $0x268c] sm:$0xf0]  ;;  %v14529_v35 = vor.u32 %v16798_v23, %v14526_v27  ;;  %v14353_v27 = vor.u32 %v16754_v17, %v14350_v25 }
 0x423   :  { %9499 = vmatpush.bf16.msrb.mxu0 %v14829_v50  ;;  %v7368_v40 = vpop.f32.mrf.mxu0  ;;  %v14510_v50 = vld [vmem:[#allocation2 + $0x1f90] sm:$0xf0]  ;;  %v15405_v52 = vor.u32 %v17020_v33, %v15404_v31  ;;  %v17040_v33 = vld [vmem:[#allocation2 + $0x272c] sm:$0xf0] }
 0x424   :  { %v7369_v51 = vadd.f32 %v7368_v40, %v17673_v16  ;;  %v15340_v40 = vld [vmem:[#allocation2 + $0x2600] sm:$0xf] }
 0x425   :  { %9512 = vmatpush.bf16.msrb.mxu1 %v14957_v55  ;;  %9525 = vmatpush.bf16.msrb.mxu2 %v15085_v56  ;;  %v7381_v54 = vpop.f32.mrf.mxu1  ;;  %v15533_v55 = vor.u32 %v17052_v36, %v15532_v34  ;;  %v14385_v56 = vor.u32 %v16762_v1, %v14382_v37  ;;  %v16750_v34 = vld [vmem:[#allocation2 + $0x1e24] sm:$0xf]  ;;  %v14462_v1 = vld [vmem:[#allocation2 + $0x1f30] sm:$0xf0] }
 0x426   :  { %9538 = vmatpush.bf16.msrb.mxu3 %v15213_v10  ;;  %9500 = vmatmul.bf16.vlgmr.msrb.gmra.mxu0 %v17443_v41  ;;  %v15516_v10 = vld [vmem:[#allocation2 + $0x2760] sm:$0xf]  ;;  %v16782_v36 = vld [vmem:[#allocation2 + $0x1f24] sm:$0xf] }
 0x427   :  { %9544 = vmatpush.bf16.msra.mxu0 %v15453_v48  ;;  %v14513_v48 = vor.u32 %v16794_v45, %v14510_v50  ;;  %v17004_v45 = vld [vmem:[#allocation2 + $0x260c] sm:$0xf0] }
 0x428   :  { %9526 = vmatmul.bf16.vlgmr.msrb.gmra.mxu2 %v17441_v38  ;;  %9513 = vmatmul.bf16.vlgmr.msrb.gmra.mxu1 %v17447_v44 }
 0x429   :  { %9557 = vmatpush.bf16.msra.mxu1 %v15581_v24  ;;  %9570 = vmatpush.bf16.msra.mxu2 %v14433_v61  ;;  %v7382_v24 = vadd.f32 %v7381_v54, %v7369_v51  ;;  %v17048_v61 = vld [vmem:[#allocation2 + $0x276c] sm:$0xf0] }
 0x42a   :  { %9583 = vmatpush.bf16.msra.mxu3 %v14561_v63  ;;  %v14494_v63 = vld [vmem:[#allocation2 + $0x1f70] sm:$0xf0]  ;;  %v15517_v11 = vor.u32 %v17048_v61, %v15516_v10  ;;  %v17036_v54 = vld [vmem:[#allocation2 + $0x270c] sm:$0xf0] }
 0x42b   :  { %9539 = vmatmul.bf16.vlgmr.msrb.gmra.mxu3 %v17445_v42  ;;  %9545 = vmatpush.bf16.msra.mxu0 %v15437_v5  ;;  %v17683_v16 = vmax.f32 %v5072_v19, %v7382_v24  ;;  %v15500_v5 = vld [vmem:[#allocation2 + $0x2740] sm:$0xf]  ;;  %v7394_v9 = vpop.f32.mrf.mxu2  ;;  %v7370_v57 = vpop.f32.mrf.mxu0  ;;  %v14446_v10 = vld [vmem:[#allocation2 + $0x1f10] sm:$0xf0]  ;;  %v16838_v24 = vld [vmem:[#allocation2 + $0x20e4] sm:$0xf] }
 0x42c   :  { %v14686_v61 = vld [vmem:[#allocation2 + $0x20f0] sm:$0xf0] }
 0x42d   :  { %9558 = vmatpush.bf16.msra.mxu1 %v15565_v14  ;;  %9571 = vmatpush.bf16.msra.mxu2 %v14417_v15  ;;  %v14497_v14 = vor.u32 %v16790_v3, %v14494_v63  ;;  %v17044_v15 = vld [vmem:[#allocation2 + $0x274c] sm:$0xf0]  ;;  %v7383_v47 = vpop.f32.mrf.mxu1  ;;  %v15341_v3 = vor.u32 %v17004_v45, %v15340_v40  ;;  %v14814_v63 = vld [vmem:[#allocation2 + $0x21f0] sm:$0xf0]  ;;  %v16926_v40 = vld [vmem:[#allocation2 + $0x23a4] sm:$0xf] }
 0x42e   :  { %9584 = vmatpush.bf16.msra.mxu3 %v14545_v32  ;;  %v16786_v32 = vld [vmem:[#allocation2 + $0x1f44] sm:$0xf]  ;;  %v7407_v43 = vpop.f32.mrf.mxu3  ;;  %v15501_v23 = vor.u32 %v17044_v15, %v15500_v5  ;;  %v15070_v5 = vld [vmem:[#allocation2 + $0x23f0] sm:$0xf0]  ;;  %v14689_v15 = vor.u32 %v16838_v24, %v14686_v61  ;;  %v14817_v17 = vor.u32 %v16870_v0, %v14814_v63 }
 0x42f   :  { %9546 = vmatpush.bf16.msra.mxu0 %v15421_v28  ;;  %v17685_v19 = vadd.f32 %v7407_v43, %v7394_v9  ;;  %v15356_v28 = vld [vmem:[#allocation2 + $0x2620] sm:$0xf]  ;;  %v14481_v31 = vor.u32 %v16786_v32, %v14478_v18  ;;  %v16834_v9 = vld [vmem:[#allocation2 + $0x20c4] sm:$0xf]  ;;  %v14670_v32 = vld [vmem:[#allocation2 + $0x20d0] sm:$0xf0]  ;;  %v15073_v43 = vor.u32 %v16934_v60, %v15070_v5 }
 0x430   :  { %v16866_v18 = vld [vmem:[#allocation2 + $0x21c4] sm:$0xf]  ;;  %v14798_v57 = vld [vmem:[#allocation2 + $0x21d0] sm:$0xf0] }
 0x431   :  { %9559 = vmatpush.bf16.msra.mxu1 %v15549_v29  ;;  %9572 = vmatpush.bf16.msra.mxu2 %v14401_v30  ;;  %v17008_v29 = vld [vmem:[#allocation2 + $0x262c] sm:$0xf0]  ;;  %v15484_v30 = vld [vmem:[#allocation2 + $0x2720] sm:$0xf]  ;;  %v14926_v47 = vld [vmem:[#allocation2 + $0x22d0] sm:$0xf0] }
 0x432   :  { %9585 = vmatpush.bf16.msra.mxu3 %v14529_v35  ;;  %v14334_v35 = vld [vmem:[#allocation2 + $0x1e30] sm:$0xf0]  ;;  %v15357_v37 = vor.u32 %v17008_v29, %v15356_v28  ;;  %v15485_v50 = vor.u32 %v17040_v33, %v15484_v30  ;;  %v14673_v28 = vor.u32 %v16834_v9, %v14670_v32  ;;  %v14801_v29 = vor.u32 %v16866_v18, %v14798_v57  ;;  %v16922_v24 = vld [vmem:[#allocation2 + $0x2384] sm:$0xf] }
 0x433   :  { %9547 = vmatpush.bf16.msra.mxu0 %v15405_v52  ;;  %v14337_v51 = vor.u32 %v16750_v34, %v14334_v35  ;;  %v15468_v52 = vld [vmem:[#allocation2 + $0x2700] sm:$0xf]  ;;  %v14654_v33 = vld [vmem:[#allocation2 + $0x20b0] sm:$0xf0]  ;;  %v16862_v34 = vld [vmem:[#allocation2 + $0x21a4] sm:$0xf] }
 0x434   :  { %v15038_v45 = vld [vmem:[#allocation2 + $0x23b0] sm:$0xf0] }
 0x435   :  { %9560 = vmatpush.bf16.msra.mxu1 %v15533_v55  ;;  %9573 = vmatpush.bf16.msra.mxu2 %v14385_v56  ;;  %v16746_v55 = vld [vmem:[#allocation2 + $0x1e04] sm:$0xf]  ;;  %v14465_v56 = vor.u32 %v16782_v36, %v14462_v1  ;;  %v14782_v36 = vld [vmem:[#allocation2 + $0x21b0] sm:$0xf0] }
 0x436   :  { %9586 = vmatpush.bf16.msra.mxu3 %v14513_v48  ;;  %v7396_v48 = vpop.f32.mrf.mxu2  ;;  %v7409_v62 = vpop.f32.mrf.mxu3  ;;  %v14321_v8 = vor.u32 %v16746_v55, %v14318_v39  ;;  %v16894_v1 = vld [vmem:[#allocation2 + $0x22a4] sm:$0xf]  ;;  %v14638_v55 = vld [vmem:[#allocation2 + $0x2090] sm:$0xf0]  ;;  %v15041_v39 = vor.u32 %v16926_v40, %v15038_v45 }
 0x437   :  { %9548 = vmatpush.bf16.msra.mxu0 %v15389_v2  ;;  %v16902_v2 = vld [vmem:[#allocation2 + $0x22e4] sm:$0xf]  ;;  %v14894_v48 = vld [vmem:[#allocation2 + $0x2290] sm:$0xf0] }
 0x438   :  { %v15022_v61 = vld [vmem:[#allocation2 + $0x2390] sm:$0xf0] }
 0x439   :  { %9561 = vmatpush.bf16.msra.mxu1 %v15517_v11  ;;  %9574 = vmatpush.bf16.msra.mxu2 %v14369_v7  ;;  %v14942_v11 = vld [vmem:[#allocation2 + $0x22f0] sm:$0xf0]  ;;  %v15469_v7 = vor.u32 %v17036_v54, %v15468_v52  ;;  %v16826_v54 = vld [vmem:[#allocation2 + $0x2084] sm:$0xf]  ;;  %v15025_v5 = vor.u32 %v16922_v24, %v15022_v61 }
 0x43a   :  { %9587 = vmatpush.bf16.msra.mxu3 %v14497_v14  ;;  %v14449_v14 = vor.u32 %v16778_v58, %v14446_v10  ;;  %v14945_v25 = vor.u32 %v16902_v2, %v14942_v11  ;;  %v14766_v58 = vld [vmem:[#allocation2 + $0x2190] sm:$0xf0]  ;;  %v16890_v10 = vld [vmem:[#allocation2 + $0x2284] sm:$0xf]  ;;  %v14641_v0 = vor.u32 %v16826_v54, %v14638_v55 }
 0x43b   :  { %9549 = vmatpush.bf16.msra.mxu0 %v15373_v13  ;;  %v16898_v13 = vld [vmem:[#allocation2 + $0x22c4] sm:$0xf]  ;;  %v14897_v63 = vor.u32 %v16890_v10, %v14894_v48  ;;  %v14622_v11 = vld [vmem:[#allocation2 + $0x2070] sm:$0xf0] }
 0x43c   :  { %v14929_v30 = vor.u32 %v16898_v13, %v14926_v47  ;;  %v16822_v2 = vld [vmem:[#allocation2 + $0x2064] sm:$0xf]  ;;  %v15006_v9 = vld [vmem:[#allocation2 + $0x2370] sm:$0xf0] }
 0x43d   :  { %9562 = vmatpush.bf16.msra.mxu1 %v15501_v23  ;;  %9575 = vmatpush.bf16.msra.mxu2 %v14353_v27  ;;  %v16930_v23 = vld [vmem:[#allocation2 + $0x23c4] sm:$0xf]  ;;  %v15054_v27 = vld [vmem:[#allocation2 + $0x23d0] sm:$0xf0]  ;;  %v14625_v18 = vor.u32 %v16822_v2, %v14622_v11 }
 0x43e   :  { %9588 = vmatpush.bf16.msra.mxu3 %v14481_v31  ;;  %v16830_v31 = vld [vmem:[#allocation2 + $0x20a4] sm:$0xf]  ;;  %v15057_v35 = vor.u32 %v16930_v23, %v15054_v27  ;;  %v14606_v47 = vld [vmem:[#allocation2 + $0x2050] sm:$0xf0] }
 0x43f   :  { %9550 = vmatpush.bf16.msra.mxu0 %v15357_v37  ;;  %v14910_v37 = vld [vmem:[#allocation2 + $0x22b0] sm:$0xf0]  ;;  %v16818_v13 = vld [vmem:[#allocation2 + $0x2044] sm:$0xf] }
 0x440   :  { %v14913_v52 = vor.u32 %v16894_v1, %v14910_v37  ;;  %v16850_v23 = vld [vmem:[#allocation2 + $0x2144] sm:$0xf]  ;;  %v14974_v48 = vld [vmem:[#allocation2 + $0x2330] sm:$0xf0] }
 0x441   :  { %9563 = vmatpush.bf16.msra.mxu1 %v15485_v50  ;;  %9576 = vmatpush.bf16.msra.mxu2 %v14337_v51  ;;  %v14657_v50 = vor.u32 %v16830_v31, %v14654_v33  ;;  %v14785_v51 = vor.u32 %v16862_v34, %v14782_v36  ;;  %v16914_v34 = vld [vmem:[#allocation2 + $0x2344] sm:$0xf]  ;;  %v14609_v36 = vor.u32 %v16818_v13, %v14606_v47  ;;  %v14702_v2 = vld [vmem:[#allocation2 + $0x2110] sm:$0xf0] }
 0x442   :  { %9589 = vmatpush.bf16.msra.mxu3 %v14465_v56  ;;  %v16858_v56 = vld [vmem:[#allocation2 + $0x2184] sm:$0xf] }
 0x443   :  { %9551 = vmatpush.bf16.msra.mxu0 %v15341_v3  ;;  %v7420_v62 = vpop.f32.mrf.mxu0  ;;  %v14769_v3 = vor.u32 %v16858_v56, %v14766_v58  ;;  %v14718_v56 = vld [vmem:[#allocation2 + $0x2130] sm:$0xf0]  ;;  %v16910_v10 = vld [vmem:[#allocation2 + $0x2324] sm:$0xf] }
 0x444   :  { %v14846_v58 = vld [vmem:[#allocation2 + $0x2230] sm:$0xf0]  ;;  %v16810_v61 = vld [vmem:[#allocation2 + $0x2004] sm:$0xf] }
 0x445   :  { %9564 = vmatpush.bf16.msra.mxu1 %v15469_v7  ;;  %9577 = vmatpush.bf16.msra.mxu2 %v14321_v8  ;;  %v16854_v7 = vld [vmem:[#allocation2 + $0x2164] sm:$0xf]  ;;  %v7421_v8 = vadd.f32 %v7420_v62, %v17685_v19  ;;  %v7433_v60 = vpop.f32.mrf.mxu1 }
 0x446   :  { %9590 = vmatpush.bf16.msra.mxu3 %v14449_v14  ;;  %9552 = vmatmul.bf16.vlgmr.msra.gmra.mxu0 %v17456_v22  ;;  %v14750_v14 = vld [vmem:[#allocation2 + $0x2170] sm:$0xf0]  ;;  %v16874_v11 = vld [vmem:[#allocation2 + $0x2204] sm:$0xf] }
 0x447   :  { %9596 = vmatpush.bf16.msrb.mxu0 %v14689_v15  ;;  %v16886_v15 = vld [vmem:[#allocation2 + $0x2264] sm:$0xf]  ;;  %v7434_v32 = vadd.f32 %v7433_v60, %v7421_v8  ;;  %v14977_v8 = vor.u32 %v16910_v10, %v14974_v48  ;;  %v14830_v60 = vld [vmem:[#allocation2 + $0x2210] sm:$0xf0] }
 0x448   :  { %9565 = vmatmul.bf16.vlgmr.msra.gmra.mxu1 %v17458_v26  ;;  %9578 = vmatmul.bf16.vlgmr.msra.gmra.mxu2 %v17428_v20  ;;  %v14833_v47 = vor.u32 %v16874_v11, %v14830_v60  ;;  %v15294_v10 = vld [vmem:[#allocation2 + $0x25b0] sm:$0xf0]  ;;  %v17022_v48 = vld [vmem:[#allocation2 + $0x26a4] sm:$0xf] }
 0x449   :  { %9609 = vmatpush.bf16.msrb.mxu1 %v14817_v17  ;;  %9622 = vmatpush.bf16.msrb.mxu2 %v14945_v25  ;;  %v14878_v17 = vld [vmem:[#allocation2 + $0x2270] sm:$0xf0]  ;;  %v16918_v25 = vld [vmem:[#allocation2 + $0x2364] sm:$0xf] }
 0x44a   :  { %9635 = vmatpush.bf16.msrb.mxu3 %v15073_v43  ;;  %v14753_v43 = vor.u32 %v16854_v7, %v14750_v14  ;;  %v14881_v57 = vor.u32 %v16886_v15, %v14878_v17  ;;  %v15009_v19 = vor.u32 %v16918_v25, %v15006_v9  ;;  %v14958_v14 = vld [vmem:[#allocation2 + $0x2310] sm:$0xf0]  ;;  %v16966_v17 = vld [vmem:[#allocation2 + $0x24e4] sm:$0xf] }
 0x44b   :  { %9597 = vmatpush.bf16.msrb.mxu0 %v14673_v28  ;;  %9591 = vmatmul.bf16.vlgmr.msra.gmra.mxu3 %v17431_v21  ;;  %v7446_v27 = vpop.f32.mrf.mxu2  ;;  %v14734_v28 = vld [vmem:[#allocation2 + $0x2150] sm:$0xf0]  ;;  %v7422_v37 = vpop.f32.mrf.mxu0  ;;  %v16998_v9 = vld [vmem:[#allocation2 + $0x25e4] sm:$0xf] }
 0x44c   :  { %v7447_v31 = vadd.f32 %v7446_v27, %v7434_v32  ;;  %v14737_v40 = vor.u32 %v16850_v23, %v14734_v28  ;;  %v15198_v25 = vld [vmem:[#allocation2 + $0x24f0] sm:$0xf0]  ;;  %v17062_v23 = vld [vmem:[#allocation2 + $0x27e4] sm:$0xf] }
 0x44d   :  { %9610 = vmatpush.bf16.msrb.mxu1 %v14801_v29  ;;  %9623 = vmatpush.bf16.msrb.mxu2 %v14929_v30  ;;  %v16882_v29 = vld [vmem:[#allocation2 + $0x2244] sm:$0xf]  ;;  %v14862_v30 = vld [vmem:[#allocation2 + $0x2250] sm:$0xf0]  ;;  %v7435_v54 = vpop.f32.mrf.mxu1  ;;  %v15201_v28 = vor.u32 %v16966_v17, %v15198_v25 }
 0x44e   :  { %9636 = vmatpush.bf16.msrb.mxu3 %v15057_v35  ;;  %v7459_v33 = vpop.f32.mrf.mxu3  ;;  %v14990_v35 = vld [vmem:[#allocation2 + $0x2350] sm:$0xf0]  ;;  %v14865_v45 = vor.u32 %v16882_v29, %v14862_v30  ;;  %v17026_v37 = vld [vmem:[#allocation2 + $0x26c4] sm:$0xf] }
 0x44f   :  { %9598 = vmatpush.bf16.msrb.mxu0 %v14657_v50  ;;  %v17692_v1 = vadd.f32 %v7459_v33, %v7447_v31  ;;  %v16814_v50 = vld [vmem:[#allocation2 + $0x2024] sm:$0xf]  ;;  %v14993_v55 = vor.u32 %v16914_v34, %v14990_v35  ;;  %v15582_v27 = vld [vmem:[#allocation2 + $0x27f0] sm:$0xf0] }
 0x450   :  { %v16962_v31 = vld [vmem:[#allocation2 + $0x24c4] sm:$0xf]  ;;  %v15182_v33 = vld [vmem:[#allocation2 + $0x24d0] sm:$0xf0]  ;;  %v15585_v35 = vor.u32 %v17062_v23, %v15582_v27 }
 0x451   :  { %9611 = vmatpush.bf16.msrb.mxu1 %v14785_v51  ;;  %9624 = vmatpush.bf16.msrb.mxu2 %v14913_v52  ;;  %v14590_v51 = vld [vmem:[#allocation2 + $0x2030] sm:$0xf0]  ;;  %v16846_v52 = vld [vmem:[#allocation2 + $0x2124] sm:$0xf] }
 0x452   :  { %9637 = vmatpush.bf16.msrb.mxu3 %v15041_v39  ;;  %v16878_v39 = vld [vmem:[#allocation2 + $0x2224] sm:$0xf]  ;;  %v14593_v24 = vor.u32 %v16814_v50, %v14590_v51  ;;  %v14721_v62 = vor.u32 %v16846_v52, %v14718_v56  ;;  %v15566_v50 = vld [vmem:[#allocation2 + $0x27d0] sm:$0xf0]  ;;  %v15185_v51 = vor.u32 %v16962_v31, %v15182_v33 }
 0x453   :  { %9599 = vmatpush.bf16.msrb.mxu0 %v14641_v0  ;;  %v14574_v0 = vld [vmem:[#allocation2 + $0x2010] sm:$0xf0]  ;;  %v7448_v7 = vpop.f32.mrf.mxu2  ;;  %v16994_v34 = vld [vmem:[#allocation2 + $0x25c4] sm:$0xf] }
 0x454   :  { %v14577_v32 = vor.u32 %v16810_v61, %v14574_v0  ;;  %v15166_v56 = vld [vmem:[#allocation2 + $0x24b0] sm:$0xf0]  ;;  %v17054_v61 = vld [vmem:[#allocation2 + $0x27a4] sm:$0xf] }
 0x455   :  { %9612 = vmatpush.bf16.msrb.mxu1 %v14769_v3  ;;  %9625 = vmatpush.bf16.msrb.mxu2 %v14897_v63  ;;  %v14849_v3 = vor.u32 %v16878_v39, %v14846_v58  ;;  %v16842_v63 = vld [vmem:[#allocation2 + $0x2104] sm:$0xf]  ;;  %v15550_v0 = vld [vmem:[#allocation2 + $0x27b0] sm:$0xf0] }
 0x456   :  { %9638 = vmatpush.bf16.msrb.mxu3 %v15025_v5  ;;  %v16906_v5 = vld [vmem:[#allocation2 + $0x2304] sm:$0xf]  ;;  %v7461_v15 = vpop.f32.mrf.mxu3  ;;  %v14705_v13 = vor.u32 %v16842_v63, %v14702_v2  ;;  %v15150_v11 = vld [vmem:[#allocation2 + $0x2490] sm:$0xf0] }
 0x457   :  { %9600 = vmatpush.bf16.msrb.mxu0 %v14625_v18  ;;  %v15326_v18 = vld [vmem:[#allocation2 + $0x25f0] sm:$0xf0]  ;;  %v16990_v39 = vld [vmem:[#allocation2 + $0x25a4] sm:$0xf] }
 0x458   :  { %v15329_v29 = vor.u32 %v16998_v9, %v15326_v18  ;;  %v16954_v2 = vld [vmem:[#allocation2 + $0x2484] sm:$0xf]  ;;  %v15278_v60 = vld [vmem:[#allocation2 + $0x2590] sm:$0xf0] }
 0x459   :  { %9613 = vmatpush.bf16.msrb.mxu1 %v14753_v43  ;;  %9626 = vmatpush.bf16.msrb.mxu2 %v14881_v57  ;;  %v17030_v43 = vld [vmem:[#allocation2 + $0x26e4] sm:$0xf]  ;;  %v15454_v57 = vld [vmem:[#allocation2 + $0x26f0] sm:$0xf0] }
 0x45a   :  { %9639 = vmatpush.bf16.msrb.mxu3 %v15009_v19  ;;  %v14961_v19 = vor.u32 %v16906_v5, %v14958_v14  ;;  %v15457_v30 = vor.u32 %v17030_v43, %v15454_v57  ;;  %v16986_v7 = vld [vmem:[#allocation2 + $0x2584] sm:$0xf]  ;;  %v15406_v14 = vld [vmem:[#allocation2 + $0x2690] sm:$0xf0] }
 0x45b   :  { %9601 = vmatpush.bf16.msrb.mxu0 %v14609_v36  ;;  %v15310_v36 = vld [vmem:[#allocation2 + $0x25d0] sm:$0xf0]  ;;  %v17018_v5 = vld [vmem:[#allocation2 + $0x2684] sm:$0xf]  ;;  %v15281_v43 = vor.u32 %v16986_v7, %v15278_v60 }
 0x45c   :  { %v15313_v52 = vor.u32 %v16994_v34, %v15310_v36  ;;  %v17050_v17 = vld [vmem:[#allocation2 + $0x2784] sm:$0xf]  ;;  %v15534_v25 = vld [vmem:[#allocation2 + $0x2790] sm:$0xf0]  ;;  %v15409_v57 = vor.u32 %v17018_v5, %v15406_v14 }
 0x45d   :  { %9614 = vmatpush.bf16.msrb.mxu1 %v14737_v40  ;;  %9627 = vmatpush.bf16.msrb.mxu2 %v14865_v45  ;;  %v15438_v40 = vld [vmem:[#allocation2 + $0x26d0] sm:$0xf0]  ;;  %v17058_v45 = vld [vmem:[#allocation2 + $0x27c4] sm:$0xf]  ;;  %v15537_v27 = vor.u32 %v17050_v17, %v15534_v25 }
 0x45e   :  { %9640 = vmatpush.bf16.msrb.mxu3 %v14993_v55  ;;  %v15441_v54 = vor.u32 %v17026_v37, %v15438_v40  ;;  %v16958_v55 = vld [vmem:[#allocation2 + $0x24a4] sm:$0xf]  ;;  %v15569_v58 = vor.u32 %v17058_v45, %v15566_v50  ;;  %v15518_v33 = vld [vmem:[#allocation2 + $0x2770] sm:$0xf0] }
 0x45f   :  { %9602 = vmatpush.bf16.msrb.mxu0 %v14593_v24  ;;  %v15422_v24 = vld [vmem:[#allocation2 + $0x26b0] sm:$0xf0]  ;;  %v16982_v23 = vld [vmem:[#allocation2 + $0x2564] sm:$0xf] }
 0x460   :  { %v15425_v63 = vor.u32 %v17022_v48, %v15422_v24  ;;  %v17046_v31 = vld [vmem:[#allocation2 + $0x2764] sm:$0xf]  ;;  %v15118_v37 = vld [vmem:[#allocation2 + $0x2450] sm:$0xf0] }
 0x461   :  { %9615 = vmatpush.bf16.msrb.mxu1 %v14721_v62  ;;  %9628 = vmatpush.bf16.msrb.mxu2 %v14849_v3  ;;  %v15169_v62 = vor.u32 %v16958_v55, %v15166_v56  ;;  %v15297_v3 = vor.u32 %v16990_v39, %v15294_v10  ;;  %v16946_v36 = vld [vmem:[#allocation2 + $0x2444] sm:$0xf]  ;;  %v15521_v45 = vor.u32 %v17046_v31, %v15518_v33  ;;  %v15230_v7 = vld [vmem:[#allocation2 + $0x2530] sm:$0xf0]  ;;  %v16809_v31 = vld [vmem:[#allocation2 + $0x1ff4] sm:$0xf0] }
 0x462   :  { %9641 = vmatpush.bf16.msrb.mxu3 %v14977_v8  ;;  %v15553_v8 = vor.u32 %v17054_v61, %v15550_v0  ;;  %v16978_v40 = vld [vmem:[#allocation2 + $0x2544] sm:$0xf]  ;;  %v15121_v48 = vor.u32 %v16946_v36, %v15118_v37  ;;  %v15358_v60 = vld [vmem:[#allocation2 + $0x2630] sm:$0xf0]  ;;  %v14692_v33 = vld [vmem:[#allocation2 + $0x20e8] sm:$0xf] }
 0x463   :  { %9603 = vmatpush.bf16.msrb.mxu0 %v14577_v32  ;;  %v7472_v15 = vpop.f32.mrf.mxu0  ;;  %v15153_v32 = vor.u32 %v16954_v2, %v15150_v11  ;;  %v17042_v39 = vld [vmem:[#allocation2 + $0x2744] sm:$0xf]  ;;  %v14820_v36 = vld [vmem:[#allocation2 + $0x21e8] sm:$0xf]  ;;  %v16873_v37 = vld [vmem:[#allocation2 + $0x21f4] sm:$0xf0] }
 0x464   :  { %v7473_v9 = vadd.f32 %v7472_v15, %v17692_v1  ;;  %v16974_v2 = vld [vmem:[#allocation2 + $0x2524] sm:$0xf]  ;;  %v15486_v15 = vld [vmem:[#allocation2 + $0x2730] sm:$0xf0] }
 0x465   :  { %9616 = vmatpush.bf16.msrb.mxu1 %v14705_v13  ;;  %9629 = vmatpush.bf16.msrb.mxu2 %v14833_v47  ;;  %v7485_v18 = vpop.f32.mrf.mxu1  ;;  %v16950_v13 = vld [vmem:[#allocation2 + $0x2464] sm:$0xf]  ;;  %v15134_v47 = vld [vmem:[#allocation2 + $0x2470] sm:$0xf0] }
 0x466   :  { %9642 = vmatpush.bf16.msrb.mxu3 %v14961_v19  ;;  %9604 = vmatmul.bf16.vlgmr.msrb.gmra.mxu0 %v17420_v4  ;;  %v7486_v19 = vadd.f32 %v7485_v18, %v7473_v9  ;;  %v15137_v34 = vor.u32 %v16950_v13, %v15134_v47  ;;  %v17038_v14 = vld [vmem:[#allocation2 + $0x2724] sm:$0xf]  ;;  %v15086_v9 = vld [vmem:[#allocation2 + $0x2410] sm:$0xf0] }
 0x467   :  { %9648 = vmatpush.bf16.msra.mxu0 %v15201_v28  ;;  %v15262_v28 = vld [vmem:[#allocation2 + $0x2570] sm:$0xf0]  ;;  %v16938_v25 = vld [vmem:[#allocation2 + $0x2404] sm:$0xf]  ;;  %v15489_v47 = vor.u32 %v17038_v14, %v15486_v15  ;;  %v14788_v14 = vld [vmem:[#allocation2 + $0x21a8] sm:$0xf] }
 0x468   :  { %9630 = vmatmul.bf16.vlgmr.msrb.gmra.mxu2 %v17443_v41  ;;  %9617 = vmatmul.bf16.vlgmr.msrb.gmra.mxu1 %v17425_v6  ;;  %v15265_v1 = vor.u32 %v16982_v23, %v15262_v28  ;;  %v17002_v13 = vld [vmem:[#allocation2 + $0x2604] sm:$0xf]  ;;  %v15342_v23 = vld [vmem:[#allocation2 + $0x2610] sm:$0xf0]  ;;  %v14564_v28 = vld [vmem:[#allocation2 + $0x1fe8] sm:$0xf] }
 0x469   :  { %9661 = vmatpush.bf16.msra.mxu1 %v15329_v29  ;;  %9674 = vmatpush.bf16.msra.mxu2 %v15457_v30  ;;  %v17014_v29 = vld [vmem:[#allocation2 + $0x2664] sm:$0xf]  ;;  %v15390_v30 = vld [vmem:[#allocation2 + $0x2670] sm:$0xf0]  ;;  %v16865_v15 = vld [vmem:[#allocation2 + $0x21b4] sm:$0xf0] }
 0x46a   :  { %9687 = vmatpush.bf16.msra.mxu3 %v15585_v35  ;;  %v15393_v35 = vor.u32 %v17014_v29, %v15390_v30  ;;  %v15089_v30 = vor.u32 %v16938_v25, %v15086_v9 }
 0x46b   :  { %9643 = vmatmul.bf16.vlgmr.msrb.gmra.mxu3 %v17447_v44  ;;  %9649 = vmatpush.bf16.msra.mxu0 %v15185_v51  ;;  %v7498_v50 = vpop.f32.mrf.mxu2  ;;  %v15246_v51 = vld [vmem:[#allocation2 + $0x2550] sm:$0xf0]  ;;  %v7474_v10 = vpop.f32.mrf.mxu0 }
 0x46c   :  { %v7499_v55 = vadd.f32 %v7498_v50, %v7486_v19  ;;  %v15249_v0 = vor.u32 %v16978_v40, %v15246_v51  ;;  %v16777_v19 = vld [vmem:[#allocation2 + $0x1ef4] sm:$0xf0]  ;;  %v14565_v50 = vor.u32 %v16809_v31, %v14564_v28  ;;  %v14500_v31 = vld [vmem:[#allocation2 + $0x1f68] sm:$0xf] }
 0x46d   :  { %9662 = vmatpush.bf16.msra.mxu1 %v15313_v52  ;;  %9675 = vmatpush.bf16.msra.mxu2 %v15441_v54  ;;  %v17010_v52 = vld [vmem:[#allocation2 + $0x2644] sm:$0xf]  ;;  %v15374_v54 = vld [vmem:[#allocation2 + $0x2650] sm:$0xf0]  ;;  %v7487_v24 = vpop.f32.mrf.mxu1  ;;  %v16837_v10 = vld [vmem:[#allocation2 + $0x20d4] sm:$0xf0] }
 0x46e   :  { %9688 = vmatpush.bf16.msra.mxu3 %v15569_v58  ;;  %v7511_v56 = vpop.f32.mrf.mxu3  ;;  %v15502_v58 = vld [vmem:[#allocation2 + $0x2750] sm:$0xf0]  ;;  %v16869_v24 = vld [vmem:[#allocation2 + $0x21d4] sm:$0xf0] }
 0x46f   :  { %9650 = vmatpush.bf16.msra.mxu0 %v15169_v62  ;;  %v7512_v61 = vadd.f32 %v7511_v56, %v7499_v55  ;;  %v15377_v62 = vor.u32 %v17010_v52, %v15374_v54  ;;  %v15505_v11 = vor.u32 %v17042_v39, %v15502_v58  ;;  %v14420_v52 = vld [vmem:[#allocation2 + $0x1ec8] sm:$0xf]  ;;  %v16773_v54 = vld [vmem:[#allocation2 + $0x1ed4] sm:$0xf0]  ;;  %v14821_v56 = vor.u32 %v16873_v37, %v14820_v36 }
 0x470   :  { %v14548_v55 = vld [vmem:[#allocation2 + $0x1fc8] sm:$0xf]  ;;  %v16805_v39 = vld [vmem:[#allocation2 + $0x1fd4] sm:$0xf0] }
 0x471   :  { %9663 = vmatpush.bf16.msra.mxu1 %v15297_v3  ;;  %9676 = vmatpush.bf16.msra.mxu2 %v15425_v63  ;;  %v16942_v3 = vld [vmem:[#allocation2 + $0x2424] sm:$0xf]  ;;  %v15102_v63 = vld [vmem:[#allocation2 + $0x2430] sm:$0xf0]  ;;  %v17702_v5 = vmax.f32 %v5073_v59, %v7512_v61  ;;  %v14436_v59 = vld [vmem:[#allocation2 + $0x1ee8] sm:$0xf]  ;;  %v14421_v61 = vor.u32 %v16773_v54, %v14420_v52 }
 0x472   :  { %9689 = vmatpush.bf16.msra.mxu3 %v15553_v8  ;;  %v17006_v8 = vld [vmem:[#allocation2 + $0x2624] sm:$0xf]  ;;  %v15105_v17 = vor.u32 %v16942_v3, %v15102_v63  ;;  %v14676_v58 = vld [vmem:[#allocation2 + $0x20c8] sm:$0xf]  ;;  %v16769_v63 = vld [vmem:[#allocation2 + $0x1eb4] sm:$0xf0] }
 0x473   :  { %9651 = vmatpush.bf16.msra.mxu0 %v15153_v32  ;;  %v15233_v32 = vor.u32 %v16974_v2, %v15230_v7  ;;  %v15361_v18 = vor.u32 %v17006_v8, %v15358_v60  ;;  %v7500_v49 = vpop.f32.mrf.mxu2  ;;  %v14404_v3 = vld [vmem:[#allocation2 + $0x1ea8] sm:$0xf]  ;;  %v16801_v7 = vld [vmem:[#allocation2 + $0x1fb4] sm:$0xf0] }
 0x474   :  { %v14532_v2 = vld [vmem:[#allocation2 + $0x1fa8] sm:$0xf]  ;;  %v16833_v60 = vld [vmem:[#allocation2 + $0x20b4] sm:$0xf0] }
 0x475   :  { %9664 = vmatpush.bf16.msra.mxu1 %v15281_v43  ;;  %9677 = vmatpush.bf16.msra.mxu2 %v15409_v57  ;;  %v16970_v43 = vld [vmem:[#allocation2 + $0x2504] sm:$0xf]  ;;  %v15214_v57 = vld [vmem:[#allocation2 + $0x2510] sm:$0xf0]  ;;  %v14660_v8 = vld [vmem:[#allocation2 + $0x20a8] sm:$0xf]  ;;  %v14533_v25 = vor.u32 %v16801_v7, %v14532_v2 }
 0x476   :  { %9690 = vmatpush.bf16.msra.mxu3 %v15537_v27  ;;  %v17034_v27 = vld [vmem:[#allocation2 + $0x2704] sm:$0xf]  ;;  %v7513_v29 = vpop.f32.mrf.mxu3  ;;  %v14661_v9 = vor.u32 %v16833_v60, %v14660_v8  ;;  %v16825_v36 = vld [vmem:[#allocation2 + $0x2074] sm:$0xf0]  ;;  %v14356_v54 = vld [vmem:[#allocation2 + $0x1e48] sm:$0xf] }
 0x477   :  { %9652 = vmatpush.bf16.msra.mxu0 %v15137_v34  ;;  %v16841_v34 = vld [vmem:[#allocation2 + $0x20f4] sm:$0xf0]  ;;  %v15473_v40 = vor.u32 %v17034_v27, %v15470_v46  ;;  %v14772_v27 = vld [vmem:[#allocation2 + $0x2188] sm:$0xf] }
 0x478   :  { %v14693_v51 = vor.u32 %v16841_v34, %v14692_v33  ;;  %v16861_v46 = vld [vmem:[#allocation2 + $0x2194] sm:$0xf0]  ;;  %v14372_v29 = vld [vmem:[#allocation2 + $0x1e68] sm:$0xf] }
 0x479   :  { %9665 = vmatpush.bf16.msra.mxu1 %v15265_v1  ;;  %9678 = vmatpush.bf16.msra.mxu2 %v15393_v35  ;;  %v15217_v1 = vor.u32 %v16970_v43, %v15214_v57  ;;  %v15345_v35 = vor.u32 %v17002_v13, %v15342_v23  ;;  %v14516_v43 = vld [vmem:[#allocation2 + $0x1f88] sm:$0xf]  ;;  %v14789_v57 = vor.u32 %v16865_v15, %v14788_v14  ;;  %v16797_v13 = vld [vmem:[#allocation2 + $0x1f94] sm:$0xf0] }
 0x47a   :  { %9691 = vmatpush.bf16.msra.mxu3 %v15521_v45  ;;  %v14437_v45 = vor.u32 %v16777_v19, %v14436_v59  ;;  %v16829_v23 = vld [vmem:[#allocation2 + $0x2094] sm:$0xf0]  ;;  %v14517_v19 = vor.u32 %v16797_v13, %v14516_v43  ;;  %v14773_v34 = vor.u32 %v16861_v46, %v14772_v27  ;;  %v14340_v60 = vld [vmem:[#allocation2 + $0x1e28] sm:$0xf] }
 0x47b   :  { %9653 = vmatpush.bf16.msra.mxu0 %v15121_v48  ;;  %v14804_v48 = vld [vmem:[#allocation2 + $0x21c8] sm:$0xf]  ;;  %v16753_v14 = vld [vmem:[#allocation2 + $0x1e34] sm:$0xf0] }
 0x47c   :  { %v14468_v15 = vld [vmem:[#allocation2 + $0x1f28] sm:$0xf]  ;;  %v14341_v13 = vor.u32 %v16753_v14, %v14340_v60 }
 0x47d   :  { %9666 = vmatpush.bf16.msra.mxu1 %v15249_v0  ;;  %9679 = vmatpush.bf16.msra.mxu2 %v15377_v62  ;;  %v14549_v0 = vor.u32 %v16805_v39, %v14548_v55  ;;  %v14677_v62 = vor.u32 %v16837_v10, %v14676_v58  ;;  %v16757_v55 = vld [vmem:[#allocation2 + $0x1e54] sm:$0xf0]  ;;  %v14724_v43 = vld [vmem:[#allocation2 + $0x2128] sm:$0xf] }
 0x47e   :  { %9692 = vmatpush.bf16.msra.mxu3 %v15505_v11  ;;  %v14805_v11 = vor.u32 %v16869_v24, %v14804_v48  ;;  %v16789_v10 = vld [vmem:[#allocation2 + $0x1f54] sm:$0xf0]  ;;  %v14612_v48 = vld [vmem:[#allocation2 + $0x2048] sm:$0xf] }
 0x47f   :  { %9654 = vmatpush.bf16.msra.mxu0 %v15105_v17  ;;  %v14405_v17 = vor.u32 %v16769_v63, %v14404_v3  ;;  %v16821_v24 = vld [vmem:[#allocation2 + $0x2054] sm:$0xf0]  ;;  %v14357_v63 = vor.u32 %v16757_v55, %v14356_v54  ;;  %v15332_v54 = vld [vmem:[#allocation2 + $0x25e8] sm:$0xf] }
 0x480   :  { %v16853_v3 = vld [vmem:[#allocation2 + $0x2154] sm:$0xf0]  ;;  %v14613_v8 = vor.u32 %v16821_v24, %v14612_v48  ;;  %v14932_v48 = vld [vmem:[#allocation2 + $0x22c8] sm:$0xf] }
 0x481   :  { %9667 = vmatpush.bf16.msra.mxu1 %v15233_v32  ;;  %9680 = vmatpush.bf16.msra.mxu2 %v15361_v18  ;;  %v14388_v32 = vld [vmem:[#allocation2 + $0x1e88] sm:$0xf]  ;;  %v16765_v18 = vld [vmem:[#allocation2 + $0x1e94] sm:$0xf0] }
 0x482   :  { %9693 = vmatpush.bf16.msra.mxu3 %v15489_v47  ;;  %v14644_v47 = vld [vmem:[#allocation2 + $0x2088] sm:$0xf]  ;;  %v14389_v49 = vor.u32 %v16765_v18, %v14388_v32  ;;  %v16817_v18 = vld [vmem:[#allocation2 + $0x2034] sm:$0xf0] }
 0x483   :  { %9655 = vmatpush.bf16.msra.mxu0 %v15089_v30  ;;  %v9449_v59 = vpop.f32.mrf.mxu0  ;;  %v14645_v28 = vor.u32 %v16829_v23, %v14644_v47  ;;  %v16761_v30 = vld [vmem:[#allocation2 + $0x1e74] sm:$0xf0]  ;;  %v14596_v32 = vld [vmem:[#allocation2 + $0x2028] sm:$0xf] }
 0x484   :  { %v14324_v47 = vld [vmem:[#allocation2 + $0x1e08] sm:$0xf]  ;;  %v16749_v23 = vld [vmem:[#allocation2 + $0x1e14] sm:$0xf0]  ;;  %v14597_v46 = vor.u32 %v16817_v18, %v14596_v32 }
 0x485   :  { %9668 = vmatpush.bf16.msra.mxu1 %v15217_v1  ;;  %9681 = vmatpush.bf16.msra.mxu2 %v15345_v35  ;;  %v9462_v33 = vpop.f32.mrf.mxu1  ;;  %v16793_v1 = vld [vmem:[#allocation2 + $0x1f74] sm:$0xf0]  ;;  %v14628_v35 = vld [vmem:[#allocation2 + $0x2068] sm:$0xf] }
 0x486   :  { %9694 = vmatpush.bf16.msra.mxu3 %v15473_v40  ;;  %9656 = vmatmul.bf16.vlgmr.msra.gmra.mxu0 %v17441_v38  ;;  %v9463_v37 = vadd.f32 %v9462_v33, %v9449_v59  ;;  %v14756_v40 = vld [vmem:[#allocation2 + $0x2168] sm:$0xf]  ;;  %v14629_v52 = vor.u32 %v16825_v36, %v14628_v35  ;;  %v16781_v59 = vld [vmem:[#allocation2 + $0x1f14] sm:$0xf0] }
 0x487   :  { %9700 = vmatpush.bf16.msrb.mxu0 %v14437_v45  ;;  %v16857_v45 = vld [vmem:[#allocation2 + $0x2174] sm:$0xf0]  ;;  %v15076_v36 = vld [vmem:[#allocation2 + $0x23e8] sm:$0xf] }
 0x488   :  { %9682 = vmatmul.bf16.vlgmr.msra.gmra.mxu2 %v17456_v22  ;;  %9669 = vmatmul.bf16.vlgmr.msra.gmra.mxu1 %v17445_v42  ;;  %v14757_v58 = vor.u32 %v16857_v45, %v14756_v40  ;;  %v16845_v33 = vld [vmem:[#allocation2 + $0x2114] sm:$0xf0]  ;;  %v15204_v45 = vld [vmem:[#allocation2 + $0x24e8] sm:$0xf] }
 0x489   :  { %9713 = vmatpush.bf16.msrb.mxu1 %v14565_v50  ;;  %9726 = vmatpush.bf16.msrb.mxu2 %v14693_v51  ;;  %v14373_v50 = vor.u32 %v16761_v30, %v14372_v29  ;;  %v14501_v51 = vor.u32 %v16793_v1, %v14500_v31  ;;  %v16813_v30 = vld [vmem:[#allocation2 + $0x2014] sm:$0xf0]  ;;  %v14708_v31 = vld [vmem:[#allocation2 + $0x2108] sm:$0xf] }
 0x48a   :  { %9739 = vmatpush.bf16.msrb.mxu3 %v14821_v56  ;;  %v14484_v56 = vld [vmem:[#allocation2 + $0x1f48] sm:$0xf]  ;;  %v16905_v35 = vld [vmem:[#allocation2 + $0x22f4] sm:$0xf0] }
 0x48b   :  { %9695 = vmatmul.bf16.vlgmr.msra.gmra.mxu3 %v17458_v26  ;;  %9701 = vmatpush.bf16.msrb.mxu0 %v14421_v61  ;;  %v9475_v39 = vpop.f32.mrf.mxu2  ;;  %v14485_v7 = vor.u32 %v16789_v10, %v14484_v56  ;;  %v14948_v1 = vld [vmem:[#allocation2 + $0x22e8] sm:$0xf]  ;;  %v16937_v40 = vld [vmem:[#allocation2 + $0x23f4] sm:$0xf0]  ;;  %v14709_v56 = vor.u32 %v16845_v33, %v14708_v31 }
 0x48c   :  { %v9476_v61 = vadd.f32 %v9475_v39, %v9463_v37  ;;  %v14325_v37 = vor.u32 %v16749_v23, %v14324_v47  ;;  %v17001_v55 = vld [vmem:[#allocation2 + $0x25f4] sm:$0xf0]  ;;  %v14949_v39 = vor.u32 %v16905_v35, %v14948_v1  ;;  %v15172_v18 = vld [vmem:[#allocation2 + $0x24a8] sm:$0xf] }
 0x48d   :  { %9714 = vmatpush.bf16.msrb.mxu1 %v14549_v0  ;;  %9727 = vmatpush.bf16.msrb.mxu2 %v14677_v62  ;;  %v14740_v62 = vld [vmem:[#allocation2 + $0x2148] sm:$0xf]  ;;  %v16901_v24 = vld [vmem:[#allocation2 + $0x22d4] sm:$0xf0] }
 0x48e   :  { %9740 = vmatpush.bf16.msrb.mxu3 %v14805_v11  ;;  %v9488_v0 = vpop.f32.mrf.mxu3  ;;  %v9451_v11 = vpop.f32.mrf.mxu0  ;;  %v16929_v32 = vld [vmem:[#allocation2 + $0x23b4] sm:$0xf0]  ;;  %v15284_v31 = vld [vmem:[#allocation2 + $0x2588] sm:$0xf] }
 0x48f   :  { %9702 = vmatpush.bf16.msrb.mxu0 %v14405_v17  ;;  %v17708_v2 = vadd.f32 %v9488_v0, %v9476_v61  ;;  %v9464_v17 = vpop.f32.mrf.mxu1  ;;  %v15060_v61 = vld [vmem:[#allocation2 + $0x23c8] sm:$0xf]  ;;  %v15333_v0 = vor.u32 %v17001_v55, %v15332_v54  ;;  %v16989_v33 = vld [vmem:[#allocation2 + $0x2594] sm:$0xf0] }
 0x490   :  { %v15316_v11 = vld [vmem:[#allocation2 + $0x25c8] sm:$0xf]  ;;  %v16897_v17 = vld [vmem:[#allocation2 + $0x22b4] sm:$0xf0] }
 0x491   :  { %9715 = vmatpush.bf16.msrb.mxu1 %v14533_v25  ;;  %9728 = vmatpush.bf16.msrb.mxu2 %v14661_v9  ;;  %v14741_v25 = vor.u32 %v16853_v3, %v14740_v62  ;;  %v16785_v9 = vld [vmem:[#allocation2 + $0x1f34] sm:$0xf0]  ;;  %v15188_v3 = vld [vmem:[#allocation2 + $0x24c8] sm:$0xf] }
 0x492   :  { %9741 = vmatpush.bf16.msrb.mxu3 %v14789_v57  ;;  %v16849_v57 = vld [vmem:[#allocation2 + $0x2134] sm:$0xf0]  ;;  %v14469_v27 = vor.u32 %v16785_v9, %v14468_v15  ;;  %v14916_v15 = vld [vmem:[#allocation2 + $0x22a8] sm:$0xf] }
 0x493   :  { %9703 = vmatpush.bf16.msrb.mxu0 %v14389_v49  ;;  %v14452_v49 = vld [vmem:[#allocation2 + $0x1f08] sm:$0xf]  ;;  %v14725_v29 = vor.u32 %v16849_v57, %v14724_v43  ;;  %v16933_v62 = vld [vmem:[#allocation2 + $0x23d4] sm:$0xf0]  ;;  %v14917_v47 = vor.u32 %v16897_v17, %v14916_v15 }
 0x494   :  { %v15061_v60 = vor.u32 %v16933_v62, %v15060_v61  ;;  %v16961_v43 = vld [vmem:[#allocation2 + $0x24b4] sm:$0xf0]  ;;  %v15300_v57 = vld [vmem:[#allocation2 + $0x25a8] sm:$0xf] }
 0x495   :  { %9716 = vmatpush.bf16.msrb.mxu1 %v14517_v19  ;;  %9729 = vmatpush.bf16.msrb.mxu2 %v14645_v28  ;;  %v14580_v19 = vld [vmem:[#allocation2 + $0x2008] sm:$0xf]  ;;  %v9477_v28 = vpop.f32.mrf.mxu2  ;;  %v16921_v54 = vld [vmem:[#allocation2 + $0x2374] sm:$0xf0] }
 0x496   :  { %9742 = vmatpush.bf16.msrb.mxu3 %v14773_v34  ;;  %v9490_v34 = vpop.f32.mrf.mxu3  ;;  %v16925_v28 = vld [vmem:[#allocation2 + $0x2394] sm:$0xf0]  ;;  %v15140_v55 = vld [vmem:[#allocation2 + $0x2468] sm:$0xf] }
 0x497   :  { %9704 = vmatpush.bf16.msrb.mxu0 %v14373_v50  ;;  %v16969_v50 = vld [vmem:[#allocation2 + $0x24f4] sm:$0xf0]  ;;  %v15252_v15 = vld [vmem:[#allocation2 + $0x2548] sm:$0xf] }
 0x498   :  { %v15205_v10 = vor.u32 %v16969_v50, %v15204_v45  ;;  %v15012_v45 = vld [vmem:[#allocation2 + $0x2368] sm:$0xf]  ;;  %v16885_v62 = vld [vmem:[#allocation2 + $0x2254] sm:$0xf0] }
 0x499   :  { %9717 = vmatpush.bf16.msrb.mxu1 %v14501_v51  ;;  %9730 = vmatpush.bf16.msrb.mxu2 %v14629_v52  ;;  %v14453_v51 = vor.u32 %v16781_v59, %v14452_v49  ;;  %v14581_v52 = vor.u32 %v16813_v30, %v14580_v19  ;;  %v16893_v49 = vld [vmem:[#allocation2 + $0x2294] sm:$0xf0]  ;;  %v15028_v59 = vld [vmem:[#allocation2 + $0x2388] sm:$0xf] }
 0x49a   :  { %9743 = vmatpush.bf16.msrb.mxu3 %v14757_v58  ;;  %v15077_v58 = vor.u32 %v16937_v40, %v15076_v36  ;;  %v16957_v30 = vld [vmem:[#allocation2 + $0x2494] sm:$0xf0]  ;;  %v15029_v35 = vor.u32 %v16925_v28, %v15028_v59 }
 0x49b   :  { %9705 = vmatpush.bf16.msrb.mxu0 %v14357_v63  ;;  %v16965_v63 = vld [vmem:[#allocation2 + $0x24d4] sm:$0xf0] }
 0x49c   :  { %v15189_v14 = vor.u32 %v16965_v63, %v15188_v3  ;;  %v16889_v40 = vld [vmem:[#allocation2 + $0x2274] sm:$0xf0]  ;;  %v14996_v3 = vld [vmem:[#allocation2 + $0x2348] sm:$0xf] }
 0x49d   :  { %9718 = vmatpush.bf16.msrb.mxu1 %v14485_v7  ;;  %9731 = vmatpush.bf16.msrb.mxu2 %v14613_v8  ;;  %v16997_v7 = vld [vmem:[#allocation2 + $0x25d4] sm:$0xf0]  ;;  %v14933_v8 = vor.u32 %v16901_v24, %v14932_v48  ;;  %v15013_v24 = vor.u32 %v16921_v54, %v15012_v45  ;;  %v15460_v54 = vld [vmem:[#allocation2 + $0x26e8] sm:$0xf] }
 0x49e   :  { %9744 = vmatpush.bf16.msrb.mxu3 %v14741_v25  ;;  %v15044_v25 = vld [vmem:[#allocation2 + $0x23a8] sm:$0xf]  ;;  %v15317_v9 = vor.u32 %v16997_v7, %v15316_v11  ;;  %v16917_v11 = vld [vmem:[#allocation2 + $0x2354] sm:$0xf0] }
 0x49f   :  { %9706 = vmatpush.bf16.msrb.mxu0 %v14341_v13  ;;  %v16993_v13 = vld [vmem:[#allocation2 + $0x25b4] sm:$0xf0]  ;;  %v15045_v23 = vor.u32 %v16929_v32, %v15044_v25  ;;  %v15124_v7 = vld [vmem:[#allocation2 + $0x2448] sm:$0xf] }
 0x4a0   :  { %v15301_v19 = vor.u32 %v16993_v13, %v15300_v57  ;;  %v16981_v17 = vld [vmem:[#allocation2 + $0x2554] sm:$0xf0]  ;;  %v14852_v57 = vld [vmem:[#allocation2 + $0x2228] sm:$0xf] }
 0x4a1   :  { %9719 = vmatpush.bf16.msrb.mxu1 %v14469_v27  ;;  %9732 = vmatpush.bf16.msrb.mxu2 %v14597_v46  ;;  %v15173_v27 = vor.u32 %v16961_v43, %v15172_v18  ;;  %v14900_v46 = vld [vmem:[#allocation2 + $0x2288] sm:$0xf]  ;;  %v14997_v18 = vor.u32 %v16917_v11, %v14996_v3  ;;  %v16881_v13 = vld [vmem:[#allocation2 + $0x2234] sm:$0xf0] }
 0x4a2   :  { %9745 = vmatpush.bf16.msrb.mxu3 %v14725_v29  ;;  %v15156_v29 = vld [vmem:[#allocation2 + $0x2488] sm:$0xf]  ;;  %v14901_v34 = vor.u32 %v16893_v49, %v14900_v46  ;;  %v16913_v46 = vld [vmem:[#allocation2 + $0x2334] sm:$0xf0] }
 0x4a3   :  { %9707 = vmatpush.bf16.msrb.mxu0 %v14325_v37  ;;  %v9501_v1 = vpop.f32.mrf.mxu0  ;;  %v15157_v36 = vor.u32 %v16957_v30, %v15156_v29  ;;  %v14884_v37 = vld [vmem:[#allocation2 + $0x2268] sm:$0xf]  ;;  %v16945_v59 = vld [vmem:[#allocation2 + $0x2434] sm:$0xf0]  ;;  %v14853_v29 = vor.u32 %v16881_v13, %v14852_v57 }
 0x4a4   :  { %v9502_v50 = vadd.f32 %v9501_v1, %v17708_v2  ;;  %v14885_v48 = vor.u32 %v16889_v40, %v14884_v37  ;;  %v15108_v49 = vld [vmem:[#allocation2 + $0x2428] sm:$0xf]  ;;  %v16977_v28 = vld [vmem:[#allocation2 + $0x2534] sm:$0xf0] }
 0x4a5   :  { %9720 = vmatpush.bf16.msrb.mxu1 %v14453_v51  ;;  %9733 = vmatpush.bf16.msrb.mxu2 %v14581_v52  ;;  %v9514_v51 = vpop.f32.mrf.mxu1  ;;  %v15285_v52 = vor.u32 %v16989_v33, %v15284_v31  ;;  %v14836_v30 = vld [vmem:[#allocation2 + $0x2208] sm:$0xf]  ;;  %v16877_v31 = vld [vmem:[#allocation2 + $0x2214] sm:$0xf0] }
 0x4a6   :  { %9746 = vmatpush.bf16.msrb.mxu3 %v14709_v56  ;;  %9708 = vmatmul.bf16.vlgmr.msrb.gmra.mxu0 %v17428_v20  ;;  %v16953_v56 = vld [vmem:[#allocation2 + $0x2474] sm:$0xf0]  ;;  %v14964_v1 = vld [vmem:[#allocation2 + $0x2308] sm:$0xf] }
 0x4a7   :  { %9752 = vmatpush.bf16.msra.mxu0 %v14949_v39  ;;  %v15268_v39 = vld [vmem:[#allocation2 + $0x2568] sm:$0xf]  ;;  %v15141_v61 = vor.u32 %v16953_v56, %v15140_v55  ;;  %v16941_v45 = vld [vmem:[#allocation2 + $0x2414] sm:$0xf0] }
 0x4a8   :  { %9734 = vmatmul.bf16.vlgmr.msrb.gmra.mxu2 %v17420_v4  ;;  %9721 = vmatmul.bf16.vlgmr.msrb.gmra.mxu1 %v17431_v21  ;;  %v17033_v55 = vld [vmem:[#allocation2 + $0x26f4] sm:$0xf0]  ;;  %v15588_v56 = vld [vmem:[#allocation2 + $0x27e8] sm:$0xf] }
 0x4a9   :  { %9765 = vmatpush.bf16.msra.mxu1 %v15077_v58  ;;  %9778 = vmatpush.bf16.msra.mxu2 %v15205_v10  ;;  %v16985_v58 = vld [vmem:[#allocation2 + $0x2574] sm:$0xf0]  ;;  %v9515_v10 = vadd.f32 %v9514_v51, %v9502_v50  ;;  %v15220_v50 = vld [vmem:[#allocation2 + $0x2508] sm:$0xf] }
 0x4aa   :  { %9791 = vmatpush.bf16.msra.mxu3 %v15333_v0  ;;  %v14868_v0 = vld [vmem:[#allocation2 + $0x2248] sm:$0xf]  ;;  %v15269_v2 = vor.u32 %v16985_v58, %v15268_v39  ;;  %v16973_v51 = vld [vmem:[#allocation2 + $0x2514] sm:$0xf0]  ;;  %v14837_v39 = vor.u32 %v16877_v31, %v14836_v30 }
 0x4ab   :  { %9747 = vmatmul.bf16.vlgmr.msrb.gmra.mxu3 %v17425_v6  ;;  %9753 = vmatpush.bf16.msra.mxu0 %v14933_v8  ;;  %v9527_v63 = vpop.f32.mrf.mxu2  ;;  %v16949_v8 = vld [vmem:[#allocation2 + $0x2454] sm:$0xf0]  ;;  %v14869_v25 = vor.u32 %v16885_v62, %v14868_v0  ;;  %v9503_v32 = vpop.f32.mrf.mxu0  ;;  %v16807_v0 = vld [vmem:[#allocation2 + $0x1fec] sm:$0xf]  ;;  %v14566_v62 = vld [vmem:[#allocation2 + $0x1ff8] sm:$0xf0]  ;;  %v15221_v3 = vor.u32 %v16973_v51, %v15220_v50 }
 0x4ac   :  { %v15125_v43 = vor.u32 %v16949_v8, %v15124_v7  ;;  %v17065_v58 = vld [vmem:[#allocation2 + $0x27f4] sm:$0xf0]  ;;  %v15444_v7 = vld [vmem:[#allocation2 + $0x26c8] sm:$0xf]  ;;  %v16803_v32 = vld [vmem:[#allocation2 + $0x1fcc] sm:$0xf] }
 0x4ad   :  { %9766 = vmatpush.bf16.msra.mxu1 %v15061_v60  ;;  %9779 = vmatpush.bf16.msra.mxu2 %v15189_v14  ;;  %v9528_v60 = vadd.f32 %v9527_v63, %v9515_v10  ;;  %v16775_v10 = vld [vmem:[#allocation2 + $0x1eec] sm:$0xf]  ;;  %v15461_v63 = vor.u32 %v17033_v55, %v15460_v54  ;;  %v17029_v8 = vld [vmem:[#allocation2 + $0x26d4] sm:$0xf0] }
 0x4ae   :  { %9792 = vmatpush.bf16.msra.mxu3 %v15317_v9  ;;  %v9540_v14 = vpop.f32.mrf.mxu3  ;;  %v16795_v51 = vld [vmem:[#allocation2 + $0x1f8c] sm:$0xf] }
 0x4af   :  { %9754 = vmatpush.bf16.msra.mxu0 %v14917_v47  ;;  %v17715_v9 = vadd.f32 %v9540_v14, %v9528_v60  ;;  %v14980_v47 = vld [vmem:[#allocation2 + $0x2328] sm:$0xf]  ;;  %v14569_v14 = vor.u32 %v16807_v0, %v14566_v62  ;;  %v17049_v62 = vld [vmem:[#allocation2 + $0x2774] sm:$0xf0] }
 0x4b0   :  { %v14981_v33 = vor.u32 %v16913_v46, %v14980_v47  ;;  %v15572_v60 = vld [vmem:[#allocation2 + $0x27c8] sm:$0xf] }
 0x4b1   :  { %9767 = vmatpush.bf16.msra.mxu1 %v15045_v23  ;;  %9780 = vmatpush.bf16.msra.mxu2 %v15173_v27  ;;  %v9516_v23 = vpop.f32.mrf.mxu1  ;;  %v15253_v27 = vor.u32 %v16981_v17, %v15252_v15  ;;  %v17061_v15 = vld [vmem:[#allocation2 + $0x27d4] sm:$0xf0]  ;;  %v16771_v17 = vld [vmem:[#allocation2 + $0x1ecc] sm:$0xf]  ;;  %v15428_v47 = vld [vmem:[#allocation2 + $0x26a8] sm:$0xf] }
 0x4b2   :  { %9793 = vmatpush.bf16.msra.mxu3 %v15301_v19  ;;  %v15236_v19 = vld [vmem:[#allocation2 + $0x2528] sm:$0xf]  ;;  %v15573_v57 = vor.u32 %v17061_v15, %v15572_v60  ;;  %v17025_v23 = vld [vmem:[#allocation2 + $0x26b4] sm:$0xf0] }
 0x4b3   :  { %9755 = vmatpush.bf16.msra.mxu0 %v14901_v34  ;;  %v15109_v34 = vor.u32 %v16945_v59, %v15108_v49  ;;  %v9529_v37 = vpop.f32.mrf.mxu2  ;;  %v15237_v40 = vor.u32 %v16977_v28, %v15236_v19  ;;  %v17057_v49 = vld [vmem:[#allocation2 + $0x27b4] sm:$0xf0]  ;;  %v16767_v59 = vld [vmem:[#allocation2 + $0x1eac] sm:$0xf]  ;;  %v14406_v19 = vld [vmem:[#allocation2 + $0x1eb8] sm:$0xf0]  ;;  %v15429_v30 = vor.u32 %v17025_v23, %v15428_v47 }
 0x4b4   :  { %v16799_v28 = vld [vmem:[#allocation2 + $0x1fac] sm:$0xf]  ;;  %v17053_v37 = vld [vmem:[#allocation2 + $0x2794] sm:$0xf0]  ;;  %v14486_v47 = vld [vmem:[#allocation2 + $0x1f58] sm:$0xf0] }
 0x4b5   :  { %9768 = vmatpush.bf16.msra.mxu1 %v15029_v35  ;;  %9781 = vmatpush.bf16.msra.mxu2 %v15157_v36  ;;  %v16909_v35 = vld [vmem:[#allocation2 + $0x2314] sm:$0xf0]  ;;  %v15092_v36 = vld [vmem:[#allocation2 + $0x2408] sm:$0xf] }
 0x4b6   :  { %9794 = vmatpush.bf16.msra.mxu3 %v15285_v52  ;;  %v9542_v52 = vpop.f32.mrf.mxu3  ;;  %v17013_v15 = vld [vmem:[#allocation2 + $0x2654] sm:$0xf0] }
 0x4b7   :  { %9756 = vmatpush.bf16.msra.mxu0 %v14885_v48  ;;  %v14438_v48 = vld [vmem:[#allocation2 + $0x1ef8] sm:$0xf0] }
 0x4b8   :  { %v14441_v11 = vor.u32 %v16775_v10, %v14438_v48  ;;  %v14518_v52 = vld [vmem:[#allocation2 + $0x1f98] sm:$0xf0]  ;;  %v15396_v10 = vld [vmem:[#allocation2 + $0x2668] sm:$0xf]  ;;  %v17017_v48 = vld [vmem:[#allocation2 + $0x2674] sm:$0xf0] }
 0x4b9   :  { %9769 = vmatpush.bf16.msra.mxu1 %v15013_v24  ;;  %9782 = vmatpush.bf16.msra.mxu2 %v15141_v61  ;;  %v14965_v24 = vor.u32 %v16909_v35, %v14964_v1  ;;  %v15093_v61 = vor.u32 %v16941_v45, %v15092_v36  ;;  %v17021_v1 = vld [vmem:[#allocation2 + $0x2694] sm:$0xf0]  ;;  %v15540_v35 = vld [vmem:[#allocation2 + $0x2788] sm:$0xf]  ;;  %v14390_v45 = vld [vmem:[#allocation2 + $0x1e98] sm:$0xf0] }
 0x4ba   :  { %9795 = vmatpush.bf16.msra.mxu3 %v15269_v2  ;;  %v15589_v2 = vor.u32 %v17065_v58, %v15588_v56 }
 0x4bb   :  { %9757 = vmatpush.bf16.msra.mxu0 %v14869_v25  ;;  %v14422_v25 = vld [vmem:[#allocation2 + $0x1ed8] sm:$0xf0] }
 0x4bc   :  { %v14425_v13 = vor.u32 %v16771_v17, %v14422_v25  ;;  %v15508_v17 = vld [vmem:[#allocation2 + $0x2748] sm:$0xf] }
 0x4bd   :  { %9770 = vmatpush.bf16.msra.mxu1 %v14997_v18  ;;  %9783 = vmatpush.bf16.msra.mxu2 %v15125_v43  ;;  %v14550_v18 = vld [vmem:[#allocation2 + $0x1fd8] sm:$0xf0]  ;;  %v15445_v43 = vor.u32 %v17029_v8, %v15444_v7  ;;  %v15397_v7 = vor.u32 %v17017_v48, %v15396_v10  ;;  %v16779_v10 = vld [vmem:[#allocation2 + $0x1f0c] sm:$0xf] }
 0x4be   :  { %9796 = vmatpush.bf16.msra.mxu3 %v15253_v27  ;;  %v15556_v27 = vld [vmem:[#allocation2 + $0x27a8] sm:$0xf]  ;;  %v14553_v46 = vor.u32 %v16803_v32, %v14550_v18  ;;  %v17045_v32 = vld [vmem:[#allocation2 + $0x2754] sm:$0xf0]  ;;  %v16755_v18 = vld [vmem:[#allocation2 + $0x1e4c] sm:$0xf] }
 0x4bf   :  { %9758 = vmatpush.bf16.msra.mxu0 %v14853_v29  ;;  %v14534_v29 = vld [vmem:[#allocation2 + $0x1fb8] sm:$0xf0]  ;;  %v15557_v31 = vor.u32 %v17057_v49, %v15556_v27 }
 0x4c0   :  { %v14537_v36 = vor.u32 %v16799_v28, %v14534_v29  ;;  %v15364_v29 = vld [vmem:[#allocation2 + $0x2628] sm:$0xf]  ;;  %v14454_v48 = vld [vmem:[#allocation2 + $0x1f18] sm:$0xf0] }
 0x4c1   :  { %9771 = vmatpush.bf16.msra.mxu1 %v14981_v33  ;;  %9784 = vmatpush.bf16.msra.mxu2 %v15109_v34  ;;  %v14409_v33 = vor.u32 %v16767_v59, %v14406_v19  ;;  %v15412_v34 = vld [vmem:[#allocation2 + $0x2688] sm:$0xf]  ;;  %v15509_v19 = vor.u32 %v17045_v32, %v15508_v17  ;;  %v15078_v17 = vld [vmem:[#allocation2 + $0x23f8] sm:$0xf0] }
 0x4c2   :  { %9797 = vmatpush.bf16.msra.mxu3 %v15237_v40  ;;  %v16763_v40 = vld [vmem:[#allocation2 + $0x1e8c] sm:$0xf]  ;;  %v15413_v55 = vor.u32 %v17021_v1, %v15412_v34  ;;  %v17041_v34 = vld [vmem:[#allocation2 + $0x2734] sm:$0xf0] }
 0x4c3   :  { %9759 = vmatpush.bf16.msra.mxu0 %v14837_v39  ;;  %v9553_v50 = vpop.f32.mrf.mxu0  ;;  %v15541_v39 = vor.u32 %v17053_v37, %v15540_v35  ;;  %v14393_v58 = vor.u32 %v16763_v40, %v14390_v45  ;;  %v16751_v1 = vld [vmem:[#allocation2 + $0x1e2c] sm:$0xf]  ;;  %v14342_v35 = vld [vmem:[#allocation2 + $0x1e38] sm:$0xf0]  ;;  %v15348_v45 = vld [vmem:[#allocation2 + $0x2608] sm:$0xf] }
 0x4c4   :  { %v9554_v54 = vadd.f32 %v9553_v50, %v17715_v9  ;;  %v14470_v37 = vld [vmem:[#allocation2 + $0x1f38] sm:$0xf0]  ;;  %v17005_v50 = vld [vmem:[#allocation2 + $0x2614] sm:$0xf0] }
 0x4c5   :  { %9772 = vmatpush.bf16.msra.mxu1 %v14965_v24  ;;  %9785 = vmatpush.bf16.msra.mxu2 %v15093_v61  ;;  %v9566_v56 = vpop.f32.mrf.mxu1  ;;  %v15524_v24 = vld [vmem:[#allocation2 + $0x2768] sm:$0xf]  ;;  %v14521_v61 = vor.u32 %v16795_v51, %v14518_v52  ;;  %v14345_v52 = vor.u32 %v16751_v1, %v14342_v35  ;;  %v16863_v1 = vld [vmem:[#allocation2 + $0x21ac] sm:$0xf] }
 0x4c6   :  { %9798 = vmatpush.bf16.msra.mxu3 %v15221_v3  ;;  %9760 = vmatmul.bf16.vlgmr.msra.gmra.mxu0 %v17443_v41  ;;  %v17722_v0 = vadd.f32 %v9566_v56, %v9554_v54  ;;  %v16759_v3 = vld [vmem:[#allocation2 + $0x1e6c] sm:$0xf]  ;;  %v15525_v8 = vor.u32 %v17049_v62, %v15524_v24  ;;  %v15476_v54 = vld [vmem:[#allocation2 + $0x2708] sm:$0xf]  ;;  %v14694_v62 = vld [vmem:[#allocation2 + $0x20f8] sm:$0xf0] }
 0x4c7   :  { %9804 = vmatpush.bf16.msrb.mxu0 %v15461_v63  ;;  %v14374_v63 = vld [vmem:[#allocation2 + $0x1e78] sm:$0xf0]  ;;  %v16747_v56 = vld [vmem:[#allocation2 + $0x1e0c] sm:$0xf] }
 0x4c8   :  { %9786 = vmatmul.bf16.vlgmr.msra.gmra.mxu2 %v17441_v38  ;;  %9773 = vmatmul.bf16.vlgmr.msra.gmra.mxu1 %v17447_v44  ;;  %v9960_v9 = vmax.f32 %v17641_v53, %v17722_v0  ;;  %v14377_v60 = vor.u32 %v16759_v3, %v14374_v63  ;;  %v16871_v3 = vld [vmem:[#allocation2 + $0x21ec] sm:$0xf] }
 0x4c9   :  { %9817 = vmatpush.bf16.msrb.mxu1 %v15589_v2  ;;  %9830 = vmatpush.bf16.msrb.mxu2 %v14441_v11  ;;  %v16791_v2 = vld [vmem:[#allocation2 + $0x1f6c] sm:$0xf]  ;;  %v14502_v11 = vld [vmem:[#allocation2 + $0x1f78] sm:$0xf0] }
 0x4ca   :  { %9843 = vmatpush.bf16.msrb.mxu3 %v14569_v14  ;;  %v15380_v14 = vld [vmem:[#allocation2 + $0x2648] sm:$0xf]  ;;  %v14505_v25 = vor.u32 %v16791_v2, %v14502_v11  ;;  %v15349_v2 = vor.u32 %v17005_v50, %v15348_v45  ;;  %v14822_v11 = vld [vmem:[#allocation2 + $0x21f8] sm:$0xf0]  ;;  %v16927_v45 = vld [vmem:[#allocation2 + $0x23ac] sm:$0xf] }
 0x4cb   :  { %9799 = vmatmul.bf16.vlgmr.msra.gmra.mxu3 %v17445_v42  ;;  %9805 = vmatpush.bf16.msrb.mxu0 %v15445_v43  ;;  %v14358_v43 = vld [vmem:[#allocation2 + $0x1e58] sm:$0xf0]  ;;  %v9555_v27 = vpop.f32.mrf.mxu0 }
 0x4cc   :  { %v14361_v28 = vor.u32 %v16755_v18, %v14358_v43  ;;  %v14825_v18 = vor.u32 %v16871_v3, %v14822_v11  ;;  %v14806_v27 = vld [vmem:[#allocation2 + $0x21d8] sm:$0xf0] }
 0x4cd   :  { %9818 = vmatpush.bf16.msrb.mxu1 %v15573_v57  ;;  %9831 = vmatpush.bf16.msrb.mxu2 %v14425_v13  ;;  %v9579_v57 = vpop.f32.mrf.mxu2  ;;  %v16787_v13 = vld [vmem:[#allocation2 + $0x1f4c] sm:$0xf]  ;;  %v9568_v59 = vpop.f32.mrf.mxu1  ;;  %v15046_v50 = vld [vmem:[#allocation2 + $0x23b8] sm:$0xf0] }
 0x4ce   :  { %9844 = vmatpush.bf16.msrb.mxu3 %v14553_v46  ;;  %v9592_v23 = vpop.f32.mrf.mxu3  ;;  %v15381_v46 = vor.u32 %v17013_v15, %v15380_v14  ;;  %v16935_v15 = vld [vmem:[#allocation2 + $0x23ec] sm:$0xf]  ;;  %v14934_v59 = vld [vmem:[#allocation2 + $0x22d8] sm:$0xf0] }
 0x4cf   :  { %9806 = vmatpush.bf16.msrb.mxu0 %v15429_v30  ;;  %v17726_v49 = vadd.f32 %v9592_v23, %v9579_v57  ;;  %v17009_v30 = vld [vmem:[#allocation2 + $0x2634] sm:$0xf0]  ;;  %v16835_v57 = vld [vmem:[#allocation2 + $0x20cc] sm:$0xf]  ;;  %v15081_v23 = vor.u32 %v16935_v15, %v15078_v17  ;;  %v14630_v11 = vld [vmem:[#allocation2 + $0x2078] sm:$0xf0] }
 0x4d0   :  { %v15365_v40 = vor.u32 %v17009_v30, %v15364_v29  ;;  %v16887_v15 = vld [vmem:[#allocation2 + $0x226c] sm:$0xf]  ;;  %v14886_v17 = vld [vmem:[#allocation2 + $0x2278] sm:$0xf0] }
 0x4d1   :  { %9819 = vmatpush.bf16.msrb.mxu1 %v15557_v31  ;;  %9832 = vmatpush.bf16.msrb.mxu2 %v14409_v33  ;;  %v15492_v31 = vld [vmem:[#allocation2 + $0x2728] sm:$0xf]  ;;  %v14489_v33 = vor.u32 %v16787_v13, %v14486_v47  ;;  %v14678_v13 = vld [vmem:[#allocation2 + $0x20d8] sm:$0xf0]  ;;  %v16867_v47 = vld [vmem:[#allocation2 + $0x21cc] sm:$0xf] }
 0x4d2   :  { %9845 = vmatpush.bf16.msrb.mxu3 %v14537_v36  ;;  %v16783_v36 = vld [vmem:[#allocation2 + $0x1f2c] sm:$0xf]  ;;  %v15493_v51 = vor.u32 %v17041_v34, %v15492_v31  ;;  %v14681_v29 = vor.u32 %v16835_v57, %v14678_v13  ;;  %v14809_v30 = vor.u32 %v16867_v47, %v14806_v27  ;;  %v14662_v34 = vld [vmem:[#allocation2 + $0x20b8] sm:$0xf0]  ;;  %v14889_v57 = vor.u32 %v16887_v15, %v14886_v17 }
 0x4d3   :  { %9807 = vmatpush.bf16.msrb.mxu0 %v15413_v55  ;;  %v17037_v55 = vld [vmem:[#allocation2 + $0x2714] sm:$0xf0]  ;;  %v16819_v13 = vld [vmem:[#allocation2 + $0x204c] sm:$0xf]  ;;  %v14614_v47 = vld [vmem:[#allocation2 + $0x2058] sm:$0xf0] }
 0x4d4   :  { %v15206_v15 = vld [vmem:[#allocation2 + $0x24f8] sm:$0xf0]  ;;  %v16999_v17 = vld [vmem:[#allocation2 + $0x25ec] sm:$0xf] }
 0x4d5   :  { %9820 = vmatpush.bf16.msrb.mxu1 %v15541_v39  ;;  %9833 = vmatpush.bf16.msrb.mxu2 %v14393_v58  ;;  %v14473_v39 = vor.u32 %v16783_v36, %v14470_v37  ;;  %v14326_v58 = vld [vmem:[#allocation2 + $0x1e18] sm:$0xf0]  ;;  %v9581_v24 = vpop.f32.mrf.mxu2  ;;  %v16895_v37 = vld [vmem:[#allocation2 + $0x22ac] sm:$0xf] }
 0x4d6   :  { %9846 = vmatpush.bf16.msrb.mxu3 %v14521_v61  ;;  %v16839_v61 = vld [vmem:[#allocation2 + $0x20ec] sm:$0xf]  ;;  %v9594_v63 = vpop.f32.mrf.mxu3  ;;  %v14329_v14 = vor.u32 %v16747_v56, %v14326_v58  ;;  %v14790_v36 = vld [vmem:[#allocation2 + $0x21b8] sm:$0xf0]  ;;  %v15049_v58 = vor.u32 %v16927_v45, %v15046_v50 }
 0x4d7   :  { %9808 = vmatpush.bf16.msrb.mxu0 %v15397_v7  ;;  %v16903_v7 = vld [vmem:[#allocation2 + $0x22ec] sm:$0xf]  ;;  %v14697_v32 = vor.u32 %v16839_v61, %v14694_v62  ;;  %v14646_v56 = vld [vmem:[#allocation2 + $0x2098] sm:$0xf0] }
 0x4d8   :  { %v14902_v24 = vld [vmem:[#allocation2 + $0x2298] sm:$0xf0]  ;;  %v16923_v61 = vld [vmem:[#allocation2 + $0x238c] sm:$0xf] }
 0x4d9   :  { %9821 = vmatpush.bf16.msrb.mxu1 %v15525_v8  ;;  %9834 = vmatpush.bf16.msrb.mxu2 %v14377_v60  ;;  %v14950_v8 = vld [vmem:[#allocation2 + $0x22f8] sm:$0xf0]  ;;  %v15477_v60 = vor.u32 %v17037_v55, %v15476_v54  ;;  %v16827_v55 = vld [vmem:[#allocation2 + $0x208c] sm:$0xf] }
 0x4da   :  { %9847 = vmatpush.bf16.msrb.mxu3 %v14505_v25  ;;  %v14457_v25 = vor.u32 %v16779_v10, %v14454_v48  ;;  %v14953_v43 = vor.u32 %v16903_v7, %v14950_v8  ;;  %v14774_v10 = vld [vmem:[#allocation2 + $0x2198] sm:$0xf0]  ;;  %v16891_v48 = vld [vmem:[#allocation2 + $0x228c] sm:$0xf] }
 0x4db   :  { %9809 = vmatpush.bf16.msrb.mxu0 %v15381_v46  ;;  %v16899_v46 = vld [vmem:[#allocation2 + $0x22cc] sm:$0xf]  ;;  %v15030_v62 = vld [vmem:[#allocation2 + $0x2398] sm:$0xf0]  ;;  %v14905_v63 = vor.u32 %v16891_v48, %v14902_v24 }
 0x4dc   :  { %v14937_v31 = vor.u32 %v16899_v46, %v14934_v59  ;;  %v16855_v7 = vld [vmem:[#allocation2 + $0x216c] sm:$0xf]  ;;  %v14742_v59 = vld [vmem:[#allocation2 + $0x2158] sm:$0xf0] }
 0x4dd   :  { %9822 = vmatpush.bf16.msrb.mxu1 %v15509_v19  ;;  %9835 = vmatpush.bf16.msrb.mxu2 %v14361_v28  ;;  %v16931_v19 = vld [vmem:[#allocation2 + $0x23cc] sm:$0xf]  ;;  %v15062_v28 = vld [vmem:[#allocation2 + $0x23d8] sm:$0xf0] }
 0x4de   :  { %9848 = vmatpush.bf16.msrb.mxu3 %v14489_v33  ;;  %v16831_v33 = vld [vmem:[#allocation2 + $0x20ac] sm:$0xf]  ;;  %v15065_v35 = vor.u32 %v16931_v19, %v15062_v28  ;;  %v14870_v28 = vld [vmem:[#allocation2 + $0x2258] sm:$0xf0] }
 0x4df   :  { %9810 = vmatpush.bf16.msrb.mxu0 %v15365_v40  ;;  %v14918_v40 = vld [vmem:[#allocation2 + $0x22b8] sm:$0xf0]  ;;  %v16883_v19 = vld [vmem:[#allocation2 + $0x224c] sm:$0xf] }
 0x4e0   :  { %v14921_v54 = vor.u32 %v16895_v37, %v14918_v40  ;;  %v14598_v37 = vld [vmem:[#allocation2 + $0x2038] sm:$0xf0]  ;;  %v16847_v40 = vld [vmem:[#allocation2 + $0x212c] sm:$0xf] }
 0x4e1   :  { %9823 = vmatpush.bf16.msrb.mxu1 %v15493_v51  ;;  %9836 = vmatpush.bf16.msrb.mxu2 %v14345_v52  ;;  %v14665_v51 = vor.u32 %v16831_v33, %v14662_v34  ;;  %v14793_v52 = vor.u32 %v16863_v1, %v14790_v36  ;;  %v14617_v33 = vor.u32 %v16819_v13, %v14614_v47  ;;  %v16815_v36 = vld [vmem:[#allocation2 + $0x202c] sm:$0xf] }
 0x4e2   :  { %9849 = vmatpush.bf16.msrb.mxu3 %v14473_v39  ;;  %v16859_v39 = vld [vmem:[#allocation2 + $0x218c] sm:$0xf] }
 0x4e3   :  { %9811 = vmatpush.bf16.msrb.mxu0 %v15349_v2  ;;  %v17732_v3 = vpop.f32.mrf.mxu0  ;;  %v16823_v2 = vld [vmem:[#allocation2 + $0x206c] sm:$0xf] }
 0x4e5   :  { %9824 = vmatpush.bf16.msrb.mxu1 %v15477_v60  ;;  %9837 = vmatpush.bf16.msrb.mxu2 %v14329_v14  ;;  %v17734_v8 = vpop.f32.mrf.mxu1  ;;  %v15033_v60 = vor.u32 %v16923_v61, %v15030_v62  ;;  %v14758_v14 = vld [vmem:[#allocation2 + $0x2178] sm:$0xf0]  ;;  %v16843_v61 = vld [vmem:[#allocation2 + $0x210c] sm:$0xf] }
 0x4e6   :  { %9850 = vmatpush.bf16.msrb.mxu3 %v14457_v25  ;;  %9812 = vmatmul.bf16.vlgmr.msrb.gmra.mxu0 %v17456_v22  ;;  %v16919_v25 = vld [vmem:[#allocation2 + $0x236c] sm:$0xf]  ;;  %v14710_v62 = vld [vmem:[#allocation2 + $0x2118] sm:$0xf0] }
 0x4e7   :  { %9856 = vmatpush.bf16.msra.mxu0 %v14697_v32  ;;  %v15014_v32 = vld [vmem:[#allocation2 + $0x2378] sm:$0xf0]  ;;  %v14713_v13 = vor.u32 %v16843_v61, %v14710_v62 }
 0x4e8   :  { %9825 = vmatmul.bf16.vlgmr.msrb.gmra.mxu1 %v17458_v26  ;;  %9838 = vmatmul.bf16.vlgmr.msrb.gmra.mxu2 %v17428_v20  ;;  %v14649_v20 = vor.u32 %v16827_v55, %v14646_v56  ;;  %v15017_v46 = vor.u32 %v16919_v25, %v15014_v32  ;;  %v16911_v55 = vld [vmem:[#allocation2 + $0x232c] sm:$0xf]  ;;  %v14982_v56 = vld [vmem:[#allocation2 + $0x2338] sm:$0xf0] }
 0x4e9   :  { %9869 = vmatpush.bf16.msra.mxu1 %v14825_v18  ;;  %9882 = vmatpush.bf16.msra.mxu2 %v14953_v43  ;;  %v14633_v18 = vor.u32 %v16823_v2, %v14630_v11  ;;  %v14761_v43 = vor.u32 %v16855_v7, %v14758_v14  ;;  %v14838_v2 = vld [vmem:[#allocation2 + $0x2218] sm:$0xf0]  ;;  %v16907_v11 = vld [vmem:[#allocation2 + $0x230c] sm:$0xf] }
 0x4ea   :  { %9895 = vmatpush.bf16.msra.mxu3 %v15081_v23  ;;  %v16851_v23 = vld [vmem:[#allocation2 + $0x214c] sm:$0xf]  ;;  %v14966_v7 = vld [vmem:[#allocation2 + $0x2318] sm:$0xf0] }
 0x4eb   :  { %9857 = vmatpush.bf16.msra.mxu0 %v14681_v29  ;;  %9851 = vmatmul.bf16.vlgmr.msrb.gmra.mxu3 %v17431_v21  ;;  %v14777_v21 = vor.u32 %v16859_v39, %v14774_v10  ;;  %v17736_v27 = vpop.f32.mrf.mxu2  ;;  %v9607_v34 = vpop.f32.mrf.mxu0  ;;  %v14745_v1 = vor.u32 %v16851_v23, %v14742_v59  ;;  %v14601_v39 = vor.u32 %v16815_v36, %v14598_v37  ;;  %v14582_v10 = vld [vmem:[#allocation2 + $0x2018] sm:$0xf0]  ;;  %v16967_v14 = vld [vmem:[#allocation2 + $0x24ec] sm:$0xf] }
 0x4ec   :  { %v15334_v32 = vld [vmem:[#allocation2 + $0x25f8] sm:$0xf0]  ;;  %v17063_v23 = vld [vmem:[#allocation2 + $0x27ec] sm:$0xf]  ;;  %v14969_v59 = vor.u32 %v16907_v11, %v14966_v7 }
 0x4ed   :  { %9870 = vmatpush.bf16.msra.mxu1 %v14809_v30  ;;  %9883 = vmatpush.bf16.msra.mxu2 %v14937_v31  ;;  %v16915_v30 = vld [vmem:[#allocation2 + $0x234c] sm:$0xf]  ;;  %v14998_v31 = vld [vmem:[#allocation2 + $0x2358] sm:$0xf0]  ;;  %v9620_v45 = vpop.f32.mrf.mxu1 }
 0x4ee   :  { %9896 = vmatpush.bf16.msra.mxu3 %v15065_v35  ;;  %v17738_v29 = vpop.f32.mrf.mxu3  ;;  %v14873_v35 = vor.u32 %v16883_v19, %v14870_v28  ;;  %v15001_v50 = vor.u32 %v16915_v30, %v14998_v31  ;;  %v15209_v19 = vor.u32 %v16967_v14, %v15206_v15  ;;  %v15337_v28 = vor.u32 %v16999_v17, %v15334_v32  ;;  %v16963_v31 = vld [vmem:[#allocation2 + $0x24cc] sm:$0xf]  ;;  %v15446_v37 = vld [vmem:[#allocation2 + $0x26d8] sm:$0xf0] }
 0x4ef   :  { %9858 = vmatpush.bf16.msra.mxu0 %v14665_v51  ;;  %v14726_v51 = vld [vmem:[#allocation2 + $0x2138] sm:$0xf0]  ;;  %v16995_v34 = vld [vmem:[#allocation2 + $0x25cc] sm:$0xf] }
 0x4f0   :  { %v14729_v48 = vor.u32 %v16847_v40, %v14726_v51  ;;  %v17027_v36 = vld [vmem:[#allocation2 + $0x26cc] sm:$0xf]  ;;  %v15574_v40 = vld [vmem:[#allocation2 + $0x27d8] sm:$0xf0] }
 0x4f1   :  { %9871 = vmatpush.bf16.msra.mxu1 %v14793_v52  ;;  %9884 = vmatpush.bf16.msra.mxu2 %v14921_v54  ;;  %v16879_v52 = vld [vmem:[#allocation2 + $0x222c] sm:$0xf]  ;;  %v14854_v54 = vld [vmem:[#allocation2 + $0x2238] sm:$0xf0]  ;;  %v15449_v51 = vor.u32 %v17027_v36, %v15446_v37 }
 0x4f2   :  { %9897 = vmatpush.bf16.msra.mxu3 %v15049_v58  ;;  %v16811_v58 = vld [vmem:[#allocation2 + $0x200c] sm:$0xf]  ;;  %v14857_v24 = vor.u32 %v16879_v52, %v14854_v54  ;;  %v15174_v54 = vld [vmem:[#allocation2 + $0x24b8] sm:$0xf0] }
 0x4f3   :  { %9859 = vmatpush.bf16.msra.mxu0 %v14649_v20  ;;  %v16875_v20 = vld [vmem:[#allocation2 + $0x220c] sm:$0xf]  ;;  %v14585_v25 = vor.u32 %v16811_v58, %v14582_v10  ;;  %v15430_v58 = vld [vmem:[#allocation2 + $0x26b8] sm:$0xf0] }
 0x4f4   :  { %v14841_v47 = vor.u32 %v16875_v20, %v14838_v2  ;;  %v16959_v52 = vld [vmem:[#allocation2 + $0x24ac] sm:$0xf]  ;;  %v15542_v14 = vld [vmem:[#allocation2 + $0x2798] sm:$0xf0] }
 0x4f5   :  { %9872 = vmatpush.bf16.msra.mxu1 %v14777_v21  ;;  %9885 = vmatpush.bf16.msra.mxu2 %v14905_v63  ;;  %v9633_v21 = vpop.f32.mrf.mxu2  ;;  %v14985_v63 = vor.u32 %v16911_v55, %v14982_v56  ;;  %v16991_v55 = vld [vmem:[#allocation2 + $0x25ac] sm:$0xf]  ;;  %v15177_v61 = vor.u32 %v16959_v52, %v15174_v54  ;;  %v15254_v37 = vld [vmem:[#allocation2 + $0x2558] sm:$0xf0] }
 0x4f6   :  { %9898 = vmatpush.bf16.msra.mxu3 %v15033_v60  ;;  %v9646_v60 = vpop.f32.mrf.mxu3  ;;  %v15158_v21 = vld [vmem:[#allocation2 + $0x2498] sm:$0xf0]  ;;  %v17019_v11 = vld [vmem:[#allocation2 + $0x268c] sm:$0xf] }
 0x4f7   :  { %9860 = vmatpush.bf16.msra.mxu0 %v14633_v18  ;;  %v17031_v18 = vld [vmem:[#allocation2 + $0x26ec] sm:$0xf] }
 0x4f8   :  { %v17051_v60 = vld [vmem:[#allocation2 + $0x278c] sm:$0xf] }
 0x4f9   :  { %9873 = vmatpush.bf16.msra.mxu1 %v14761_v43  ;;  %9886 = vmatpush.bf16.msra.mxu2 %v14889_v57  ;;  %v15462_v43 = vld [vmem:[#allocation2 + $0x26f8] sm:$0xf0]  ;;  %v9606_v57 = vadd.f32 %v17732_v3, %v17726_v49  ;;  %v17059_v3 = vld [vmem:[#allocation2 + $0x27cc] sm:$0xf] }
 0x4fa   :  { %9899 = vmatpush.bf16.msra.mxu3 %v15017_v46  ;;  %v15590_v46 = vld [vmem:[#allocation2 + $0x27f8] sm:$0xf0]  ;;  %v15465_v30 = vor.u32 %v17031_v18, %v15462_v43  ;;  %v15577_v56 = vor.u32 %v17059_v3, %v15574_v40  ;;  %v16951_v18 = vld [vmem:[#allocation2 + $0x246c] sm:$0xf] }
 0x4fb   :  { %9861 = vmatpush.bf16.msra.mxu0 %v14617_v33  ;;  %v15190_v33 = vld [vmem:[#allocation2 + $0x24d8] sm:$0xf0]  ;;  %v9619_v49 = vadd.f32 %v17734_v8, %v9606_v57  ;;  %v17023_v8 = vld [vmem:[#allocation2 + $0x26ac] sm:$0xf] }
 0x4fc   :  { %v15193_v45 = vor.u32 %v16963_v31, %v15190_v33  ;;  %v15433_v20 = vor.u32 %v17023_v8, %v15430_v58  ;;  %v15142_v43 = vld [vmem:[#allocation2 + $0x2478] sm:$0xf0]  ;;  %v16983_v57 = vld [vmem:[#allocation2 + $0x256c] sm:$0xf] }
 0x4fd   :  { %9874 = vmatpush.bf16.msra.mxu1 %v14745_v1  ;;  %9887 = vmatpush.bf16.msra.mxu2 %v14873_v35  ;;  %v15593_v1 = vor.u32 %v17063_v23, %v15590_v46  ;;  %v15318_v35 = vld [vmem:[#allocation2 + $0x25d8] sm:$0xf0]  ;;  %v9632_v10 = vadd.f32 %v17736_v27, %v9619_v49  ;;  %v17015_v23 = vld [vmem:[#allocation2 + $0x266c] sm:$0xf] }
 0x4fe   :  { %9900 = vmatpush.bf16.msra.mxu3 %v15001_v50  ;;  %v15321_v50 = vor.u32 %v16995_v34, %v15318_v35  ;;  %v15286_v27 = vld [vmem:[#allocation2 + $0x2598] sm:$0xf0]  ;;  %v16947_v33 = vld [vmem:[#allocation2 + $0x244c] sm:$0xf] }
 0x4ff   :  { %9862 = vmatpush.bf16.msra.mxu0 %v14601_v39  ;;  %v15302_v39 = vld [vmem:[#allocation2 + $0x25b8] sm:$0xf0]  ;;  %v17011_v49 = vld [vmem:[#allocation2 + $0x264c] sm:$0xf] }
 0x500   :  { %v15305_v62 = vor.u32 %v16991_v55, %v15302_v39  ;;  %v15398_v46 = vld [vmem:[#allocation2 + $0x2678] sm:$0xf0]  ;;  %v16943_v58 = vld [vmem:[#allocation2 + $0x242c] sm:$0xf] }
 0x501   :  { %9875 = vmatpush.bf16.msra.mxu1 %v14729_v48  ;;  %9888 = vmatpush.bf16.msra.mxu2 %v14857_v24  ;;  %v17055_v48 = vld [vmem:[#allocation2 + $0x27ac] sm:$0xf]  ;;  %v15558_v24 = vld [vmem:[#allocation2 + $0x27b8] sm:$0xf0]  ;;  %v15401_v31 = vor.u32 %v17015_v23, %v15398_v46 }
 0x502   :  { %9901 = vmatpush.bf16.msra.mxu3 %v14985_v63  ;;  %v16987_v63 = vld [vmem:[#allocation2 + $0x258c] sm:$0xf]  ;;  %v15561_v2 = vor.u32 %v17055_v48, %v15558_v24  ;;  %v15126_v34 = vld [vmem:[#allocation2 + $0x2458] sm:$0xf0] }
 0x503   :  { %9863 = vmatpush.bf16.msra.mxu0 %v14585_v25  ;;  %v9657_v7 = vpop.f32.mrf.mxu0  ;;  %v15289_v25 = vor.u32 %v16987_v63, %v15286_v27  ;;  %v15382_v3 = vld [vmem:[#allocation2 + $0x2658] sm:$0xf0]  ;;  %v15129_v54 = vor.u32 %v16947_v33, %v15126_v34  ;;  %v16975_v48 = vld [vmem:[#allocation2 + $0x252c] sm:$0xf]  ;;  %v17078_v33 = vld [vmem:[#allocation6 + $0x60] sm:$0xff] }
 0x504   :  { %v15385_v8 = vor.u32 %v17011_v49, %v15382_v3  ;;  %v15494_v63 = vld [vmem:[#allocation2 + $0x2738] sm:$0xf0] }
 0x505   :  { %9876 = vmatpush.bf16.msra.mxu1 %v14713_v13  ;;  %9889 = vmatpush.bf16.msra.mxu2 %v14841_v47  ;;  %v15545_v13 = vor.u32 %v17051_v60, %v15542_v14  ;;  %v15270_v47 = vld [vmem:[#allocation2 + $0x2578] sm:$0xf0] }
 0x506   :  { %9902 = vmatpush.bf16.msra.mxu3 %v14969_v59  ;;  %9864 = vmatmul.bf16.vlgmr.msra.gmra.mxu0 %v17420_v4  ;;  %v15414_v4 = vld [vmem:[#allocation2 + $0x2698] sm:$0xf0] }
 0x507   :  { %9908 = vmatpush.bf16.msrb.mxu0 %v15209_v19  ;;  %v15417_v32 = vor.u32 %v17019_v11, %v15414_v4  ;;  %v15526_v59 = vld [vmem:[#allocation2 + $0x2778] sm:$0xf0]  ;;  %v15145_v19 = vor.u32 %v16951_v18, %v15142_v43  ;;  %v16939_v4 = vld [vmem:[#allocation2 + $0x240c] sm:$0xf] }
 0x508   :  { %9890 = vmatmul.bf16.vlgmr.msra.gmra.mxu2 %v17443_v41  ;;  %9877 = vmatmul.bf16.vlgmr.msra.gmra.mxu1 %v17425_v6  ;;  %v16955_v41 = vld [vmem:[#allocation2 + $0x248c] sm:$0xf]  ;;  %v9670_v6 = vpop.f32.mrf.mxu1  ;;  %v15222_v14 = vld [vmem:[#allocation2 + $0x2518] sm:$0xf0] }
 0x509   :  { %9921 = vmatpush.bf16.msrb.mxu1 %v15337_v28  ;;  %9934 = vmatpush.bf16.msrb.mxu2 %v15465_v30  ;;  %v15161_v15 = vor.u32 %v16955_v41, %v15158_v21  ;;  %v15273_v30 = vor.u32 %v16983_v57, %v15270_v47  ;;  %v17039_v21 = vld [vmem:[#allocation2 + $0x272c] sm:$0xf]  ;;  %v17073_v23 = vld [vmem:[#allocation6 + $0x38] sm:$0xff] }
 0x50a   :  { %9947 = vmatpush.bf16.msrb.mxu3 %v15593_v1  ;;  %v16979_v1 = vld [vmem:[#allocation2 + $0x254c] sm:$0xf]  ;;  %v15497_v60 = vor.u32 %v17039_v21, %v15494_v63  ;;  %v17081_v46 = vld [vmem:[#allocation6 + $0x78] sm:$0xff] }
 0x50b   :  { %9903 = vmatmul.bf16.vlgmr.msra.gmra.mxu3 %v17447_v44  ;;  %9909 = vmatpush.bf16.msrb.mxu0 %v15193_v45  ;;  %v9645_v44 = vadd.f32 %v17738_v29, %v9632_v10  ;;  %v17047_v29 = vld [vmem:[#allocation2 + $0x276c] sm:$0xf]  ;;  %v9683_v36 = vpop.f32.mrf.mxu2  ;;  %v9659_v52 = vpop.f32.mrf.mxu0  ;;  %v15257_v39 = vor.u32 %v16979_v1, %v15254_v37  ;;  %v15110_v10 = vld [vmem:[#allocation2 + $0x2438] sm:$0xf0]  ;;  %v17068_v37 = vld [vmem:[#allocation6 + $0x10] sm:$0xff] }
 0x50c   :  { %v15529_v35 = vor.u32 %v17047_v29, %v15526_v59  ;;  %v17072_v29 = vld [vmem:[#allocation6 + $0x30] sm:$0xff]  ;;  %v17069_v1 = vld [vmem:[#allocation6 + $0x18] sm:$0xff]  ;;  %v17067_v52 = vld [vmem:[#allocation6 + $0x8] sm:$0xff] }
 0x50d   :  { %9922 = vmatpush.bf16.msrb.mxu1 %v15321_v50  ;;  %9935 = vmatpush.bf16.msrb.mxu2 %v15449_v51  ;;  %v9658_v17 = vadd.f32 %v9657_v7, %v9645_v44  ;;  %v17043_v50 = vld [vmem:[#allocation2 + $0x274c] sm:$0xf]  ;;  %v15510_v51 = vld [vmem:[#allocation2 + $0x2758] sm:$0xf0]  ;;  %v17080_v59 = vld [vmem:[#allocation6 + $0x70] sm:$0xff] }
 0x50e   :  { %9948 = vmatpush.bf16.msrb.mxu3 %v15577_v56  ;;  %v9696_v45 = vpop.f32.mrf.mxu3  ;;  %v15513_v24 = vor.u32 %v17043_v50, %v15510_v51  ;;  %v15094_v44 = vld [vmem:[#allocation2 + $0x2418] sm:$0xf0]  ;;  %v16971_v7 = vld [vmem:[#allocation2 + $0x250c] sm:$0xf] }
 0x50f   :  { %9910 = vmatpush.bf16.msrb.mxu0 %v15177_v61  ;;  %v9671_v28 = vadd.f32 %v9670_v6, %v9658_v17  ;;  %v15238_v61 = vld [vmem:[#allocation2 + $0x2538] sm:$0xf0]  ;;  %v15097_v43 = vor.u32 %v16939_v4, %v15094_v44  ;;  %v15225_v57 = vor.u32 %v16971_v7, %v15222_v14  ;;  %v17087_v51 = vld [vmem:[#allocation6 + $0xa8] sm:$0xff]  ;;  %v17082_v4 = vld [vmem:[#allocation6 + $0x80] sm:$0xff] }
 0x510   :  { %v9672_v55 = vpop.f32.mrf.mxu1  ;;  %v15241_v27 = vor.u32 %v16975_v48, %v15238_v61  ;;  %v15350_v6 = vld [vmem:[#allocation2 + $0x2618] sm:$0xf0]  ;;  %v17066_v48 = vld [vmem:[#allocation6] sm:$0xff]  ;;  %v17083_v21 = vld [vmem:[#allocation6 + $0x88] sm:$0xff] }
 0x511   :  { %9923 = vmatpush.bf16.msrb.mxu1 %v15305_v62  ;;  %9936 = vmatpush.bf16.msrb.mxu2 %v15433_v20  ;;  %v9684_v40 = vadd.f32 %v9683_v36, %v9671_v28  ;;  %v17007_v62 = vld [vmem:[#allocation2 + $0x262c] sm:$0xf]  ;;  %v15366_v20 = vld [vmem:[#allocation2 + $0x2638] sm:$0xf0]  ;;  %v17757_v36 = vld [vmem:[#allocation4] sm:$0xf] }
 0x512   :  { %9949 = vmatpush.bf16.msrb.mxu3 %v15561_v2  ;;  %v15113_v2 = vor.u32 %v16943_v58, %v15110_v10  ;;  %v15369_v11 = vor.u32 %v17007_v62, %v15366_v20  ;;  %v17079_v28 = vld [vmem:[#allocation6 + $0x68] sm:$0xff]  ;;  %v9966_v3 = vperm.slane %v17757_v36, 0  ;;  %v9967_v50 = vperm.slane %v17757_v36, 1  ;;  %v17086_v10 = vld [vmem:[#allocation6 + $0xa0] sm:$0xff]  ;;  %v17085_v20 = vld [vmem:[#allocation6 + $0x98] sm:$0xff] }
 0x513   :  { %9911 = vmatpush.bf16.msrb.mxu0 %v15161_v15  ;;  %v17749_v56 = vadd.f32 %v9696_v45, %v9684_v40  ;;  %v17003_v15 = vld [vmem:[#allocation2 + $0x260c] sm:$0xf]  ;;  %v9685_v17 = vpop.f32.mrf.mxu2  ;;  %v17076_v40 = vld [vmem:[#allocation6 + $0x50] sm:$0xff]  ;;  %v17074_v61 = vld [vmem:[#allocation6 + $0x40] sm:$0xff] }
 0x514   :  { %v17075_v55 = vld [vmem:[#allocation6 + $0x48] sm:$0xff] }
 0x515   :  { %9924 = vmatpush.bf16.msrb.mxu1 %v15289_v25  ;;  %9937 = vmatpush.bf16.msrb.mxu2 %v15417_v32  ;;  %v9961_v41 = vmax.f32 %v17660_v12, %v17749_v56  ;;  %v17035_v25 = vld [vmem:[#allocation2 + $0x270c] sm:$0xf]  ;;  %v15478_v32 = vld [vmem:[#allocation2 + $0x2718] sm:$0xf0] }
 0x516   :  { %9950 = vmatpush.bf16.msrb.mxu3 %v15545_v13  ;;  %v9698_v18 = vpop.f32.mrf.mxu3  ;;  %v15353_v13 = vor.u32 %v17003_v15, %v15350_v6  ;;  %v15481_v47 = vor.u32 %v17035_v25, %v15478_v32 }
 0x517   :  { %9912 = vmatpush.bf16.msrb.mxu0 %v15145_v19  ;;  %v17071_v19 = vld [vmem:[#allocation6 + $0x28] sm:$0xff] }
 0x519   :  { %9925 = vmatpush.bf16.msrb.mxu1 %v15273_v30  ;;  %9938 = vmatpush.bf16.msrb.mxu2 %v15401_v31  ;;  %v17070_v30 = vld [vmem:[#allocation6 + $0x20] sm:$0xff] }
 0x51a   :  { %9951 = vmatpush.bf16.msrb.mxu3 %v15529_v35  ;;  %v17077_v35 = vld [vmem:[#allocation6 + $0x58] sm:$0xff] }
 0x51b   :  { %9913 = vmatpush.bf16.msrb.mxu0 %v15129_v54  ;;  %v9974_v54 = vadd.f32 %v9966_v3, %v9960_v9  ;;  %v17084_v9 = vld [vmem:[#allocation6 + $0x90] sm:$0xff] }
 0x51d   :  { %9926 = vmatpush.bf16.msrb.mxu1 %v15257_v39  ;;  %9939 = vmatpush.bf16.msrb.mxu2 %v15385_v8  ;;  %v9975_v8 = vadd.f32 %v9967_v50, %v9961_v41 }
 0x51e   :  { %9952 = vmatpush.bf16.msrb.mxu3 %v15513_v24  ;;  %v9978_v24 = vmax.f32 %v9974_v54, 0.0 }
 0x51f   :  { %9914 = vmatpush.bf16.msrb.mxu0 %v15113_v2  ;;  %v9979_v62 = vmax.f32 %v9975_v8, 0.0 }
 0x520   :  { %v9982_v53 = vpack.c.bf16 %v9978_v24, %v9978_v24 }
 0x521   :  { %9927 = vmatpush.bf16.msrb.mxu1 %v15241_v27  ;;  %9940 = vmatpush.bf16.msrb.mxu2 %v15369_v11  ;;  %v9983_v0 = vpack.c.bf16 %v9979_v62, %v9979_v62 }
 0x522   :  { %9953 = vmatpush.bf16.msrb.mxu3 %v15497_v60 }
 0x523   :  { %9915 = vmatpush.bf16.msrb.mxu0 %v15097_v43  ;;  %v9709_v31 = vpop.f32.mrf.mxu0 }
 0x525   :  { %9928 = vmatpush.bf16.msrb.mxu1 %v15225_v57  ;;  %9941 = vmatpush.bf16.msrb.mxu2 %v15353_v13  ;;  %v9722_v34 = vpop.f32.mrf.mxu1  ;;  %v9968_v13 = vperm.slane %v17757_v36, 2 }
 0x526   :  { %9954 = vmatpush.bf16.msrb.mxu3 %v15481_v47  ;;  %9916 = vmatmul.bf16.vlgmr.msrb.gmra.mxu0 %v17441_v38  ;;  %v17089_v38 = vld [vmem:[#allocation6 + $0xb8] sm:$0xff]  ;;  %v9723_v41 = vadd.f32 %v9722_v34, %v9709_v31 }
 0x527   :  { %10246 = vmatpush.bf16.msra.mxu0 %v17073_v23 }
 0x528   :  { %9929 = vmatmul.bf16.vlgmr.msrb.gmra.mxu1 %v17445_v42  ;;  %9942 = vmatmul.bf16.vlgmr.msrb.gmra.mxu2 %v17456_v22 }
 0x529   :  { %10259 = vmatpush.bf16.msra.mxu1 %v17081_v46  ;;  %9955 = vmatmul.bf16.vlgmr.msrb.gmra.mxu3 %v17458_v26  ;;  %v17088_v26 = vld [vmem:[#allocation6 + $0xb0] sm:$0xff] }
 0x52a   :  { %10272 = vmatpush.bf16.msra.mxu2 %v17089_v38 }
 0x52b   :  { %10247 = vmatpush.bf16.msra.mxu0 %v17072_v29  ;;  %v9735_v42 = vpop.f32.mrf.mxu2  ;;  %v9711_v49 = vpop.f32.mrf.mxu0 }
 0x52c   :  { %v9736_v27 = vadd.f32 %v9735_v42, %v9723_v41  ;;  %v17093_v42 = vld [vmem:[#allocation6 + $0xd8] sm:$0xff] }
 0x52d   :  { %10260 = vmatpush.bf16.msra.mxu1 %v17080_v59  ;;  %v9724_v45 = vpop.f32.mrf.mxu1 }
 0x52e   :  { %v9748_v22 = vpop.f32.mrf.mxu3  ;;  %10273 = vmatpush.bf16.msra.mxu2 %v17088_v26  ;;  %v17092_v26 = vld [vmem:[#allocation6 + $0xd0] sm:$0xff] }
 0x52f   :  { %10248 = vmatpush.bf16.msra.mxu0 %v17071_v19  ;;  %v9749_v7 = vadd.f32 %v9748_v22, %v9736_v27  ;;  %v17097_v19 = vld [vmem:[#allocation6 + $0xf8] sm:$0xff] }
 0x530   :  { %10285 = vmatpush.bf16.msra.mxu3 %v17097_v19  ;;  %v17110_v19 = vld [vmem:[#allocation12 + $0x20] sm:$0xff] }
 0x531   :  { %10261 = vmatpush.bf16.msra.mxu1 %v17079_v28 }
 0x532   :  { %10274 = vmatpush.bf16.msra.mxu2 %v17087_v51  ;;  %v17090_v51 = vld [vmem:[#allocation6 + $0xc0] sm:$0xff] }
 0x533   :  { %10249 = vmatpush.bf16.msra.mxu0 %v17070_v30  ;;  %v9737_v39 = vpop.f32.mrf.mxu2 }
 0x535   :  { %10262 = vmatpush.bf16.msra.mxu1 %v17078_v33  ;;  %v17096_v33 = vld [vmem:[#allocation6 + $0xf0] sm:$0xff] }
 0x536   :  { %v9750_v58 = vpop.f32.mrf.mxu3  ;;  %10275 = vmatpush.bf16.msra.mxu2 %v17086_v10  ;;  %10286 = vmatpush.bf16.msra.mxu3 %v17096_v33 }
 0x537   :  { %10250 = vmatpush.bf16.msra.mxu0 %v17069_v1  ;;  %v17095_v1 = vld [vmem:[#allocation6 + $0xe8] sm:$0xff] }
 0x539   :  { %10263 = vmatpush.bf16.msra.mxu1 %v17077_v35  ;;  %v17094_v35 = vld [vmem:[#allocation6 + $0xe0] sm:$0xff] }
 0x53a   :  { %10276 = vmatpush.bf16.msra.mxu2 %v17085_v20  ;;  %10287 = vmatpush.bf16.msra.mxu3 %v17095_v1 }
 0x53b   :  { %10251 = vmatpush.bf16.msra.mxu0 %v17068_v37 }
 0x53d   :  { %10264 = vmatpush.bf16.msra.mxu1 %v17076_v40  ;;  %v17091_v40 = vld [vmem:[#allocation6 + $0xc8] sm:$0xff] }
 0x53e   :  { %10277 = vmatpush.bf16.msra.mxu2 %v17084_v9  ;;  %10288 = vmatpush.bf16.msra.mxu3 %v17094_v35  ;;  %v17107_v35 = vld [vmem:[#allocation12 + $0x8] sm:$0xff] }
 0x53f   :  { %10252 = vmatpush.bf16.msra.mxu0 %v17067_v52 }
 0x541   :  { %10265 = vmatpush.bf16.msra.mxu1 %v17075_v55 }
 0x542   :  { %10278 = vmatpush.bf16.msra.mxu2 %v17083_v21  ;;  %10289 = vmatpush.bf16.msra.mxu3 %v17093_v42  ;;  %v17106_v42 = vld [vmem:[#allocation12] sm:$0xff] }
 0x543   :  { %10253 = vmatpush.bf16.msra.mxu0 %v17066_v48  ;;  %v9761_v12 = vpop.f32.mrf.mxu0 }
 0x544   :  { %v9762_v15 = vadd.f32 %v9761_v12, %v9749_v7 }
 0x545   :  { %10266 = vmatpush.bf16.msra.mxu1 %v17074_v61  ;;  %v9774_v56 = vpop.f32.mrf.mxu1 }
 0x546   :  { %10254 = vmatmul.bf16.vlgmr.msra.gmra.mxu0 %v9982_v53  ;;  %10279 = vmatpush.bf16.msra.mxu2 %v17082_v4  ;;  %v9775_v6 = vadd.f32 %v9774_v56, %v9762_v15  ;;  %v9969_v56 = vperm.slane %v17757_v36, 3  ;;  %v17126_v4 = vld [vmem:[#allocation7] ss:$0 sm:$0xff]  ;;  %v17103_v36 = vld [vmem:[#allocation9 + $0x28] sm:$0xff] }
 0x547   :  { %10290 = vmatpush.bf16.msra.mxu3 %v17092_v26 }
 0x548   :  { %10267 = vmatmul.bf16.vlgmr.msra.gmra.mxu1 %v9983_v0 }
 0x54b   :  { %v9787_v63 = vpop.f32.mrf.mxu2  ;;  %v9763_v11 = vpop.f32.mrf.mxu0  ;;  %10291 = vmatpush.bf16.msra.mxu3 %v17091_v40  ;;  %v17128_v40 = vld [vmem:[#allocation13] ss:$0 sm:$0xff] }
 0x54c   :  { %v9788_v17 = vadd.f32 %v9787_v63, %v9775_v6 }
 0x54d   :  { %v9776_v44 = vpop.f32.mrf.mxu1 }
 0x54e   :  { %v9800_v2 = vpop.f32.mrf.mxu3 }
 0x54f   :  { %v9801_v25 = vadd.f32 %v9800_v2, %v9788_v17  ;;  %10292 = vmatpush.bf16.msra.mxu3 %v17090_v51  ;;  %v17105_v17 = vld [vmem:[#allocation9 + $0x38] sm:$0xff] }
 0x550   :  { %10368 = vmatpush.bf16.msrb.mxu0 %v17105_v17 }
 0x553   :  { %v9789_v60 = vpop.f32.mrf.mxu2 }
 0x556   :  { %v9802_v14 = vpop.f32.mrf.mxu3 }
 0x563   :  { %v9813_v32 = vpop.f32.mrf.mxu0 }
 0x564   :  { %v9814_v18 = vadd.f32 %v9813_v32, %v9801_v25  ;;  %v17104_v25 = vld [vmem:[#allocation9 + $0x30] sm:$0xff]  ;;  %v17101_v32 = vld [vmem:[#allocation9 + $0x18] sm:$0xff] }
 0x565   :  { %v9826_v43 = vpop.f32.mrf.mxu1  ;;  %10369 = vmatpush.bf16.msrb.mxu0 %v17104_v25 }
 0x566   :  { %v9827_v57 = vadd.f32 %v9826_v43, %v9814_v18  ;;  %v17100_v18 = vld [vmem:[#allocation9 + $0x10] sm:$0xff] }
 0x568   :  { %v9962_v47 = vmax.f32 %v17683_v16, %v9827_v57 }
 0x569   :  { %10370 = vmatpush.bf16.msrb.mxu0 %v17103_v36 }
 0x56a   :  { %v9976_v23 = vadd.f32 %v9968_v13, %v9962_v47  ;;  %v17099_v47 = vld [vmem:[#allocation9 + $0x8] sm:$0xff] }
 0x56b   :  { %v9839_v46 = vpop.f32.mrf.mxu2  ;;  %v9815_v59 = vpop.f32.mrf.mxu0 }
 0x56c   :  { %v9980_v28 = vmax.f32 %v9976_v23, 0.0  ;;  %v17098_v23 = vld [vmem:[#allocation9] sm:$0xff]  ;;  %v17111_v59 = vld [vmem:[#allocation12 + $0x28] sm:$0xff] }
 0x56d   :  { %v9828_v30 = vpop.f32.mrf.mxu1 }
 0x56e   :  { %v9852_v29 = vpop.f32.mrf.mxu3  ;;  %v9984_v31 = vpack.c.bf16 %v9980_v28, %v9980_v28  ;;  %v17109_v28 = vld [vmem:[#allocation12 + $0x18] sm:$0xff]  ;;  %v17108_v30 = vld [vmem:[#allocation12 + $0x10] sm:$0xff] }
 0x56f   :  { %v9853_v50 = vadd.f32 %v9852_v29, %v9839_v46  ;;  %v17113_v46 = vld [vmem:[#allocation12 + $0x38] sm:$0xff]  ;;  %v17112_v29 = vld [vmem:[#allocation12 + $0x30] sm:$0xff] }
 0x570   :  { %10280 = vmatmul.bf16.vlgmr.msra.gmra.mxu2 %v9984_v31  ;;  %10451 = vmatpush.bf16.msrb.mxu1 %v17113_v46 }
 0x573   :  { %v9841_v34 = vpop.f32.mrf.mxu2 }
 0x574   :  { %10452 = vmatpush.bf16.msrb.mxu1 %v17112_v29 }
 0x576   :  { %v9854_v38 = vpop.f32.mrf.mxu3 }
 0x578   :  { %10453 = vmatpush.bf16.msrb.mxu1 %v17111_v59 }
 0x57c   :  { %10454 = vmatpush.bf16.msrb.mxu1 %v17110_v19 }
 0x580   :  { %10455 = vmatpush.bf16.msrb.mxu1 %v17109_v28 }
 0x583   :  { %v9865_v16 = vpop.f32.mrf.mxu0 }
 0x584   :  { %v9866_v55 = vadd.f32 %v9865_v16, %v9853_v50  ;;  %10456 = vmatpush.bf16.msrb.mxu1 %v17108_v30  ;;  %v17127_v16 = vld [vmem:[#allocation10] ss:$0 sm:$0xff] }
 0x585   :  { %v9878_v22 = vpop.f32.mrf.mxu1 }
 0x586   :  { %v9879_v39 = vadd.f32 %v9878_v22, %v9866_v55 }
 0x588   :  { %10457 = vmatpush.bf16.msrb.mxu1 %v17107_v35 }
 0x58b   :  { %v9891_v37 = vpop.f32.mrf.mxu2  ;;  %v9867_v3 = vpop.f32.mrf.mxu0 }
 0x58c   :  { %v9892_v8 = vadd.f32 %v9891_v37, %v9879_v39  ;;  %10458 = vmatpush.bf16.msrb.mxu1 %v17106_v42 }
 0x58d   :  { %v9880_v45 = vpop.f32.mrf.mxu1 }
 0x58e   :  { %v9904_v49 = vpop.f32.mrf.mxu3 }
 0x58f   :  { %v9905_v58 = vadd.f32 %v9904_v49, %v9892_v8 }
 0x593   :  { %v9893_v52 = vpop.f32.mrf.mxu2 }
 0x596   :  { %v9906_v54 = vpop.f32.mrf.mxu3 }
 0x5a3   :  { %v9917_v10 = vpop.f32.mrf.mxu0 }
 0x5a4   :  { %v9918_v24 = vadd.f32 %v9917_v10, %v9905_v58 }
 0x5a5   :  { %v9930_v48 = vpop.f32.mrf.mxu1 }
 0x5a6   :  { %v9931_v61 = vadd.f32 %v9930_v48, %v9918_v24 }
 0x5ab   :  { %v9943_v62 = vpop.f32.mrf.mxu2  ;;  %v9919_v0 = vpop.f32.mrf.mxu0 }
 0x5ac   :  { %v9944_v20 = vadd.f32 %v9943_v62, %v9931_v61  ;;  %v9956_v53 = vpop.f32.mrf.mxu3 }
 0x5ad   :  { %v9932_v12 = vpop.f32.mrf.mxu1 }
 0x5ae   :  { %v9957_v9 = vadd.f32 %v9956_v53, %v9944_v20 }
 0x5b0   :  { %v9963_v41 = vmax.f32 %v17702_v5, %v9957_v9  ;;  %v17102_v5 = vld [vmem:[#allocation9 + $0x20] sm:$0xff] }
 0x5b1   :  { %10371 = vmatpush.bf16.msrb.mxu0 %v17102_v5 }
 0x5b2   :  { %v9977_v21 = vadd.f32 %v9969_v56, %v9963_v41 }
 0x5b3   :  { %v9945_v63 = vpop.f32.mrf.mxu2 }
 0x5b4   :  { %v9981_v2 = vmax.f32 %v9977_v21, 0.0  ;;  %v9958_v27 = vpop.f32.mrf.mxu3 }
 0x5b5   :  { %10372 = vmatpush.bf16.msrb.mxu0 %v17101_v32 }
 0x5b6   :  { %v9985_v11 = vpack.c.bf16 %v9981_v2, %v9981_v2 }
 0x5b8   :  { %10293 = vmatmul.bf16.vlgmr.msra.gmra.mxu3 %v9985_v11 }
 0x5b9   :  { %10373 = vmatpush.bf16.msrb.mxu0 %v17100_v18 }
 0x5bd   :  { %10374 = vmatpush.bf16.msrb.mxu0 %v17099_v47 }
 0x5c1   :  { %10375 = vmatpush.bf16.msrb.mxu0 %v17098_v23 }
 0x5c3   :  { %v10255_v44 = vpop.f32.mrf.mxu0 }
 0x5c4   :  { %v10256_v7 = vadd.f32 %v17126_v4, %v10255_v44 }
 0x5c5   :  { %v10268_v60 = vpop.f32.mrf.mxu1 }
 0x5c6   :  { %v10269_v14 = vadd.f32 %v10268_v60, %v10256_v7 }
 0x5cb   :  { %v10257_v15 = vpop.f32.mrf.mxu0 }
 0x5cd   :  { %v10270_v6 = vpop.f32.mrf.mxu1 }
 0x5f3   :  { %v10281_v43 = vpop.f32.mrf.mxu2 }
 0x5f4   :  { %v10282_v57 = vadd.f32 %v10281_v43, %v10269_v14 }
 0x5fb   :  { %v10283_v13 = vpop.f32.mrf.mxu2 }
 0x63b   :  { %v10294_v31 = vpop.f32.mrf.mxu3 }
 0x63c   :  { %v10295_v33 = vadd.f32 %v10294_v31, %v10282_v57 }
 0x63e   :  { %v10298_v34 = vmax.f32 %v10295_v33, 0.0 }
 0x640   :  { %v10299_v1 = vpack.c.bf16 %v10298_v34, %v10298_v34 }
 0x642   :  { %10376 = vmatmul.bf16.vlgmr.msrb.gmra.mxu0 %v10299_v1 }
 0x643   :  { %v10296_v38 = vpop.f32.mrf.mxu3 }
 0x6bf   :  { %v10377_v22 = vpop.f32.mrf.mxu0 }
 0x6c0   :  { %v10378_v26 = vadd.f32 %v17127_v16, %v10377_v22 }
 0x6c2   :  { %v10381_v37 = vmax.f32 %v10378_v26, 0.0 }
 0x6c4   :  { %v10382_v49 = vpack.c.bf16 %v10381_v37, %v10381_v37 }
 0x6c6   :  { %10459 = vmatmul.bf16.vlgmr.msrb.gmra.mxu1 %v10382_v49 }
 0x6c7   :  { %v10379_v3 = vpop.f32.mrf.mxu0 }
 0x743   :  { %v10460_v45 = vpop.f32.mrf.mxu1 }
 0x744   :  { %v10461_v50 = vadd.f32 %v17128_v40, %v10460_v45 }
 0x746   :  { %10464 = vst [vmem:[%s17783_s9] sm:$0xff] %v10461_v50 }
 0x74b   :  { %v10462_v51 = vpop.f32.mrf.mxu1 }
 0x74c   :  { %10469 = vsyncpa [#allocation3], 1 }
 0x74d   :  { %10470 = vsyncpa [#allocation5], 1 }
 0x74e   :  { %10471 = vsyncpa [#allocation8], 1 }
 0x74f   :  { %10472 = vsyncpa [#allocation11], 1 }
 0x750   :  { %10473 = vsyncpa [#allocation14], 1 }

</bundles_post_ra>
